<compile_context>
chip_gen: v7x
topology: tpu7x:2x2x1
jax: 0.10.0
libtpu: 0.0.40
codegen_flags: <defaults>
</compile_context>

<pallas_src>
import functools
import math

import jax
import jax.numpy as jnp
from jax.experimental import pallas as pl
from jax.experimental.pallas import tpu as pltpu


# ---------------------------------------------------------------------------
# In-kernel helpers (pure jnp, traced inside the Pallas kernel body)
# ---------------------------------------------------------------------------
_SQRT_2_OVER_PI = 0.7978845608028654


def _gelu_tanh(x):
    # tanh-form GELU: one EUP tanh + a few VALU ops (vs ~12 VALU ops + exp for an
    # erf polynomial). Max abs deviation from exact GELU ~3e-3, inside tolerance.
    return 0.5 * x * (1.0 + jnp.tanh(_SQRT_2_OVER_PI * (x + 0.044715 * (x * x * x))))


def _grouped_layer_norm(x, is_class, gamma, beta, eps):
    # x: (M, D) f32. Rows flagged as class tokens pass through untouched; others
    # are normalized over D with UNBIASED std (torch.std default) and eps added
    # to the std (not the variance).
    D = x.shape[-1]
    mean = jnp.mean(x, axis=-1, keepdims=True)
    diff = x - mean
    var_unbiased = jnp.sum(diff * diff, axis=-1, keepdims=True) * (1.0 / (D - 1))
    inv = pl.reciprocal(jnp.sqrt(var_unbiased) + eps, approx=True)   # EUP, not VALU
    normed = diff * inv * gamma + beta
    return jnp.where(is_class, x, normed)


# ---------------------------------------------------------------------------
# Pallas kernel: one full encoder block for Bt flattened sequences
# ---------------------------------------------------------------------------
def _encoder_block_kernel(x_ref, g1_ref, be1_ref, wqkv_ref, bqkv_ref,
                          wo_ref, bo_ref, g2_ref, be2_ref,
                          w1_ref, b1_ref, w2_ref, b2_ref, out_ref,
                          *, num_heads, eps, seqs_per_block, seq_len):
    M, D = x_ref.shape                       # M = seqs_per_block * seq_len
    hd = D // num_heads
    scale = 1.0 / math.sqrt(hd)

    x = x_ref[...].astype(jnp.float32)       # (M, D); residual path stays f32

    # ---- per-row bookkeeping (sequence id & class-token mask, no int division) ----
    row = jax.lax.broadcasted_iota(jnp.int32, (M, 1), 0)
    col = jax.lax.broadcasted_iota(jnp.int32, (1, M), 1)
    seq_row = jnp.zeros((M, 1), jnp.int32)
    seq_col = jnp.zeros((1, M), jnp.int32)
    for b in range(1, seqs_per_block):       # static unroll: a few VALU cmps/adds
        seq_row = seq_row + (row >= b * seq_len).astype(jnp.int32)
        seq_col = seq_col + (col >= b * seq_len).astype(jnp.int32)
    is_class = (row - seq_row * seq_len) == (seq_len - 1)             # (M, 1)
    # Block-diagonal additive bias: tokens only attend within their own sequence.
    attn_bias = jnp.where(seq_row == seq_col, 0.0, -1e30).astype(jnp.float32)

    # ---- GroupedLayerNorm 1 + fused QKV projection ----
    h1 = _grouped_layer_norm(x, is_class, g1_ref[...], be1_ref[...], eps)
    qkv = jnp.dot(h1.astype(jnp.bfloat16), wqkv_ref[...],
                  preferred_element_type=jnp.float32) + bqkv_ref[...]  # (M, 3D) f32

    # ---- multi-head self-attention (per-sequence via the additive mask) ----
    attn = jnp.zeros((M, D), jnp.float32)
    for hh in range(num_heads):              # static unroll over heads
        lo = hh * hd
        q_h = (qkv[:, lo:lo + hd] * scale).astype(jnp.bfloat16)        # (M, hd)
        k_h = qkv[:, D + lo:D + lo + hd].astype(jnp.bfloat16)
        v_h = qkv[:, 2 * D + lo:2 * D + lo + hd].astype(jnp.bfloat16)
        s = jax.lax.dot_general(q_h, k_h, (((1,), (1,)), ((), ())),
                                preferred_element_type=jnp.float32)    # (M, M)
        s = s + attn_bias
        s = s - jnp.max(s, axis=-1, keepdims=True)
        p = jnp.exp(s)
        p = p * pl.reciprocal(jnp.sum(p, axis=-1, keepdims=True), approx=True)
        o_h = jnp.dot(p.astype(jnp.bfloat16), v_h,
                      preferred_element_type=jnp.float32)              # (M, hd)
        # Fuse "concat heads -> @ Wo" into a per-head Wo row-slice matmul + sum
        # (removes the lane-axis concatenate entirely).
        attn = attn + jnp.dot(o_h.astype(jnp.bfloat16), wo_ref[lo:lo + hd, :],
                              preferred_element_type=jnp.float32)
    x1 = x + attn + bo_ref[...]              # residual 1

    # ---- GroupedLayerNorm 2 + MLP ----
    h2 = _grouped_layer_norm(x1, is_class, g2_ref[...], be2_ref[...], eps)
    m = jnp.dot(h2.astype(jnp.bfloat16), w1_ref[...],
                preferred_element_type=jnp.float32) + b1_ref[...]
    m = _gelu_tanh(m)
    m = jnp.dot(m.astype(jnp.bfloat16), w2_ref[...],
                preferred_element_type=jnp.float32) + b2_ref[...]
    m = _gelu_tanh(m)
    # TODO(synk): training-mode Dropout(0.2) masks not implemented (eval = identity).

    out_ref[...] = (x1 + m).astype(out_ref.dtype)   # residual 2


# ---------------------------------------------------------------------------
# Wrapper
# ---------------------------------------------------------------------------
def _pick_block_b(B, L_total, target):
    # Prefer a batch block whose flattened row count is a multiple of 8 (sublane
    # tile) and that divides B exactly; otherwise fall back to the full batch
    # (a block equal to the full array dims is always legal).
    for bt in range(min(target, B), 0, -1):
        if B % bt == 0 and (bt * L_total) % 8 == 0:
            return bt
    return B


def transformer_encoder_block(x, params, *, num_heads, eps=1e-5, block_b=8):
    B, L_total, D = x.shape
    assert L_total % 2 == 1, "expects 2*L user tokens + 1 class token"
    assert D % num_heads == 0
    H = params["w1_t"].shape[1]

    Bt = _pick_block_b(B, L_total, block_b)
    Mb = Bt * L_total
    n_blocks = B // Bt

    # Flatten (B, L_total, D) -> (B*L_total, D) outside the kernel (contiguous,
    # free); the kernel then only touches lane-last 2-D slabs.
    x2d = x.reshape(B * L_total, D)

    # Fused QKV weight/bias; matmul weights in bf16 (MXU-native), f32 accumulate.
    wqkv = jnp.concatenate([params["wq_t"], params["wk_t"], params["wv_t"]],
                           axis=1).astype(jnp.bfloat16)                 # (D, 3D)
    bqkv = jnp.concatenate([params["bq"], params["bk"], params["bv"]],
                           axis=1).astype(jnp.float32)                  # (1, 3D)
    wo = params["wo_t"].astype(jnp.bfloat16)
    w1 = params["w1_t"].astype(jnp.bfloat16)
    w2 = params["w2_t"].astype(jnp.bfloat16)

    def full_spec(shape):
        return pl.BlockSpec(shape, lambda i, n=len(shape): (0,) * n)

    in_specs = [
        pl.BlockSpec((Mb, D), lambda i: (i, 0)),            # x slab
        full_spec((1, D)), full_spec((1, D)),               # gamma1, beta1
        full_spec((D, 3 * D)), full_spec((1, 3 * D)),       # Wqkv^T, bqkv
        full_spec((D, D)), full_spec((1, D)),               # Wo^T, bo
        full_spec((1, D)), full_spec((1, D)),               # gamma2, beta2
        full_spec((D, H)), full_spec((1, H)),               # W1^T, b1
        full_spec((H, D)), full_spec((1, D)),               # W2^T, b2
    ]

    kernel = functools.partial(_encoder_block_kernel, num_heads=num_heads,
                               eps=eps, seqs_per_block=Bt, seq_len=L_total)

    # TODO(synk): for production-size D/H on v7x (64 MiB VMEM) set vmem_limit_bytes
    # and tile the FFN contraction with an extra "arbitrary" grid axis instead of
    # keeping W1/W2 fully resident.
    out2d = pl.pallas_call(
        kernel,
        out_shape=jax.ShapeDtypeStruct((B * L_total, D), x.dtype),
        grid=(n_blocks,),
        in_specs=in_specs,
        out_specs=pl.BlockSpec((Mb, D), lambda i: (i, 0)),
        compiler_params=pltpu.CompilerParams(
            dimension_semantics=("parallel",)),     # shards across v7x's 2 TCs
    )(x2d, params["gamma1"], params["beta1"], wqkv, bqkv, wo, params["bo"],
      params["gamma2"], params["beta2"], w1, params["b1"], w2, params["b2"])

    return out2d.reshape(B, L_total, D)


# ---------------------------------------------------------------------------
# Deterministic parameter init (shapes follow the PyTorch module's __init__)
# ---------------------------------------------------------------------------
def init_params(key, D, H):
    ks = jax.random.split(key, 6)
    s = 0.02
    in_proj_w = jax.random.normal(ks[0], (3 * D, D), jnp.float32) * s   # MHA in_proj_weight
    in_proj_b = jax.random.normal(ks[1], (3 * D,), jnp.float32) * s
    out_proj_w = jax.random.normal(ks[2], (D, D), jnp.float32) * s
    out_proj_b = jnp.zeros((D,), jnp.float32)
    w1 = jax.random.normal(ks[3], (H, D), jnp.float32) * s              # nn.Linear(D, H)
    b1 = jax.random.normal(ks[4], (H,), jnp.float32) * s
    w2 = jax.random.normal(ks[5], (D, H), jnp.float32) * s              # nn.Linear(H, D)
    b2 = jnp.zeros((D,), jnp.float32)
    return dict(
        gamma1=jnp.ones((1, D), jnp.float32), beta1=jnp.zeros((1, D), jnp.float32),
        wq_t=in_proj_w[:D].T, wk_t=in_proj_w[D:2 * D].T, wv_t=in_proj_w[2 * D:].T,
        bq=in_proj_b[:D].reshape(1, D), bk=in_proj_b[D:2 * D].reshape(1, D),
        bv=in_proj_b[2 * D:].reshape(1, D),
        wo_t=out_proj_w.T, bo=out_proj_b.reshape(1, D),
        gamma2=jnp.ones((1, D), jnp.float32), beta2=jnp.zeros((1, D), jnp.float32),
        w1_t=w1.T, b1=b1.reshape(1, H),
        w2_t=w2.T, b2=b2.reshape(1, D),
    )


# ---------------------------------------------------------------------------
# Pure-JAX reference (exact erf GELU, f32 matmuls) for a sanity check
# ---------------------------------------------------------------------------
def _reference(x, params, *, num_heads, eps=1e-5):
    def gln(xb, gamma, beta):
        L_total, D = xb.shape
        mean = xb.mean(-1, keepdims=True)
        var = ((xb - mean) ** 2).sum(-1, keepdims=True) / (D - 1)
        normed = (xb - mean) / (jnp.sqrt(var) + eps) * gamma + beta
        rr = jnp.arange(L_total)[:, None]
        return jnp.where(rr < L_total - 1, normed, xb)

    def per_batch(xb):
        D = xb.shape[-1]
        hd = D // num_heads
        h = gln(xb, params["gamma1"], params["beta1"])
        q = h @ params["wq_t"] + params["bq"]
        k = h @ params["wk_t"] + params["bk"]
        v = h @ params["wv_t"] + params["bv"]
        outs = []
        for hh in range(num_heads):
            qh, kh, vh = (t[:, hh * hd:(hh + 1) * hd] for t in (q, k, v))
            p = jax.nn.softmax(qh @ kh.T / math.sqrt(hd), axis=-1)
            outs.append(p @ vh)
        attn = jnp.concatenate(outs, -1) @ params["wo_t"] + params["bo"]
        x1 = xb + attn
        h2 = gln(x1, params["gamma2"], params["beta2"])
        m = jax.nn.gelu(h2 @ params["w1_t"] + params["b1"], approximate=False)
        m = jax.nn.gelu(m @ params["w2_t"] + params["b2"], approximate=False)
        return x1 + m

    return jax.vmap(per_batch)(x)


if __name__ == "__main__":
    B, L, D, H, num_heads = 16, 8, 32, 64, 4
    L_total = 2 * L + 1                      # 2 user groups + class token = 17

    key = jax.random.PRNGKey(0)
    kx, kp = jax.random.split(key)
    x = jax.random.normal(kx, (B, L_total, D), jnp.float32)
    params = init_params(kp, D, H)

    out = jax.block_until_ready(transformer_encoder_block(x, params, num_heads=num_heads))
    ref = jax.block_until_ready(_reference(x, params, num_heads=num_heads))

    assert out.shape == (B, L_total, D)
    assert bool(jnp.all(jnp.isfinite(out)))
    max_err = float(jnp.max(jnp.abs(out - ref)))
    # bf16 matmuls + tanh GELU + approx reciprocals vs f32/exact reference.
    assert bool(jnp.allclose(out, ref, atol=2e-2, rtol=2e-2)), f"max abs err {max_err}"
    print("KERNEL_OK")
</pallas_src>

<mosaic_0001>
module attributes {stable_mosaic.version = 11 : i64} {
  func.func @_encoder_block_kernel(%arg0: i32, %arg1: memref<136x32xf32, #tpu.memory_space<vmem>>, %arg2: memref<1x32xf32, #tpu.memory_space<vmem>>, %arg3: memref<1x32xf32, #tpu.memory_space<vmem>>, %arg4: memref<32x96xbf16, #tpu.memory_space<vmem>>, %arg5: memref<1x96xf32, #tpu.memory_space<vmem>>, %arg6: memref<32x32xbf16, #tpu.memory_space<vmem>>, %arg7: memref<1x32xf32, #tpu.memory_space<vmem>>, %arg8: memref<1x32xf32, #tpu.memory_space<vmem>>, %arg9: memref<1x32xf32, #tpu.memory_space<vmem>>, %arg10: memref<32x64xbf16, #tpu.memory_space<vmem>>, %arg11: memref<1x64xf32, #tpu.memory_space<vmem>>, %arg12: memref<64x32xbf16, #tpu.memory_space<vmem>>, %arg13: memref<1x32xf32, #tpu.memory_space<vmem>>, %arg14: memref<136x32xf32, #tpu.memory_space<vmem>>) attributes {dimension_semantics = [#tpu.dimension_semantics<parallel>], iteration_bounds = array<i64: 2>, scalar_prefetch = 0 : i64, scratch_operands = 0 : i64, tpu.core_type = #tpu.core_type<tc>, window_params = [{transform_indices = @transform_0, window_bounds = array<i64: 136, 32>}, {pipeline_mode = #tpu.pipeline_mode<synchronous>, transform_indices = @transform_1, window_bounds = array<i64: 1, 32>}, {pipeline_mode = #tpu.pipeline_mode<synchronous>, transform_indices = @transform_2, window_bounds = array<i64: 1, 32>}, {pipeline_mode = #tpu.pipeline_mode<synchronous>, transform_indices = @transform_3, window_bounds = array<i64: 32, 96>}, {pipeline_mode = #tpu.pipeline_mode<synchronous>, transform_indices = @transform_4, window_bounds = array<i64: 1, 96>}, {pipeline_mode = #tpu.pipeline_mode<synchronous>, transform_indices = @transform_5, window_bounds = array<i64: 32, 32>}, {pipeline_mode = #tpu.pipeline_mode<synchronous>, transform_indices = @transform_6, window_bounds = array<i64: 1, 32>}, {pipeline_mode = #tpu.pipeline_mode<synchronous>, transform_indices = @transform_7, window_bounds = array<i64: 1, 32>}, {pipeline_mode = #tpu.pipeline_mode<synchronous>, transform_indices = @transform_8, window_bounds = array<i64: 1, 32>}, {pipeline_mode = #tpu.pipeline_mode<synchronous>, transform_indices = @transform_9, window_bounds = array<i64: 32, 64>}, {pipeline_mode = #tpu.pipeline_mode<synchronous>, transform_indices = @transform_10, window_bounds = array<i64: 1, 64>}, {pipeline_mode = #tpu.pipeline_mode<synchronous>, transform_indices = @transform_11, window_bounds = array<i64: 64, 32>}, {pipeline_mode = #tpu.pipeline_mode<synchronous>, transform_indices = @transform_12, window_bounds = array<i64: 1, 32>}, {transform_indices = @transform_13, window_bounds = array<i64: 136, 32>}]} {
    %c0 = arith.constant 0 : index
    %c0_0 = arith.constant 0 : index
    %0 = vector.load %arg1[%c0, %c0_0] : memref<136x32xf32, #tpu.memory_space<vmem>>, vector<136x32xf32>
    %1 = tpu.iota {dimensions = array<i32: 0>} : vector<136x1xi32>
    %2 = tpu.iota {dimensions = array<i32: 1>} : vector<1x136xi32>
    %c0_i32 = arith.constant 0 : i32
    %3 = vector.broadcast %c0_i32 : i32 to vector<136x1xi32>
    %c0_i32_1 = arith.constant 0 : i32
    %4 = vector.broadcast %c0_i32_1 : i32 to vector<1x136xi32>
    %c17_i32 = arith.constant 17 : i32
    %5 = vector.broadcast %c17_i32 : i32 to vector<136x1xi32>
    %6 = arith.cmpi sge, %1, %5 : vector<136x1xi32>
    %7 = arith.extui %6 : vector<136x1xi1> to vector<136x1xi32>
    %8 = arith.addi %3, %7 : vector<136x1xi32>
    %c17_i32_2 = arith.constant 17 : i32
    %9 = vector.broadcast %c17_i32_2 : i32 to vector<1x136xi32>
    %10 = arith.cmpi sge, %2, %9 : vector<1x136xi32>
    %11 = arith.extui %10 : vector<1x136xi1> to vector<1x136xi32>
    %12 = arith.addi %4, %11 : vector<1x136xi32>
    %c34_i32 = arith.constant 34 : i32
    %13 = vector.broadcast %c34_i32 : i32 to vector<136x1xi32>
    %14 = arith.cmpi sge, %1, %13 : vector<136x1xi32>
    %15 = arith.extui %14 : vector<136x1xi1> to vector<136x1xi32>
    %16 = arith.addi %8, %15 : vector<136x1xi32>
    %c34_i32_3 = arith.constant 34 : i32
    %17 = vector.broadcast %c34_i32_3 : i32 to vector<1x136xi32>
    %18 = arith.cmpi sge, %2, %17 : vector<1x136xi32>
    %19 = arith.extui %18 : vector<1x136xi1> to vector<1x136xi32>
    %20 = arith.addi %12, %19 : vector<1x136xi32>
    %c51_i32 = arith.constant 51 : i32
    %21 = vector.broadcast %c51_i32 : i32 to vector<136x1xi32>
    %22 = arith.cmpi sge, %1, %21 : vector<136x1xi32>
    %23 = arith.extui %22 : vector<136x1xi1> to vector<136x1xi32>
    %24 = arith.addi %16, %23 : vector<136x1xi32>
    %c51_i32_4 = arith.constant 51 : i32
    %25 = vector.broadcast %c51_i32_4 : i32 to vector<1x136xi32>
    %26 = arith.cmpi sge, %2, %25 : vector<1x136xi32>
    %27 = arith.extui %26 : vector<1x136xi1> to vector<1x136xi32>
    %28 = arith.addi %20, %27 : vector<1x136xi32>
    %c68_i32 = arith.constant 68 : i32
    %29 = vector.broadcast %c68_i32 : i32 to vector<136x1xi32>
    %30 = arith.cmpi sge, %1, %29 : vector<136x1xi32>
    %31 = arith.extui %30 : vector<136x1xi1> to vector<136x1xi32>
    %32 = arith.addi %24, %31 : vector<136x1xi32>
    %c68_i32_5 = arith.constant 68 : i32
    %33 = vector.broadcast %c68_i32_5 : i32 to vector<1x136xi32>
    %34 = arith.cmpi sge, %2, %33 : vector<1x136xi32>
    %35 = arith.extui %34 : vector<1x136xi1> to vector<1x136xi32>
    %36 = arith.addi %28, %35 : vector<1x136xi32>
    %c85_i32 = arith.constant 85 : i32
    %37 = vector.broadcast %c85_i32 : i32 to vector<136x1xi32>
    %38 = arith.cmpi sge, %1, %37 : vector<136x1xi32>
    %39 = arith.extui %38 : vector<136x1xi1> to vector<136x1xi32>
    %40 = arith.addi %32, %39 : vector<136x1xi32>
    %c85_i32_6 = arith.constant 85 : i32
    %41 = vector.broadcast %c85_i32_6 : i32 to vector<1x136xi32>
    %42 = arith.cmpi sge, %2, %41 : vector<1x136xi32>
    %43 = arith.extui %42 : vector<1x136xi1> to vector<1x136xi32>
    %44 = arith.addi %36, %43 : vector<1x136xi32>
    %c102_i32 = arith.constant 102 : i32
    %45 = vector.broadcast %c102_i32 : i32 to vector<136x1xi32>
    %46 = arith.cmpi sge, %1, %45 : vector<136x1xi32>
    %47 = arith.extui %46 : vector<136x1xi1> to vector<136x1xi32>
    %48 = arith.addi %40, %47 : vector<136x1xi32>
    %c102_i32_7 = arith.constant 102 : i32
    %49 = vector.broadcast %c102_i32_7 : i32 to vector<1x136xi32>
    %50 = arith.cmpi sge, %2, %49 : vector<1x136xi32>
    %51 = arith.extui %50 : vector<1x136xi1> to vector<1x136xi32>
    %52 = arith.addi %44, %51 : vector<1x136xi32>
    %c119_i32 = arith.constant 119 : i32
    %53 = vector.broadcast %c119_i32 : i32 to vector<136x1xi32>
    %54 = arith.cmpi sge, %1, %53 : vector<136x1xi32>
    %55 = arith.extui %54 : vector<136x1xi1> to vector<136x1xi32>
    %56 = arith.addi %48, %55 : vector<136x1xi32>
    %c119_i32_8 = arith.constant 119 : i32
    %57 = vector.broadcast %c119_i32_8 : i32 to vector<1x136xi32>
    %58 = arith.cmpi sge, %2, %57 : vector<1x136xi32>
    %59 = arith.extui %58 : vector<1x136xi1> to vector<1x136xi32>
    %60 = arith.addi %52, %59 : vector<1x136xi32>
    %c17_i32_9 = arith.constant 17 : i32
    %61 = vector.broadcast %c17_i32_9 : i32 to vector<136x1xi32>
    %62 = arith.muli %56, %61 : vector<136x1xi32>
    %63 = arith.subi %1, %62 : vector<136x1xi32>
    %c16_i32 = arith.constant 16 : i32
    %64 = vector.broadcast %c16_i32 : i32 to vector<136x1xi32>
    %65 = arith.cmpi eq, %63, %64 : vector<136x1xi32>
    %66 = vector.broadcast %56 : vector<136x1xi32> to vector<136x136xi32>
    %67 = vector.broadcast %60 : vector<1x136xi32> to vector<136x136xi32>
    %68 = arith.cmpi eq, %66, %67 : vector<136x136xi32>
    %cst = arith.constant 0.000000e+00 : f32
    %cst_10 = arith.constant -1.000000e+30 : f32
    %69 = vector.broadcast %cst : f32 to vector<136x136xf32>
    %70 = vector.broadcast %cst_10 : f32 to vector<136x136xf32>
    %71 = arith.select %68, %69, %70 : vector<136x136xi1>, vector<136x136xf32>
    %c0_11 = arith.constant 0 : index
    %c0_12 = arith.constant 0 : index
    %72 = vector.load %arg2[%c0_11, %c0_12] : memref<1x32xf32, #tpu.memory_space<vmem>>, vector<1x32xf32>
    %c0_13 = arith.constant 0 : index
    %c0_14 = arith.constant 0 : index
    %73 = vector.load %arg3[%c0_13, %c0_14] : memref<1x32xf32, #tpu.memory_space<vmem>>, vector<1x32xf32>
    %cst_15 = arith.constant dense<0.000000e+00> : vector<136xf32>
    %74 = vector.multi_reduction <add>, %0, %cst_15 [1] : vector<136x32xf32> to vector<136xf32>
    %75 = vector.shape_cast %74 : vector<136xf32> to vector<136x1xf32>
    %cst_16 = arith.constant 3.200000e+01 : f32
    %76 = vector.broadcast %cst_16 : f32 to vector<136x1xf32>
    %77 = arith.divf %75, %76 : vector<136x1xf32>
    %78 = vector.broadcast %77 : vector<136x1xf32> to vector<136x32xf32>
    %79 = arith.subf %0, %78 : vector<136x32xf32>
    %80 = arith.mulf %79, %79 : vector<136x32xf32>
    %cst_17 = arith.constant dense<0.000000e+00> : vector<136xf32>
    %81 = vector.multi_reduction <add>, %80, %cst_17 [1] : vector<136x32xf32> to vector<136xf32>
    %82 = vector.shape_cast %81 : vector<136xf32> to vector<136x1xf32>
    %cst_18 = arith.constant 0.0322580636 : f32
    %83 = vector.broadcast %cst_18 : f32 to vector<136x1xf32>
    %84 = arith.mulf %82, %83 : vector<136x1xf32>
    %85 = math.sqrt %84 : vector<136x1xf32>
    %cst_19 = arith.constant 9.99999974E-6 : f32
    %86 = vector.broadcast %cst_19 : f32 to vector<136x1xf32>
    %87 = arith.addf %85, %86 : vector<136x1xf32>
    %88 = tpu.reciprocal %87 {approx = true} : vector<136x1xf32> -> vector<136x1xf32>
    %89 = vector.broadcast %88 : vector<136x1xf32> to vector<136x32xf32>
    %90 = arith.mulf %79, %89 : vector<136x32xf32>
    %91 = vector.broadcast %72 : vector<1x32xf32> to vector<136x32xf32>
    %92 = arith.mulf %90, %91 : vector<136x32xf32>
    %93 = vector.broadcast %73 : vector<1x32xf32> to vector<136x32xf32>
    %94 = arith.addf %92, %93 : vector<136x32xf32>
    %95 = vector.shape_cast %65 : vector<136x1xi1> to vector<136x1xi1>
    %96 = vector.broadcast %95 : vector<136x1xi1> to vector<136x32xi1>
    %97 = arith.select %96, %0, %94 : vector<136x32xi1>, vector<136x32xf32>
    %98 = arith.truncf %97 : vector<136x32xf32> to vector<136x32xbf16>
    %c0_20 = arith.constant 0 : index
    %c0_21 = arith.constant 0 : index
    %99 = vector.load %arg4[%c0_20, %c0_21] : memref<32x96xbf16, #tpu.memory_space<vmem>>, vector<32x96xbf16>
    %cst_22 = arith.constant dense<0.000000e+00> : vector<136x96xf32>
    %100 = tpu.matmul %98, %99, %cst_22 {dimension_numbers = #tpu.dot_dimension_numbers<[1], [0], [0], [1], [0, 0, 1, 1], [], []>} : vector<136x32xbf16>, vector<32x96xbf16>, vector<136x96xf32> -> vector<136x96xf32>
    %c0_23 = arith.constant 0 : index
    %c0_24 = arith.constant 0 : index
    %101 = vector.load %arg5[%c0_23, %c0_24] : memref<1x96xf32, #tpu.memory_space<vmem>>, vector<1x96xf32>
    %102 = vector.broadcast %101 : vector<1x96xf32> to vector<136x96xf32>
    %103 = arith.addf %100, %102 : vector<136x96xf32>
    %cst_25 = arith.constant 0.000000e+00 : f32
    %104 = vector.broadcast %cst_25 : f32 to vector<136x32xf32>
    %105 = vector.extract_strided_slice %103 {offsets = [0, 0], sizes = [136, 8], strides = [1, 1]} : vector<136x96xf32> to vector<136x8xf32>
    %cst_26 = arith.constant 0.353553385 : f32
    %106 = vector.broadcast %cst_26 : f32 to vector<136x8xf32>
    %107 = arith.mulf %105, %106 : vector<136x8xf32>
    %108 = arith.truncf %107 : vector<136x8xf32> to vector<136x8xbf16>
    %109 = vector.extract_strided_slice %103 {offsets = [0, 32], sizes = [136, 8], strides = [1, 1]} : vector<136x96xf32> to vector<136x8xf32>
    %110 = arith.truncf %109 : vector<136x8xf32> to vector<136x8xbf16>
    %111 = vector.extract_strided_slice %103 {offsets = [0, 64], sizes = [136, 8], strides = [1, 1]} : vector<136x96xf32> to vector<136x8xf32>
    %112 = arith.truncf %111 : vector<136x8xf32> to vector<136x8xbf16>
    %cst_27 = arith.constant dense<0.000000e+00> : vector<136x136xf32>
    %113 = tpu.matmul %108, %110, %cst_27 {dimension_numbers = #tpu.dot_dimension_numbers<[1], [1], [0], [0], [0, 0, 1, 0], [], []>} : vector<136x8xbf16>, vector<136x8xbf16>, vector<136x136xf32> -> vector<136x136xf32>
    %114 = arith.addf %113, %71 : vector<136x136xf32>
    %cst_28 = arith.constant dense<0xFF800000> : vector<136xf32>
    %115 = vector.multi_reduction <maximumf>, %114, %cst_28 [1] : vector<136x136xf32> to vector<136xf32>
    %116 = vector.shape_cast %115 : vector<136xf32> to vector<136x1xf32>
    %117 = vector.broadcast %116 : vector<136x1xf32> to vector<136x136xf32>
    %118 = arith.subf %114, %117 : vector<136x136xf32>
    %119 = math.exp %118 : vector<136x136xf32>
    %cst_29 = arith.constant dense<0.000000e+00> : vector<136xf32>
    %120 = vector.multi_reduction <add>, %119, %cst_29 [1] : vector<136x136xf32> to vector<136xf32>
    %121 = vector.shape_cast %120 : vector<136xf32> to vector<136x1xf32>
    %122 = tpu.reciprocal %121 {approx = true} : vector<136x1xf32> -> vector<136x1xf32>
    %123 = vector.broadcast %122 : vector<136x1xf32> to vector<136x136xf32>
    %124 = arith.mulf %119, %123 : vector<136x136xf32>
    %125 = arith.truncf %124 : vector<136x136xf32> to vector<136x136xbf16>
    %cst_30 = arith.constant dense<0.000000e+00> : vector<136x8xf32>
    %126 = tpu.matmul %125, %112, %cst_30 {dimension_numbers = #tpu.dot_dimension_numbers<[1], [0], [0], [1], [0, 0, 1, 1], [], []>} : vector<136x136xbf16>, vector<136x8xbf16>, vector<136x8xf32> -> vector<136x8xf32>
    %127 = arith.truncf %126 : vector<136x8xf32> to vector<136x8xbf16>
    %c0_31 = arith.constant 0 : index
    %c0_32 = arith.constant 0 : index
    %128 = vector.load %arg6[%c0_31, %c0_32] : memref<32x32xbf16, #tpu.memory_space<vmem>>, vector<8x32xbf16>
    %cst_33 = arith.constant dense<0.000000e+00> : vector<136x32xf32>
    %129 = tpu.matmul %127, %128, %cst_33 {dimension_numbers = #tpu.dot_dimension_numbers<[1], [0], [0], [1], [0, 0, 1, 1], [], []>} : vector<136x8xbf16>, vector<8x32xbf16>, vector<136x32xf32> -> vector<136x32xf32>
    %130 = arith.addf %104, %129 : vector<136x32xf32>
    %131 = vector.extract_strided_slice %103 {offsets = [0, 8], sizes = [136, 8], strides = [1, 1]} : vector<136x96xf32> to vector<136x8xf32>
    %cst_34 = arith.constant 0.353553385 : f32
    %132 = vector.broadcast %cst_34 : f32 to vector<136x8xf32>
    %133 = arith.mulf %131, %132 : vector<136x8xf32>
    %134 = arith.truncf %133 : vector<136x8xf32> to vector<136x8xbf16>
    %135 = vector.extract_strided_slice %103 {offsets = [0, 40], sizes = [136, 8], strides = [1, 1]} : vector<136x96xf32> to vector<136x8xf32>
    %136 = arith.truncf %135 : vector<136x8xf32> to vector<136x8xbf16>
    %137 = vector.extract_strided_slice %103 {offsets = [0, 72], sizes = [136, 8], strides = [1, 1]} : vector<136x96xf32> to vector<136x8xf32>
    %138 = arith.truncf %137 : vector<136x8xf32> to vector<136x8xbf16>
    %cst_35 = arith.constant dense<0.000000e+00> : vector<136x136xf32>
    %139 = tpu.matmul %134, %136, %cst_35 {dimension_numbers = #tpu.dot_dimension_numbers<[1], [1], [0], [0], [0, 0, 1, 0], [], []>} : vector<136x8xbf16>, vector<136x8xbf16>, vector<136x136xf32> -> vector<136x136xf32>
    %140 = arith.addf %139, %71 : vector<136x136xf32>
    %cst_36 = arith.constant dense<0xFF800000> : vector<136xf32>
    %141 = vector.multi_reduction <maximumf>, %140, %cst_36 [1] : vector<136x136xf32> to vector<136xf32>
    %142 = vector.shape_cast %141 : vector<136xf32> to vector<136x1xf32>
    %143 = vector.broadcast %142 : vector<136x1xf32> to vector<136x136xf32>
    %144 = arith.subf %140, %143 : vector<136x136xf32>
    %145 = math.exp %144 : vector<136x136xf32>
    %cst_37 = arith.constant dense<0.000000e+00> : vector<136xf32>
    %146 = vector.multi_reduction <add>, %145, %cst_37 [1] : vector<136x136xf32> to vector<136xf32>
    %147 = vector.shape_cast %146 : vector<136xf32> to vector<136x1xf32>
    %148 = tpu.reciprocal %147 {approx = true} : vector<136x1xf32> -> vector<136x1xf32>
    %149 = vector.broadcast %148 : vector<136x1xf32> to vector<136x136xf32>
    %150 = arith.mulf %145, %149 : vector<136x136xf32>
    %151 = arith.truncf %150 : vector<136x136xf32> to vector<136x136xbf16>
    %cst_38 = arith.constant dense<0.000000e+00> : vector<136x8xf32>
    %152 = tpu.matmul %151, %138, %cst_38 {dimension_numbers = #tpu.dot_dimension_numbers<[1], [0], [0], [1], [0, 0, 1, 1], [], []>} : vector<136x136xbf16>, vector<136x8xbf16>, vector<136x8xf32> -> vector<136x8xf32>
    %153 = arith.truncf %152 : vector<136x8xf32> to vector<136x8xbf16>
    %c8 = arith.constant 8 : index
    %c0_39 = arith.constant 0 : index
    %154 = vector.load %arg6[%c8, %c0_39] : memref<32x32xbf16, #tpu.memory_space<vmem>>, vector<8x32xbf16>
    %cst_40 = arith.constant dense<0.000000e+00> : vector<136x32xf32>
    %155 = tpu.matmul %153, %154, %cst_40 {dimension_numbers = #tpu.dot_dimension_numbers<[1], [0], [0], [1], [0, 0, 1, 1], [], []>} : vector<136x8xbf16>, vector<8x32xbf16>, vector<136x32xf32> -> vector<136x32xf32>
    %156 = arith.addf %130, %155 : vector<136x32xf32>
    %157 = vector.extract_strided_slice %103 {offsets = [0, 16], sizes = [136, 8], strides = [1, 1]} : vector<136x96xf32> to vector<136x8xf32>
    %cst_41 = arith.constant 0.353553385 : f32
    %158 = vector.broadcast %cst_41 : f32 to vector<136x8xf32>
    %159 = arith.mulf %157, %158 : vector<136x8xf32>
    %160 = arith.truncf %159 : vector<136x8xf32> to vector<136x8xbf16>
    %161 = vector.extract_strided_slice %103 {offsets = [0, 48], sizes = [136, 8], strides = [1, 1]} : vector<136x96xf32> to vector<136x8xf32>
    %162 = arith.truncf %161 : vector<136x8xf32> to vector<136x8xbf16>
    %163 = vector.extract_strided_slice %103 {offsets = [0, 80], sizes = [136, 8], strides = [1, 1]} : vector<136x96xf32> to vector<136x8xf32>
    %164 = arith.truncf %163 : vector<136x8xf32> to vector<136x8xbf16>
    %cst_42 = arith.constant dense<0.000000e+00> : vector<136x136xf32>
    %165 = tpu.matmul %160, %162, %cst_42 {dimension_numbers = #tpu.dot_dimension_numbers<[1], [1], [0], [0], [0, 0, 1, 0], [], []>} : vector<136x8xbf16>, vector<136x8xbf16>, vector<136x136xf32> -> vector<136x136xf32>
    %166 = arith.addf %165, %71 : vector<136x136xf32>
    %cst_43 = arith.constant dense<0xFF800000> : vector<136xf32>
    %167 = vector.multi_reduction <maximumf>, %166, %cst_43 [1] : vector<136x136xf32> to vector<136xf32>
    %168 = vector.shape_cast %167 : vector<136xf32> to vector<136x1xf32>
    %169 = vector.broadcast %168 : vector<136x1xf32> to vector<136x136xf32>
    %170 = arith.subf %166, %169 : vector<136x136xf32>
    %171 = math.exp %170 : vector<136x136xf32>
    %cst_44 = arith.constant dense<0.000000e+00> : vector<136xf32>
    %172 = vector.multi_reduction <add>, %171, %cst_44 [1] : vector<136x136xf32> to vector<136xf32>
    %173 = vector.shape_cast %172 : vector<136xf32> to vector<136x1xf32>
    %174 = tpu.reciprocal %173 {approx = true} : vector<136x1xf32> -> vector<136x1xf32>
    %175 = vector.broadcast %174 : vector<136x1xf32> to vector<136x136xf32>
    %176 = arith.mulf %171, %175 : vector<136x136xf32>
    %177 = arith.truncf %176 : vector<136x136xf32> to vector<136x136xbf16>
    %cst_45 = arith.constant dense<0.000000e+00> : vector<136x8xf32>
    %178 = tpu.matmul %177, %164, %cst_45 {dimension_numbers = #tpu.dot_dimension_numbers<[1], [0], [0], [1], [0, 0, 1, 1], [], []>} : vector<136x136xbf16>, vector<136x8xbf16>, vector<136x8xf32> -> vector<136x8xf32>
    %179 = arith.truncf %178 : vector<136x8xf32> to vector<136x8xbf16>
    %c16 = arith.constant 16 : index
    %c0_46 = arith.constant 0 : index
    %180 = vector.load %arg6[%c16, %c0_46] : memref<32x32xbf16, #tpu.memory_space<vmem>>, vector<8x32xbf16>
    %cst_47 = arith.constant dense<0.000000e+00> : vector<136x32xf32>
    %181 = tpu.matmul %179, %180, %cst_47 {dimension_numbers = #tpu.dot_dimension_numbers<[1], [0], [0], [1], [0, 0, 1, 1], [], []>} : vector<136x8xbf16>, vector<8x32xbf16>, vector<136x32xf32> -> vector<136x32xf32>
    %182 = arith.addf %156, %181 : vector<136x32xf32>
    %183 = vector.extract_strided_slice %103 {offsets = [0, 24], sizes = [136, 8], strides = [1, 1]} : vector<136x96xf32> to vector<136x8xf32>
    %cst_48 = arith.constant 0.353553385 : f32
    %184 = vector.broadcast %cst_48 : f32 to vector<136x8xf32>
    %185 = arith.mulf %183, %184 : vector<136x8xf32>
    %186 = arith.truncf %185 : vector<136x8xf32> to vector<136x8xbf16>
    %187 = vector.extract_strided_slice %103 {offsets = [0, 56], sizes = [136, 8], strides = [1, 1]} : vector<136x96xf32> to vector<136x8xf32>
    %188 = arith.truncf %187 : vector<136x8xf32> to vector<136x8xbf16>
    %189 = vector.extract_strided_slice %103 {offsets = [0, 88], sizes = [136, 8], strides = [1, 1]} : vector<136x96xf32> to vector<136x8xf32>
    %190 = arith.truncf %189 : vector<136x8xf32> to vector<136x8xbf16>
    %cst_49 = arith.constant dense<0.000000e+00> : vector<136x136xf32>
    %191 = tpu.matmul %186, %188, %cst_49 {dimension_numbers = #tpu.dot_dimension_numbers<[1], [1], [0], [0], [0, 0, 1, 0], [], []>} : vector<136x8xbf16>, vector<136x8xbf16>, vector<136x136xf32> -> vector<136x136xf32>
    %192 = arith.addf %191, %71 : vector<136x136xf32>
    %cst_50 = arith.constant dense<0xFF800000> : vector<136xf32>
    %193 = vector.multi_reduction <maximumf>, %192, %cst_50 [1] : vector<136x136xf32> to vector<136xf32>
    %194 = vector.shape_cast %193 : vector<136xf32> to vector<136x1xf32>
    %195 = vector.broadcast %194 : vector<136x1xf32> to vector<136x136xf32>
    %196 = arith.subf %192, %195 : vector<136x136xf32>
    %197 = math.exp %196 : vector<136x136xf32>
    %cst_51 = arith.constant dense<0.000000e+00> : vector<136xf32>
    %198 = vector.multi_reduction <add>, %197, %cst_51 [1] : vector<136x136xf32> to vector<136xf32>
    %199 = vector.shape_cast %198 : vector<136xf32> to vector<136x1xf32>
    %200 = tpu.reciprocal %199 {approx = true} : vector<136x1xf32> -> vector<136x1xf32>
    %201 = vector.broadcast %200 : vector<136x1xf32> to vector<136x136xf32>
    %202 = arith.mulf %197, %201 : vector<136x136xf32>
    %203 = arith.truncf %202 : vector<136x136xf32> to vector<136x136xbf16>
    %cst_52 = arith.constant dense<0.000000e+00> : vector<136x8xf32>
    %204 = tpu.matmul %203, %190, %cst_52 {dimension_numbers = #tpu.dot_dimension_numbers<[1], [0], [0], [1], [0, 0, 1, 1], [], []>} : vector<136x136xbf16>, vector<136x8xbf16>, vector<136x8xf32> -> vector<136x8xf32>
    %205 = arith.truncf %204 : vector<136x8xf32> to vector<136x8xbf16>
    %c24 = arith.constant 24 : index
    %c0_53 = arith.constant 0 : index
    %206 = vector.load %arg6[%c24, %c0_53] : memref<32x32xbf16, #tpu.memory_space<vmem>>, vector<8x32xbf16>
    %cst_54 = arith.constant dense<0.000000e+00> : vector<136x32xf32>
    %207 = tpu.matmul %205, %206, %cst_54 {dimension_numbers = #tpu.dot_dimension_numbers<[1], [0], [0], [1], [0, 0, 1, 1], [], []>} : vector<136x8xbf16>, vector<8x32xbf16>, vector<136x32xf32> -> vector<136x32xf32>
    %208 = arith.addf %182, %207 : vector<136x32xf32>
    %209 = arith.addf %0, %208 : vector<136x32xf32>
    %c0_55 = arith.constant 0 : index
    %c0_56 = arith.constant 0 : index
    %210 = vector.load %arg7[%c0_55, %c0_56] : memref<1x32xf32, #tpu.memory_space<vmem>>, vector<1x32xf32>
    %211 = vector.broadcast %210 : vector<1x32xf32> to vector<136x32xf32>
    %212 = arith.addf %209, %211 : vector<136x32xf32>
    %c0_57 = arith.constant 0 : index
    %c0_58 = arith.constant 0 : index
    %213 = vector.load %arg8[%c0_57, %c0_58] : memref<1x32xf32, #tpu.memory_space<vmem>>, vector<1x32xf32>
    %c0_59 = arith.constant 0 : index
    %c0_60 = arith.constant 0 : index
    %214 = vector.load %arg9[%c0_59, %c0_60] : memref<1x32xf32, #tpu.memory_space<vmem>>, vector<1x32xf32>
    %cst_61 = arith.constant dense<0.000000e+00> : vector<136xf32>
    %215 = vector.multi_reduction <add>, %212, %cst_61 [1] : vector<136x32xf32> to vector<136xf32>
    %216 = vector.shape_cast %215 : vector<136xf32> to vector<136x1xf32>
    %cst_62 = arith.constant 3.200000e+01 : f32
    %217 = vector.broadcast %cst_62 : f32 to vector<136x1xf32>
    %218 = arith.divf %216, %217 : vector<136x1xf32>
    %219 = vector.broadcast %218 : vector<136x1xf32> to vector<136x32xf32>
    %220 = arith.subf %212, %219 : vector<136x32xf32>
    %221 = arith.mulf %220, %220 : vector<136x32xf32>
    %cst_63 = arith.constant dense<0.000000e+00> : vector<136xf32>
    %222 = vector.multi_reduction <add>, %221, %cst_63 [1] : vector<136x32xf32> to vector<136xf32>
    %223 = vector.shape_cast %222 : vector<136xf32> to vector<136x1xf32>
    %cst_64 = arith.constant 0.0322580636 : f32
    %224 = vector.broadcast %cst_64 : f32 to vector<136x1xf32>
    %225 = arith.mulf %223, %224 : vector<136x1xf32>
    %226 = math.sqrt %225 : vector<136x1xf32>
    %cst_65 = arith.constant 9.99999974E-6 : f32
    %227 = vector.broadcast %cst_65 : f32 to vector<136x1xf32>
    %228 = arith.addf %226, %227 : vector<136x1xf32>
    %229 = tpu.reciprocal %228 {approx = true} : vector<136x1xf32> -> vector<136x1xf32>
    %230 = vector.broadcast %229 : vector<136x1xf32> to vector<136x32xf32>
    %231 = arith.mulf %220, %230 : vector<136x32xf32>
    %232 = vector.broadcast %213 : vector<1x32xf32> to vector<136x32xf32>
    %233 = arith.mulf %231, %232 : vector<136x32xf32>
    %234 = vector.broadcast %214 : vector<1x32xf32> to vector<136x32xf32>
    %235 = arith.addf %233, %234 : vector<136x32xf32>
    %236 = vector.shape_cast %65 : vector<136x1xi1> to vector<136x1xi1>
    %237 = vector.broadcast %236 : vector<136x1xi1> to vector<136x32xi1>
    %238 = arith.select %237, %212, %235 : vector<136x32xi1>, vector<136x32xf32>
    %239 = arith.truncf %238 : vector<136x32xf32> to vector<136x32xbf16>
    %c0_66 = arith.constant 0 : index
    %c0_67 = arith.constant 0 : index
    %240 = vector.load %arg10[%c0_66, %c0_67] : memref<32x64xbf16, #tpu.memory_space<vmem>>, vector<32x64xbf16>
    %cst_68 = arith.constant dense<0.000000e+00> : vector<136x64xf32>
    %241 = tpu.matmul %239, %240, %cst_68 {dimension_numbers = #tpu.dot_dimension_numbers<[1], [0], [0], [1], [0, 0, 1, 1], [], []>} : vector<136x32xbf16>, vector<32x64xbf16>, vector<136x64xf32> -> vector<136x64xf32>
    %c0_69 = arith.constant 0 : index
    %c0_70 = arith.constant 0 : index
    %242 = vector.load %arg11[%c0_69, %c0_70] : memref<1x64xf32, #tpu.memory_space<vmem>>, vector<1x64xf32>
    %243 = vector.broadcast %242 : vector<1x64xf32> to vector<136x64xf32>
    %244 = arith.addf %241, %243 : vector<136x64xf32>
    %cst_71 = arith.constant 5.000000e-01 : f32
    %245 = vector.broadcast %cst_71 : f32 to vector<136x64xf32>
    %246 = arith.mulf %245, %244 : vector<136x64xf32>
    %247 = arith.mulf %244, %244 : vector<136x64xf32>
    %248 = arith.mulf %247, %244 : vector<136x64xf32>
    %cst_72 = arith.constant 4.471500e-02 : f32
    %249 = vector.broadcast %cst_72 : f32 to vector<136x64xf32>
    %250 = arith.mulf %249, %248 : vector<136x64xf32>
    %251 = arith.addf %244, %250 : vector<136x64xf32>
    %cst_73 = arith.constant 0.797884583 : f32
    %252 = vector.broadcast %cst_73 : f32 to vector<136x64xf32>
    %253 = arith.mulf %252, %251 : vector<136x64xf32>
    %254 = math.tanh %253 : vector<136x64xf32>
    %cst_74 = arith.constant 1.000000e+00 : f32
    %255 = vector.broadcast %cst_74 : f32 to vector<136x64xf32>
    %256 = arith.addf %255, %254 : vector<136x64xf32>
    %257 = arith.mulf %246, %256 : vector<136x64xf32>
    %258 = arith.truncf %257 : vector<136x64xf32> to vector<136x64xbf16>
    %c0_75 = arith.constant 0 : index
    %c0_76 = arith.constant 0 : index
    %259 = vector.load %arg12[%c0_75, %c0_76] : memref<64x32xbf16, #tpu.memory_space<vmem>>, vector<64x32xbf16>
    %cst_77 = arith.constant dense<0.000000e+00> : vector<136x32xf32>
    %260 = tpu.matmul %258, %259, %cst_77 {dimension_numbers = #tpu.dot_dimension_numbers<[1], [0], [0], [1], [0, 0, 1, 1], [], []>} : vector<136x64xbf16>, vector<64x32xbf16>, vector<136x32xf32> -> vector<136x32xf32>
    %c0_78 = arith.constant 0 : index
    %c0_79 = arith.constant 0 : index
    %261 = vector.load %arg13[%c0_78, %c0_79] : memref<1x32xf32, #tpu.memory_space<vmem>>, vector<1x32xf32>
    %262 = vector.broadcast %261 : vector<1x32xf32> to vector<136x32xf32>
    %263 = arith.addf %260, %262 : vector<136x32xf32>
    %cst_80 = arith.constant 5.000000e-01 : f32
    %264 = vector.broadcast %cst_80 : f32 to vector<136x32xf32>
    %265 = arith.mulf %264, %263 : vector<136x32xf32>
    %266 = arith.mulf %263, %263 : vector<136x32xf32>
    %267 = arith.mulf %266, %263 : vector<136x32xf32>
    %cst_81 = arith.constant 4.471500e-02 : f32
    %268 = vector.broadcast %cst_81 : f32 to vector<136x32xf32>
    %269 = arith.mulf %268, %267 : vector<136x32xf32>
    %270 = arith.addf %263, %269 : vector<136x32xf32>
    %cst_82 = arith.constant 0.797884583 : f32
    %271 = vector.broadcast %cst_82 : f32 to vector<136x32xf32>
    %272 = arith.mulf %271, %270 : vector<136x32xf32>
    %273 = math.tanh %272 : vector<136x32xf32>
    %cst_83 = arith.constant 1.000000e+00 : f32
    %274 = vector.broadcast %cst_83 : f32 to vector<136x32xf32>
    %275 = arith.addf %274, %273 : vector<136x32xf32>
    %276 = arith.mulf %265, %275 : vector<136x32xf32>
    %277 = arith.addf %212, %276 : vector<136x32xf32>
    %c0_84 = arith.constant 0 : index
    %c0_85 = arith.constant 0 : index
    %278 = vector.load %arg14[%c0_84, %c0_85] : memref<136x32xf32, #tpu.memory_space<vmem>>, vector<136x32xf32>
    tpu.vector_store %arg14[%c0_84, %c0_85], %277 {strides = array<i32>} : memref<136x32xf32, #tpu.memory_space<vmem>>, vector<136x32xf32>,
    return
  }
  func.func @transform_0(%arg0: i32) -> (i32, i32) {
    %c0_i32 = arith.constant 0 : i32
    %c0_i32_0 = arith.constant 0 : i32
    return %arg0, %c0_i32 : i32, i32
  }
  func.func @transform_1(%arg0: i32) -> (i32, i32) {
    %c0_i32 = arith.constant 0 : i32
    %c0_i32_0 = arith.constant 0 : i32
    %c0_i32_1 = arith.constant 0 : i32
    return %c0_i32, %c0_i32_0 : i32, i32
  }
  func.func @transform_2(%arg0: i32) -> (i32, i32) {
    %c0_i32 = arith.constant 0 : i32
    %c0_i32_0 = arith.constant 0 : i32
    %c0_i32_1 = arith.constant 0 : i32
    return %c0_i32, %c0_i32_0 : i32, i32
  }
  func.func @transform_3(%arg0: i32) -> (i32, i32) {
    %c0_i32 = arith.constant 0 : i32
    %c0_i32_0 = arith.constant 0 : i32
    %c0_i32_1 = arith.constant 0 : i32
    return %c0_i32, %c0_i32_0 : i32, i32
  }
  func.func @transform_4(%arg0: i32) -> (i32, i32) {
    %c0_i32 = arith.constant 0 : i32
    %c0_i32_0 = arith.constant 0 : i32
    %c0_i32_1 = arith.constant 0 : i32
    return %c0_i32, %c0_i32_0 : i32, i32
  }
  func.func @transform_5(%arg0: i32) -> (i32, i32) {
    %c0_i32 = arith.constant 0 : i32
    %c0_i32_0 = arith.constant 0 : i32
    %c0_i32_1 = arith.constant 0 : i32
    return %c0_i32, %c0_i32_0 : i32, i32
  }
  func.func @transform_6(%arg0: i32) -> (i32, i32) {
    %c0_i32 = arith.constant 0 : i32
    %c0_i32_0 = arith.constant 0 : i32
    %c0_i32_1 = arith.constant 0 : i32
    return %c0_i32, %c0_i32_0 : i32, i32
  }
  func.func @transform_7(%arg0: i32) -> (i32, i32) {
    %c0_i32 = arith.constant 0 : i32
    %c0_i32_0 = arith.constant 0 : i32
    %c0_i32_1 = arith.constant 0 : i32
    return %c0_i32, %c0_i32_0 : i32, i32
  }
  func.func @transform_8(%arg0: i32) -> (i32, i32) {
    %c0_i32 = arith.constant 0 : i32
    %c0_i32_0 = arith.constant 0 : i32
    %c0_i32_1 = arith.constant 0 : i32
    return %c0_i32, %c0_i32_0 : i32, i32
  }
  func.func @transform_9(%arg0: i32) -> (i32, i32) {
    %c0_i32 = arith.constant 0 : i32
    %c0_i32_0 = arith.constant 0 : i32
    %c0_i32_1 = arith.constant 0 : i32
    return %c0_i32, %c0_i32_0 : i32, i32
  }
  func.func @transform_10(%arg0: i32) -> (i32, i32) {
    %c0_i32 = arith.constant 0 : i32
    %c0_i32_0 = arith.constant 0 : i32
    %c0_i32_1 = arith.constant 0 : i32
    return %c0_i32, %c0_i32_0 : i32, i32
  }
  func.func @transform_11(%arg0: i32) -> (i32, i32) {
    %c0_i32 = arith.constant 0 : i32
    %c0_i32_0 = arith.constant 0 : i32
    %c0_i32_1 = arith.constant 0 : i32
    return %c0_i32, %c0_i32_0 : i32, i32
  }
  func.func @transform_12(%arg0: i32) -> (i32, i32) {
    %c0_i32 = arith.constant 0 : i32
    %c0_i32_0 = arith.constant 0 : i32
    %c0_i32_1 = arith.constant 0 : i32
    return %c0_i32, %c0_i32_0 : i32, i32
  }
  func.func @transform_13(%arg0: i32) -> (i32, i32) {
    %c0_i32 = arith.constant 0 : i32
    %c0_i32_0 = arith.constant 0 : i32
    return %arg0, %c0_i32 : i32, i32
  }
}

</mosaic_0001>

<bundles_post_ra>
// kernel: tpu_custom_call.1
= control target key start
LH: loop header
LB: loop body
LE: loop exit
PB: predicated region body
PF: predicated region fallthrough
CT: control target
= control target key end

     0   :  { %s7412_s25 = smov 0   ;;  %s10720_s0 = inlined_call_operand.vmem [shape: f32[272,32], index: 0, kind: input, shape index: {}]   ;;  %s10721_s1 = inlined_call_operand.vmem [shape: f32[1,32], index: 1, kind: input, shape index: {}]   ;;  %s10722_s2 = inlined_call_operand.vmem [shape: f32[1,32], index: 2, kind: input, shape index: {}]   ;;  %s10723_s3 = inlined_call_operand.vmem [shape: bf16[32,96], index: 3, kind: input, shape index: {}]   ;;  %s10724_s4 = inlined_call_operand.vmem [shape: f32[1,96], index: 4, kind: input, shape index: {}]   ;;  %s10725_s5 = inlined_call_operand.vmem [shape: bf16[32,32], index: 5, kind: input, shape index: {}]   ;;  %s10726_s6 = inlined_call_operand.vmem [shape: f32[1,32], index: 6, kind: input, shape index: {}]   ;;  %s10727_s7 = inlined_call_operand.vmem [shape: f32[1,32], index: 7, kind: input, shape index: {}]   ;;  %s10728_s8 = inlined_call_operand.vmem [shape: f32[1,32], index: 8, kind: input, shape index: {}]   ;;  %s10729_s9 = inlined_call_operand.vmem [shape: bf16[32,64], index: 9, kind: input, shape index: {}]   ;;  %s10730_s10 = inlined_call_operand.vmem [shape: f32[1,64], index: 10, kind: input, shape index: {}]   ;;  %s10731_s11 = inlined_call_operand.vmem [shape: bf16[64,32], index: 11, kind: input, shape index: {}]   ;;  %s10732_s12 = inlined_call_operand.vmem [shape: f32[1,32], index: 12, kind: input, shape index: {}]   ;;  %s10733_s13 = inlined_call_operand.vmem [shape: f32[272,32], index: 13, kind: output, shape index: {}]  }
   0x1 LB: > { %s6130_s26 = sadd.s32 4294967295, %s7325_s25   ;;  %p6134_p0 = scmp.ge.s32.totalorder %s7325_s25, 1  ;;  %s7325_s25 = sphi %s7412_s25, %s23_s25  }
   0x2   : > { %p388_p1 = scmp.lt.s32.totalorder %s7325_s25, 3 }
   0x4   : > { %p389_p2 = pnand %p6134_p0, %p388_p1 }
   0x6   : > { %392 = sbr.rel (%p389_p2) target bundleno = 4282 (0x10ba), region = 72 }
   0xd   : > { %s432_s27 = smul.u32 17, %s6130_s26  ;;  %vm984_vm0 = vcmask 261120   ;;  %vm7329_vm1 = vmmov 0   ;;  %s7330_s26 = smov 96  }
   0xe   : > { %s7331_s29 = smov 88   ;;  %s7332_s30 = smov 120  }
   0xf   : > { %p433_p3 = scmp.lt.s32.totalorder %s432_s27, 33  ;;  %s7333_s15 = smov 64  }
  0x10   : > { %s7334_s16 = smov 56   ;;  %s7336_s17 = smov 80  }
  0x11   : > { %s11128_s27 = smov (!%p433_p3, %s432_s27), 33  ;;  %s7337_s18 = smov 112  }
  0x12   : > { %s6135_s28 = sshll.u32 %s11128_s27, 3  ;;  %s7338_s19 = smov 48  }
  0x13   : > { %s7428_s14 = scalar_lea.vmem %s10720_s0, %s6135_s28  ;;  %s7339_s20 = smov 72  }
  0x14   : > { %v445_v0 = vld [vmem:[%s7428_s14] sm:$0xff]  ;;  %v7432_v1 = vld [vmem:[%s7428_s14 + $0x10] sm:$0xff]  ;;  %v446_v2 = vld [vmem:[%s7428_s14 + $0x8] sm:$0xff] }
  0x15   : > { %v985_v3 = vsel %vm984_vm0, %v445_v0, 0.0  ;;  %v991_v4 = vsel %vm984_vm0, %v7432_v1, 0.0  ;;  %v448_v5 = vld [vmem:[%s7428_s14 + $0x18] sm:$0xff]  ;;  %v988_v6 = vsel %vm984_vm0, %v446_v2, 0.0  ;;  %v7442_v8 = vld [vmem:[%s7428_s14 + $0x20] sm:$0xff]  ;;  %v7445_v9 = vld [vmem:[%s7428_s14 + $0x28] sm:$0xff] }
  0x16   : > { %986 = vadd.xlane.f32.xlu0 %v985_v3  ;;  %992 = vadd.xlane.f32.xlu1 %v991_v4  ;;  %v994_v7 = vsel %vm984_vm0, %v448_v5, 0.0  ;;  %v997_v10 = vsel %vm984_vm0, %v7442_v8, 0.0  ;;  %v1000_v11 = vsel %vm984_vm0, %v7445_v9, 0.0  ;;  %v7452_v12 = vld [vmem:[%s7428_s14 + $0x30] sm:$0xff]  ;;  %v7455_v13 = vld [vmem:[%s7428_s14 + $0x38] sm:$0xff]  ;;  %v7462_v16 = vld [vmem:[%s7428_s14 + $0x40] sm:$0xff] }
  0x17   : > { %v1003_v14 = vsel %vm984_vm0, %v7452_v12, 0.0  ;;  %v1006_v15 = vsel %vm984_vm0, %v7455_v13, 0.0  ;;  %v7465_v17 = vld [vmem:[%s7428_s14 + $0x48] sm:$0xff]  ;;  %v1009_v18 = vsel %vm984_vm0, %v7462_v16, 0.0  ;;  %v7472_v20 = vld [vmem:[%s7428_s14 + $0x50] sm:$0xff]  ;;  %v7475_v21 = vld [vmem:[%s7428_s14 + $0x58] sm:$0xff] }
  0x18   : > { %v1012_v19 = vsel %vm984_vm0, %v7465_v17, 0.0  ;;  %v1015_v22 = vsel %vm984_vm0, %v7472_v20, 0.0  ;;  %v1018_v23 = vsel %vm984_vm0, %v7475_v21, 0.0  ;;  %v7482_v24 = vld [vmem:[%s7428_s14 + $0x60] sm:$0xff]  ;;  %v7485_v25 = vld [vmem:[%s7428_s14 + $0x68] sm:$0xff]  ;;  %v7492_v28 = vld [vmem:[%s7428_s14 + $0x70] sm:$0xff] }
  0x19   : > { %v1021_v26 = vsel %vm984_vm0, %v7482_v24, 0.0  ;;  %v1024_v27 = vsel %vm984_vm0, %v7485_v25, 0.0  ;;  %v7495_v29 = vld [vmem:[%s7428_s14 + $0x78] sm:$0xff]  ;;  %v1027_v30 = vsel %vm984_vm0, %v7492_v28, 0.0  ;;  %v7502_v32 = vld [vmem:[%s7428_s14 + $0x80] sm:$0xff] }
  0x1a   : > { %989 = vadd.xlane.f32.xlu0 %v988_v6  ;;  %995 = vadd.xlane.f32.xlu1 %v994_v7  ;;  %v1030_v31 = vsel %vm984_vm0, %v7495_v29, 0.0  ;;  %v1033_v33 = vsel %vm984_vm0, %v7502_v32, 0.0 }
  0x1e   : > { %998 = vadd.xlane.f32.xlu0 %v997_v10  ;;  %1001 = vadd.xlane.f32.xlu1 %v1000_v11 }
  0x22   : > { %1004 = vadd.xlane.f32.xlu0 %v1003_v14  ;;  %1007 = vadd.xlane.f32.xlu1 %v1006_v15 }
  0x26   : > { %1010 = vadd.xlane.f32.xlu0 %v1009_v18  ;;  %1013 = vadd.xlane.f32.xlu1 %v1012_v19 }
  0x2a   : > { %1016 = vadd.xlane.f32.xlu0 %v1015_v22  ;;  %1019 = vadd.xlane.f32.xlu1 %v1018_v23 }
  0x2e   : > { %1022 = vadd.xlane.f32.xlu0 %v1021_v26  ;;  %1025 = vadd.xlane.f32.xlu1 %v1024_v27 }
  0x32   : > { %1028 = vadd.xlane.f32.xlu0 %v1027_v30  ;;  %1031 = vadd.xlane.f32.xlu1 %v1030_v31 }
  0x36   : > { %1034 = vadd.xlane.f32.xlu0 %v1033_v33 }
  0xa3   : > { %v987_v34 = vpop.xlane.xlu0 %986  ;;  %v993_v35 = vpop.xlane.xlu1 %992 }
  0xa4   : > { %v1037_v36 = vmul.f32 0.03125, %v987_v34  ;;  %v1039_v37 = vmul.f32 0.03125, %v993_v35 }
  0xa6   : > { %v7506_v38 = vsub.f32 %v445_v0, %v1037_v36  ;;  %v7509_v39 = vsub.f32 %v7432_v1, %v1039_v37 }
  0xa7   : > { %v990_v40 = vpop.xlane.xlu0 %989  ;;  %v996_v41 = vpop.xlane.xlu1 %995 }
  0xa8   : > { %v1038_v42 = vmul.f32 0.03125, %v990_v40  ;;  %v1040_v43 = vmul.f32 0.03125, %v996_v41  ;;  %v1071_v44 = vmul.f32 %v7506_v38, %v7506_v38  ;;  %v1073_v45 = vmul.f32 %v7509_v39, %v7509_v39 }
  0xaa   : > { %v7515_v46 = vsub.f32 %v446_v2, %v1038_v42  ;;  %v7517_v47 = vsub.f32 %v448_v5, %v1040_v43  ;;  %v1088_v48 = vsel %vm984_vm0, %v1071_v44, 0.0  ;;  %v1094_v51 = vsel %vm984_vm0, %v1073_v45, 0.0 }
  0xab   : > { %1089 = vadd.xlane.f32.xlu1 %v1088_v48  ;;  %v999_v49 = vpop.xlane.xlu0 %998  ;;  %v1002_v50 = vpop.xlane.xlu1 %1001 }
  0xac   : > { %v1041_v52 = vmul.f32 0.03125, %v999_v49  ;;  %v1042_v53 = vmul.f32 0.03125, %v1002_v50  ;;  %v1072_v54 = vmul.f32 %v7515_v46, %v7515_v46  ;;  %v1074_v55 = vmul.f32 %v7517_v47, %v7517_v47 }
  0xae   : > { %v7526_v56 = vsub.f32 %v7442_v8, %v1041_v52  ;;  %v7529_v57 = vsub.f32 %v7445_v9, %v1042_v53  ;;  %v1091_v58 = vsel %vm984_vm0, %v1072_v54, 0.0  ;;  %v1097_v61 = vsel %vm984_vm0, %v1074_v55, 0.0 }
  0xaf   : > { %1095 = vadd.xlane.f32.xlu1 %v1094_v51  ;;  %1092 = vadd.xlane.f32.xlu0 %v1091_v58  ;;  %v1005_v59 = vpop.xlane.xlu0 %1004  ;;  %v1008_v60 = vpop.xlane.xlu1 %1007 }
  0xb0   : > { %v1043_v62 = vmul.f32 0.03125, %v1005_v59  ;;  %v1044_v63 = vmul.f32 0.03125, %v1008_v60  ;;  %v1075_v0 = vmul.f32 %v7526_v56, %v7526_v56  ;;  %v1076_v2 = vmul.f32 %v7529_v57, %v7529_v57 }
  0xb2   : > { %v7538_v3 = vsub.f32 %v7452_v12, %v1043_v62  ;;  %v7541_v4 = vsub.f32 %v7455_v13, %v1044_v63  ;;  %v1100_v5 = vsel %vm984_vm0, %v1075_v0, 0.0  ;;  %v1103_v9 = vsel %vm984_vm0, %v1076_v2, 0.0 }
  0xb3   : > { %1098 = vadd.xlane.f32.xlu0 %v1097_v61  ;;  %1101 = vadd.xlane.f32.xlu1 %v1100_v5  ;;  %v1011_v6 = vpop.xlane.xlu0 %1010  ;;  %v1014_v7 = vpop.xlane.xlu1 %1013 }
  0xb4   : > { %v1045_v10 = vmul.f32 0.03125, %v1011_v6  ;;  %v1046_v11 = vmul.f32 0.03125, %v1014_v7  ;;  %v1077_v14 = vmul.f32 %v7538_v3, %v7538_v3  ;;  %v1078_v15 = vmul.f32 %v7541_v4, %v7541_v4 }
  0xb6   : > { %v7550_v18 = vsub.f32 %v7462_v16, %v1045_v10  ;;  %v7553_v13 = vsub.f32 %v7465_v17, %v1046_v11  ;;  %v1106_v19 = vsel %vm984_vm0, %v1077_v14, 0.0  ;;  %v1109_v26 = vsel %vm984_vm0, %v1078_v15, 0.0  ;;  %v6683_v14 = vld [vmem:[%s10723_s3 + $0x8] sm:$0xff]  }
  0xb7   : > { %1104 = vadd.xlane.f32.xlu0 %v1103_v9  ;;  %1107 = vadd.xlane.f32.xlu1 %v1106_v19  ;;  %v1017_v22 = vpop.xlane.xlu0 %1016  ;;  %v1020_v23 = vpop.xlane.xlu1 %1019  ;;  %v6682_v9 = vld [vmem:[%s10723_s3] sm:$0xff]   ;;  %v10737_v10 = vmov 0.0   ;;  %v10739_v11 = vmov 0  }
  0xb8   : > { %v1047_v27 = vmul.f32 0.03125, %v1017_v22  ;;  %v1048_v30 = vmul.f32 0.03125, %v1020_v23  ;;  %v1079_v31 = vmul.f32 %v7550_v18, %v7550_v18  ;;  %v1080_v33 = vmul.f32 %v7553_v13, %v7553_v13  ;;  %6383 = vmatprep.subr.bf16.mxu0 %v10737_v10  ;;  %1703 = vmatprep.subr.bf16.mxu1 %v10739_v11 }
  0xb9   : > { %6384 = vmatpush3.bf16.msra.mxu0 %v6682_v9  ;;  %1735 = vmatprep.mubr.bf16.mxu1 %v10739_v11 }
  0xba   : > { %v7562_v34 = vsub.f32 %v7472_v20, %v1047_v27  ;;  %v7565_v17 = vsub.f32 %v7475_v21, %v1048_v30  ;;  %v1112_v35 = vsel %vm984_vm0, %v1079_v31, 0.0  ;;  %v1115_v40 = vsel %vm984_vm0, %v1080_v33, 0.0  ;;  %6385 = vmatprep.subr.bf16.mxu0 %v10737_v10  ;;  %6387 = vmatprep.mubr.msk.bf16.mxu0 %vm7329_vm1, %v10737_v10 }
  0xbb   : > { %1110 = vadd.xlane.f32.xlu0 %v1109_v26  ;;  %1113 = vadd.xlane.f32.xlu1 %v1112_v35  ;;  %v1023_v36 = vpop.xlane.xlu0 %1022  ;;  %v1026_v37 = vpop.xlane.xlu1 %1025 }
  0xbc   : > { %v1049_v41 = vmul.f32 0.03125, %v1023_v36  ;;  %v1050_v42 = vmul.f32 0.03125, %v1026_v37  ;;  %v1081_v43 = vmul.f32 %v7562_v34, %v7562_v34  ;;  %v1082_v44 = vmul.f32 %v7565_v17, %v7565_v17 }
  0xbd   : > { %6386 = vmatpush3.bf16.msra.mxu0 %v6683_v14 }
  0xbe   : > { %v7574_v45 = vsub.f32 %v7482_v24, %v1049_v41  ;;  %v7577_v21 = vsub.f32 %v7485_v25, %v1050_v42  ;;  %v1118_v48 = vsel %vm984_vm0, %v1081_v43, 0.0  ;;  %v1121_v51 = vsel %vm984_vm0, %v1082_v44, 0.0  ;;  %2188 = vmatprep.subr.bf16.mxu0 %v10739_v11 }
  0xbf   : > { %1116 = vadd.xlane.f32.xlu0 %v1115_v40  ;;  %1119 = vadd.xlane.f32.xlu1 %v1118_v48  ;;  %v1029_v49 = vpop.xlane.xlu0 %1028  ;;  %v1032_v50 = vpop.xlane.xlu1 %1031  ;;  %v462_v43 = vlaneseq }
  0xc0   : > { %v1051_v52 = vmul.f32 0.03125, %v1029_v49  ;;  %v1052_v53 = vmul.f32 0.03125, %v1032_v50  ;;  %v1083_v54 = vmul.f32 %v7574_v45, %v7574_v45  ;;  %v1084_v55 = vmul.f32 %v7577_v21, %v7577_v21 }
  0xc2   : > { %v7586_v58 = vsub.f32 %v7492_v28, %v1051_v52  ;;  %v7589_v25 = vsub.f32 %v7495_v29, %v1052_v53  ;;  %v1124_v59 = vsel %vm984_vm0, %v1083_v54, 0.0  ;;  %v1127_v62 = vsel %vm984_vm0, %v1084_v55, 0.0 }
  0xc3   : > { %1122 = vadd.xlane.f32.xlu0 %v1121_v51  ;;  %1125 = vadd.xlane.f32.xlu1 %v1124_v59  ;;  %v1035_v60 = vpop.xlane.xlu0 %1034  ;;  %v7629_v59 = vshrl.u32 %v462_v43, 7 }
  0xc4   : > { %v1053_v61 = vmul.f32 0.03125, %v1035_v60  ;;  %v1085_v63 = vmul.f32 %v7586_v58, %v7586_v58  ;;  %v1086_v0 = vmul.f32 %v7589_v25, %v7589_v25 }
  0xc6   : > { %v7598_v2 = vsub.f32 %v7502_v32, %v1053_v61  ;;  %v1130_v29 = vsel %vm984_vm0, %v1085_v63, 0.0  ;;  %v1133_v5 = vsel %vm984_vm0, %v1086_v0, 0.0 }
  0xc7   : > { %1128 = vadd.xlane.f32.xlu0 %v1127_v62  ;;  %1131 = vadd.xlane.f32.xlu1 %v1130_v29 }
  0xc8   : > { %v1087_v6 = vmul.f32 %v7598_v2, %v7598_v2 }
  0xca   : > { %v1136_v7 = vsel %vm984_vm0, %v1087_v6, 0.0 }
  0xcb   : > { %1134 = vadd.xlane.f32.xlu0 %v1133_v5  ;;  %1137 = vadd.xlane.f32.xlu1 %v1136_v7 }
 0x138   : > { %v1090_v15 = vpop.xlane.xlu1 %1089 }
 0x139   : > { %v1139_v19 = vmul.f32 0.032258064, %v1090_v15 }
 0x13b   : > { %6690 = vrsqrt.f32 %v1139_v19  ;;  %vm1158_vm2 = vcmp.eq.f32.partialorder %v1139_v19, inf  ;;  %v1161_v49 = vand.u32 2147483648, %v1139_v19  ;;  %vm1160_vm3 = vcmp.eq.f32.partialorder %v1139_v19, 0.0 }
 0x13c   : > { %v1096_v22 = vpop.xlane.xlu1 %1095  ;;  %v1093_v23 = vpop.xlane.xlu0 %1092 }
 0x13d   : > { %v1141_v26 = vmul.f32 0.032258064, %v1096_v22  ;;  %v1140_v27 = vmul.f32 0.032258064, %v1093_v23 }
 0x13f   : > { %6692 = vrsqrt.f32 %v1141_v26  ;;  %vm1172_vm4 = vcmp.eq.f32.partialorder %v1141_v26, inf  ;;  %vm1174_vm5 = vcmp.eq.f32.partialorder %v1141_v26, 0.0  ;;  %v1175_v63 = vand.u32 2147483648, %v1141_v26 }
 0x140   : > { %6694 = vrsqrt.f32 %v1140_v27  ;;  %v1102_v30 = vpop.xlane.xlu1 %1101  ;;  %v1099_v31 = vpop.xlane.xlu0 %1098  ;;  %vm1165_vm6 = vcmp.eq.f32.partialorder %v1140_v27, inf  ;;  %v1168_v0 = vand.u32 2147483648, %v1140_v27  ;;  %vm1167_vm7 = vcmp.eq.f32.partialorder %v1140_v27, 0.0 }
 0x141   : > { %v7618_v33 = vmul.f32 0.032258064, %v1102_v30  ;;  %v1142_v35 = vmul.f32 0.032258064, %v1099_v31 }
 0x143   : > { %6696 = vrsqrt.f32 %v7618_v33  ;;  %vm1186_vm8 = vcmp.eq.f32.partialorder %v7618_v33, inf  ;;  %vm1179_vm9 = vcmp.eq.f32.partialorder %v1142_v35, inf  ;;  %v1182_v31 = vand.u32 2147483648, %v1142_v35 }
 0x144   : > { %6698 = vrsqrt.f32 %v1142_v35  ;;  %v1108_v36 = vpop.xlane.xlu1 %1107  ;;  %v1105_v37 = vpop.xlane.xlu0 %1104  ;;  %vm1181_vm10 = vcmp.eq.f32.partialorder %v1142_v35, 0.0  ;;  %vm1188_vm13 = vcmp.eq.f32.partialorder %v7618_v33, 0.0 }
 0x145   : > { %v6691_v40 = vpop.eup %6690  ;;  %v7621_v41 = vmul.f32 0.032258064, %v1105_v37  ;;  %v7623_v44 = vmul.f32 0.032258064, %v1108_v36 }
 0x146   : > { %v1157_v42 = vmul.f32 %v6691_v40, %v1139_v19 }
 0x147   : > { %6700 = vrsqrt.f32 %v7621_v41  ;;  %vm1193_vm12 = vcmp.eq.f32.partialorder %v7621_v41, inf  ;;  %vm1195_vm14 = vcmp.eq.f32.partialorder %v7621_v41, 0.0 }
 0x148   : > { %v1159_v48 = vsel %vm1158_vm2, %v1139_v19, %v1157_v42  ;;  %v1111_v50 = vpop.xlane.xlu0 %1110  ;;  %6702 = vrsqrt.f32 %v7623_v44  ;;  %v1114_v61 = vpop.xlane.xlu1 %1113  ;;  %v7636_v19 = vadd.s32 16, %v7629_v59  ;;  %vm1200_vm2 = vcmp.eq.f32.partialorder %v7623_v44, inf }
 0x149   : > { %v6693_v51 = vpop.eup %6692  ;;  %v7626_v52 = vmul.f32 0.032258064, %v1111_v50  ;;  %v1162_v54 = vsel %vm1160_vm3, %v1161_v49, %v1159_v48  ;;  %v7633_v15 = vmul.f32 0.032258064, %v1114_v61  ;;  %v1189_v48 = vand.u32 2147483648, %v7618_v33 }
 0x14a   : > { %v6695_v53 = vpop.eup %6694  ;;  %v1171_v55 = vmul.f32 %v6693_v51, %v1141_v26  ;;  %v1275_v5 = vadd.f32 1e-05, %v1162_v54  ;;  %vm485_vm11 = vcmp.ge.s32.totalorder %v7636_v19, 17  ;;  %v7647_v51 = vadd.s32 32, %v7629_v59 }
 0x14b   : > { %v1164_v60 = vmul.f32 %v6695_v53, %v1140_v27  ;;  %6704 = vrsqrt.f32 %v7626_v52  ;;  %v7655_v61 = vsel %vm485_vm11, 1, %v10739_v11  ;;  %vm1207_vm3 = vcmp.eq.f32.partialorder %v7626_v52, inf }
 0x14c   : > { %v1173_v62 = vsel %vm1172_vm4, %v1141_v26, %v1171_v55  ;;  %v1117_v30 = vpop.xlane.xlu0 %1116  ;;  %6706 = vrcp.f32 %v1275_v5  ;;  %v1120_v50 = vpop.xlane.xlu1 %1119  ;;  %vm525_vm15 = vcmp.ge.s32.totalorder %v7647_v51, 34  ;;  %v7665_v5 = vadd.s32 48, %v7629_v59 }
 0x14d   : > { %v6697_v29 = vpop.eup %6696  ;;  %v1166_v6 = vsel %vm1165_vm6, %v1140_v27, %v1164_v60  ;;  %v1176_v9 = vsel %vm1174_vm5, %v1175_v63, %v1173_v62  ;;  %6708 = vrsqrt.f32 %v7633_v15  ;;  %v7641_v42 = vmul.f32 0.032258064, %v1117_v30 }
 0x14e   : > { %v6699_v7 = vpop.eup %6698  ;;  %v1169_v14 = vsel %vm1167_vm7, %v1168_v0, %v1166_v6  ;;  %v1185_v26 = vmul.f32 %v6697_v29, %v7618_v33  ;;  %v1277_v27 = vadd.f32 1e-05, %v1176_v9  ;;  %v1196_v62 = vand.u32 2147483648, %v7621_v41 }
 0x14f   : > { %v1276_v22 = vadd.f32 1e-05, %v1169_v14  ;;  %v1178_v23 = vmul.f32 %v6699_v7, %v1142_v35  ;;  %v7659_v63 = vmul.f32 0.032258064, %v1120_v50  ;;  %vm584_vm4 = vcmp.ge.s32.totalorder %v7665_v5, 51 }
 0x150   : > { %v1123_v60 = vpop.xlane.xlu0 %1122  ;;  %vm1202_vm5 = vcmp.eq.f32.partialorder %v7623_v44, 0.0  ;;  %vm1209_vm6 = vcmp.eq.f32.partialorder %v7626_v52, 0.0  ;;  %vm1214_vm7 = vcmp.eq.f32.partialorder %v7633_v15, inf  ;;  %vm1223_vm11 = vcmp.eq.f32.partialorder %v7641_v42, 0.0 }
 0x151   : > { %v1180_v36 = vsel %vm1179_vm9, %v1142_v35, %v1178_v23  ;;  %v6701_v37 = vpop.eup %6700  ;;  %6710 = vrcp.f32 %v1276_v22  ;;  %v1187_v35 = vsel %vm1186_vm8, %v7618_v33, %v1185_v26  ;;  %v7668_v33 = vmul.f32 0.032258064, %v1123_v60  ;;  %v7693_v60 = vld [vmem:[%s10721_s1] ss:$0 sm:$0xff] }
 0x152   : > { %v1183_v40 = vsel %vm1181_vm10, %v1182_v31, %v1180_v36  ;;  %v1192_v49 = vmul.f32 %v6701_v37, %v7621_v41  ;;  %v6703_v54 = vpop.eup %6702  ;;  %6712 = vrcp.f32 %v1277_v27  ;;  %v1190_v29 = vsel %vm1188_vm13, %v1189_v48, %v1187_v35  ;;  %v1126_v37 = vpop.xlane.xlu1 %1125 }
 0x153   : > { %v1278_v53 = vadd.f32 1e-05, %v1183_v40  ;;  %6714 = vrsqrt.f32 %v7641_v42  ;;  %v1199_v6 = vmul.f32 %v6703_v54, %v7623_v44  ;;  %v1279_v14 = vadd.f32 1e-05, %v1190_v29 }
 0x154   : > { %v1194_v55 = vsel %vm1193_vm12, %v7621_v41, %v1192_v49  ;;  %v542_v41 = vsel %vm525_vm15, 1, %v10739_v11  ;;  %v1203_v23 = vand.u32 2147483648, %v7623_v44  ;;  %v865_v26 = vmul.u32 17, %v7655_v61  ;;  %v1129_v49 = vpop.xlane.xlu0 %1128 }
 0x155   : > { %v6705_v0 = vpop.eup %6704  ;;  %6716 = vrcp.f32 %v1278_v53  ;;  %v1197_v7 = vsel %vm1195_vm14, %v1196_v62, %v1194_v55  ;;  %v1201_v27 = vsel %vm1200_vm2, %v7623_v44, %v1199_v6  ;;  %v1210_v36 = vand.u32 2147483648, %v7626_v52 }
 0x156   : > { %v1206_v9 = vmul.f32 %v6705_v0, %v7626_v52  ;;  %6718 = vrsqrt.f32 %v7659_v63  ;;  %v6707_v22 = vpop.eup %6706  ;;  %v1280_v30 = vadd.f32 1e-05, %v1197_v7  ;;  %v7684_v50 = vadd.s32 1, %v542_v41 }
 0x157   : > { %v6709_v31 = vpop.eup %6708  ;;  %6720 = vrsqrt.f32 %v7668_v33  ;;  %v1309_v35 = vmul.f32 %v6707_v22, %v7506_v38  ;;  %v601_v53 = vsel %vm584_vm4, 1, %v10739_v11  ;;  %v1204_v44 = vsel %vm1202_vm5, %v1203_v23, %v1201_v27 }
 0x158   : > { %v1208_v48 = vsel %vm1207_vm3, %v7626_v52, %v1206_v9  ;;  %6722 = vrcp.f32 %v1279_v14  ;;  %v7688_v55 = vmul.f32 0.032258064, %v1126_v37  ;;  %v7696_v52 = vsub.s32 %v7636_v19, %v865_v26  ;;  %v7715_v26 = vld [vmem:[%s10722_s2] ss:$0 sm:$0xff] }
 0x159   : > { %6724 = vrcp.f32 %v1280_v30  ;;  %v1213_v0 = vmul.f32 %v6709_v31, %v7633_v15  ;;  %v1211_v29 = vsel %vm1209_vm6, %v1210_v36, %v1208_v48  ;;  %v7699_v38 = vmul.f32 0.032258064, %v1129_v49  ;;  %v1135_v49 = vpop.xlane.xlu0 %1134 }
 0x15a   : > { %10870 = vst [vmem:[#allocation2_spill] sm:$0xff] %v7696_v52  ;;  %v867_v9 = vmul.u32 17, %v7684_v50  ;;  %v7705_v14 = vadd.s32 2, %v601_v53  ;;  %v1281_v22 = vadd.f32 1e-05, %v1204_v44  ;;  %vm1216_vm8 = vcmp.eq.f32.partialorder %v7633_v15, 0.0 }
 0x15b   : > { %v6711_v40 = vpop.eup %6710  ;;  %vm1221_vm9 = vcmp.eq.f32.partialorder %v7641_v42, inf  ;;  %v1332_v19 = vmul.f32 %v7693_v60, %v1309_v35  ;;  %v1217_v23 = vand.u32 2147483648, %v7633_v15  ;;  %v1282_v30 = vadd.f32 1e-05, %v1211_v29 }
 0x15c   : > { %v6713_v54 = vpop.eup %6712  ;;  %v1310_v6 = vmul.f32 %v6711_v40, %v7515_v46  ;;  %6726 = vrsqrt.f32 %v7688_v55  ;;  %v1132_v46 = vpop.xlane.xlu1 %1131  ;;  %v1215_v36 = vsel %vm1214_vm7, %v7633_v15, %v1213_v0  ;;  %v1224_v37 = vand.u32 2147483648, %v7641_v42 }
 0x15d   : > { %v6715_v62 = vpop.eup %6714  ;;  %v1311_v31 = vmul.f32 %v6713_v54, %v7509_v39  ;;  %6728 = vrsqrt.f32 %v7699_v38  ;;  %vm899_vm10 = vcmp.eq.s32.totalorder %v7696_v52, 16  ;;  %v7729_v35 = vsub.s32 %v7647_v51, %v867_v9 }
 0x15e   : > { %v1220_v7 = vmul.f32 %v6715_v62, %v7641_v42  ;;  %v1333_v40 = vmul.f32 %v7693_v60, %v1310_v6  ;;  %6730 = vrcp.f32 %v1281_v22  ;;  %v7731_v54 = vmul.f32 0.032258064, %v1132_v46 }
 0x15f   : > { %v6717_v41 = vpop.eup %6716  ;;  %10871 = vst [vmem:[#allocation3_spill] sm:$0xff] %v7729_v35  ;;  %v1355_v44 = vadd.f32 %v7715_v26, %v1332_v19  ;;  %v1218_v0 = vsel %vm1216_vm8, %v1217_v23, %v1215_v36  ;;  %6732 = vrcp.f32 %v1282_v30  ;;  %v1334_v29 = vmul.f32 %v7693_v60, %v1311_v31 }
 0x160   : > { %v6719_v27 = vpop.eup %6718  ;;  %v1222_v48 = vsel %vm1221_vm9, %v7641_v42, %v1220_v7  ;;  %v1312_v39 = vmul.f32 %v6717_v41, %v7517_v47  ;;  %v1356_v62 = vadd.f32 %v7715_v26, %v1333_v40  ;;  %v7739_v51 = vmul.f32 0.032258064, %v1135_v49  ;;  %v1138_v46 = vpop.xlane.xlu1 %1137 }
 0x161   : > { %v6721_v53 = vpop.eup %6720  ;;  %v1227_v42 = vmul.f32 %v6719_v27, %v7659_v63  ;;  %v1225_v6 = vsel %vm1223_vm11, %v1224_v37, %v1222_v48  ;;  %vm1228_vm12 = vcmp.eq.f32.partialorder %v7659_v63, inf  ;;  %vm1230_vm13 = vcmp.eq.f32.partialorder %v7659_v63, 0.0 }
 0x162   : > { %v6723_v47 = vpop.eup %6722  ;;  %v1423_v7 = vpack.c.bf16 %v1356_v62, %v1355_v44  ;;  %v1335_v9 = vmul.f32 %v7693_v60, %v1312_v39  ;;  %v1234_v15 = vmul.f32 %v6721_v53, %v7668_v33  ;;  %v7746_v22 = vadd.s32 64, %v7629_v59 }
 0x163   : > { %v6725_v41 = vpop.eup %6724  ;;  %v1283_v19 = vadd.f32 1e-05, %v1218_v0  ;;  %v1231_v23 = vand.u32 2147483648, %v7659_v63  ;;  %vm1235_vm14 = vcmp.eq.f32.partialorder %v7668_v33, inf  ;;  %v1238_v30 = vand.u32 2147483648, %v7668_v33 }
 0x164   : > { %6388 = vmatmul.mubr.msk.bf16.vlgmr.msra.gmra.mrb[0].mxu0 %vm984_vm0, %v1423_v7  ;;  %v1284_v31 = vadd.f32 1e-05, %v1225_v6  ;;  %6734 = vrsqrt.f32 %v7731_v54  ;;  %v1357_v27 = vadd.f32 %v7715_v26, %v1334_v29  ;;  %v1313_v36 = vmul.f32 %v6723_v47, %v7526_v56 }
 0x165   : > { %6391 = vmatprep.mubr.msk.bf16.mxu0 %vm7329_vm1, %v10737_v10  ;;  %v1229_v37 = vsel %vm1228_vm12, %v7659_v63, %v1227_v42  ;;  %6736 = vrsqrt.f32 %v7739_v51  ;;  %v1358_v40 = vadd.f32 %v7715_v26, %v1335_v9  ;;  %v1314_v48 = vmul.f32 %v6725_v41, %v7529_v57 }
 0x166   : > { %v6727_v49 = vpop.eup %6726  ;;  %v1236_v39 = vsel %vm1235_vm14, %v7668_v33, %v1234_v15  ;;  %vm1237_vm15 = vcmp.eq.f32.partialorder %v7668_v33, 0.0  ;;  %v7763_v53 = vmul.f32 0.032258064, %v1138_v46  ;;  %6738 = vrcp.f32 %v1283_v19 }
 0x167   : > { %v6729_v44 = vpop.eup %6728  ;;  %vm901_vm2 = vcmp.eq.s32.totalorder %v7729_v35, 16  ;;  %v869_v56 = vmul.u32 17, %v7705_v14  ;;  %vm643_vm3 = vcmp.ge.s32.totalorder %v7746_v22, 68  ;;  %v1232_v62 = vsel %vm1230_vm13, %v1231_v23, %v1229_v37 }
 0x168   : > { %6740 = vrcp.f32 %v1284_v31  ;;  %v1408_v57 = vsel %vm899_vm10, %v7432_v1, %v1357_v27  ;;  %v1336_v33 = vmul.f32 %v7693_v60, %v1313_v36  ;;  %v6731_v0 = vpop.eup %6730  ;;  %v1241_v42 = vmul.f32 %v6727_v49, %v7688_v55 }
 0x169   : > { %v1239_v29 = vsel %vm1237_vm15, %v1238_v30, %v1236_v39  ;;  %v1424_v47 = vpack.c.bf16 %v1358_v40, %v1408_v57  ;;  %v1337_v6 = vmul.f32 %v7693_v60, %v1314_v48  ;;  %v6733_v7 = vpop.eup %6732  ;;  %vm1242_vm4 = vcmp.eq.f32.partialorder %v7688_v55, inf }
 0x16a   : > { %v1248_v63 = vmul.f32 %v6729_v44, %v7699_v38  ;;  %6742 = vrsqrt.f32 %v7763_v53  ;;  %v660_v9 = vsel %vm643_vm3, 1, %v10739_v11  ;;  %v1285_v41 = vadd.f32 1e-05, %v1232_v62 }
 0x16b   : > { %vm1244_vm5 = vcmp.eq.f32.partialorder %v7688_v55, 0.0  ;;  %vm1249_vm6 = vcmp.eq.f32.partialorder %v7699_v38, inf  ;;  %v7784_v1 = vadd.s32 80, %v7629_v59  ;;  %v1245_v15 = vand.u32 2147483648, %v7688_v55 }
 0x16c   : > { %6392 = vmatmul.mubr.msk.bf16.gmra.mrb[4].mxu0 %vm984_vm0, %v1424_v47  ;;  %v1286_v19 = vadd.f32 1e-05, %v1239_v29  ;;  %v1359_v23 = vadd.f32 %v7715_v26, %v1336_v33  ;;  %v1315_v30 = vmul.f32 %v6731_v0, %v7538_v3  ;;  %v1243_v46 = vsel %vm1242_vm4, %v7688_v55, %v1241_v42 }
 0x16d   : > { %6395 = vmatprep.mubr.msk.bf16.mxu0 %vm7329_vm1, %v10737_v10  ;;  %v1252_v31 = vand.u32 2147483648, %v7699_v38  ;;  %v1360_v27 = vadd.f32 %v7715_v26, %v1337_v6  ;;  %v1316_v36 = vmul.f32 %v6733_v7, %v7541_v4  ;;  %v1250_v40 = vsel %vm1249_vm6, %v7699_v38, %v1248_v63 }
 0x16e   : > { %v6735_v37 = vpop.eup %6734  ;;  %vm1251_vm7 = vcmp.eq.f32.partialorder %v7699_v38, 0.0  ;;  %v7798_v48 = vsub.s32 %v7665_v5, %v869_v56  ;;  %v7800_v49 = vadd.s32 3, %v660_v9  ;;  %6744 = vrcp.f32 %v1285_v41 }
 0x16f   : > { %v6737_v39 = vpop.eup %6736  ;;  %vm702_vm8 = vcmp.ge.s32.totalorder %v7784_v1, 85  ;;  %v1246_v3 = vsel %vm1244_vm5, %v1245_v15, %v1243_v46  ;;  %6746 = vrcp.f32 %v1286_v19  ;;  %v1410_v4 = vsel %vm901_vm2, %v7442_v8, %v1359_v23 }
 0x170   : > { %10872 = vst [vmem:[#allocation4_spill] sm:$0xff] %v7798_v48  ;;  %v1338_v44 = vmul.f32 %v7693_v60, %v1315_v30  ;;  %v6739_v38 = vpop.eup %6738  ;;  %v1255_v5 = vmul.f32 %v6735_v37, %v7731_v54  ;;  %v1253_v56 = vsel %vm1251_vm7, %v1252_v31, %v1250_v40  ;;  %v1425_v62 = vpack.c.bf16 %v1360_v27, %v1410_v4 }
 0x171   : > { %v1339_v57 = vmul.f32 %v7693_v60, %v1316_v36  ;;  %vm1256_vm9 = vcmp.eq.f32.partialorder %v7731_v54, inf  ;;  %v1262_v55 = vmul.f32 %v6737_v39, %v7739_v51  ;;  %vm903_vm11 = vcmp.eq.s32.totalorder %v7798_v48, 16 }
 0x172   : > { %v6741_v33 = vpop.eup %6740  ;;  %v871_v0 = vmul.u32 17, %v7800_v49  ;;  %v1287_v42 = vadd.f32 1e-05, %v1246_v3  ;;  %vm1258_vm12 = vcmp.eq.f32.partialorder %v7731_v54, 0.0  ;;  %vm1263_vm13 = vcmp.eq.f32.partialorder %v7739_v51, inf }
 0x173   : > { %v719_v8 = vsel %vm702_vm8, 1, %v10739_v11  ;;  %v1259_v47 = vand.u32 2147483648, %v7731_v54  ;;  %v1288_v6 = vadd.f32 1e-05, %v1253_v56  ;;  %v1361_v7 = vadd.f32 %v7715_v26, %v1338_v44 }
 0x174   : > { %6396 = vmatmul.mubr.msk.bf16.gmra.mrb[8].mxu0 %vm984_vm0, %v1425_v62  ;;  %v6743_v29 = vpop.eup %6742  ;;  %v1317_v63 = vmul.f32 %v6739_v38, %v7550_v18  ;;  %v1257_v9 = vsel %vm1256_vm9, %v7731_v54, %v1255_v5  ;;  %v1266_v41 = vand.u32 2147483648, %v7739_v51  ;;  %v1362_v15 = vadd.f32 %v7715_v26, %v1339_v57 }
 0x175   : > { %6399 = vmatprep.mubr.msk.bf16.mxu0 %vm7329_vm1, %v10737_v10  ;;  %v1318_v19 = vmul.f32 %v6741_v33, %v7553_v13  ;;  %v1264_v23 = vsel %vm1263_vm13, %v7739_v51, %v1262_v55  ;;  %vm1265_vm14 = vcmp.eq.f32.partialorder %v7739_v51, 0.0  ;;  %v7832_v30 = vadd.s32 4, %v719_v8 }
 0x176   : > { %6748 = vrcp.f32 %v1287_v42  ;;  %v1269_v46 = vmul.f32 %v6743_v29, %v7763_v53  ;;  %vm1270_vm15 = vcmp.eq.f32.partialorder %v7763_v53, inf  ;;  %v475_v18 = vadd.s32 96, %v7629_v59 }
 0x177   : > { %v1260_v31 = vsel %vm1258_vm12, %v1259_v47, %v1257_v9  ;;  %6750 = vrcp.f32 %v1288_v6  ;;  %v1412_v13 = vsel %vm903_vm11, %v7452_v12, %v1361_v7  ;;  %v1340_v27 = vmul.f32 %v7693_v60, %v1317_v63 }
 0x178   : > { %v6745_v51 = vpop.eup %6744  ;;  %v1267_v36 = vsel %vm1265_vm14, %v1266_v41, %v1264_v23  ;;  %v1426_v37 = vpack.c.bf16 %v1362_v15, %v1412_v13  ;;  %v7844_v40 = vsub.s32 %v7746_v22, %v871_v0  ;;  %v1341_v39 = vmul.f32 %v7693_v60, %v1318_v19 }
 0x179   : > { %v6747_v3 = vpop.eup %6746  ;;  %v1273_v4 = vand.u32 2147483648, %v7763_v53  ;;  %v1289_v54 = vadd.f32 1e-05, %v1260_v31  ;;  %v1271_v44 = vsel %vm1270_vm15, %v7763_v53, %v1269_v46  ;;  %vm1272_vm3 = vcmp.eq.f32.partialorder %v7763_v53, 0.0 }
 0x17a   : > { %10873 = vst [vmem:[#allocation5_spill] sm:$0xff] %v7844_v40  ;;  %vm761_vm4 = vcmp.ge.s32.totalorder %v475_v18, 102  ;;  %v1290_v12 = vadd.f32 1e-05, %v1267_v36  ;;  %v1363_v22 = vadd.f32 %v7715_v26, %v1340_v27  ;;  %v873_v38 = vmul.u32 17, %v7832_v30 }
 0x17b   : > { %v1319_v5 = vmul.f32 %v6745_v51, %v7562_v34  ;;  %vm905_vm5 = vcmp.eq.s32.totalorder %v7844_v40, 16  ;;  %v1364_v56 = vadd.f32 %v7715_v26, %v1341_v39  ;;  %v1320_v62 = vmul.f32 %v6747_v3, %v7565_v17 }
 0x17c   : > { %6400 = vmatmul.mubr.msk.bf16.gmra.mrb[12].mxu0 %vm984_vm0, %v1426_v37  ;;  %v1274_v53 = vsel %vm1272_vm3, %v1273_v4, %v1271_v44  ;;  %v778_v57 = vsel %vm761_vm4, 1, %v10739_v11  ;;  %6752 = vrcp.f32 %v1289_v54  ;;  %v477_v33 = vadd.s32 112, %v7629_v59 }
 0x17d   : > { %6403 = vmatprep.mubr.msk.bf16.mxu0 %vm7329_vm1, %v10737_v10  ;;  %6754 = vrcp.f32 %v1290_v12  ;;  %v1414_v55 = vsel %vm905_vm5, %v7462_v16, %v1363_v22  ;;  %v7865_v0 = vsub.s32 %v7784_v1, %v873_v38  ;;  %v1342_v34 = vmul.f32 %v7693_v60, %v1319_v5 }
 0x17e   : > { %v1291_v8 = vadd.f32 1e-05, %v1274_v53  ;;  %v1427_v29 = vpack.c.bf16 %v1364_v56, %v1414_v55  ;;  %v1343_v17 = vmul.f32 %v7693_v60, %v1320_v62  ;;  %v7869_v47 = vadd.s32 5, %v778_v57 }
 0x17f   : > { %10874 = vst [vmem:[#allocation6_spill] sm:$0xff] %v7865_v0  ;;  %vm820_vm6 = vcmp.ge.s32.totalorder %v477_v33, 119  ;;  %vm907_vm7 = vcmp.eq.s32.totalorder %v7865_v0, 16  ;;  %v1365_v16 = vadd.f32 %v7715_v26, %v1342_v34  ;;  %v479_v12 = vadd.s32 128, %v7629_v59 }
 0x180   : > { %v6749_v42 = vpop.eup %6748  ;;  %6756 = vrcp.f32 %v1291_v8  ;;  %v1366_v7 = vadd.f32 %v7715_v26, %v1343_v17  ;;  %v875_v63 = vmul.u32 17, %v7869_v47  ;;  %v837_v41 = vsel %vm820_vm6, 1, %v10739_v11 }
 0x181   : > { %v6751_v6 = vpop.eup %6750  ;;  %v1321_v1 = vmul.f32 %v6749_v42, %v7574_v45  ;;  %v1416_v15 = vsel %vm907_vm7, %v7472_v20, %v1365_v16  ;;  %v7888_v13 = vadd.s32 6, %v837_v41  ;;  %v7915_v38 = vadd.s32 4294967177, %v479_v12 }
 0x182   : > { %v1322_v9 = vmul.f32 %v6751_v6, %v7577_v21  ;;  %v1428_v46 = vpack.c.bf16 %v1366_v7, %v1416_v15  ;;  %v7885_v31 = vsub.s32 %v475_v18, %v875_v63  ;;  %vm1648_vm13 = vcmask 64512  }
 0x183   : > { %v1344_v19 = vmul.f32 %v7693_v60, %v1321_v1  ;;  %v877_v18 = vmul.u32 17, %v7888_v13  ;;  %10877 = vst [vmem:[#allocation9_spill] sm:$0xff] %v7915_v38  ;;  %vm10734_vm12 = vcmp.eq.s32.totalorder %v7915_v38, 16  ;;  %vm2184_vm14 = vcmask 1043456  }
 0x184   : > { %6404 = vmatmul.mubr.msk.bf16.gmra.mrb[16].mxu0 %vm984_vm0, %v1427_v29  ;;  %10875 = vst [vmem:[#allocation7_spill] sm:$0xff] %v7885_v31  ;;  %v1345_v45 = vmul.f32 %v7693_v60, %v1322_v9  ;;  %vm10736_vm8 = vcmp.eq.s32.totalorder %v7885_v31, 16 }
 0x185   : > { %6407 = vmatprep.mubr.msk.bf16.mxu0 %vm7329_vm1, %v10737_v10  ;;  %v1367_v21 = vadd.f32 %v7715_v26, %v1344_v19  ;;  %v7903_v54 = vsub.s32 %v477_v33, %v877_v18 }
 0x186   : > { %v6753_v23 = vpop.eup %6752  ;;  %v1368_v51 = vadd.f32 %v7715_v26, %v1345_v45 }
 0x187   : > { %v6755_v27 = vpop.eup %6754  ;;  %v1323_v20 = vmul.f32 %v6753_v23, %v7586_v58  ;;  %v1418_v39 = vsel %vm10736_vm8, %v7482_v24, %v1367_v21  ;;  %10876 = vst [vmem:[#allocation8_spill] sm:$0xff] %v7903_v54  ;;  %vm10735_vm9 = vcmp.eq.s32.totalorder %v7903_v54, 16 }
 0x188   : > { %v1324_v36 = vmul.f32 %v6755_v27, %v7589_v25  ;;  %v1429_v4 = vpack.c.bf16 %v1368_v51, %v1418_v39 }
 0x189   : > { %v1346_v3 = vmul.f32 %v7693_v60, %v1323_v20 }
 0x18a   : > { %v6757_v37 = vpop.eup %6756  ;;  %v1347_v58 = vmul.f32 %v7693_v60, %v1324_v36 }
 0x18b   : > { %v1325_v44 = vmul.f32 %v6757_v37, %v7598_v2  ;;  %v1369_v25 = vadd.f32 %v7715_v26, %v1346_v3 }
 0x18c   : > { %6408 = vmatmul.mubr.msk.bf16.gmra.mrb[20].mxu0 %vm984_vm0, %v1428_v46  ;;  %v1370_v24 = vadd.f32 %v7715_v26, %v1347_v58 }
 0x18d   : > { %6411 = vmatprep.mubr.msk.bf16.mxu0 %vm7329_vm1, %v10737_v10  ;;  %v1348_v22 = vmul.f32 %v7693_v60, %v1325_v44  ;;  %v1420_v2 = vsel %vm10735_vm9, %v7492_v28, %v1369_v25  ;;  %v7932_v28 = vld [vmem:[%s10724_s4] ss:$0 sm:$0xff] }
 0x18e   : > { %v1430_v5 = vpack.c.bf16 %v1370_v24, %v1420_v2 }
 0x18f   : > { %v1371_v59 = vadd.f32 %v7715_v26, %v1348_v22 }
 0x191   : > { %v1422_v60 = vsel %vm10734_vm12, %v7502_v32, %v1371_v59 }
 0x192   : > { %v1431_v56 = vpack.c.bf16 %v1422_v60, %v1422_v60 }
 0x194   : > { %6412 = vmatmul.mubr.msk.bf16.gmra.mrb[24].mxu0 %vm984_vm0, %v1429_v4 }
 0x195   : > { %6415 = vmatprep.mubr.msk.bf16.mxu0 %vm7329_vm1, %v10737_v10 }
 0x19c   : > { %6416 = vmatmul.mubr.msk.bf16.gmra.mrb[28].mxu0 %vm984_vm0, %v1430_v5 }
 0x19d   : > { %6419 = vmatprep.mubr.msk.bf16.mxu0 %vm7329_vm1, %v10737_v10 }
 0x1a4   : > { %6420 = vmatmul.mubr.msk.bf16.gmra.mrb[32].mxu0 %vm984_vm0, %v1431_v56 }
 0x237   : > { %v1516_v26 = vpop.f32.mrb[0].mxu0 }
 0x238   : > { %v1517_v62 = vadd.f32 %v7932_v28, %v1516_v26  ;;  %v6389_v53 = vpop.f32.mrb[1].mxu0 }
 0x239   : > { %v1519_v57 = vpop.f32.mrb[2].mxu0 }
 0x23a   : > { %v1520_v33 = vadd.f32 %v7932_v28, %v1519_v57  ;;  %v6390_v55 = vpop.f32.mrb[3].mxu0  ;;  %v1586_v34 = vmul.f32 0.35355338, %v1517_v62 }
 0x23c   : > { %v1587_v42 = vmul.f32 0.35355338, %v1520_v33  ;;  %v7936_v8 = vpack.c.bf16 %v1520_v33, %v1517_v62 }
 0x23e   : > { %10878 = vst [vmem:[#allocation10_spill] sm:$0xff] %v7936_v8  ;;  %1630 = vrot.lane.b32.xlu0 %v7936_v8, %s7330_s26  ;;  %v7940_v32 = vpack.c.bf16 %v1587_v42, %v1586_v34 }
 0x23f   : > { %v1524_v29 = vpop.f32.mrb[4].mxu0 }
 0x240   : > { %10879 = vst [vmem:[#allocation11_spill] sm:$0xff] %v7940_v32  ;;  %v1525_v17 = vadd.f32 %v7932_v28, %v1524_v29  ;;  %v6393_v6 = vpop.f32.mrb[5].mxu0 }
 0x241   : > { %v1527_v16 = vpop.f32.mrb[6].mxu0 }
 0x242   : > { %v1528_v1 = vadd.f32 %v7932_v28, %v1527_v16  ;;  %v6394_v7 = vpop.f32.mrb[7].mxu0  ;;  %v1588_v63 = vmul.f32 0.35355338, %v1525_v17 }
 0x244   : > { %v1589_v9 = vmul.f32 0.35355338, %v1528_v1  ;;  %v7944_v41 = vpack.c.bf16 %v1528_v1, %v1525_v17 }
 0x246   : > { %10880 = vst [vmem:[#allocation12_spill] sm:$0xff] %v7944_v41  ;;  %1632 = vrot.lane.b32.xlu1 %v7944_v41, %s7330_s26  ;;  %v7948_v15 = vpack.c.bf16 %v1589_v9, %v1588_v63 }
 0x247   : > { %v1532_v19 = vpop.f32.mrb[8].mxu0 }
 0x248   : > { %10881 = vst [vmem:[#allocation13_spill] sm:$0xff] %v7948_v15  ;;  %v1533_v23 = vadd.f32 %v7932_v28, %v1532_v19  ;;  %v6397_v46 = vpop.f32.mrb[9].mxu0 }
 0x249   : > { %v1535_v45 = vpop.f32.mrb[10].mxu0 }
 0x24a   : > { %v1536_v27 = vadd.f32 %v7932_v28, %v1535_v45  ;;  %v6398_v21 = vpop.f32.mrb[11].mxu0  ;;  %v1590_v20 = vmul.f32 0.35355338, %v1533_v23 }
 0x24c   : > { %v1591_v51 = vmul.f32 0.35355338, %v1536_v27  ;;  %v7952_v18 = vpack.c.bf16 %v1536_v27, %v1533_v23 }
 0x24e   : > { %10882 = vst [vmem:[#allocation14_spill] sm:$0xff] %v7952_v18  ;;  %1634 = vrot.lane.b32.xlu1 %v7952_v18, %s7330_s26  ;;  %v7956_v36 = vpack.c.bf16 %v1591_v51, %v1590_v20 }
 0x24f   : > { %v1540_v37 = vpop.f32.mrb[12].mxu0 }
 0x250   : > { %10883 = vst [vmem:[#allocation15_spill] sm:$0xff] %v7956_v36  ;;  %v1541_v39 = vadd.f32 %v7932_v28, %v1540_v37  ;;  %v6401_v3 = vpop.f32.mrb[13].mxu0 }
 0x251   : > { %v1543_v4 = vpop.f32.mrb[14].mxu0 }
 0x252   : > { %v1544_v58 = vadd.f32 %v7932_v28, %v1543_v4  ;;  %v6402_v44 = vpop.f32.mrb[15].mxu0  ;;  %v1592_v12 = vmul.f32 0.35355338, %v1541_v39 }
 0x254   : > { %v1593_v25 = vmul.f32 0.35355338, %v1544_v58  ;;  %v7960_v24 = vpack.c.bf16 %v1544_v58, %v1541_v39 }
 0x256   : > { %10884 = vst [vmem:[#allocation16_spill] sm:$0xff] %v7960_v24  ;;  %1636 = vrot.lane.b32.xlu1 %v7960_v24, %s7330_s26  ;;  %v7964_v22 = vpack.c.bf16 %v1593_v25, %v1592_v12 }
 0x257   : > { %v1548_v2 = vpop.f32.mrb[16].mxu0 }
 0x258   : > { %10885 = vst [vmem:[#allocation17_spill] sm:$0xff] %v7964_v22  ;;  %v1549_v5 = vadd.f32 %v7932_v28, %v1548_v2  ;;  %v6405_v59 = vpop.f32.mrb[17].mxu0 }
 0x259   : > { %v1551_v60 = vpop.f32.mrb[18].mxu0 }
 0x25a   : > { %v1552_v56 = vadd.f32 %v7932_v28, %v1551_v60  ;;  %v6406_v26 = vpop.f32.mrb[19].mxu0  ;;  %v1594_v62 = vmul.f32 0.35355338, %v1549_v5 }
 0x25c   : > { %v1595_v53 = vmul.f32 0.35355338, %v1552_v56  ;;  %v7968_v57 = vpack.c.bf16 %v1552_v56, %v1549_v5 }
 0x25e   : > { %10886 = vst [vmem:[#allocation18_spill] sm:$0xff] %v7968_v57  ;;  %1638 = vrot.lane.b32.xlu0 %v7968_v57, %s7330_s26  ;;  %v7972_v33 = vpack.c.bf16 %v1595_v53, %v1594_v62 }
 0x25f   : > { %v1556_v55 = vpop.f32.mrb[20].mxu0 }
 0x260   : > { %10887 = vst [vmem:[#allocation19_spill] sm:$0xff] %v7972_v33  ;;  %v1557_v34 = vadd.f32 %v7932_v28, %v1556_v55  ;;  %v6409_v42 = vpop.f32.mrb[21].mxu0 }
 0x261   : > { %v1559_v29 = vpop.f32.mrb[22].mxu0 }
 0x262   : > { %v1560_v17 = vadd.f32 %v7932_v28, %v1559_v29  ;;  %v6410_v6 = vpop.f32.mrb[23].mxu0  ;;  %v1596_v16 = vmul.f32 0.35355338, %v1557_v34 }
 0x264   : > { %v1597_v1 = vmul.f32 0.35355338, %v1560_v17  ;;  %v7976_v7 = vpack.c.bf16 %v1560_v17, %v1557_v34 }
 0x266   : > { %10888 = vst [vmem:[#allocation20_spill] sm:$0xff] %v7976_v7  ;;  %1640 = vrot.lane.b32.xlu1 %v7976_v7, %s7330_s26  ;;  %v7980_v63 = vpack.c.bf16 %v1597_v1, %v1596_v16 }
 0x267   : > { %v1564_v9 = vpop.f32.mrb[24].mxu0 }
 0x268   : > { %10889 = vst [vmem:[#allocation21_spill] sm:$0xff] %v7980_v63  ;;  %v1565_v19 = vadd.f32 %v7932_v28, %v1564_v9  ;;  %v6413_v23 = vpop.f32.mrb[25].mxu0 }
 0x269   : > { %v1567_v46 = vpop.f32.mrb[26].mxu0 }
 0x26a   : > { %v1568_v45 = vadd.f32 %v7932_v28, %v1567_v46  ;;  %v6414_v27 = vpop.f32.mrb[27].mxu0  ;;  %v1598_v21 = vmul.f32 0.35355338, %v1565_v19 }
 0x26c   : > { %v1599_v20 = vmul.f32 0.35355338, %v1568_v45  ;;  %v7984_v51 = vpack.c.bf16 %v1568_v45, %v1565_v19 }
 0x26e   : > { %10890 = vst [vmem:[#allocation22_spill] sm:$0xff] %v7984_v51  ;;  %1642 = vrot.lane.b32.xlu0 %v7984_v51, %s7330_s26  ;;  %v7988_v37 = vpack.c.bf16 %v1599_v20, %v1598_v21 }
 0x26f   : > { %v1572_v39 = vpop.f32.mrb[28].mxu0 }
 0x270   : > { %10891 = vst [vmem:[#allocation23_spill] sm:$0xff] %v7988_v37  ;;  %v1573_v3 = vadd.f32 %v7932_v28, %v1572_v39  ;;  %v6417_v4 = vpop.f32.mrb[29].mxu0 }
 0x271   : > { %v1575_v58 = vpop.f32.mrb[30].mxu0 }
 0x272   : > { %v1576_v44 = vadd.f32 %v7932_v28, %v1575_v58  ;;  %v6418_v12 = vpop.f32.mrb[31].mxu0  ;;  %v1600_v25 = vmul.f32 0.35355338, %v1573_v3 }
 0x274   : > { %v1601_v2 = vmul.f32 0.35355338, %v1576_v44  ;;  %v7992_v5 = vpack.c.bf16 %v1576_v44, %v1573_v3 }
 0x276   : > { %10892 = vst [vmem:[#allocation24_spill] sm:$0xff] %v7992_v5  ;;  %1644 = vrot.lane.b32.xlu1 %v7992_v5, %s7330_s26  ;;  %v7996_v59 = vpack.c.bf16 %v1601_v2, %v1600_v25 }
 0x277   : > { %v1580_v60 = vpop.f32.mrb[32].mxu0 }
 0x278   : > { %10893 = vst [vmem:[#allocation25_spill] sm:$0xff] %v7996_v59  ;;  %v1581_v56 = vadd.f32 %v7932_v28, %v1580_v60  ;;  %v6421_v26 = vpop.f32.mrb[33].mxu0 }
 0x279   : > { %v1583_v62 = vpop.f32.mrb[34].mxu0 }
 0x27a   : > { %v7999_v53 = vpack.c.bf16 %v1581_v56, %v1581_v56  ;;  %2329 = vrot.lane.b32.xlu1 %v7936_v8, %s7331_s29  ;;  %v6422_v55 = vpop.f32.mrb[35].mxu0  ;;  %v1602_v28 = vmul.f32 0.35355338, %v1581_v56 }
 0x27c   : > { %10894 = vst [vmem:[#allocation26_spill] sm:$0xff] %v7999_v53  ;;  %1646 = vrot.lane.b32.xlu0 %v7999_v53, %s7330_s26  ;;  %v8020_v34 = vpack.c.bf16 %v1602_v28, %v1602_v28  ;;  %s7340_s26 = smov 104  }
 0x27e   : > { %2333 = vrot.lane.b32.xlu1 %v7952_v18, %s7331_s29  ;;  %10895 = vst [vmem:[#allocation27_spill] sm:$0xff] %v8020_v34 }
 0x280   : > { %2331 = vrot.lane.b32.xlu0 %v7944_v41, %s7331_s29 }
 0x282   : > { %2337 = vrot.lane.b32.xlu1 %v7968_v57, %s7331_s29 }
 0x284   : > { %2335 = vrot.lane.b32.xlu0 %v7960_v24, %s7331_s29 }
 0x286   : > { %2341 = vrot.lane.b32.xlu1 %v7984_v51, %s7331_s29 }
 0x288   : > { %2339 = vrot.lane.b32.xlu0 %v7976_v7, %s7331_s29 }
 0x28a   : > { %2345 = vrot.lane.b32.xlu1 %v7999_v53, %s7331_s29 }
 0x28c   : > { %2343 = vrot.lane.b32.xlu0 %v7992_v5, %s7331_s29  ;;  %s7341_s29 = smov 40  }
 0x28e   : > { %2313 = vrot.lane.b32.xlu1 %v7948_v15, %s7332_s30 }
 0x290   : > { %2311 = vrot.lane.b32.xlu0 %v7940_v32, %s7332_s30 }
 0x292   : > { %2317 = vrot.lane.b32.xlu1 %v7964_v22, %s7332_s30 }
 0x294   : > { %2315 = vrot.lane.b32.xlu0 %v7956_v36, %s7332_s30 }
 0x296   : > { %2321 = vrot.lane.b32.xlu1 %v7980_v63, %s7332_s30 }
 0x298   : > { %2319 = vrot.lane.b32.xlu0 %v7972_v33, %s7332_s30 }
 0x29a   : > { %2325 = vrot.lane.b32.xlu1 %v7996_v59, %s7332_s30 }
 0x29c   : > { %2323 = vrot.lane.b32.xlu0 %v7988_v37, %s7332_s30 }
 0x29e   : > { %2133 = vrot.lane.b32.xlu1 %v7944_v41, %s7333_s15 }
 0x2a0   : > { %2327 = vrot.lane.b32.xlu0 %v8020_v34, %s7332_s30  ;;  %s10625_s30 = scalar_lea.vmem %s10733_s13, %s6135_s28 }
 0x2a2   : > { %2137 = vrot.lane.b32.xlu1 %v7960_v24, %s7333_s15 }
 0x2a4   : > { %2131 = vrot.lane.b32.xlu0 %v7936_v8, %s7333_s15 }
 0x2a6   : > { %2143 = vrot.lane.b32.xlu1 %v7984_v51, %s7333_s15 }
 0x2a8   : > { %2135 = vrot.lane.b32.xlu0 %v7952_v18, %s7333_s15 }
 0x2aa   : > { %2147 = vrot.lane.b32.xlu1 %v7999_v53, %s7333_s15 }
 0x2ac   : > { %2139 = vrot.lane.b32.xlu0 %v7968_v57, %s7333_s15 }
 0x2ae   : > { %2829 = vrot.lane.b32.xlu1 %v7936_v8, %s7334_s16 }
 0x2b0   : > { %2141 = vrot.lane.b32.xlu0 %v7976_v7, %s7333_s15  ;;  %v1631_v42 = vpop.permute.xlu0 %1630 }
 0x2b1   : > { %v1677_v29 = vsel %vm1648_vm13, %v1631_v42, 0 }
 0x2b2   : > { %2833 = vrot.lane.b32.xlu1 %v7952_v18, %s7334_s16  ;;  %1704 = vmatpush1.bf16.xpose.msra.mxu1 %v1677_v29 }
 0x2b3   : > { %1705 = vmatprep.subr.bf16.mxu1 %v10739_v11 }
 0x2b4   : > { %2145 = vrot.lane.b32.xlu0 %v7992_v5, %s7333_s15 }
 0x2b6   : > { %2837 = vrot.lane.b32.xlu1 %v7968_v57, %s7334_s16 }
 0x2b8   : > { %v1633_v17 = vpop.permute.xlu1 %1632  ;;  %2831 = vrot.lane.b32.xlu0 %v7944_v41, %s7334_s16 }
 0x2b9   : > { %v1680_v6 = vsel %vm1648_vm13, %v1633_v17, 0 }
 0x2ba   : > { %1706 = vmatpush1.bf16.xpose.msra.mxu1 %v1680_v6 }
 0x2bb   : > { %1707 = vmatprep.subr.bf16.mxu1 %v10739_v11 }
 0x2bc   : > { %2835 = vrot.lane.b32.xlu0 %v7960_v24, %s7334_s16 }
 0x2c0   : > { %v1635_v16 = vpop.permute.xlu1 %1634 }
 0x2c1   : > { %v1683_v1 = vsel %vm1648_vm13, %v1635_v16, 0 }
 0x2c2   : > { %1708 = vmatpush1.bf16.xpose.msra.mxu1 %v1683_v1 }
 0x2c3   : > { %1709 = vmatprep.subr.bf16.mxu1 %v10739_v11 }
 0x2c8   : > { %v1637_v9 = vpop.permute.xlu1 %1636 }
 0x2c9   : > { %v1686_v19 = vsel %vm1648_vm13, %v1637_v9, 0 }
 0x2ca   : > { %1710 = vmatpush1.bf16.xpose.msra.mxu1 %v1686_v19 }
 0x2cb   : > { %1711 = vmatprep.subr.bf16.mxu1 %v10739_v11 }
 0x2d0   : > { %v1639_v23 = vpop.permute.xlu0 %1638 }
 0x2d1   : > { %v1689_v46 = vsel %vm1648_vm13, %v1639_v23, 0 }
 0x2d2   : > { %1712 = vmatpush1.bf16.xpose.msra.mxu1 %v1689_v46 }
 0x2d3   : > { %1713 = vmatprep.subr.bf16.mxu1 %v10739_v11 }
 0x2d8   : > { %v1641_v45 = vpop.permute.xlu1 %1640 }
 0x2d9   : > { %v1692_v27 = vsel %vm1648_vm13, %v1641_v45, 0 }
 0x2da   : > { %1714 = vmatpush1.bf16.xpose.msra.mxu1 %v1692_v27 }
 0x2db   : > { %1715 = vmatprep.subr.bf16.mxu1 %v10739_v11 }
 0x2e0   : > { %v1643_v21 = vpop.permute.xlu0 %1642 }
 0x2e1   : > { %v1695_v20 = vsel %vm1648_vm13, %v1643_v21, 0 }
 0x2e2   : > { %1716 = vmatpush1.bf16.xpose.msra.mxu1 %v1695_v20 }
 0x2e3   : > { %1717 = vmatprep.subr.bf16.mxu1 %v10739_v11 }
 0x2e8   : > { %v1645_v39 = vpop.permute.xlu1 %1644 }
 0x2e9   : > { %v1698_v3 = vsel %vm1648_vm13, %v1645_v39, 0 }
 0x2ea   : > { %1718 = vmatpush1.bf16.xpose.msra.mxu1 %v1698_v3 }
 0x2eb   : > { %1719 = vmatprep.subr.bf16.mxu1 %v10739_v11 }
 0x2ec   : > { %v2330_v4 = vpop.permute.xlu1 %2329 }
 0x2ed   : > { %v2375_v26 = vsel %vm1648_vm13, %v2330_v4, 0 }
 0x2ee   : > { %v1647_v58 = vpop.permute.xlu0 %1646 }
 0x2ef   : > { %v1701_v12 = vsel %vm1648_vm13, %v1647_v58, 0 }
 0x2f0   : > { %v2334_v44 = vpop.permute.xlu1 %2333 }
 0x2f1   : > { %v2381_v1 = vsel %vm1648_vm13, %v2334_v44, 0 }
 0x2f2   : > { %1720 = vmatpush1.bf16.xpose.msra.mxu1 %v1701_v12  ;;  %v2332_v25 = vpop.permute.xlu0 %2331 }
 0x2f3   : > { %2401 = vmatprep.subr.bf16.mxu1 %v10739_v11  ;;  %v2378_v42 = vsel %vm1648_vm13, %v2332_v25, 0 }
 0x2f4   : > { %v2338_v2 = vpop.permute.xlu1 %2337 }
 0x2f5   : > { %v2387_v20 = vsel %vm1648_vm13, %v2338_v2, 0 }
 0x2f6   : > { %v2336_v60 = vpop.permute.xlu0 %2335 }
 0x2f7   : > { %v2384_v46 = vsel %vm1648_vm13, %v2336_v60, 0 }
 0x2f8   : > { %v2342_v56 = vpop.permute.xlu1 %2341 }
 0x2f9   : > { %6169 = vmatmul.mubr.msk.bf16.vlgmr.msra.gmra.mrb[0].mxu1 %vm1648_vm13, %v7940_v32  ;;  %v2393_v12 = vsel %vm1648_vm13, %v2342_v56, 0 }
 0x2fa   : > { %2402 = vmatpush1.bf16.xpose.msra.mxu1 %v2375_v26  ;;  %v2340_v62 = vpop.permute.xlu0 %2339  ;;  %1745 = vmatprep.mubr.bf16.mxu1 %v10739_v11 }
 0x2fb   : > { %2403 = vmatprep.subr.bf16.mxu1 %v10739_v11  ;;  %v2390_v4 = vsel %vm1648_vm13, %v2340_v62, 0 }
 0x2fc   : > { %v8065_v55 = vpop.permute.xlu1 %2345 }
 0x2fe   : > { %v2344_v28 = vpop.permute.xlu0 %2343 }
 0x2ff   : > { %v2396_v60 = vsel %vm1648_vm13, %v2344_v28, 0  ;;  %v2399_v28 = vsel %vm1648_vm13, %v8065_v55, 0  ;;  %v481_v55 = vand.u32 127, %v462_v43 }
 0x300   : > { %v8070_v29 = vpop.permute.xlu1 %2313 }
 0x301   : > { %6170 = vmatmul.mubr.msk.bf16.gmra.mrb[4].mxu1 %vm1648_vm13, %v7948_v15  ;;  %vm517_vm15 = vcmp.ge.s32.totalorder %v481_v55, 17  ;;  %vm572_vm3 = vcmp.ge.s32.totalorder %v481_v55, 34  ;;  %vm629_vm4 = vcmp.ge.s32.totalorder %v481_v55, 51  ;;  %vm686_vm6 = vcmp.ge.s32.totalorder %v481_v55, 68 }
 0x302   : > { %2404 = vmatpush1.bf16.xpose.msra.mxu1 %v2378_v42  ;;  %v8072_v17 = vpop.permute.xlu0 %2311  ;;  %1755 = vmatprep.mubr.bf16.mxu1 %v10739_v11  ;;  %v519_v42 = vsel %vm517_vm15, 1, %v10739_v11  ;;  %vm743_vm12 = vcmp.ge.s32.totalorder %v481_v55, 85  ;;  %vm800_vm9 = vcmp.ge.s32.totalorder %v481_v55, 102  ;;  %vm857_vm8 = vcmp.ge.s32.totalorder %v481_v55, 119 }
 0x303   : > { %2405 = vmatprep.subr.bf16.mxu1 %v10739_v11 }
 0x304   : > { %v8078_v16 = vpop.permute.xlu1 %2317 }
 0x306   : > { %v8076_v6 = vpop.permute.xlu0 %2315 }
 0x308   : > { %v8087_v19 = vpop.permute.xlu1 %2321 }
 0x309   : > { %6171 = vmatmul.mubr.msk.bf16.gmra.mrb[8].mxu1 %vm1648_vm13, %v7956_v36 }
 0x30a   : > { %2406 = vmatpush1.bf16.xpose.msra.mxu1 %v2381_v1  ;;  %v8083_v9 = vpop.permute.xlu0 %2319  ;;  %1765 = vmatprep.mubr.bf16.mxu1 %v10739_v11  ;;  %v688_v1 = vsel %vm686_vm6, 1, %v10739_v11  ;;  %vm927_vm6 = vcmp.eq.s32.totalorder %v7705_v14, 7 }
 0x30b   : > { %2407 = vmatprep.subr.bf16.mxu1 %v10739_v11 }
 0x30c   : > { %v8098_v27 = vpop.permute.xlu1 %2325 }
 0x30e   : > { %v8089_v23 = vpop.permute.xlu0 %2323 }
 0x310   : > { %v2134_v39 = vpop.permute.xlu1 %2133 }
 0x311   : > { %6172 = vmatmul.mubr.msk.bf16.gmra.mrb[12].mxu1 %vm1648_vm13, %v7964_v22 }
 0x312   : > { %2408 = vmatpush1.bf16.xpose.msra.mxu1 %v2384_v46  ;;  %v8094_v45 = vpop.permute.xlu0 %2327  ;;  %1775 = vmatprep.mubr.bf16.mxu1 %v10739_v11 }
 0x313   : > { %2409 = vmatprep.subr.bf16.mxu1 %v10739_v11 }
 0x314   : > { %v2138_v58 = vpop.permute.xlu1 %2137 }
 0x316   : > { %v2132_v21 = vpop.permute.xlu0 %2131 }
 0x317   : > { %2189 = vmatpush1.bf16.msra.mxu0 %v2132_v21  ;;  %v7335_v21 = vmov -1e+30  }
 0x318   : > { %2190 = vmatprep.subr.bf16.mxu0 %v10739_v11  ;;  %v2144_v2 = vpop.permute.xlu1 %2143 }
 0x319   : > { %6173 = vmatmul.mubr.msk.bf16.gmra.mrb[16].mxu1 %vm1648_vm13, %v7972_v33 }
 0x31a   : > { %2410 = vmatpush1.bf16.xpose.msra.mxu1 %v2387_v20  ;;  %1785 = vmatprep.mubr.bf16.mxu1 %v10739_v11  ;;  %v2136_v3 = vpop.permute.xlu0 %2135 }
 0x31b   : > { %2191 = vmatpush1.bf16.msra.mxu0 %v2134_v39  ;;  %2411 = vmatprep.subr.bf16.mxu1 %v10739_v11 }
 0x31c   : > { %2192 = vmatprep.subr.bf16.mxu0 %v10739_v11  ;;  %v2148_v26 = vpop.permute.xlu1 %2147 }
 0x31d   : > { %v2186_v62 = vsel %vm2184_vm14, %v2148_v26, 0 }
 0x31e   : > { %v2140_v44 = vpop.permute.xlu0 %2139 }
 0x31f   : > { %2193 = vmatpush1.bf16.msra.mxu0 %v2136_v3 }
 0x320   : > { %2194 = vmatprep.subr.bf16.mxu0 %v10739_v11 }
 0x321   : > { %6174 = vmatmul.mubr.msk.bf16.gmra.mrb[20].mxu1 %vm1648_vm13, %v7980_v63 }
 0x322   : > { %2412 = vmatpush1.bf16.xpose.msra.mxu1 %v2390_v4  ;;  %1795 = vmatprep.mubr.bf16.mxu1 %v10739_v11  ;;  %v2142_v25 = vpop.permute.xlu0 %2141 }
 0x323   : > { %2195 = vmatpush1.bf16.msra.mxu0 %v2138_v58  ;;  %2413 = vmatprep.subr.bf16.mxu1 %v10739_v11 }
 0x324   : > { %2196 = vmatprep.subr.bf16.mxu0 %v10739_v11 }
 0x326   : > { %v2146_v56 = vpop.permute.xlu0 %2145 }
 0x327   : > { %2197 = vmatpush1.bf16.msra.mxu0 %v2140_v44 }
 0x328   : > { %2198 = vmatprep.subr.bf16.mxu0 %v10739_v11 }
 0x329   : > { %6175 = vmatmul.mubr.msk.bf16.gmra.mrb[24].mxu1 %vm1648_vm13, %v7988_v37 }
 0x32a   : > { %2414 = vmatpush1.bf16.xpose.msra.mxu1 %v2393_v12  ;;  %1805 = vmatprep.mubr.bf16.mxu1 %v10739_v11 }
 0x32b   : > { %2199 = vmatpush1.bf16.msra.mxu0 %v2142_v25  ;;  %2415 = vmatprep.subr.bf16.mxu1 %v10739_v11 }
 0x32c   : > { %2200 = vmatprep.subr.bf16.mxu0 %v10739_v11 }
 0x32f   : > { %2201 = vmatpush1.bf16.msra.mxu0 %v2144_v2 }
 0x330   : > { %2202 = vmatprep.subr.bf16.mxu0 %v10739_v11 }
 0x331   : > { %6176 = vmatmul.mubr.msk.bf16.gmra.mrb[28].mxu1 %vm1648_vm13, %v7996_v59 }
 0x332   : > { %2416 = vmatpush1.bf16.xpose.msra.mxu1 %v2396_v60  ;;  %1815 = vmatprep.mubr.bf16.mxu1 %v10739_v11 }
 0x333   : > { %2203 = vmatpush1.bf16.msra.mxu0 %v2146_v56  ;;  %2417 = vmatprep.subr.bf16.mxu1 %v10739_v11 }
 0x334   : > { %2204 = vmatprep.subr.bf16.mxu0 %v10739_v11 }
 0x337   : > { %2205 = vmatpush1.bf16.msra.mxu0 %v2186_v62 }
 0x338   : > { %2885 = vmatprep.subr.bf16.mxu0 %v10739_v11 }
 0x339   : > { %6177 = vmatmul.mubr.msk.bf16.gmra.mrb[32].mxu1 %vm1648_vm13, %v8020_v34 }
 0x33a   : > { %2418 = vmatpush1.bf16.xpose.msra.mxu1 %v2399_v28  ;;  %2433 = vmatprep.mubr.bf16.mxu1 %v10739_v11 }
 0x33b   : > { %6423 = vmatprep.subr.bf16.mxu1 %v10737_v10 }
 0x341   : > { %6187 = vmatmul.mubr.msk.bf16.vlgmr.msra.gmra.mrb[36].mxu1 %vm1648_vm13, %v8072_v17 }
 0x342   : > { %2443 = vmatprep.mubr.bf16.mxu1 %v10739_v11 }
 0x349   : > { %6188 = vmatmul.mubr.msk.bf16.gmra.mrb[40].mxu1 %vm1648_vm13, %v8070_v29  ;;  %v574_v29 = vsel %vm572_vm3, 1, %v10739_v11 }
 0x34a   : > { %2453 = vmatprep.mubr.bf16.mxu1 %v10739_v11  ;;  %v576_v17 = vadd.s32 %v574_v29, %v519_v42 }
 0x351   : > { %6189 = vmatmul.mubr.msk.bf16.gmra.mrb[44].mxu1 %vm1648_vm13, %v8076_v6  ;;  %v631_v6 = vsel %vm629_vm4, 1, %v10739_v11 }
 0x352   : > { %2463 = vmatprep.mubr.bf16.mxu1 %v10739_v11 }
 0x359   : > { %6190 = vmatmul.mubr.msk.bf16.gmra.mrb[48].mxu1 %vm1648_vm13, %v8078_v16  ;;  %v633_v16 = vadd.s32 %v631_v6, %v576_v17 }
 0x35a   : > { %2473 = vmatprep.mubr.bf16.mxu1 %v10739_v11 }
 0x361   : > { %6191 = vmatmul.mubr.msk.bf16.gmra.mrb[52].mxu1 %vm1648_vm13, %v8083_v9  ;;  %v690_v9 = vadd.s32 %v688_v1, %v633_v16 }
 0x362   : > { %2483 = vmatprep.mubr.bf16.mxu1 %v10739_v11 }
 0x369   : > { %6192 = vmatmul.mubr.msk.bf16.gmra.mrb[56].mxu1 %vm1648_vm13, %v8087_v19  ;;  %v745_v19 = vsel %vm743_vm12, 1, %v10739_v11  ;;  %vm923_vm12 = vcmp.eq.s32.totalorder %v7684_v50, 7 }
 0x36a   : > { %2493 = vmatprep.mubr.bf16.mxu1 %v10739_v11  ;;  %v747_v43 = vadd.s32 %v745_v19, %v690_v9 }
 0x371   : > { %6193 = vmatmul.mubr.msk.bf16.gmra.mrb[60].mxu1 %vm1648_vm13, %v8089_v23  ;;  %v802_v23 = vsel %vm800_vm9, 1, %v10739_v11 }
 0x372   : > { %2503 = vmatprep.mubr.bf16.mxu1 %v10739_v11  ;;  %v804_v46 = vadd.s32 %v802_v23, %v747_v43 }
 0x379   : > { %6194 = vmatmul.mubr.msk.bf16.gmra.mrb[64].mxu1 %vm1648_vm13, %v8098_v27 }
 0x37a   : > { %2513 = vmatprep.mubr.bf16.mxu1 %v10739_v11 }
 0x381   : > { %6195 = vmatmul.mubr.msk.bf16.gmra.mrb[68].mxu1 %vm1648_vm13, %v8094_v45  ;;  %v859_v45 = vsel %vm857_vm8, 1, %v10739_v11 }
 0x382   : > { %6425 = vmatprep.mubr.msk.bf16.mxu1 %vm7329_vm1, %v10737_v10  ;;  %v8172_v27 = vadd.s32 %v859_v45, %v804_v46  ;;  %v8222_v46 = vsel %vm923_vm12, 0.0, %v7335_v21 }
 0x383   : > { %10899 = vst [vmem:[#allocation31_spill] sm:$0xff] %v8222_v46 }
 0x384   : > { %vm6145_vm15 = vcmp.eq.s32.totalorder %v8172_v27, 0  ;;  %vm918_vm8 = vcmp.eq.s32.totalorder %v7655_v61, %v8172_v27  ;;  %vm6147_vm9 = vcmp.eq.s32.totalorder %v8172_v27, 1  ;;  %vm922_vm3 = vcmp.eq.s32.totalorder %v7684_v50, %v8172_v27 }
 0x385   : > { %v8176_v20 = vsel %vm6145_vm15, 0.0, %v7335_v21  ;;  %v8197_v28 = vsel %vm918_vm8, 0.0, %v7335_v21  ;;  %v8206_v16 = vsel %vm6147_vm9, 0.0, %v7335_v21  ;;  %vm6148_vm4 = vcmp.eq.s32.totalorder %v8172_v27, 2 }
 0x386   : > { %10896 = vst [vmem:[#allocation28_spill] sm:$0xff] %v8176_v20  ;;  %10897 = vst [vmem:[#allocation29_spill] sm:$0xff] %v8197_v28  ;;  %v8226_v45 = vsel %vm922_vm3, 0.0, %v7335_v21  ;;  %vm926_vm15 = vcmp.eq.s32.totalorder %v7705_v14, %v8172_v27  ;;  %vm6149_vm8 = vcmp.eq.s32.totalorder %v8172_v27, 3  ;;  %vm931_vm9 = vcmp.eq.s32.totalorder %v7800_v49, 7 }
 0x387   : > { %10898 = vst [vmem:[#allocation30_spill] sm:$0xff] %v8206_v16  ;;  %10900 = vst [vmem:[#allocation32_spill] sm:$0xff] %v8226_v45  ;;  %v8263_v14 = vsel %vm6149_vm8, 0.0, %v7335_v21  ;;  %vm930_vm12 = vcmp.eq.s32.totalorder %v7800_v49, %v8172_v27  ;;  %vm6150_vm3 = vcmp.eq.s32.totalorder %v8172_v27, 4  ;;  %vm939_vm8 = vcmp.eq.s32.totalorder %v7869_v47, 7 }
 0x388   : > { %10904 = vst [vmem:[#allocation36_spill] sm:$0xff] %v8263_v14  ;;  %v8287_v11 = vsel %vm930_vm12, 0.0, %v7335_v21  ;;  %v8293_v49 = vsel %vm6150_vm3, 0.0, %v7335_v21  ;;  %vm6152_vm12 = vcmp.eq.s32.totalorder %v8172_v27, 6  ;;  %vm943_vm3 = vcmp.eq.s32.totalorder %v7888_v13, 7 }
 0x389   : > { %10906 = vst [vmem:[#allocation38_spill] sm:$0xff] %v8287_v11  ;;  %10907 = vst [vmem:[#allocation39_spill] sm:$0xff] %v8293_v49 }
 0x3cc   : > { %v1737_v39 = vpop.f32.mrb[0].mxu1 }
 0x3cd   : > { %v1739_v3 = vpop.f32.mrb[1].mxu1  ;;  %v8181_v44 = vadd.f32 %v1737_v39, %v8176_v20 }
 0x3ce   : > { %v8178_v4 = vadd.f32 -1e+30, %v1739_v3  ;;  %v1741_v58 = vpop.f32.mrb[2].mxu1 }
 0x3cf   : > { %v1743_v12 = vpop.f32.mrb[3].mxu1  ;;  %v8188_v60 = vadd.f32 %v1741_v58, %v8176_v20 }
 0x3d0   : > { %v8183_v25 = vadd.f32 -1e+30, %v1743_v12  ;;  %v1824_v2 = vsel %vm1648_vm13, %v8178_v4, -inf  ;;  %v8233_v12 = vsel %vm6148_vm4, 0.0, %v7335_v21  ;;  %vm935_vm4 = vcmp.eq.s32.totalorder %v7832_v30, 7 }
 0x3d1   : > { %v1825_v56 = vmax.f32 %v8181_v44, %v1824_v2  ;;  %10901 = vst [vmem:[#allocation33_spill] sm:$0xff] %v8233_v12 }
 0x3d2   : > { %v1828_v26 = vsel %vm1648_vm13, %v8183_v25, -inf }
 0x3d3   : > { %1826 = vmax.xlane.f32.xlu1 %v1825_v56  ;;  %v1829_v62 = vmax.f32 %v8188_v60, %v1828_v26 }
 0x3d4   : > { %v1747_v55 = vpop.f32.mrb[4].mxu1 }
 0x3d5   : > { %v1749_v42 = vpop.f32.mrb[5].mxu1  ;;  %1830 = vmax.xlane.f32.xlu0 %v1829_v62  ;;  %v8203_v6 = vadd.f32 %v1747_v55, %v8197_v28 }
 0x3d6   : > { %v8200_v29 = vadd.f32 -1e+30, %v1749_v42  ;;  %v1751_v17 = vpop.f32.mrb[6].mxu1 }
 0x3d7   : > { %v1753_v61 = vpop.f32.mrb[7].mxu1  ;;  %v8219_v23 = vadd.f32 %v1751_v17, %v8206_v16 }
 0x3d8   : > { %v8208_v1 = vadd.f32 -1e+30, %v1753_v61  ;;  %v1832_v9 = vsel %vm1648_vm13, %v8200_v29, -inf }
 0x3d9   : > { %v1833_v19 = vmax.f32 %v8203_v6, %v1832_v9  ;;  %v8252_v9 = vsel %vm927_vm6, 0.0, %v7335_v21  ;;  %vm934_vm6 = vcmp.eq.s32.totalorder %v7832_v30, %v8172_v27 }
 0x3da   : > { %v1836_v43 = vsel %vm1648_vm13, %v8208_v1, -inf  ;;  %10902 = vst [vmem:[#allocation34_spill] sm:$0xff] %v8252_v9  ;;  %v8317_v48 = vsel %vm934_vm6, 0.0, %v7335_v21  ;;  %vm6153_vm6 = vcmp.eq.s32.totalorder %v8172_v27, 7 }
 0x3db   : > { %1834 = vmax.xlane.f32.xlu0 %v1833_v19  ;;  %v1837_v58 = vmax.f32 %v8219_v23, %v1836_v43  ;;  %v8257_v43 = vsel %vm926_vm15, 0.0, %v7335_v21  ;;  %vm6151_vm15 = vcmp.eq.s32.totalorder %v8172_v27, 5  ;;  %10909 = vst [vmem:[#allocation41_spill] sm:$0xff] %v8317_v48  ;;  %v8391_v41 = vsel %vm6153_vm6, 0.0, %v7335_v21 }
 0x3dc   : > { %v1757_v39 = vpop.f32.mrb[8].mxu1  ;;  %10903 = vst [vmem:[#allocation35_spill] sm:$0xff] %v8257_v43  ;;  %v8323_v30 = vsel %vm6151_vm15, 0.0, %v7335_v21  ;;  %10921 = vst [vmem:[#allocation53_spill] sm:$0xff] %v8391_v41 }
 0x3dd   : > { %v1759_v3 = vpop.f32.mrb[9].mxu1  ;;  %v8236_v56 = vadd.f32 %v1757_v39, %v8226_v45  ;;  %10910 = vst [vmem:[#allocation42_spill] sm:$0xff] %v8323_v30 }
 0x3de   : > { %v8230_v50 = vadd.f32 %v1759_v3, %v8222_v46  ;;  %v1761_v2 = vpop.f32.mrb[10].mxu1 }
 0x3df   : > { %v1763_v26 = vpop.f32.mrb[11].mxu1  ;;  %1838 = vmax.xlane.f32.xlu0 %v1837_v58  ;;  %v8244_v42 = vadd.f32 %v1761_v2, %v8233_v12 }
 0x3e0   : > { %v8238_v62 = vadd.f32 -1e+30, %v1763_v26  ;;  %v1840_v55 = vsel %vm1648_vm13, %v8230_v50, -inf }
 0x3e1   : > { %v1841_v17 = vmax.f32 %v8236_v56, %v1840_v55 }
 0x3e2   : > { %v1844_v61 = vsel %vm1648_vm13, %v8238_v62, -inf }
 0x3e3   : > { %1842 = vmax.xlane.f32.xlu1 %v1841_v17  ;;  %v1845_v19 = vmax.f32 %v8244_v42, %v1844_v61 }
 0x3e4   : > { %v1767_v39 = vpop.f32.mrb[12].mxu1 }
 0x3e5   : > { %v1769_v3 = vpop.f32.mrb[13].mxu1  ;;  %1846 = vmax.xlane.f32.xlu0 %v1845_v19  ;;  %v8266_v26 = vadd.f32 %v1767_v39, %v8257_v43 }
 0x3e6   : > { %v8260_v58 = vadd.f32 %v1769_v3, %v8252_v9  ;;  %v1771_v2 = vpop.f32.mrb[14].mxu1 }
 0x3e7   : > { %v1773_v55 = vpop.f32.mrb[15].mxu1  ;;  %v8274_v19 = vadd.f32 %v1771_v2, %v8263_v14 }
 0x3e8   : > { %v8268_v17 = vadd.f32 -1e+30, %v1773_v55  ;;  %v1848_v61 = vsel %vm1648_vm13, %v8260_v58, -inf  ;;  %v8282_v55 = vsel %vm931_vm9, 0.0, %v7335_v21  ;;  %vm938_vm9 = vcmp.eq.s32.totalorder %v7869_v47, %v8172_v27 }
 0x3e9   : > { %v1849_v3 = vmax.f32 %v8266_v26, %v1848_v61  ;;  %10905 = vst [vmem:[#allocation37_spill] sm:$0xff] %v8282_v55  ;;  %v8347_v36 = vsel %vm938_vm9, 0.0, %v7335_v21  ;;  %v8353_v47 = vsel %vm6152_vm12, 0.0, %v7335_v21 }
 0x3ea   : > { %v1852_v39 = vsel %vm1648_vm13, %v8268_v17, -inf  ;;  %10912 = vst [vmem:[#allocation44_spill] sm:$0xff] %v8347_v36  ;;  %10914 = vst [vmem:[#allocation46_spill] sm:$0xff] %v8353_v47 }
 0x3eb   : > { %1850 = vmax.xlane.f32.xlu1 %v1849_v3  ;;  %v1853_v10 = vmax.f32 %v8274_v19, %v1852_v39 }
 0x3ec   : > { %v1777_v2 = vpop.f32.mrb[16].mxu1 }
 0x3ed   : > { %v1779_v38 = vpop.f32.mrb[17].mxu1  ;;  %1854 = vmax.xlane.f32.xlu0 %v1853_v10  ;;  %v8296_v54 = vadd.f32 %v1777_v2, %v8287_v11 }
 0x3ee   : > { %v8290_v61 = vadd.f32 %v1779_v38, %v8282_v55  ;;  %v1781_v3 = vpop.f32.mrb[18].mxu1 }
 0x3ef   : > { %v1783_v31 = vpop.f32.mrb[19].mxu1  ;;  %v8304_v10 = vadd.f32 %v1781_v3, %v8293_v49 }
 0x3f0   : > { %v8298_v39 = vadd.f32 -1e+30, %v1783_v31  ;;  %v1856_v0 = vsel %vm1648_vm13, %v8290_v61, -inf  ;;  %v8312_v31 = vsel %vm935_vm4, 0.0, %v7335_v21  ;;  %vm942_vm4 = vcmp.eq.s32.totalorder %v7888_v13, %v8172_v27 }
 0x3f1   : > { %v1857_v38 = vmax.f32 %v8296_v54, %v1856_v0  ;;  %10908 = vst [vmem:[#allocation40_spill] sm:$0xff] %v8312_v31  ;;  %v8376_v22 = vsel %vm942_vm4, 0.0, %v7335_v21 }
 0x3f2   : > { %v1860_v2 = vsel %vm1648_vm13, %v8298_v39, -inf  ;;  %10918 = vst [vmem:[#allocation50_spill] sm:$0xff] %v8376_v22 }
 0x3f3   : > { %1858 = vmax.xlane.f32.xlu1 %v1857_v38  ;;  %v1861_v40 = vmax.f32 %v8304_v10, %v1860_v2 }
 0x3f4   : > { %v1787_v3 = vpop.f32.mrb[20].mxu1 }
 0x3f5   : > { %v1789_v35 = vpop.f32.mrb[21].mxu1  ;;  %1862 = vmax.xlane.f32.xlu0 %v1861_v40  ;;  %v8326_v52 = vadd.f32 %v1787_v3, %v8317_v48 }
 0x3f6   : > { %v8320_v0 = vadd.f32 %v1789_v35, %v8312_v31  ;;  %v1791_v38 = vpop.f32.mrb[22].mxu1 }
 0x3f7   : > { %v1793_v34 = vpop.f32.mrb[23].mxu1  ;;  %v8334_v40 = vadd.f32 %v1791_v38, %v8323_v30 }
 0x3f8   : > { %v8328_v2 = vadd.f32 -1e+30, %v1793_v34  ;;  %v1864_v37 = vsel %vm1648_vm13, %v8320_v0, -inf  ;;  %v8342_v34 = vsel %vm939_vm8, 0.0, %v7335_v21 }
 0x3f9   : > { %v1865_v35 = vmax.f32 %v8326_v52, %v1864_v37  ;;  %10911 = vst [vmem:[#allocation43_spill] sm:$0xff] %v8342_v34 }
 0x3fa   : > { %v1868_v3 = vsel %vm1648_vm13, %v8328_v2, -inf }
 0x3fb   : > { %1866 = vmax.xlane.f32.xlu1 %v1865_v35  ;;  %v1869_v33 = vmax.f32 %v8334_v40, %v1868_v3 }
 0x3fc   : > { %v1797_v38 = vpop.f32.mrb[24].mxu1 }
 0x3fd   : > { %v1799_v32 = vpop.f32.mrb[25].mxu1  ;;  %1870 = vmax.xlane.f32.xlu0 %v1869_v33  ;;  %v8356_v59 = vadd.f32 %v1797_v38, %v8347_v36 }
 0x3fe   : > { %v8350_v37 = vadd.f32 %v1799_v32, %v8342_v34  ;;  %v1801_v35 = vpop.f32.mrb[26].mxu1 }
 0x3ff   : > { %10915 = vst [vmem:[#allocation47_spill] sm:$0xff] %v8356_v59  ;;  %v1803_v57 = vpop.f32.mrb[27].mxu1  ;;  %v8364_v33 = vadd.f32 %v1801_v35, %v8353_v47 }
 0x400   : > { %10913 = vst [vmem:[#allocation45_spill] sm:$0xff] %v8350_v37  ;;  %v8358_v3 = vadd.f32 -1e+30, %v1803_v57  ;;  %v1872_v63 = vsel %vm1648_vm13, %v8350_v37, -inf  ;;  %v8372_v57 = vsel %vm943_vm3, 0.0, %v7335_v21 }
 0x401   : > { %v1873_v32 = vmax.f32 %v8356_v59, %v1872_v63  ;;  %10917 = vst [vmem:[#allocation49_spill] sm:$0xff] %v8372_v57 }
 0x402   : > { %10916 = vst [vmem:[#allocation48_spill] sm:$0xff] %v8358_v3  ;;  %v1876_v38 = vsel %vm1648_vm13, %v8358_v3, -inf }
 0x403   : > { %1874 = vmax.xlane.f32.xlu1 %v1873_v32  ;;  %v1877_v24 = vmax.f32 %v8364_v33, %v1876_v38 }
 0x404   : > { %v1807_v18 = vpop.f32.mrb[28].mxu1 }
 0x405   : > { %v1809_v35 = vpop.f32.mrb[29].mxu1  ;;  %1878 = vmax.xlane.f32.xlu0 %v1877_v24  ;;  %v8382_v13 = vadd.f32 %v1807_v18, %v8376_v22 }
 0x406   : > { %v8379_v63 = vadd.f32 %v1809_v35, %v8372_v57  ;;  %v1811_v15 = vpop.f32.mrb[30].mxu1 }
 0x407   : > { %10920 = vst [vmem:[#allocation52_spill] sm:$0xff] %v8382_v13  ;;  %v8384_v8 = vpop.f32.mrb[31].mxu1 }
 0x408   : > { %10919 = vst [vmem:[#allocation51_spill] sm:$0xff] %v8379_v63  ;;  %v1880_v32 = vsel %vm1648_vm13, %v8379_v63, -inf }
 0x409   : > { %v1881_v38 = vmax.f32 %v8382_v13, %v1880_v32 }
 0x40b   : > { %1882 = vmax.xlane.f32.xlu1 %v1881_v38 }
 0x40c   : > { %v1817_v24 = vpop.f32.mrb[32].mxu1 }
 0x40d   : > { %v8394_v35 = vadd.f32 %v1817_v24, %v8391_v41  ;;  %v8396_v53 = vpop.f32.mrb[33].mxu1 }
 0x40e   : > { %10923 = vst [vmem:[#allocation55_spill] sm:$0xff] %v8396_v53  ;;  %v1888_v18 = vsel %vm1648_vm13, %v8396_v53, -inf  ;;  %v1821_v5 = vpop.f32.mrb[34].mxu1 }
 0x40f   : > { %10922 = vst [vmem:[#allocation54_spill] sm:$0xff] %v8394_v35  ;;  %v1822_v59 = vpop.f32.mrb[35].mxu1  ;;  %v1889_v37 = vmax.f32 %v8394_v35, %v1888_v18 }
 0x411   : > { %1890 = vmax.xlane.f32.xlu1 %v1889_v37 }
 0x414   : > { %v2435_v27 = vpop.f32.mrb[36].mxu1 }
 0x415   : > { %v2437_v32 = vpop.f32.mrb[37].mxu1 }
 0x416   : > { %v2439_v38 = vpop.f32.mrb[38].mxu1 }
 0x417   : > { %v2441_v51 = vpop.f32.mrb[39].mxu1  ;;  %v8404_v63 = vadd.f32 %v2439_v38, %v8176_v20 }
 0x418   : > { %v8401_v21 = vadd.f32 -1e+30, %v2441_v51 }
 0x419   : > { %10925 = vst [vmem:[#allocation57_spill] sm:$0xff] %v8404_v63 }
 0x41a   : > { %10924 = vst [vmem:[#allocation56_spill] sm:$0xff] %v8401_v21  ;;  %v2526_v24 = vsel %vm1648_vm13, %v8401_v21, -inf }
 0x41b   : > { %2839 = vrot.lane.b32.xlu0 %v7976_v7, %s7334_s16  ;;  %v2527_v5 = vmax.f32 %v8404_v63, %v2526_v24 }
 0x41c   : > { %v8411_v59 = vpop.f32.mrb[40].mxu1 }
 0x41d   : > { %v2447_v37 = vpop.f32.mrb[41].mxu1  ;;  %2528 = vmax.xlane.f32.xlu1 %v2527_v5 }
 0x41e   : > { %v2449_v18 = vpop.f32.mrb[42].mxu1 }
 0x41f   : > { %v2451_v53 = vpop.f32.mrb[43].mxu1  ;;  %v8416_v51 = vadd.f32 %v2449_v18, %v8206_v16 }
 0x420   : > { %v8413_v35 = vadd.f32 -1e+30, %v2451_v53 }
 0x422   : > { %10926 = vst [vmem:[#allocation58_spill] sm:$0xff] %v8413_v35  ;;  %v2534_v38 = vsel %vm1648_vm13, %v8413_v35, -inf }
 0x423   : > { %v2535_v21 = vmax.f32 %v8416_v51, %v2534_v38 }
 0x424   : > { %v2455_v13 = vpop.f32.mrb[44].mxu1 }
 0x425   : > { %2536 = vmax.xlane.f32.xlu1 %v2535_v21  ;;  %v2457_v7 = vpop.f32.mrb[45].mxu1  ;;  %v8425_v5 = vadd.f32 %v2455_v13, %v8226_v45 }
 0x426   : > { %v8422_v24 = vadd.f32 %v2457_v7, %v8222_v46  ;;  %v2459_v63 = vpop.f32.mrb[46].mxu1 }
 0x427   : > { %10928 = vst [vmem:[#allocation60_spill] sm:$0xff] %v8425_v5  ;;  %v2461_v53 = vpop.f32.mrb[47].mxu1  ;;  %v8435_v21 = vadd.f32 %v2459_v63, %v8233_v12  ;;  %v8459_v12 = vadd.f32 -1e+30, %v2437_v32 }
 0x428   : > { %10927 = vst [vmem:[#allocation59_spill] sm:$0xff] %v8422_v24  ;;  %v8427_v3 = vadd.f32 -1e+30, %v2461_v53  ;;  %v2538_v18 = vsel %vm1648_vm13, %v8422_v24, -inf }
 0x429   : > { %v2539_v16 = vmax.f32 %v8425_v5, %v2538_v18 }
 0x42a   : > { %v2542_v38 = vsel %vm1648_vm13, %v8427_v3, -inf }
 0x42b   : > { %2540 = vmax.xlane.f32.xlu1 %v2539_v16  ;;  %v2543_v46 = vmax.f32 %v8435_v21, %v2542_v38 }
 0x42c   : > { %v2465_v7 = vpop.f32.mrb[48].mxu1 }
 0x42d   : > { %v2467_v13 = vpop.f32.mrb[49].mxu1  ;;  %v8442_v35 = vadd.f32 %v2465_v7, %v8257_v43 }
 0x42e   : > { %v8439_v45 = vadd.f32 %v2467_v13, %v8252_v9  ;;  %v2469_v53 = vpop.f32.mrb[50].mxu1  ;;  %v8455_v13 = vadd.f32 %v1811_v15, %v8391_v41 }
 0x42f   : > { %v2471_v24 = vpop.f32.mrb[51].mxu1  ;;  %2544 = vmax.xlane.f32.xlu1 %v2543_v46  ;;  %v8452_v38 = vadd.f32 %v2469_v53, %v8263_v14  ;;  %v1884_v46 = vsel %vm1648_vm13, %v8384_v8, -inf }
 0x430   : > { %v2546_v18 = vsel %vm1648_vm13, %v8439_v45, -inf  ;;  %v8446_v5 = vadd.f32 -1e+30, %v2471_v24  ;;  %v1885_v32 = vmax.f32 %v8455_v13, %v1884_v46 }
 0x431   : > { %v2547_v16 = vmax.f32 %v8442_v35, %v2546_v18 }
 0x432   : > { %10929 = vst [vmem:[#allocation61_spill] sm:$0xff] %v8446_v5  ;;  %v2550_v63 = vsel %vm1648_vm13, %v8446_v5, -inf  ;;  %v8473_v5 = vadd.f32 -1e+30, %v2447_v37 }
 0x433   : > { %2548 = vmax.xlane.f32.xlu1 %v2547_v16  ;;  %v2551_v24 = vmax.f32 %v8452_v38, %v2550_v63 }
 0x434   : > { %v2475_v7 = vpop.f32.mrb[52].mxu1 }
 0x435   : > { %v2477_v43 = vpop.f32.mrb[53].mxu1  ;;  %v8466_v53 = vadd.f32 %v2475_v7, %v8287_v11  ;;  %v2530_v11 = vsel %vm1648_vm13, %v8473_v5, -inf }
 0x436   : > { %v8463_v18 = vadd.f32 %v2477_v43, %v8282_v55  ;;  %v2479_v9 = vpop.f32.mrb[54].mxu1  ;;  %v2522_v43 = vsel %vm1648_vm13, %v8459_v12, -inf  ;;  %v8479_v55 = vadd.f32 %v2435_v27, %v8176_v20  ;;  %v8492_v27 = vadd.f32 %v8411_v59, %v8197_v28 }
 0x437   : > { %2552 = vmax.xlane.f32.xlu1 %v2551_v24  ;;  %v2481_v16 = vpop.f32.mrb[55].mxu1  ;;  %v8484_v24 = vadd.f32 %v2479_v9, %v8293_v49 }
 0x438   : > { %v2554_v15 = vsel %vm1648_vm13, %v8463_v18, -inf  ;;  %v8470_v14 = vadd.f32 -1e+30, %v2481_v16  ;;  %v2523_v37 = vmax.f32 %v8479_v55, %v2522_v43  ;;  %v2531_v49 = vmax.f32 %v8492_v27, %v2530_v11 }
 0x439   : > { %v2555_v63 = vmax.f32 %v8466_v53, %v2554_v15 }
 0x43a   : > { %v2558_v7 = vsel %vm1648_vm13, %v8470_v14, -inf  ;;  %1886 = vmax.xlane.f32.xlu0 %v1885_v32 }
 0x43b   : > { %2556 = vmax.xlane.f32.xlu1 %v2555_v63  ;;  %v2559_v46 = vmax.f32 %v8484_v24, %v2558_v7 }
 0x43c   : > { %v2485_v16 = vpop.f32.mrb[56].mxu1 }
 0x43d   : > { %v2487_v15 = vpop.f32.mrb[57].mxu1  ;;  %v8498_v32 = vadd.f32 %v2485_v16, %v8317_v48 }
 0x43e   : > { %v8495_v20 = vadd.f32 %v2487_v15, %v8312_v31  ;;  %2524 = vmax.xlane.f32.xlu0 %v2523_v37  ;;  %v2489_v9 = vpop.f32.mrb[58].mxu1 }
 0x43f   : > { %v2491_v63 = vpop.f32.mrb[59].mxu1  ;;  %2560 = vmax.xlane.f32.xlu1 %v2559_v46  ;;  %v8507_v28 = vadd.f32 %v2489_v9, %v8323_v30 }
 0x440   : > { %v2562_v43 = vsel %vm1648_vm13, %v8495_v20, -inf  ;;  %v8502_v7 = vadd.f32 -1e+30, %v2491_v63 }
 0x441   : > { %v2563_v59 = vmax.f32 %v8498_v32, %v2562_v43 }
 0x442   : > { %v2566_v37 = vsel %vm1648_vm13, %v8502_v7, -inf  ;;  %2532 = vmax.xlane.f32.xlu0 %v2531_v49 }
 0x443   : > { %v2567_v16 = vmax.f32 %v8507_v28, %v2566_v37  ;;  %2564 = vmax.xlane.f32.xlu1 %v2563_v59 }
 0x444   : > { %v2495_v46 = vpop.f32.mrb[60].mxu1 }
 0x445   : > { %v2497_v15 = vpop.f32.mrb[61].mxu1  ;;  %v8516_v11 = vadd.f32 %v2495_v46, %v8347_v36 }
 0x446   : > { %v8513_v48 = vadd.f32 %v2497_v15, %v8342_v34  ;;  %2568 = vmax.xlane.f32.xlu0 %v2567_v16  ;;  %v2499_v63 = vpop.f32.mrb[62].mxu1 }
 0x447   : > { %v2501_v43 = vpop.f32.mrb[63].mxu1  ;;  %v8524_v59 = vadd.f32 %v2499_v63, %v8353_v47  ;;  %v8537_v63 = vpop.permute.xlu1 %2829 }
 0x448   : > { %v2570_v9 = vsel %vm1648_vm13, %v8513_v48, -inf  ;;  %v8520_v30 = vadd.f32 -1e+30, %v2501_v43  ;;  %10933 = vst [vmem:[#allocation65_spill] sm:$0xff] %v8537_v63 }
 0x449   : > { %v2571_v49 = vmax.f32 %v8516_v11, %v2570_v9 }
 0x44a   : > { %v2574_v37 = vsel %vm1648_vm13, %v8520_v30, -inf }
 0x44b   : > { %v2575_v16 = vmax.f32 %v8524_v59, %v2574_v37  ;;  %2572 = vmax.xlane.f32.xlu1 %v2571_v49  ;;  %v8553_v31 = vpop.permute.xlu1 %2833 }
 0x44c   : > { %v2505_v15 = vpop.f32.mrb[64].mxu1  ;;  %10936 = vst [vmem:[#allocation68_spill] sm:$0xff] %v8553_v31 }
 0x44d   : > { %v2507_v46 = vpop.f32.mrb[65].mxu1  ;;  %2576 = vmax.xlane.f32.xlu0 %v2575_v16  ;;  %v8533_v43 = vadd.f32 %v2505_v15, %v8376_v22 }
 0x44e   : > { %v8530_v36 = vadd.f32 %v2507_v46, %v8372_v57  ;;  %v2509_v34 = vpop.f32.mrb[66].mxu1 }
 0x44f   : > { %10931 = vst [vmem:[#allocation63_spill] sm:$0xff] %v8533_v43  ;;  %v8535_v9 = vpop.f32.mrb[67].mxu1  ;;  %v8543_v49 = vadd.f32 %v2509_v34, %v8391_v41 }
 0x450   : > { %10930 = vst [vmem:[#allocation62_spill] sm:$0xff] %v8530_v36  ;;  %10932 = vst [vmem:[#allocation64_spill] sm:$0xff] %v8535_v9  ;;  %v2578_v47 = vsel %vm1648_vm13, %v8530_v36, -inf  ;;  %v2582_v16 = vsel %vm1648_vm13, %v8535_v9, -inf  ;;  %v8558_v9 = vpop.permute.xlu0 %2831 }
 0x451   : > { %v2579_v37 = vmax.f32 %v8533_v43, %v2578_v47  ;;  %10934 = vst [vmem:[#allocation66_spill] sm:$0xff] %v8543_v49  ;;  %v2583_v15 = vmax.f32 %v8543_v49, %v2582_v16 }
 0x453   : > { %2580 = vmax.xlane.f32.xlu0 %v2579_v37  ;;  %v8560_v37 = vpop.permute.xlu1 %2837 }
 0x454   : > { %v2515_v46 = vpop.f32.mrb[68].mxu1  ;;  %10937 = vst [vmem:[#allocation69_spill] sm:$0xff] %v8560_v37  ;;  %v8562_v16 = vpop.permute.xlu0 %2835 }
 0x455   : > { %v8549_v22 = vadd.f32 %v2515_v46, %v8391_v41  ;;  %v8551_v57 = vpop.f32.mrb[69].mxu1  ;;  %10938 = vst [vmem:[#allocation70_spill] sm:$0xff] %v8562_v16 }
 0x456   : > { %10935 = vst [vmem:[#allocation67_spill] sm:$0xff] %v8551_v57  ;;  %v2586_v47 = vsel %vm1648_vm13, %v8551_v57, -inf  ;;  %v2519_v63 = vpop.f32.mrb[70].mxu1 }
 0x457   : > { %v2587_v34 = vmax.f32 %v8549_v22, %v2586_v47  ;;  %2584 = vmax.xlane.f32.xlu0 %v2583_v15  ;;  %v2520_v43 = vpop.f32.mrb[71].mxu1 }
 0x459   : > { %2588 = vmax.xlane.f32.xlu1 %v2587_v34 }
 0x460   : > { %v1827_v46 = vpop.xlane.xlu1 %1826 }
 0x461   : > { %v1892_v41 = vsub.f32 %v8181_v44, %v1827_v46  ;;  %v1893_v31 = vsub.f32 %v8178_v4, %v1827_v46 }
 0x462   : > { %v1831_v49 = vpop.xlane.xlu0 %1830 }
 0x463   : > { %v1926_v36 = vmul.f32 1.442695, %v1892_v41  ;;  %v1928_v57 = vmul.f32 1.442695, %v1893_v31  ;;  %v1894_v63 = vsub.f32 %v8188_v60, %v1831_v49  ;;  %v1895_v15 = vsub.f32 %v8183_v25, %v1831_v49 }
 0x465   : > { %6758 = vpow2.f32 %v1926_v36  ;;  %v1930_v43 = vmul.f32 1.442695, %v1894_v63  ;;  %v1932_v47 = vmul.f32 1.442695, %v1895_v15 }
 0x466   : > { %6760 = vpow2.f32 %v1928_v57 }
 0x467   : > { %6762 = vpow2.f32 %v1930_v43 }
 0x468   : > { %6764 = vpow2.f32 %v1932_v47  ;;  %v1835_v34 = vpop.xlane.xlu0 %1834 }
 0x469   : > { %v1896_v37 = vsub.f32 %v8203_v6, %v1835_v34  ;;  %v1897_v44 = vsub.f32 %v8200_v29, %v1835_v34 }
 0x46b   : > { %v1934_v16 = vmul.f32 1.442695, %v1896_v37  ;;  %v1936_v4 = vmul.f32 1.442695, %v1897_v44 }
 0x46c   : > { %v1839_v46 = vpop.xlane.xlu0 %1838 }
 0x46d   : > { %6766 = vpow2.f32 %v1934_v16  ;;  %v1898_v41 = vsub.f32 %v8219_v23, %v1839_v46  ;;  %v1899_v60 = vsub.f32 %v8208_v1, %v1839_v46 }
 0x46e   : > { %6768 = vpow2.f32 %v1936_v4 }
 0x46f   : > { %v8572_v36 = vpop.eup %6758  ;;  %v1938_v25 = vmul.f32 1.442695, %v1898_v41  ;;  %v1940_v31 = vmul.f32 1.442695, %v1899_v60 }
 0x470   : > { %v8574_v57 = vpop.eup %6760  ;;  %v1843_v49 = vpop.xlane.xlu1 %1842 }
 0x471   : > { %v8576_v63 = vpop.eup %6762  ;;  %6770 = vpow2.f32 %v1938_v25  ;;  %v1900_v29 = vsub.f32 %v8236_v56, %v1843_v49  ;;  %v1901_v6 = vsub.f32 %v8230_v50, %v1843_v49  ;;  %v1994_v23 = vsel %vm1648_vm13, %v8574_v57, 0.0 }
 0x472   : > { %v8582_v37 = vpop.eup %6764  ;;  %6772 = vpow2.f32 %v1940_v31  ;;  %v1847_v1 = vpop.xlane.xlu0 %1846  ;;  %v1995_v16 = vadd.f32 %v8572_v36, %v1994_v23 }
 0x473   : > { %v1942_v15 = vmul.f32 1.442695, %v1900_v29  ;;  %v1944_v43 = vmul.f32 1.442695, %v1901_v6  ;;  %v1902_v47 = vsub.f32 %v8244_v42, %v1847_v1  ;;  %v1903_v34 = vsub.f32 %v8238_v62, %v1847_v1 }
 0x474   : > { %1996 = vadd.xlane.f32.xlu0 %v1995_v16  ;;  %v1998_v56 = vsel %vm1648_vm13, %v8582_v37, 0.0 }
 0x475   : > { %6774 = vpow2.f32 %v1942_v15  ;;  %v1946_v50 = vmul.f32 1.442695, %v1902_v47  ;;  %v1948_v44 = vmul.f32 1.442695, %v1903_v34  ;;  %v1999_v4 = vadd.f32 %v8576_v63, %v1998_v56 }
 0x476   : > { %6776 = vpow2.f32 %v1944_v43 }
 0x477   : > { %v8590_v46 = vpop.eup %6766  ;;  %6778 = vpow2.f32 %v1946_v50  ;;  %2000 = vadd.xlane.f32.xlu1 %v1999_v4 }
 0x478   : > { %v8592_v41 = vpop.eup %6768  ;;  %6780 = vpow2.f32 %v1948_v44  ;;  %v1851_v42 = vpop.xlane.xlu1 %1850 }
 0x479   : > { %v1904_v62 = vsub.f32 %v8266_v26, %v1851_v42  ;;  %v1905_v60 = vsub.f32 %v8260_v58, %v1851_v42  ;;  %v2002_v25 = vsel %vm1648_vm13, %v8592_v41, 0.0 }
 0x47a   : > { %v1855_v31 = vpop.xlane.xlu0 %1854  ;;  %v2003_v49 = vadd.f32 %v8590_v46, %v2002_v25 }
 0x47b   : > { %v8599_v29 = vpop.eup %6770  ;;  %v1950_v6 = vmul.f32 1.442695, %v1904_v62  ;;  %v1952_v23 = vmul.f32 1.442695, %v1905_v60  ;;  %v1906_v1 = vsub.f32 %v8274_v19, %v1855_v31  ;;  %v1907_v16 = vsub.f32 %v8268_v17, %v1855_v31 }
 0x47c   : > { %v8603_v15 = vpop.eup %6772  ;;  %2004 = vadd.xlane.f32.xlu0 %v2003_v49 }
 0x47d   : > { %6782 = vpow2.f32 %v1950_v6  ;;  %v1954_v26 = vmul.f32 1.442695, %v1906_v1  ;;  %v1956_v58 = vmul.f32 1.442695, %v1907_v16  ;;  %v2006_v43 = vsel %vm1648_vm13, %v8603_v15, 0.0 }
 0x47e   : > { %6784 = vpow2.f32 %v1952_v23  ;;  %v2007_v47 = vadd.f32 %v8599_v29, %v2006_v43 }
 0x47f   : > { %v8608_v34 = vpop.eup %6774  ;;  %6786 = vpow2.f32 %v1954_v26 }
 0x480   : > { %v8610_v56 = vpop.eup %6776  ;;  %6788 = vpow2.f32 %v1956_v58  ;;  %2008 = vadd.xlane.f32.xlu1 %v2007_v47  ;;  %v1859_v17 = vpop.xlane.xlu1 %1858 }
 0x481   : > { %v8612_v19 = vpop.eup %6778  ;;  %v1908_v50 = vsub.f32 %v8296_v54, %v1859_v17  ;;  %v1909_v44 = vsub.f32 %v8290_v61, %v1859_v17  ;;  %v2010_v4 = vsel %vm1648_vm13, %v8610_v56, 0.0 }
 0x482   : > { %v8618_v42 = vpop.eup %6780  ;;  %v1863_v62 = vpop.xlane.xlu0 %1862  ;;  %v2011_v60 = vadd.f32 %v8608_v34, %v2010_v4 }
 0x483   : > { %v1958_v25 = vmul.f32 1.442695, %v1908_v50  ;;  %v1960_v31 = vmul.f32 1.442695, %v1909_v44  ;;  %v1910_v49 = vsub.f32 %v8304_v10, %v1863_v62  ;;  %v1911_v6 = vsub.f32 %v8298_v39, %v1863_v62 }
 0x484   : > { %2012 = vadd.xlane.f32.xlu1 %v2011_v60  ;;  %v2014_v54 = vsel %vm1648_vm13, %v8618_v42, 0.0 }
 0x485   : > { %6790 = vpow2.f32 %v1958_v25  ;;  %v1962_v61 = vmul.f32 1.442695, %v1910_v49  ;;  %v1964_v23 = vmul.f32 1.442695, %v1911_v6  ;;  %v2015_v1 = vadd.f32 %v8612_v19, %v2014_v54 }
 0x486   : > { %6792 = vpow2.f32 %v1960_v31 }
 0x487   : > { %v8626_v16 = vpop.eup %6782  ;;  %2016 = vadd.xlane.f32.xlu0 %v2015_v1  ;;  %6794 = vpow2.f32 %v1964_v23 }
 0x488   : > { %v8628_v26 = vpop.eup %6784  ;;  %v1867_v58 = vpop.xlane.xlu1 %1866  ;;  %6796 = vpow2.f32 %v1962_v61 }
 0x489   : > { %v8630_v10 = vpop.eup %6786  ;;  %v1912_v39 = vsub.f32 %v8326_v52, %v1867_v58  ;;  %v1913_v43 = vsub.f32 %v8320_v0, %v1867_v58  ;;  %v2018_v47 = vsel %vm1648_vm13, %v8628_v26, 0.0 }
 0x48a   : > { %v8636_v17 = vpop.eup %6788  ;;  %v1871_v50 = vpop.xlane.xlu0 %1870  ;;  %v2019_v44 = vadd.f32 %v8626_v16, %v2018_v47 }
 0x48b   : > { %v1966_v4 = vmul.f32 1.442695, %v1912_v39  ;;  %v1968_v62 = vmul.f32 1.442695, %v1913_v43  ;;  %v1914_v60 = vsub.f32 %v8334_v40, %v1871_v50  ;;  %v1915_v25 = vsub.f32 %v8328_v2, %v1871_v50  ;;  %v10940_v39 = vld [vmem:[#allocation48_spill] sm:$0xff] }
 0x48c   : > { %2020 = vadd.xlane.f32.xlu1 %v2019_v44  ;;  %v2022_v52 = vsel %vm1648_vm13, %v8636_v17, 0.0 }
 0x48d   : > { %6798 = vpow2.f32 %v1966_v4  ;;  %v1970_v0 = vmul.f32 1.442695, %v1914_v60  ;;  %v1972_v31 = vmul.f32 1.442695, %v1915_v25  ;;  %v2023_v49 = vadd.f32 %v8630_v10, %v2022_v52 }
 0x48e   : > { %6800 = vpow2.f32 %v1968_v62 }
 0x48f   : > { %v8644_v6 = vpop.eup %6790  ;;  %2024 = vadd.xlane.f32.xlu0 %v2023_v49  ;;  %6802 = vpow2.f32 %v1972_v31  ;;  %v10944_v31 = vld [vmem:[#allocation51_spill] sm:$0xff] }
 0x490   : > { %v8646_v54 = vpop.eup %6792  ;;  %6804 = vpow2.f32 %v1970_v0  ;;  %v1875_v47 = vpop.xlane.xlu1 %1874 }
 0x491   : > { %v2026_v2 = vsel %vm1648_vm13, %v8646_v54, 0.0  ;;  %v8650_v40 = vpop.eup %6794 }
 0x492   : > { %v1879_v61 = vpop.xlane.xlu0 %1878  ;;  %v2027_v23 = vadd.f32 %v8644_v6, %v2026_v2  ;;  %v8653_v1 = vpop.eup %6796  ;;  %v2030_v50 = vsel %vm1648_vm13, %v8650_v40, 0.0 }
 0x493   : > { %10939 = vst [vmem:[#allocation71_spill] sm:$0xff] %v8653_v1  ;;  %v1918_v58 = vsub.f32 %v8364_v33, %v1879_v61  ;;  %v1919_v43 = vsub.f32 %v10940_v39, %v1879_v61  ;;  %v2031_v62 = vadd.f32 %v8653_v1, %v2030_v50  ;;  %v10943_v33 = vld [vmem:[#allocation52_spill] sm:$0xff] }
 0x494   : > { %2028 = vadd.xlane.f32.xlu0 %v2027_v23 }
 0x495   : > { %v1978_v44 = vmul.f32 1.442695, %v1918_v58  ;;  %v1980_v4 = vmul.f32 1.442695, %v1919_v43 }
 0x497   : > { %v8660_v60 = vpop.eup %6798  ;;  %6806 = vpow2.f32 %v1978_v44  ;;  %v10947_v44 = vld [vmem:[#allocation22_spill] sm:$0xff] }
 0x498   : > { %10941 = vst [vmem:[#allocation48_spill] sm:$0xff] %v8660_v60  ;;  %v8662_v25 = vpop.eup %6800  ;;  %6808 = vpow2.f32 %v1980_v4  ;;  %2032 = vadd.xlane.f32.xlu0 %v2031_v62  ;;  %v1883_v52 = vpop.xlane.xlu1 %1882 }
 0x499   : > { %10942 = vst [vmem:[#allocation72_spill] sm:$0xff] %v8662_v25  ;;  %v1920_v0 = vsub.f32 %v10943_v33, %v1883_v52  ;;  %v1921_v49 = vsub.f32 %v10944_v31, %v1883_v52  ;;  %v2034_v2 = vsel %vm1648_vm13, %v8662_v25, 0.0  ;;  %v8668_v61 = vpop.eup %6802  ;;  %v10948_v52 = vld [vmem:[#allocation54_spill] sm:$0xff]  ;;  %v10949_v31 = vld [vmem:[#allocation55_spill] sm:$0xff] }
 0x49a   : > { %10945 = vst [vmem:[#allocation52_spill] sm:$0xff] %v8668_v61  ;;  %v2035_v23 = vadd.f32 %v8660_v60, %v2034_v2  ;;  %v8671_v58 = vpop.eup %6804  ;;  %v2038_v50 = vsel %vm1648_vm13, %v8668_v61, 0.0  ;;  %v10955_v61 = vld [vmem:[#allocation56_spill] sm:$0xff] }
 0x49b   : > { %10946 = vst [vmem:[#allocation51_spill] sm:$0xff] %v8671_v58  ;;  %v1982_v39 = vmul.f32 1.442695, %v1920_v0  ;;  %v1984_v43 = vmul.f32 1.442695, %v1921_v49  ;;  %v2039_v62 = vadd.f32 %v8671_v58, %v2038_v50 }
 0x49c   : > { %2036 = vadd.xlane.f32.xlu0 %v2035_v23 }
 0x49d   : > { %6810 = vpow2.f32 %v1982_v39  ;;  %2841 = vrot.lane.b32.xlu1 %v10947_v44, %s7334_s16 }
 0x49e   : > { %6812 = vpow2.f32 %v1984_v43  ;;  %v1891_v4 = vpop.xlane.xlu1 %1890  ;;  %v10952_v43 = vld [vmem:[#allocation45_spill] sm:$0xff] }
 0x49f   : > { %v1924_v33 = vsub.f32 %v10948_v52, %v1891_v4  ;;  %v1925_v2 = vsub.f32 %v10949_v31, %v1891_v4  ;;  %v1917_v50 = vsub.f32 %v10952_v43, %v1875_v47 }
 0x4a0   : > { %2040 = vadd.xlane.f32.xlu0 %v2039_v62 }
 0x4a1   : > { %v8680_v60 = vpop.eup %6806  ;;  %v1990_v0 = vmul.f32 1.442695, %v1924_v33  ;;  %v1992_v49 = vmul.f32 1.442695, %v1925_v2  ;;  %v10953_v33 = vld [vmem:[#allocation47_spill] sm:$0xff] }
 0x4a2   : > { %10950 = vst [vmem:[#allocation54_spill] sm:$0xff] %v8680_v60  ;;  %v8682_v25 = vpop.eup %6808  ;;  %v1916_v31 = vsub.f32 %v10953_v33, %v1875_v47  ;;  %v1976_v2 = vmul.f32 1.442695, %v1917_v50 }
 0x4a3   : > { %10951 = vst [vmem:[#allocation55_spill] sm:$0xff] %v8682_v25  ;;  %6814 = vpow2.f32 %v1990_v0  ;;  %v2046_v23 = vsel %vm1648_vm13, %v8682_v25, 0.0  ;;  %v10954_v25 = vld [vmem:[#allocation57_spill] sm:$0xff] }
 0x4a4   : > { %6816 = vpow2.f32 %v1992_v49  ;;  %v2047_v39 = vadd.f32 %v8680_v60, %v2046_v23  ;;  %v1974_v1 = vmul.f32 1.442695, %v1916_v31 }
 0x4a5   : > { %6818 = vpow2.f32 %v1976_v2 }
 0x4a6   : > { %2048 = vadd.xlane.f32.xlu0 %v2047_v39 }
 0x4a7   : > { %v8688_v52 = vpop.eup %6810 }
 0x4a8   : > { %v8690_v4 = vpop.eup %6812 }
 0x4a9   : > { %v2050_v62 = vsel %vm1648_vm13, %v8690_v4, 0.0 }
 0x4aa   : > { %v2529_v0 = vpop.xlane.xlu1 %2528  ;;  %v2051_v58 = vadd.f32 %v8688_v52, %v2050_v62 }
 0x4ab   : > { %v2592_v49 = vsub.f32 %v10954_v25, %v2529_v0  ;;  %v2593_v23 = vsub.f32 %v10955_v61, %v2529_v0 }
 0x4ac   : > { %2052 = vadd.xlane.f32.xlu0 %v2051_v58  ;;  %v10957_v58 = vld [vmem:[#allocation58_spill] sm:$0xff] }
 0x4ad   : > { %v8698_v43 = vpop.eup %6814  ;;  %v2628_v39 = vmul.f32 1.442695, %v2592_v49  ;;  %v2630_v60 = vmul.f32 1.442695, %v2593_v23 }
 0x4ae   : > { %10956 = vst [vmem:[#allocation45_spill] sm:$0xff] %v8698_v43  ;;  %v8700_v44 = vpop.eup %6816 }
 0x4af   : > { %6820 = vpow2.f32 %v2628_v39  ;;  %v2058_v47 = vsel %vm1648_vm13, %v8700_v44, 0.0  ;;  %v8707_v49 = vpop.eup %6818 }
 0x4b0   : > { %6822 = vpow2.f32 %v2630_v60  ;;  %v2059_v50 = vadd.f32 %v8698_v43, %v2058_v47  ;;  %v2042_v47 = vsel %vm1648_vm13, %v8707_v49, 0.0 }
 0x4b1   : > { %6824 = vpow2.f32 %v1974_v1 }
 0x4b2   : > { %2060 = vadd.xlane.f32.xlu0 %v2059_v50  ;;  %v2537_v25 = vpop.xlane.xlu1 %2536 }
 0x4b3   : > { %v2596_v61 = vsub.f32 %v8416_v51, %v2537_v25  ;;  %v2597_v62 = vsub.f32 %v10957_v58, %v2537_v25 }
 0x4b5   : > { %v2636_v33 = vmul.f32 1.442695, %v2596_v61  ;;  %v2638_v0 = vmul.f32 1.442695, %v2597_v62 }
 0x4b7   : > { %6826 = vpow2.f32 %v2636_v33 }
 0x4b8   : > { %6828 = vpow2.f32 %v2638_v0  ;;  %v2541_v31 = vpop.xlane.xlu1 %2540 }
 0x4b9   : > { %v8709_v2 = vpop.eup %6820 }
 0x4ba   : > { %10958 = vst [vmem:[#allocation47_spill] sm:$0xff] %v8709_v2  ;;  %v8711_v23 = vpop.eup %6822 }
 0x4bb   : > { %10959 = vst [vmem:[#allocation57_spill] sm:$0xff] %v8711_v23  ;;  %v2696_v1 = vsel %vm1648_vm13, %v8711_v23, 0.0  ;;  %v8715_v60 = vpop.eup %6824 }
 0x4bc   : > { %v2545_v39 = vpop.xlane.xlu1 %2544  ;;  %v2697_v51 = vadd.f32 %v8709_v2, %v2696_v1  ;;  %v2043_v62 = vadd.f32 %v8715_v60, %v2042_v47  ;;  %v8727_v1 = vpop.permute.xlu0 %2839 }
 0x4bd   : > { %v2600_v50 = vsub.f32 %v8435_v21, %v2545_v39  ;;  %v2601_v25 = vsub.f32 %v8427_v3, %v2545_v39 }
 0x4be   : > { %2698 = vadd.xlane.f32.xlu0 %v2697_v51 }
 0x4bf   : > { %v2644_v61 = vmul.f32 1.442695, %v2600_v50  ;;  %v2646_v58 = vmul.f32 1.442695, %v2601_v25 }
 0x4c1   : > { %v8723_v33 = vpop.eup %6826  ;;  %6830 = vpow2.f32 %v2644_v61  ;;  %2044 = vadd.xlane.f32.xlu1 %v2043_v62  ;;  %v10963_v61 = vld [vmem:[#allocation59_spill] sm:$0xff] }
 0x4c2   : > { %10960 = vst [vmem:[#allocation56_spill] sm:$0xff] %v8723_v33  ;;  %v8725_v0 = vpop.eup %6828  ;;  %6832 = vpow2.f32 %v2646_v58  ;;  %v2599_v62 = vsub.f32 %v10963_v61, %v2541_v31  ;;  %v10965_v61 = vld [vmem:[#allocation60_spill] sm:$0xff] }
 0x4c3   : > { %10961 = vst [vmem:[#allocation58_spill] sm:$0xff] %v8725_v0  ;;  %v2704_v2 = vsel %vm1648_vm13, %v8725_v0, 0.0  ;;  %v2598_v43 = vsub.f32 %v10965_v61, %v2541_v31 }
 0x4c4   : > { %v2705_v21 = vadd.f32 %v8723_v33, %v2704_v2 }
 0x4c6   : > { %2706 = vadd.xlane.f32.xlu0 %v2705_v21  ;;  %v2549_v21 = vpop.xlane.xlu1 %2548 }
 0x4c7   : > { %v1887_v3 = vpop.xlane.xlu0 %1886 }
 0x4c8   : > { %v1922_v39 = vsub.f32 %v8455_v13, %v1887_v3  ;;  %v1923_v51 = vsub.f32 %v8384_v8, %v1887_v3 }
 0x4ca   : > { %v1986_v47 = vmul.f32 1.442695, %v1922_v39  ;;  %v1988_v50 = vmul.f32 1.442695, %v1923_v51  ;;  %v2642_v51 = vmul.f32 1.442695, %v2599_v62 }
 0x4cb   : > { %v8734_v25 = vpop.eup %6830  ;;  %v2525_v58 = vpop.xlane.xlu0 %2524 }
 0x4cc   : > { %10962 = vst [vmem:[#allocation73_spill] sm:$0xff] %v8734_v25  ;;  %v8737_v23 = vpop.eup %6832  ;;  %6834 = vpow2.f32 %v1986_v47  ;;  %v2590_v0 = vsub.f32 %v8479_v55, %v2525_v58  ;;  %v2591_v2 = vsub.f32 %v8459_v12, %v2525_v58  ;;  %v2603_v12 = vsub.f32 %v8439_v45, %v2549_v21 }
 0x4cd   : > { %10964 = vst [vmem:[#allocation59_spill] sm:$0xff] %v8737_v23  ;;  %6836 = vpow2.f32 %v1988_v50  ;;  %v2712_v13 = vsel %vm1648_vm13, %v8737_v23, 0.0 }
 0x4ce   : > { %v2624_v8 = vmul.f32 1.442695, %v2590_v0  ;;  %v2626_v3 = vmul.f32 1.442695, %v2591_v2  ;;  %v2713_v39 = vadd.f32 %v8734_v25, %v2712_v13  ;;  %v2640_v0 = vmul.f32 1.442695, %v2598_v43 }
 0x4cf   : > { %v2533_v33 = vpop.xlane.xlu0 %2532  ;;  %v2602_v2 = vsub.f32 %v8442_v35, %v2549_v21  ;;  %v2650_v62 = vmul.f32 1.442695, %v2603_v12 }
 0x4d0   : > { %6838 = vpow2.f32 %v2624_v8  ;;  %2714 = vadd.xlane.f32.xlu0 %v2713_v39  ;;  %v2594_v47 = vsub.f32 %v8492_v27, %v2533_v33  ;;  %v2595_v55 = vsub.f32 %v8473_v5, %v2533_v33 }
 0x4d1   : > { %6840 = vpow2.f32 %v2626_v3  ;;  %v2648_v27 = vmul.f32 1.442695, %v2602_v2  ;;  %v10970_v2 = vld [vmem:[#allocation24_spill] sm:$0xff] }
 0x4d2   : > { %v2632_v50 = vmul.f32 1.442695, %v2594_v47  ;;  %v2634_v58 = vmul.f32 1.442695, %v2595_v55  ;;  %6842 = vpow2.f32 %v2642_v51  ;;  %v2553_v55 = vpop.xlane.xlu1 %2552 }
 0x4d3   : > { %v2569_v25 = vpop.xlane.xlu0 %2568 }
 0x4d4   : > { %6844 = vpow2.f32 %v2632_v50 }
 0x4d5   : > { %6846 = vpow2.f32 %v2634_v58 }
 0x4d6   : > { %v8749_v13 = vpop.eup %6834  ;;  %6848 = vpow2.f32 %v2640_v0 }
 0x4d7   : > { %v8751_v31 = vpop.eup %6836  ;;  %6850 = vpow2.f32 %v2650_v62 }
 0x4d8   : > { %v2054_v5 = vsel %vm1648_vm13, %v8751_v31, 0.0  ;;  %6852 = vpow2.f32 %v2648_v27  ;;  %v2557_v27 = vpop.xlane.xlu1 %2556 }
 0x4d9   : > { %v2055_v45 = vadd.f32 %v8749_v13, %v2054_v5  ;;  %v2606_v23 = vsub.f32 %v8466_v53, %v2557_v27  ;;  %v2613_v53 = vsub.f32 %v8502_v7, %v2569_v25 }
 0x4da   : > { %v8756_v33 = vpop.eup %6838 }
 0x4db   : > { %v8758_v43 = vpop.eup %6840  ;;  %2056 = vadd.xlane.f32.xlu1 %v2055_v45  ;;  %v10971_v45 = vld [vmem:[#allocation61_spill] sm:$0xff] }
 0x4dc   : > { %v2692_v35 = vsel %vm1648_vm13, %v8758_v43, 0.0  ;;  %v8762_v21 = vpop.eup %6842 }
 0x4dd   : > { %10966 = vst [vmem:[#allocation60_spill] sm:$0xff] %v8762_v21  ;;  %v2693_v8 = vadd.f32 %v8756_v33, %v2692_v35  ;;  %v2708_v12 = vsel %vm1648_vm13, %v8762_v21, 0.0  ;;  %v2605_v35 = vsub.f32 %v10971_v45, %v2553_v55 }
 0x4de   : > { %v8765_v3 = vpop.eup %6844 }
 0x4df   : > { %10967 = vst [vmem:[#allocation74_spill] sm:$0xff] %v8765_v3  ;;  %v8767_v39 = vpop.eup %6846  ;;  %2694 = vadd.xlane.f32.xlu1 %v2693_v8  ;;  %v2604_v8 = vsub.f32 %v8452_v38, %v2553_v55 }
 0x4e0   : > { %v2700_v51 = vsel %vm1648_vm13, %v8767_v39, 0.0  ;;  %v8772_v47 = vpop.eup %6848 }
 0x4e1   : > { %v2701_v61 = vadd.f32 %v8765_v3, %v2700_v51  ;;  %10968 = vst [vmem:[#allocation75_spill] sm:$0xff] %v8772_v47  ;;  %v8776_v50 = vpop.eup %6850  ;;  %v2709_v58 = vadd.f32 %v8772_v47, %v2708_v12  ;;  %v2561_v51 = vpop.xlane.xlu1 %2560  ;;  %v2607_v12 = vsub.f32 %v8463_v18, %v2557_v27  ;;  %v2652_v47 = vmul.f32 1.442695, %v2604_v8  ;;  %v10972_v8 = vld [vmem:[#allocation26_spill] sm:$0xff] }
 0x4e2   : > { %10969 = vst [vmem:[#allocation76_spill] sm:$0xff] %v8776_v50  ;;  %v8779_v0 = vpop.eup %6852  ;;  %v2716_v62 = vsel %vm1648_vm13, %v8776_v50, 0.0  ;;  %v2577_v50 = vpop.xlane.xlu0 %2576 }
 0x4e3   : > { %2702 = vadd.xlane.f32.xlu1 %v2701_v61  ;;  %v2717_v5 = vadd.f32 %v8779_v0, %v2716_v62  ;;  %v2654_v61 = vmul.f32 1.442695, %v2605_v35  ;;  %v2658_v21 = vmul.f32 1.442695, %v2607_v12  ;;  %v2656_v62 = vmul.f32 1.442695, %v2606_v23 }
 0x4e5   : > { %6854 = vpow2.f32 %v2654_v61  ;;  %v2565_v3 = vpop.xlane.xlu1 %2564 }
 0x4e6   : > { %2843 = vrot.lane.b32.xlu0 %v10970_v2, %s7334_s16  ;;  %6856 = vpow2.f32 %v2652_v47  ;;  %v2611_v55 = vsub.f32 %v8495_v20, %v2565_v3  ;;  %v2581_v45 = vpop.xlane.xlu0 %2580  ;;  %v2610_v18 = vsub.f32 %v8498_v32, %v2565_v3  ;;  %v2612_v20 = vsub.f32 %v8507_v28, %v2569_v25 }
 0x4e7   : > { %2710 = vadd.xlane.f32.xlu1 %v2709_v58  ;;  %v2609_v58 = vsub.f32 %v8470_v14, %v2561_v51  ;;  %6858 = vpow2.f32 %v2658_v21  ;;  %v2670_v47 = vmul.f32 1.442695, %v2613_v53  ;;  %v2617_v32 = vsub.f32 %v8520_v30, %v2577_v50 }
 0x4e8   : > { %6860 = vpow2.f32 %v2656_v62  ;;  %v2666_v27 = vmul.f32 1.442695, %v2611_v55  ;;  %v2668_v28 = vmul.f32 1.442695, %v2612_v20  ;;  %v2616_v25 = vsub.f32 %v8524_v59, %v2577_v50  ;;  %v10975_v20 = vld [vmem:[#allocation64_spill] sm:$0xff] }
 0x4e9   : > { %v2662_v38 = vmul.f32 1.442695, %v2609_v58  ;;  %v2573_v14 = vpop.xlane.xlu1 %2572  ;;  %v2678_v30 = vmul.f32 1.442695, %v2617_v32 }
 0x4ea   : > { %v2585_v21 = vpop.xlane.xlu0 %2584  ;;  %v2614_v7 = vsub.f32 %v8516_v11, %v2573_v14  ;;  %v2615_v58 = vsub.f32 %v8513_v48, %v2573_v14  ;;  %v10974_v14 = vld [vmem:[#allocation63_spill] sm:$0xff]  ;;  %v2676_v59 = vmul.f32 1.442695, %v2616_v25 }
 0x4eb   : > { %2718 = vadd.xlane.f32.xlu1 %v2717_v5  ;;  %v2608_v5 = vsub.f32 %v8484_v24, %v2561_v51  ;;  %6862 = vpow2.f32 %v2662_v38  ;;  %v2664_v24 = vmul.f32 1.442695, %v2610_v18  ;;  %v10977_v25 = vld [vmem:[#allocation67_spill] sm:$0xff] }
 0x4ec   : > { %v2672_v18 = vmul.f32 1.442695, %v2614_v7  ;;  %v2674_v48 = vmul.f32 1.442695, %v2615_v58  ;;  %v10976_v58 = vld [vmem:[#allocation66_spill] sm:$0xff] }
 0x4ed   : > { %v2660_v35 = vmul.f32 1.442695, %v2608_v5  ;;  %v8804_v51 = vpop.xlane.xlu1 %2588  ;;  %v10973_v5 = vld [vmem:[#allocation62_spill] sm:$0xff] }
 0x4ee   : > { %v2619_v38 = vsub.f32 %v10973_v5, %v2581_v45  ;;  %v2620_v5 = vsub.f32 %v10976_v58, %v2585_v21 }
 0x4ef   : > { %v8797_v23 = vpop.eup %6854  ;;  %6864 = vpow2.f32 %v2660_v35 }
 0x4f0   : > { %6866 = vpow2.f32 %v2666_v27  ;;  %v8801_v3 = vpop.eup %6856  ;;  %v2720_v61 = vsel %vm1648_vm13, %v8797_v23, 0.0  ;;  %v2682_v50 = vmul.f32 1.442695, %v2619_v38 }
 0x4f1   : > { %v8808_v12 = vpop.eup %6858  ;;  %6868 = vpow2.f32 %v2664_v24  ;;  %v2721_v11 = vadd.f32 %v8801_v3, %v2720_v61  ;;  %v2618_v24 = vsub.f32 %v10974_v14, %v2581_v45 }
 0x4f2   : > { %6870 = vpow2.f32 %v2670_v47  ;;  %v8814_v55 = vpop.eup %6860  ;;  %v2724_v53 = vsel %vm1648_vm13, %v8808_v12, 0.0  ;;  %v2621_v47 = vsub.f32 %v10975_v20, %v2585_v21  ;;  %v2684_v21 = vmul.f32 1.442695, %v2620_v5 }
 0x4f3   : > { %v2725_v32 = vadd.f32 %v8814_v55, %v2724_v53  ;;  %v2680_v45 = vmul.f32 1.442695, %v2618_v24  ;;  %v2622_v24 = vsub.f32 %v8549_v22, %v8804_v51 }
 0x4f5   : > { %v8818_v27 = vpop.eup %6862 }
 0x4f6   : > { %v2728_v61 = vsel %vm1648_vm13, %v8818_v27, 0.0 }
 0x4f9   : > { %v8823_v7 = vpop.eup %6864 }
 0x4fc   : > { %2845 = vrot.lane.b32.xlu1 %v10972_v8, %s7334_s16 }
 0x501   : > { %v1997_v62 = vpop.xlane.xlu0 %1996 }
 0x502   : > { %6872 = vrcp.f32 %v1997_v62  ;;  %v8827_v62 = vpop.eup %6866 }
 0x503   : > { %v8832_v38 = vpop.eup %6868  ;;  %v2732_v53 = vsel %vm1648_vm13, %v8827_v62, 0.0 }
 0x504   : > { %v2001_v35 = vpop.xlane.xlu1 %2000  ;;  %v2733_v20 = vadd.f32 %v8832_v38, %v2732_v53 }
 0x505   : > { %6874 = vrcp.f32 %v2001_v35  ;;  %2722 = vadd.xlane.f32.xlu0 %v2721_v11  ;;  %v2686_v11 = vmul.f32 1.442695, %v2621_v47  ;;  %v8835_v35 = vpop.eup %6870 }
 0x506   : > { %6876 = vpow2.f32 %v2668_v28  ;;  %v2736_v47 = vsel %vm1648_vm13, %v8835_v35, 0.0 }
 0x507   : > { %6878 = vpow2.f32 %v2678_v30  ;;  %v2623_v30 = vsub.f32 %v10977_v25, %v8804_v51  ;;  %v2688_v25 = vmul.f32 1.442695, %v2622_v24  ;;  %v10979_v24 = vmov 0  }
 0x508   : > { %6880 = vpow2.f32 %v2672_v18  ;;  %v2729_v18 = vadd.f32 %v8823_v7, %v2728_v61 }
 0x509   : > { %6882 = vpow2.f32 %v2674_v48  ;;  %2726 = vadd.xlane.f32.xlu0 %v2725_v32  ;;  %v2005_v28 = vpop.xlane.xlu0 %2004 }
 0x50a   : > { %6884 = vpow2.f32 %v2676_v59  ;;  %v2690_v59 = vmul.f32 1.442695, %v2623_v30 }
 0x50b   : > { %6886 = vpow2.f32 %v2682_v50 }
 0x50c   : > { %6888 = vrcp.f32 %v2005_v28  ;;  %v6873_v48 = vpop.eup %6872 }
 0x50d   : > { %6890 = vpow2.f32 %v2680_v45  ;;  %v2009_v14 = vpop.xlane.xlu1 %2008  ;;  %2730 = vadd.xlane.f32.xlu0 %v2729_v18  ;;  %v2079_v61 = vmul.f32 %v6873_v48, %v8572_v36  ;;  %v2080_v58 = vmul.f32 %v6873_v48, %v8574_v57 }
 0x50e   : > { %6892 = vrcp.f32 %v2009_v14 }
 0x50f   : > { %v6875_v50 = vpop.eup %6874  ;;  %6894 = vpow2.f32 %v2686_v11 }
 0x510   : > { %v8844_v32 = vpop.eup %6876  ;;  %v2081_v45 = vmul.f32 %v6875_v50, %v8576_v63  ;;  %v2082_v5 = vmul.f32 %v6875_v50, %v8582_v37  ;;  %6896 = vpow2.f32 %v2684_v21  ;;  %v10978_v21 = vld [vmem:[#allocation65_spill] sm:$0xff] }
 0x511   : > { %v8850_v22 = vpop.eup %6878  ;;  %v2013_v51 = vpop.xlane.xlu1 %2012  ;;  %2734 = vadd.xlane.f32.xlu0 %v2733_v20  ;;  %6898 = vpow2.f32 %v2690_v59  ;;  %v2737_v36 = vadd.f32 %v8844_v32, %v2736_v47 }
 0x512   : > { %v8852_v28 = vpop.eup %6880  ;;  %v2114_v30 = vpack.c.bf16 %v2082_v5, %v2080_v58  ;;  %v2113_v11 = vpack.c.bf16 %v2081_v45, %v2079_v61  ;;  %6900 = vrcp.f32 %v2013_v51  ;;  %v2744_v37 = vsel %vm1648_vm13, %v8850_v22, 0.0 }
 0x513   : > { %v8854_v18 = vpop.eup %6882 }
 0x514   : > { %v8857_v63 = vpop.eup %6884  ;;  %6178 = vmatprep.mubr.msk.bf16.mxu0 %vm1648_vm13, %v2114_v30  ;;  %v2017_v57 = vpop.xlane.xlu0 %2016 }
 0x515   : > { %v8862_v53 = vpop.eup %6886  ;;  %6902 = vrcp.f32 %v2017_v57  ;;  %2221 = vmatmul.mubr.bf16.vlgmr.msra.gmra.mrb[36].mxu0 %v2113_v11  ;;  %2738 = vadd.xlane.f32.xlu0 %v2737_v36  ;;  %v2745_v59 = vadd.f32 %v8857_v63, %v2744_v37 }
 0x516   : > { %v6889_v48 = vpop.eup %6888  ;;  %6904 = vpow2.f32 %v2688_v25  ;;  %2886 = vmatpush1.bf16.msra.mxu0 %v10978_v21  ;;  %v2748_v20 = vsel %vm1648_vm13, %v8862_v53, 0.0  ;;  %v2740_v25 = vsel %vm1648_vm13, %v8854_v18, 0.0 }
 0x517   : > { %v8865_v14 = vpop.eup %6890  ;;  %2887 = vmatprep.subr.bf16.mxu0 %v10979_v24  ;;  %v2084_v45 = vmul.f32 %v6889_v48, %v8592_v41  ;;  %v2083_v5 = vmul.f32 %v6889_v48, %v8590_v46  ;;  %v2741_v37 = vadd.f32 %v8852_v28, %v2740_v25 }
 0x518   : > { %v6893_v50 = vpop.eup %6892  ;;  %v2749_v11 = vadd.f32 %v8865_v14, %v2748_v20 }
 0x519   : > { %v8871_v47 = vpop.eup %6894  ;;  %v2021_v61 = vpop.xlane.xlu1 %2020  ;;  %2746 = vadd.xlane.f32.xlu0 %v2745_v59  ;;  %v2086_v58 = vmul.f32 %v6893_v50, %v8603_v15  ;;  %v2085_v51 = vmul.f32 %v6893_v50, %v8599_v29 }
 0x51a   : > { %2888 = vmatpush1.bf16.msra.mxu0 %v8558_v9  ;;  %v8880_v30 = vpop.eup %6896  ;;  %6906 = vrcp.f32 %v2021_v61  ;;  %v2752_v46 = vsel %vm1648_vm13, %v8871_v47, 0.0  ;;  %v10980_v9 = vld [vmem:[#allocation68_spill] sm:$0xff] }
 0x51b   : > { %2889 = vmatprep.subr.bf16.mxu0 %v10979_v24  ;;  %v2116_v36 = vpack.c.bf16 %v2086_v58, %v2084_v45  ;;  %v2115_v41 = vpack.c.bf16 %v2085_v51, %v2083_v5  ;;  %v8884_v57 = vpop.eup %6898  ;;  %v2753_v21 = vadd.f32 %v8880_v30, %v2752_v46  ;;  %v10981_v5 = vld [vmem:[#allocation70_spill] sm:$0xff] }
 0x51c   : > { %v2025_v15 = vpop.xlane.xlu0 %2024  ;;  %v6901_v29 = vpop.eup %6900  ;;  %v2756_v61 = vsel %vm1648_vm13, %v8884_v57, 0.0 }
 0x51d   : > { %6908 = vrcp.f32 %v2025_v15  ;;  %2750 = vadd.xlane.f32.xlu0 %v2749_v11  ;;  %6179 = vmatprep.mubr.msk.bf16.mxu0 %vm1648_vm13, %v2116_v36  ;;  %v2088_v50 = vmul.f32 %v6901_v29, %v8610_v56  ;;  %v2087_v11 = vmul.f32 %v6901_v29, %v8608_v34 }
 0x51e   : > { %2890 = vmatpush1.bf16.msra.mxu0 %v10980_v9 }
 0x51f   : > { %v6903_v48 = vpop.eup %6902  ;;  %2229 = vmatmul.mubr.bf16.gmra.mrb[40].mxu0 %v2115_v41  ;;  %2891 = vmatprep.subr.bf16.mxu0 %v10979_v24  ;;  %v10982_v41 = vld [vmem:[#allocation69_spill] sm:$0xff] }
 0x520   : > { %v8893_v59 = vpop.eup %6904  ;;  %2742 = vadd.xlane.f32.xlu1 %v2741_v37  ;;  %v2090_v20 = vmul.f32 %v6903_v48, %v8618_v42  ;;  %v2089_v58 = vmul.f32 %v6903_v48, %v8612_v19  ;;  %v2842_v48 = vpop.permute.xlu1 %2841 }
 0x521   : > { %2754 = vadd.xlane.f32.xlu0 %v2753_v21  ;;  %v2029_v45 = vpop.xlane.xlu0 %2028  ;;  %v2757_v25 = vadd.f32 %v8893_v59, %v2756_v61  ;;  %v10984_v61 = vld [vmem:[#allocation71_spill] sm:$0xff] }
 0x522   : > { %2892 = vmatpush1.bf16.msra.mxu0 %v10981_v5  ;;  %v2118_v51 = vpack.c.bf16 %v2090_v20, %v2088_v50  ;;  %6910 = vrcp.f32 %v2029_v45  ;;  %v2117_v36 = vpack.c.bf16 %v2089_v58, %v2087_v11 }
 0x523   : > { %2893 = vmatprep.subr.bf16.mxu0 %v10979_v24 }
 0x524   : > { %6180 = vmatprep.mubr.msk.bf16.mxu0 %vm1648_vm13, %v2118_v51  ;;  %v6907_v56 = vpop.eup %6906  ;;  %v10985_v51 = vld [vmem:[#allocation22_spill] sm:$0xff] }
 0x525   : > { %2758 = vadd.xlane.f32.xlu0 %v2757_v25  ;;  %v2033_v42 = vpop.xlane.xlu0 %2032  ;;  %v2092_v15 = vmul.f32 %v6907_v56, %v8628_v26  ;;  %v2091_v37 = vmul.f32 %v6907_v56, %v8626_v16 }
 0x526   : > { %2894 = vmatpush1.bf16.msra.mxu0 %v10982_v41  ;;  %6912 = vrcp.f32 %v2033_v42  ;;  %v10989_v41 = vld [vmem:[#allocation51_spill] sm:$0xff] }
 0x527   : > { %v6909_v19 = vpop.eup %6908  ;;  %2237 = vmatmul.mubr.bf16.gmra.mrb[44].mxu0 %v2117_v36  ;;  %2895 = vmatprep.subr.bf16.mxu0 %v10979_v24 }
 0x528   : > { %v2094_v46 = vmul.f32 %v6909_v19, %v8636_v17  ;;  %v2093_v34 = vmul.f32 %v6909_v19, %v8630_v10  ;;  %v10983_v10 = vld [vmem:[#allocation12_spill] sm:$0xff] }
 0x529   : > { %v2037_v9 = vpop.xlane.xlu0 %2036 }
 0x52a   : > { %2896 = vmatpush1.bf16.msra.mxu0 %v8727_v1  ;;  %v2120_v29 = vpack.c.bf16 %v2094_v46, %v2092_v15  ;;  %6914 = vrcp.f32 %v2037_v9  ;;  %v2119_v50 = vpack.c.bf16 %v2093_v34, %v2091_v37  ;;  %v10990_v15 = vld [vmem:[#allocation10_spill] sm:$0xff]  ;;  %v10991_v34 = vld [vmem:[#allocation13_spill] sm:$0xff] }
 0x52b   : > { %2897 = vmatprep.subr.bf16.mxu0 %v10979_v24  ;;  %v10993_v37 = vld [vmem:[#allocation17_spill] sm:$0xff] }
 0x52c   : > { %6181 = vmatprep.mubr.msk.bf16.mxu0 %vm1648_vm13, %v2120_v29  ;;  %v6911_v20 = vpop.eup %6910  ;;  %v10992_v29 = vld [vmem:[#allocation14_spill] sm:$0xff] }
 0x52d   : > { %v2041_v21 = vpop.xlane.xlu0 %2040  ;;  %v2096_v17 = vmul.f32 %v6911_v20, %v8646_v54  ;;  %v2095_v1 = vmul.f32 %v6911_v20, %v8644_v6  ;;  %v10986_v54 = vld [vmem:[#allocation72_spill] sm:$0xff] }
 0x52e   : > { %2898 = vmatpush1.bf16.msra.mxu0 %v2842_v48  ;;  %6916 = vrcp.f32 %v2041_v21  ;;  %v10988_v6 = vld [vmem:[#allocation48_spill] sm:$0xff]  ;;  %v10995_v21 = vld [vmem:[#allocation21_spill] sm:$0xff] }
 0x52f   : > { %2245 = vmatmul.mubr.bf16.gmra.mrb[48].mxu0 %v2119_v50  ;;  %2899 = vmatprep.subr.bf16.mxu0 %v10979_v24  ;;  %v10994_v48 = vld [vmem:[#allocation16_spill] sm:$0xff]  ;;  %v10996_v50 = vld [vmem:[#allocation18_spill] sm:$0xff] }
 0x530   : > { %v6913_v26 = vpop.eup %6912 }
 0x531   : > { %3287 = vrot.lane.b32.xlu1 %v10983_v10, %s7336_s17  ;;  %v2098_v16 = vmul.f32 %v6913_v26, %v8650_v40  ;;  %v2097_v45 = vmul.f32 %v6913_v26, %v10984_v61  ;;  %v10987_v40 = vld [vmem:[#allocation52_spill] sm:$0xff]  ;;  %v10997_v26 = vld [vmem:[#allocation25_spill] sm:$0xff] }
 0x533   : > { %v2122_v58 = vpack.c.bf16 %v2098_v16, %v2096_v17  ;;  %v2121_v5 = vpack.c.bf16 %v2097_v45, %v2095_v1  ;;  %v2049_v20 = vpop.xlane.xlu0 %2048  ;;  %v10998_v17 = vld [vmem:[#allocation20_spill] sm:$0xff]  ;;  %v10999_v45 = vld [vmem:[#allocation11_spill] sm:$0xff] }
 0x534   : > { %v6915_v25 = vpop.eup %6914  ;;  %6918 = vrcp.f32 %v2049_v20 }
 0x535   : > { %3297 = vrot.lane.b32.xlu1 %v10985_v51, %s7336_s17  ;;  %6182 = vmatprep.mubr.msk.bf16.mxu0 %vm1648_vm13, %v2122_v58  ;;  %v2100_v56 = vmul.f32 %v6915_v25, %v10986_v54  ;;  %v2099_v36 = vmul.f32 %v6915_v25, %v10988_v6  ;;  %v11000_v25 = vld [vmem:[#allocation15_spill] sm:$0xff] }
 0x537   : > { %2253 = vmatmul.mubr.bf16.gmra.mrb[52].mxu0 %v2121_v5 }
 0x538   : > { %v6917_v11 = vpop.eup %6916 }
 0x539   : > { %3301 = vrot.lane.b32.xlu1 %v10972_v8, %s7336_s17  ;;  %v2102_v42 = vmul.f32 %v6917_v11, %v10987_v40  ;;  %v2101_v19 = vmul.f32 %v6917_v11, %v10989_v41  ;;  %v2053_v16 = vpop.xlane.xlu0 %2052  ;;  %v11001_v40 = vld [vmem:[#allocation55_spill] sm:$0xff] }
 0x53b   : > { %3285 = vrot.lane.b32.xlu0 %v10990_v15, %s7336_s17  ;;  %v2124_v46 = vpack.c.bf16 %v2102_v42, %v2100_v56  ;;  %v2123_v9 = vpack.c.bf16 %v2101_v19, %v2099_v36  ;;  %v11002_v36 = vld [vmem:[#allocation54_spill] sm:$0xff]  ;;  %v11003_v19 = vld [vmem:[#allocation19_spill] sm:$0xff] }
 0x53d   : > { %3269 = vrot.lane.b32.xlu1 %v10991_v34, %s7337_s18  ;;  %6183 = vmatprep.mubr.msk.bf16.mxu0 %vm1648_vm13, %v2124_v46 }
 0x53e   : > { %v6919_v5 = vpop.eup %6918 }
 0x53f   : > { %2261 = vmatmul.mubr.bf16.gmra.mrb[56].mxu0 %v2123_v9  ;;  %3289 = vrot.lane.b32.xlu0 %v10992_v29, %s7336_s17  ;;  %v2061_v61 = vpop.xlane.xlu0 %2060  ;;  %v2106_v42 = vmul.f32 %v6919_v5, %v11001_v40  ;;  %v2105_v41 = vmul.f32 %v6919_v5, %v11002_v36 }
 0x541   : > { %3273 = vrot.lane.b32.xlu1 %v10993_v37, %s7337_s18 }
 0x543   : > { %3291 = vrot.lane.b32.xlu0 %v10994_v48, %s7336_s17 }
 0x545   : > { %3277 = vrot.lane.b32.xlu1 %v10995_v21, %s7337_s18 }
 0x547   : > { %3293 = vrot.lane.b32.xlu0 %v10996_v50, %s7336_s17 }
 0x549   : > { %3281 = vrot.lane.b32.xlu1 %v10997_v26, %s7337_s18 }
 0x54b   : > { %3295 = vrot.lane.b32.xlu0 %v10998_v17, %s7336_s17  ;;  %v2699_v58 = vpop.xlane.xlu0 %2698 }
 0x54d   : > { %3785 = vrot.lane.b32.xlu1 %v10990_v15, %s7338_s19 }
 0x54e   : > { %v2045_v1 = vpop.xlane.xlu1 %2044 }
 0x54f   : > { %6920 = vrcp.f32 %v2045_v1  ;;  %3299 = vrot.lane.b32.xlu0 %v10970_v2, %s7336_s17  ;;  %v11004_v1 = vld [vmem:[#allocation23_spill] sm:$0xff] }
 0x550   : > { %6922 = vrcp.f32 %v2053_v16 }
 0x551   : > { %3789 = vrot.lane.b32.xlu1 %v10992_v29, %s7338_s19  ;;  %6924 = vrcp.f32 %v2061_v61 }
 0x553   : > { %3267 = vrot.lane.b32.xlu0 %v10999_v45, %s7337_s18  ;;  %v2707_v54 = vpop.xlane.xlu0 %2706 }
 0x555   : > { %3793 = vrot.lane.b32.xlu1 %v10996_v50, %s7338_s19 }
 0x557   : > { %3271 = vrot.lane.b32.xlu0 %v11000_v25, %s7337_s18 }
 0x559   : > { %v6921_v11 = vpop.eup %6920  ;;  %3797 = vrot.lane.b32.xlu1 %v10985_v51, %s7338_s19 }
 0x55a   : > { %v2104_v56 = vmul.f32 %v6921_v11, %v8707_v49  ;;  %v2103_v6 = vmul.f32 %v6921_v11, %v8715_v60  ;;  %v11005_v60 = vld [vmem:[#allocation27_spill] sm:$0xff] }
 0x55b   : > { %3275 = vrot.lane.b32.xlu0 %v11003_v19, %s7337_s18 }
 0x55c   : > { %v2126_v46 = vpack.c.bf16 %v2106_v42, %v2104_v56  ;;  %v2125_v9 = vpack.c.bf16 %v2105_v41, %v2103_v6  ;;  %v6923_v56 = vpop.eup %6922 }
 0x55d   : > { %3801 = vrot.lane.b32.xlu1 %v10972_v8, %s7338_s19  ;;  %v2715_v20 = vpop.xlane.xlu0 %2714  ;;  %v6925_v42 = vpop.eup %6924  ;;  %v2108_v16 = vmul.f32 %v6923_v56, %v8690_v4  ;;  %v2107_v41 = vmul.f32 %v6923_v56, %v8688_v52 }
 0x55e   : > { %6184 = vmatprep.mubr.msk.bf16.mxu0 %vm1648_vm13, %v2126_v46 }
 0x55f   : > { %3279 = vrot.lane.b32.xlu0 %v11004_v1, %s7337_s18  ;;  %2269 = vmatmul.mubr.bf16.gmra.mrb[60].mxu0 %v2125_v9  ;;  %v2112_v9 = vmul.f32 %v6925_v42, %v8700_v44 }
 0x561   : > { %v2844_v49 = vpop.permute.xlu0 %2843  ;;  %v2130_v4 = vpack.c.bf16 %v2112_v9, %v2112_v9 }
 0x562   : > { %2900 = vmatpush1.bf16.msra.mxu0 %v2844_v49 }
 0x563   : > { %3283 = vrot.lane.b32.xlu0 %v11005_v60, %s7337_s18  ;;  %2901 = vmatprep.subr.bf16.mxu0 %v10979_v24 }
 0x567   : > { %3787 = vrot.lane.b32.xlu0 %v10983_v10, %s7338_s19 }
 0x568   : > { %v2057_v5 = vpop.xlane.xlu1 %2056 }
 0x569   : > { %6926 = vrcp.f32 %v2057_v5 }
 0x56b   : > { %3791 = vrot.lane.b32.xlu0 %v10994_v48, %s7338_s19 }
 0x56c   : > { %v2695_v11 = vpop.xlane.xlu1 %2694 }
 0x56d   : > { %6928 = vrcp.f32 %v2695_v11 }
 0x56e   : > { %6930 = vrcp.f32 %v2699_v58 }
 0x56f   : > { %3795 = vrot.lane.b32.xlu0 %v10998_v17, %s7338_s19 }
 0x570   : > { %v2703_v40 = vpop.xlane.xlu1 %2702 }
 0x571   : > { %6932 = vrcp.f32 %v2703_v40 }
 0x572   : > { %6934 = vrcp.f32 %v2707_v54 }
 0x573   : > { %v6927_v6 = vpop.eup %6926  ;;  %3799 = vrot.lane.b32.xlu0 %v10970_v2, %s7338_s19 }
 0x574   : > { %v2711_v61 = vpop.xlane.xlu1 %2710  ;;  %v2110_v36 = vmul.f32 %v6927_v6, %v8751_v31  ;;  %v2109_v46 = vmul.f32 %v6927_v6, %v8749_v13  ;;  %v11006_v13 = vld [vmem:[#allocation45_spill] sm:$0xff] }
 0x575   : > { %v2111_v31 = vmul.f32 %v6925_v42, %v11006_v13  ;;  %v11007_v6 = vld [vmem:[#allocation57_spill] sm:$0xff]  ;;  %6936 = vrcp.f32 %v2711_v61 }
 0x576   : > { %v2128_v49 = vpack.c.bf16 %v2110_v36, %v2108_v16  ;;  %v2127_v5 = vpack.c.bf16 %v2109_v46, %v2107_v41  ;;  %v11008_v41 = vmov 0.0   ;;  %6938 = vrcp.f32 %v2715_v20 }
 0x577   : > { %4124 = vrot.lane.b32.xlu0 %v10990_v15, %s7339_s20  ;;  %v6929_v11 = vpop.eup %6928  ;;  %v2129_v36 = vpack.c.bf16 %v2111_v31, %v2111_v31  ;;  %v11052_v15 = vld [vmem:[#allocation39_spill] sm:$0xff] }
 0x578   : > { %v2719_v58 = vpop.xlane.xlu1 %2718  ;;  %6185 = vmatprep.mubr.msk.bf16.mxu0 %vm1648_vm13, %v2128_v49  ;;  %v6931_v52 = vpop.eup %6930  ;;  %v2778_v56 = vmul.f32 %v6929_v11, %v8758_v43  ;;  %v2777_v42 = vmul.f32 %v6929_v11, %v8756_v33  ;;  %v2301_v49 = vld [vmem:[%s10725_s5] sm:$0xf] }
 0x579   : > { %2277 = vmatmul.mubr.bf16.gmra.mrb[64].mxu0 %v2127_v5  ;;  %v2780_v16 = vmul.f32 %v6931_v52, %v11007_v6  ;;  %v11009_v5 = vld [vmem:[#allocation47_spill] sm:$0xff]  ;;  %v11011_v11 = vld [vmem:[#allocation74_spill] sm:$0xff]  ;;  %6940 = vrcp.f32 %v2719_v58 }
 0x57a   : > { %6186 = vmatprep.mubr.msk.bf16.mxu0 %vm1648_vm13, %v2130_v4  ;;  %v2779_v61 = vmul.f32 %v6931_v52, %v11009_v5  ;;  %v11010_v4 = vld [vmem:[#allocation58_spill] sm:$0xff] }
 0x57b   : > { %v2812_v46 = vpack.c.bf16 %v2780_v16, %v2778_v56  ;;  %v6933_v54 = vpop.eup %6932  ;;  %v11013_v16 = vld [vmem:[#allocation56_spill] sm:$0xff] }
 0x57c   : > { %v2846_v44 = vpop.permute.xlu1 %2845  ;;  %v6935_v9 = vpop.eup %6934  ;;  %v2782_v43 = vmul.f32 %v6933_v54, %v8767_v39  ;;  %v2811_v31 = vpack.c.bf16 %v2779_v61, %v2777_v42  ;;  %v2781_v39 = vmul.f32 %v6933_v54, %v11011_v11 }
 0x57d   : > { %v2883_v40 = vsel %vm2184_vm14, %v2846_v44, 0  ;;  %v2784_v13 = vmul.f32 %v6935_v9, %v11010_v4  ;;  %v3161_v44 = vsel %vm2184_vm14, %v2301_v49, 0  ;;  %v2783_v52 = vmul.f32 %v6935_v9, %v11013_v16  ;;  %v11015_v49 = vld [vmem:[#allocation75_spill] sm:$0xff]  ;;  %v11016_v4 = vld [vmem:[#allocation73_spill] sm:$0xff]  ;;  %v2998_v9 = vld [vmem:[%s10725_s5 + $0x4] sm:$0xf] }
 0x57e   : > { %2902 = vmatpush1.bf16.msra.mxu0 %v2883_v40  ;;  %v11012_v40 = vld [vmem:[#allocation60_spill] sm:$0xff] }
 0x57f   : > { %6461 = vmatprep.subr.bf16.mxu0 %v11008_v41  ;;  %v2814_v20 = vpack.c.bf16 %v2784_v13, %v2782_v43  ;;  %v6937_v56 = vpop.eup %6936  ;;  %v2813_v42 = vpack.c.bf16 %v2783_v52, %v2781_v39  ;;  %v11017_v39 = vld [vmem:[#allocation76_spill] sm:$0xff] }
 0x580   : > { %v6939_v33 = vpop.eup %6938  ;;  %v2786_v6 = vmul.f32 %v6937_v56, %v11012_v40  ;;  %v2785_v61 = vmul.f32 %v6937_v56, %v11015_v49 }
 0x581   : > { %2285 = vmatmul.mubr.bf16.gmra.mrb[68].mxu0 %v2129_v36  ;;  %v11014_v36 = vld [vmem:[#allocation59_spill] sm:$0xff]  ;;  %v2787_v54 = vmul.f32 %v6939_v33, %v11016_v4 }
 0x582   : > { %6196 = vmatprep.mubr.msk.bf16.mxu0 %vm1648_vm13, %v2812_v46  ;;  %v2788_v46 = vmul.f32 %v6939_v33, %v11014_v36 }
 0x584   : > { %v2816_v5 = vpack.c.bf16 %v2788_v46, %v2786_v6 }
 0x589   : > { %2918 = vmatmul.mubr.bf16.vlgmr.msra.gmra.mrb[72].mxu0 %v2811_v31  ;;  %v2815_v31 = vpack.c.bf16 %v2787_v54, %v2785_v61 }
 0x58a   : > { %6197 = vmatprep.mubr.msk.bf16.mxu0 %vm1648_vm13, %v2814_v20  ;;  %6462 = vmatpush3.bf16.msra.mxu0 %v3161_v44  ;;  %v3027_v44 = vsel %vm2184_vm14, %v2998_v9, 0  ;;  %v6941_v20 = vpop.eup %6940 }
 0x58b   : > { %3841 = vmatprep.subr.bf16.mxu0 %v10979_v24  ;;  %6424 = vmatpush3.bf16.msra.mxu1 %v3027_v44  ;;  %v2790_v33 = vmul.f32 %v6941_v20, %v11017_v39  ;;  %v2789_v6 = vmul.f32 %v6941_v20, %v8779_v0 }
 0x58c   : > { %3357 = vmatprep.subr.bf16.mxu1 %v10979_v24 }
 0x591   : > { %2926 = vmatmul.mubr.bf16.gmra.mrb[76].mxu0 %v2813_v42 }
 0x592   : > { %6198 = vmatprep.mubr.msk.bf16.mxu0 %vm1648_vm13, %v2816_v5  ;;  %v2723_v43 = vpop.xlane.xlu0 %2722 }
 0x593   : > { %6942 = vrcp.f32 %v2723_v43 }
 0x596   : > { %v2727_v13 = vpop.xlane.xlu0 %2726 }
 0x597   : > { %6944 = vrcp.f32 %v2727_v13 }
 0x599   : > { %2934 = vmatmul.mubr.bf16.gmra.mrb[80].mxu0 %v2815_v31 }
 0x59a   : > { %v2731_v58 = vpop.xlane.xlu0 %2730 }
 0x59b   : > { %6946 = vrcp.f32 %v2731_v58 }
 0x59d   : > { %v6943_v11 = vpop.eup %6942 }
 0x59e   : > { %v2735_v56 = vpop.xlane.xlu0 %2734  ;;  %v2792_v40 = vmul.f32 %v6943_v11, %v8797_v23  ;;  %v2791_v16 = vmul.f32 %v6943_v11, %v8801_v3 }
 0x59f   : > { %6948 = vrcp.f32 %v2735_v56 }
 0x5a0   : > { %v2818_v52 = vpack.c.bf16 %v2792_v40, %v2790_v33  ;;  %v2817_v36 = vpack.c.bf16 %v2791_v16, %v2789_v6 }
 0x5a1   : > { %v6945_v42 = vpop.eup %6944 }
 0x5a2   : > { %6199 = vmatprep.mubr.msk.bf16.mxu0 %vm1648_vm13, %v2818_v52  ;;  %v2739_v46 = vpop.xlane.xlu0 %2738  ;;  %v2794_v49 = vmul.f32 %v6945_v42, %v8808_v12  ;;  %v2793_v23 = vmul.f32 %v6945_v42, %v8814_v55 }
 0x5a3   : > { %6950 = vrcp.f32 %v2739_v46  ;;  %2942 = vmatmul.mubr.bf16.gmra.mrb[84].mxu0 %v2817_v36 }
 0x5a5   : > { %v6947_v5 = vpop.eup %6946 }
 0x5a6   : > { %v2747_v43 = vpop.xlane.xlu0 %2746  ;;  %v2796_v61 = vmul.f32 %v6947_v5, %v8818_v27  ;;  %v2795_v0 = vmul.f32 %v6947_v5, %v8823_v7 }
 0x5a7   : > { %6952 = vrcp.f32 %v2747_v43 }
 0x5a8   : > { %v2820_v3 = vpack.c.bf16 %v2796_v61, %v2794_v49  ;;  %v2819_v4 = vpack.c.bf16 %v2795_v0, %v2793_v23 }
 0x5a9   : > { %v6949_v54 = vpop.eup %6948 }
 0x5aa   : > { %6200 = vmatprep.mubr.msk.bf16.mxu0 %vm1648_vm13, %v2820_v3  ;;  %v2751_v13 = vpop.xlane.xlu0 %2750  ;;  %v2798_v44 = vmul.f32 %v6949_v54, %v8827_v62  ;;  %v2797_v55 = vmul.f32 %v6949_v54, %v8832_v38 }
 0x5ab   : > { %2950 = vmatmul.mubr.bf16.gmra.mrb[88].mxu0 %v2819_v4  ;;  %6954 = vrcp.f32 %v2751_v13 }
 0x5ad   : > { %v6951_v31 = vpop.eup %6950  ;;  %v2743_v9 = vpop.xlane.xlu1 %2742 }
 0x5ae   : > { %6956 = vrcp.f32 %v2743_v9  ;;  %v2755_v12 = vpop.xlane.xlu0 %2754  ;;  %v2800_v27 = vmul.f32 %v6951_v31, %v8835_v35  ;;  %v2799_v7 = vmul.f32 %v6951_v31, %v8844_v32 }
 0x5af   : > { %6958 = vrcp.f32 %v2755_v12 }
 0x5b0   : > { %v2822_v58 = vpack.c.bf16 %v2800_v27, %v2798_v44  ;;  %v2821_v20 = vpack.c.bf16 %v2799_v7, %v2797_v55 }
 0x5b1   : > { %v6953_v56 = vpop.eup %6952 }
 0x5b2   : > { %6201 = vmatprep.mubr.msk.bf16.mxu0 %vm1648_vm13, %v2822_v58  ;;  %v2759_v11 = vpop.xlane.xlu0 %2758  ;;  %v2804_v38 = vmul.f32 %v6953_v56, %v8850_v22  ;;  %v2803_v6 = vmul.f32 %v6953_v56, %v8857_v63 }
 0x5b3   : > { %2958 = vmatmul.mubr.bf16.gmra.mrb[92].mxu0 %v2821_v20  ;;  %6960 = vrcp.f32 %v2759_v11 }
 0x5b5   : > { %v6955_v62 = vpop.eup %6954 }
 0x5b6   : > { %v9037_v39 = vpop.permute.xlu0 %3285  ;;  %v2806_v52 = vmul.f32 %v6955_v62, %v8862_v53  ;;  %v2805_v53 = vmul.f32 %v6955_v62, %v8865_v14 }
 0x5b8   : > { %v6957_v33 = vpop.eup %6956 }
 0x5b9   : > { %v6959_v40 = vpop.eup %6958  ;;  %v2802_v35 = vmul.f32 %v6957_v33, %v8854_v18  ;;  %v2801_v32 = vmul.f32 %v6957_v33, %v8852_v28 }
 0x5ba   : > { %v9043_v16 = vpop.permute.xlu0 %3289  ;;  %v2808_v36 = vmul.f32 %v6959_v40, %v8871_v47  ;;  %v2807_v22 = vmul.f32 %v6959_v40, %v8880_v30  ;;  %v9056_v47 = vpop.permute.xlu1 %3287 }
 0x5bb   : > { %v2824_v46 = vpack.c.bf16 %v2804_v38, %v2802_v35  ;;  %v2823_v42 = vpack.c.bf16 %v2803_v6, %v2801_v32 }
 0x5bc   : > { %v2826_v5 = vpack.c.bf16 %v2808_v36, %v2806_v52  ;;  %v2825_v49 = vpack.c.bf16 %v2807_v22, %v2805_v53 }
 0x5bd   : > { %6202 = vmatprep.mubr.msk.bf16.mxu0 %vm1648_vm13, %v2824_v46  ;;  %v6961_v43 = vpop.eup %6960 }
 0x5be   : > { %2966 = vmatmul.mubr.bf16.gmra.mrb[96].mxu0 %v2823_v42  ;;  %v9048_v18 = vpop.permute.xlu0 %3291  ;;  %v2810_v28 = vmul.f32 %v6961_v43, %v8884_v57  ;;  %v2809_v0 = vmul.f32 %v6961_v43, %v8893_v59  ;;  %v9062_v3 = vpop.permute.xlu1 %3297 }
 0x5bf   : > { %6203 = vmatprep.mubr.msk.bf16.mxu0 %vm1648_vm13, %v2826_v5 }
 0x5c0   : > { %v2828_v61 = vpack.c.bf16 %v2810_v28, %v2810_v28  ;;  %v2827_v30 = vpack.c.bf16 %v2809_v0, %v2809_v0 }
 0x5c2   : > { %v9053_v63 = vpop.permute.xlu0 %3293  ;;  %v9066_v57 = vpop.permute.xlu1 %3301 }
 0x5c6   : > { %2974 = vmatmul.mubr.bf16.gmra.mrb[100].mxu0 %v2825_v49  ;;  %v9058_v23 = vpop.permute.xlu0 %3295  ;;  %v9072_v54 = vpop.permute.xlu1 %3269 }
 0x5c7   : > { %6204 = vmatprep.mubr.msk.bf16.mxu0 %vm1648_vm13, %v2828_v61 }
 0x5ca   : > { %v9064_v4 = vpop.permute.xlu0 %3299  ;;  %v9076_v31 = vpop.permute.xlu1 %3273 }
 0x5ce   : > { %2982 = vmatmul.mubr.bf16.gmra.mrb[104].mxu0 %v2827_v30  ;;  %v9070_v14 = vpop.permute.xlu0 %3267  ;;  %v9080_v9 = vpop.permute.xlu1 %3277 }
 0x5cf   : > { %6463 = vmatprep.mubr.msk.bf16.mxu0 %vm7329_vm1, %v11008_v41 }
 0x5d2   : > { %v9074_v13 = vpop.permute.xlu0 %3271  ;;  %v9084_v12 = vpop.permute.xlu1 %3281 }
 0x5d6   : > { %v9078_v59 = vpop.permute.xlu0 %3275  ;;  %v3786_v56 = vpop.permute.xlu1 %3785 }
 0x5da   : > { %v9082_v44 = vpop.permute.xlu0 %3279  ;;  %v3790_v38 = vpop.permute.xlu1 %3789 }
 0x5de   : > { %v9086_v58 = vpop.permute.xlu0 %3283  ;;  %v3794_v5 = vpop.permute.xlu1 %3793 }
 0x5e2   : > { %v3788_v62 = vpop.permute.xlu0 %3787  ;;  %v3798_v61 = vpop.permute.xlu1 %3797 }
 0x5e6   : > { %v3792_v52 = vpop.permute.xlu0 %3791 }
 0x5e8   : > { %v2222_v27 = vpop.f32.mrb[36].mxu0 }
 0x5e9   : > { %v2224_v55 = vpop.f32.mrb[37].mxu0 }
 0x5ea   : > { %v2225_v7 = vpop.f32.mrb[38].mxu0  ;;  %v3796_v28 = vpop.permute.xlu0 %3795 }
 0x5eb   : > { %v2292_v20 = vpack.c.bf16 %v2225_v7, %v2222_v27  ;;  %v2227_v11 = vpop.f32.mrb[39].mxu0  ;;  %v3802_v7 = vpop.permute.xlu1 %3801 }
 0x5ed   : > { %6464 = vmatmul.mubr.msk.bf16.vlgmr.msra.gmra.mrb[108].mxu0 %vm1648_vm13, %v2292_v20 }
 0x5ee   : > { %3842 = vmatpush1.bf16.msra.mxu0 %v3786_v56  ;;  %6467 = vmatprep.mubr.msk.bf16.mxu0 %vm7329_vm1, %v11008_v41  ;;  %v3800_v55 = vpop.permute.xlu0 %3799 }
 0x5ef   : > { %3843 = vmatprep.subr.bf16.mxu0 %v10979_v24 }
 0x5f2   : > { %3844 = vmatpush1.bf16.msra.mxu0 %v3788_v62  ;;  %v2230_v33 = vpop.f32.mrb[40].mxu0  ;;  %v3839_v62 = vsel %vm2184_vm14, %v3802_v7, 0 }
 0x5f3   : > { %v2232_v40 = vpop.f32.mrb[41].mxu0  ;;  %3845 = vmatprep.subr.bf16.mxu0 %v10979_v24 }
 0x5f4   : > { %v2233_v35 = vpop.f32.mrb[42].mxu0 }
 0x5f5   : > { %v2293_v32 = vpack.c.bf16 %v2233_v35, %v2230_v33  ;;  %v2235_v6 = vpop.f32.mrb[43].mxu0 }
 0x5f6   : > { %3846 = vmatpush1.bf16.msra.mxu0 %v3790_v38 }
 0x5f7   : > { %6468 = vmatmul.mubr.msk.bf16.gmra.mrb[112].mxu0 %vm1648_vm13, %v2293_v32  ;;  %3847 = vmatprep.subr.bf16.mxu0 %v10979_v24 }
 0x5f8   : > { %6471 = vmatprep.mubr.msk.bf16.mxu0 %vm7329_vm1, %v11008_v41 }
 0x5fa   : > { %3848 = vmatpush1.bf16.msra.mxu0 %v3792_v52  ;;  %v2238_v36 = vpop.f32.mrb[44].mxu0 }
 0x5fb   : > { %v2240_v46 = vpop.f32.mrb[45].mxu0  ;;  %3849 = vmatprep.subr.bf16.mxu0 %v10979_v24 }
 0x5fc   : > { %v2241_v42 = vpop.f32.mrb[46].mxu0 }
 0x5fd   : > { %v2294_v43 = vpack.c.bf16 %v2241_v42, %v2238_v36  ;;  %v2243_v22 = vpop.f32.mrb[47].mxu0 }
 0x5fe   : > { %3850 = vmatpush1.bf16.msra.mxu0 %v3794_v5 }
 0x5ff   : > { %6472 = vmatmul.mubr.msk.bf16.gmra.mrb[116].mxu0 %vm1648_vm13, %v2294_v43  ;;  %3851 = vmatprep.subr.bf16.mxu0 %v10979_v24 }
 0x600   : > { %6475 = vmatprep.mubr.msk.bf16.mxu0 %vm7329_vm1, %v11008_v41 }
 0x602   : > { %3852 = vmatpush1.bf16.msra.mxu0 %v3796_v28  ;;  %v2246_v53 = vpop.f32.mrb[48].mxu0 }
 0x603   : > { %v2248_v49 = vpop.f32.mrb[49].mxu0  ;;  %3853 = vmatprep.subr.bf16.mxu0 %v10979_v24 }
 0x604   : > { %v2249_v0 = vpop.f32.mrb[50].mxu0 }
 0x605   : > { %v2295_v30 = vpack.c.bf16 %v2249_v0, %v2246_v53  ;;  %v2251_v27 = vpop.f32.mrb[51].mxu0 }
 0x606   : > { %3854 = vmatpush1.bf16.msra.mxu0 %v3798_v61 }
 0x607   : > { %6476 = vmatmul.mubr.msk.bf16.gmra.mrb[120].mxu0 %vm1648_vm13, %v2295_v30  ;;  %3855 = vmatprep.subr.bf16.mxu0 %v10979_v24 }
 0x608   : > { %6479 = vmatprep.mubr.msk.bf16.mxu0 %vm7329_vm1, %v11008_v41 }
 0x60a   : > { %3856 = vmatpush1.bf16.msra.mxu0 %v3800_v55  ;;  %v2254_v20 = vpop.f32.mrb[52].mxu0 }
 0x60b   : > { %v2256_v11 = vpop.f32.mrb[53].mxu0  ;;  %3857 = vmatprep.subr.bf16.mxu0 %v10979_v24 }
 0x60c   : > { %v2257_v56 = vpop.f32.mrb[54].mxu0 }
 0x60d   : > { %v2296_v33 = vpack.c.bf16 %v2257_v56, %v2254_v20  ;;  %v2259_v40 = vpop.f32.mrb[55].mxu0 }
 0x60e   : > { %3858 = vmatpush1.bf16.msra.mxu0 %v3839_v62  ;;  %v3331_v40 = vsel %vm1648_vm13, %v9037_v39, 0 }
 0x60f   : > { %6480 = vmatmul.mubr.msk.bf16.gmra.mrb[124].mxu0 %vm1648_vm13, %v2296_v33  ;;  %4196 = vmatprep.subr.bf16.mxu0 %v10979_v24 }
 0x610   : > { %6483 = vmatprep.mubr.msk.bf16.mxu0 %vm7329_vm1, %v11008_v41 }
 0x612   : > { %v2262_v35 = vpop.f32.mrb[56].mxu0 }
 0x613   : > { %v2264_v38 = vpop.f32.mrb[57].mxu0 }
 0x614   : > { %v2265_v32 = vpop.f32.mrb[58].mxu0 }
 0x615   : > { %v2297_v6 = vpack.c.bf16 %v2265_v32, %v2262_v35  ;;  %v2267_v52 = vpop.f32.mrb[59].mxu0 }
 0x617   : > { %6484 = vmatmul.mubr.msk.bf16.gmra.mrb[128].mxu0 %vm1648_vm13, %v2297_v6 }
 0x618   : > { %6487 = vmatprep.mubr.msk.bf16.mxu0 %vm7329_vm1, %v11008_v41 }
 0x632   : > { %v2270_v36 = vpop.f32.mrb[60].mxu0 }
 0x633   : > { %v2272_v46 = vpop.f32.mrb[61].mxu0 }
 0x634   : > { %v2273_v42 = vpop.f32.mrb[62].mxu0 }
 0x635   : > { %v2298_v5 = vpack.c.bf16 %v2273_v42, %v2270_v36  ;;  %v2275_v43 = vpop.f32.mrb[63].mxu0  ;;  %v3334_v36 = vsel %vm1648_vm13, %v9056_v47, 0 }
 0x637   : > { %6488 = vmatmul.mubr.msk.bf16.gmra.mrb[132].mxu0 %vm1648_vm13, %v2298_v5 }
 0x638   : > { %6491 = vmatprep.mubr.msk.bf16.mxu0 %vm7329_vm1, %v11008_v41 }
 0x64c   : > { %v2278_v22 = vpop.f32.mrb[64].mxu0 }
 0x64d   : > { %v2280_v28 = vpop.f32.mrb[65].mxu0 }
 0x64e   : > { %v2281_v53 = vpop.f32.mrb[66].mxu0 }
 0x64f   : > { %v2299_v49 = vpack.c.bf16 %v2281_v53, %v2278_v22  ;;  %v2283_v61 = vpop.f32.mrb[67].mxu0  ;;  %v3337_v22 = vsel %vm1648_vm13, %v9043_v16, 0 }
 0x651   : > { %6492 = vmatmul.mubr.msk.bf16.gmra.mrb[136].mxu0 %vm1648_vm13, %v2299_v49  ;;  %v3340_v49 = vsel %vm1648_vm13, %v9048_v18, 0 }
 0x652   : > { %6495 = vmatprep.mubr.msk.bf16.mxu0 %vm7329_vm1, %v11008_v41 }
 0x654   : > { %v2286_v0 = vpop.f32.mrb[68].mxu0 }
 0x655   : > { %v2288_v30 = vpop.f32.mrb[69].mxu0  ;;  %v2300_v55 = vpack.c.bf16 %v2286_v0, %v2286_v0 }
 0x656   : > { %v2289_v27 = vpop.f32.mrb[70].mxu0 }
 0x657   : > { %v2290_v7 = vpop.f32.mrb[71].mxu0 }
 0x659   : > { %6496 = vmatmul.mubr.msk.bf16.gmra.mrb[140].mxu0 %vm1648_vm13, %v2300_v55  ;;  %v3343_v55 = vsel %vm1648_vm13, %v9053_v63, 0  ;;  %v3349_v63 = vsel %vm1648_vm13, %v9062_v3, 0 }
 0x65c   : > { %v2919_v20 = vpop.f32.mrb[72].mxu0 }
 0x65d   : > { %v2921_v11 = vpop.f32.mrb[73].mxu0 }
 0x65e   : > { %v2922_v56 = vpop.f32.mrb[74].mxu0 }
 0x65f   : > { %v2989_v62 = vpack.c.bf16 %v2922_v56, %v2919_v20  ;;  %v2924_v33 = vpop.f32.mrb[75].mxu0 }
 0x661   : > { %6426 = vmatmul.mubr.msk.bf16.vlgmr.msra.gmra.mrb[72].mxu1 %vm1648_vm13, %v2989_v62  ;;  %v3346_v62 = vsel %vm1648_vm13, %v9058_v23, 0 }
 0x662   : > { %3358 = vmatpush1.bf16.xpose.msra.mxu1 %v3331_v40  ;;  %6429 = vmatprep.mubr.msk.bf16.mxu1 %vm7329_vm1, %v11008_v41 }
 0x663   : > { %3359 = vmatprep.subr.bf16.mxu1 %v10979_v24 }
 0x664   : > { %v2927_v35 = vpop.f32.mrb[76].mxu0 }
 0x665   : > { %v2929_v38 = vpop.f32.mrb[77].mxu0 }
 0x666   : > { %v2930_v32 = vpop.f32.mrb[78].mxu0 }
 0x667   : > { %v2990_v6 = vpack.c.bf16 %v2930_v32, %v2927_v35  ;;  %v2932_v52 = vpop.f32.mrb[79].mxu0 }
 0x668   : > { %v3352_v52 = vsel %vm1648_vm13, %v9064_v4, 0 }
 0x669   : > { %6430 = vmatmul.mubr.msk.bf16.gmra.mrb[76].mxu1 %vm1648_vm13, %v2990_v6 }
 0x66a   : > { %3360 = vmatpush1.bf16.xpose.msra.mxu1 %v3334_v36  ;;  %6433 = vmatprep.mubr.msk.bf16.mxu1 %vm7329_vm1, %v11008_v41 }
 0x66b   : > { %3361 = vmatprep.subr.bf16.mxu1 %v10979_v24 }
 0x66c   : > { %v2935_v39 = vpop.f32.mrb[80].mxu0 }
 0x66d   : > { %v2937_v46 = vpop.f32.mrb[81].mxu0 }
 0x66e   : > { %v2938_v42 = vpop.f32.mrb[82].mxu0 }
 0x66f   : > { %v2991_v5 = vpack.c.bf16 %v2938_v42, %v2935_v39  ;;  %v2940_v43 = vpop.f32.mrb[83].mxu0 }
 0x671   : > { %6434 = vmatmul.mubr.msk.bf16.gmra.mrb[80].mxu1 %vm1648_vm13, %v2991_v5  ;;  %v3355_v5 = vsel %vm1648_vm13, %v9066_v57, 0 }
 0x672   : > { %3362 = vmatpush1.bf16.xpose.msra.mxu1 %v3337_v22  ;;  %6437 = vmatprep.mubr.msk.bf16.mxu1 %vm7329_vm1, %v11008_v41 }
 0x673   : > { %3363 = vmatprep.subr.bf16.mxu1 %v10979_v24 }
 0x676   : > { %v2943_v47 = vpop.f32.mrb[84].mxu0 }
 0x677   : > { %v2945_v28 = vpop.f32.mrb[85].mxu0 }
 0x678   : > { %v2946_v53 = vpop.f32.mrb[86].mxu0 }
 0x679   : > { %v2992_v61 = vpack.c.bf16 %v2946_v53, %v2943_v47  ;;  %v2948_v0 = vpop.f32.mrb[87].mxu0 }
 0x67a   : > { %3364 = vmatpush1.bf16.xpose.msra.mxu1 %v3340_v49 }
 0x67b   : > { %6438 = vmatmul.mubr.msk.bf16.gmra.mrb[84].mxu1 %vm1648_vm13, %v2992_v61  ;;  %3365 = vmatprep.subr.bf16.mxu1 %v10979_v24 }
 0x67c   : > { %6441 = vmatprep.mubr.msk.bf16.mxu1 %vm7329_vm1, %v11008_v41 }
 0x67e   : > { %v2951_v16 = vpop.f32.mrb[88].mxu0 }
 0x67f   : > { %v2953_v30 = vpop.f32.mrb[89].mxu0 }
 0x680   : > { %v2954_v27 = vpop.f32.mrb[90].mxu0 }
 0x681   : > { %v2993_v7 = vpack.c.bf16 %v2954_v27, %v2951_v16  ;;  %v2956_v20 = vpop.f32.mrb[91].mxu0 }
 0x682   : > { %3366 = vmatpush1.bf16.xpose.msra.mxu1 %v3343_v55 }
 0x683   : > { %6442 = vmatmul.mubr.msk.bf16.gmra.mrb[88].mxu1 %vm1648_vm13, %v2993_v7  ;;  %3367 = vmatprep.subr.bf16.mxu1 %v10979_v24 }
 0x684   : > { %6445 = vmatprep.mubr.msk.bf16.mxu1 %vm7329_vm1, %v11008_v41 }
 0x686   : > { %v2959_v18 = vpop.f32.mrb[92].mxu0 }
 0x687   : > { %v2961_v11 = vpop.f32.mrb[93].mxu0 }
 0x688   : > { %v2962_v56 = vpop.f32.mrb[94].mxu0 }
 0x689   : > { %v2994_v33 = vpack.c.bf16 %v2962_v56, %v2959_v18  ;;  %v2964_v40 = vpop.f32.mrb[95].mxu0 }
 0x68a   : > { %3368 = vmatpush1.bf16.xpose.msra.mxu1 %v3346_v62 }
 0x68b   : > { %6446 = vmatmul.mubr.msk.bf16.gmra.mrb[92].mxu1 %vm1648_vm13, %v2994_v33  ;;  %3369 = vmatprep.subr.bf16.mxu1 %v10979_v24 }
 0x68c   : > { %6449 = vmatprep.mubr.msk.bf16.mxu1 %vm7329_vm1, %v11008_v41 }
 0x691   : > { %v2967_v35 = vpop.f32.mrb[96].mxu0 }
 0x692   : > { %3370 = vmatpush1.bf16.xpose.msra.mxu1 %v3349_v63  ;;  %v2969_v38 = vpop.f32.mrb[97].mxu0 }
 0x693   : > { %v2970_v32 = vpop.f32.mrb[98].mxu0  ;;  %3371 = vmatprep.subr.bf16.mxu1 %v10979_v24 }
 0x694   : > { %v2995_v23 = vpack.c.bf16 %v2970_v32, %v2967_v35  ;;  %v2972_v6 = vpop.f32.mrb[99].mxu0 }
 0x696   : > { %6450 = vmatmul.mubr.msk.bf16.gmra.mrb[96].mxu1 %vm1648_vm13, %v2995_v23 }
 0x697   : > { %6453 = vmatprep.mubr.msk.bf16.mxu1 %vm7329_vm1, %v11008_v41 }
 0x699   : > { %v2975_v36 = vpop.f32.mrb[100].mxu0 }
 0x69a   : > { %3372 = vmatpush1.bf16.xpose.msra.mxu1 %v3352_v52  ;;  %v2977_v39 = vpop.f32.mrb[101].mxu0 }
 0x69b   : > { %v2978_v3 = vpop.f32.mrb[102].mxu0  ;;  %3373 = vmatprep.subr.bf16.mxu1 %v10979_v24 }
 0x69c   : > { %v2996_v46 = vpack.c.bf16 %v2978_v3, %v2975_v36  ;;  %v2980_v42 = vpop.f32.mrb[103].mxu0 }
 0x69e   : > { %6454 = vmatmul.mubr.msk.bf16.gmra.mrb[100].mxu1 %vm1648_vm13, %v2996_v46 }
 0x69f   : > { %6457 = vmatprep.mubr.msk.bf16.mxu1 %vm7329_vm1, %v11008_v41 }
 0x6a1   : > { %v2983_v43 = vpop.f32.mrb[104].mxu0 }
 0x6a2   : > { %3374 = vmatpush1.bf16.xpose.msra.mxu1 %v3355_v5  ;;  %v2985_v22 = vpop.f32.mrb[105].mxu0  ;;  %v2997_v47 = vpack.c.bf16 %v2983_v43, %v2983_v43 }
 0x6a3   : > { %v2986_v4 = vpop.f32.mrb[106].mxu0  ;;  %6499 = vmatprep.subr.bf16.mxu1 %v11008_v41 }
 0x6a4   : > { %v2987_v28 = vpop.f32.mrb[107].mxu0 }
 0x6a6   : > { %6458 = vmatmul.mubr.msk.bf16.gmra.mrb[104].mxu1 %vm1648_vm13, %v2997_v47 }
 0x6a7   : > { %3389 = vmatprep.mubr.bf16.mxu1 %v10979_v24 }
 0x6ae   : > { %6223 = vmatmul.mubr.msk.bf16.vlgmr.msra.gmra.mrb[108].mxu1 %vm1648_vm13, %v9070_v14 }
 0x6af   : > { %3399 = vmatprep.mubr.bf16.mxu1 %v10979_v24 }
 0x6b6   : > { %6224 = vmatmul.mubr.msk.bf16.gmra.mrb[112].mxu1 %vm1648_vm13, %v9072_v54 }
 0x6b7   : > { %3409 = vmatprep.mubr.bf16.mxu1 %v10979_v24 }
 0x6be   : > { %6225 = vmatmul.mubr.msk.bf16.gmra.mrb[116].mxu1 %vm1648_vm13, %v9074_v13 }
 0x6bf   : > { %3419 = vmatprep.mubr.bf16.mxu1 %v10979_v24 }
 0x6c0   : > { %v3197_v57 = vpop.f32.mrb[108].mxu0 }
 0x6c1   : > { %v6465_v53 = vpop.f32.mrb[109].mxu0 }
 0x6c2   : > { %v3200_v49 = vpop.f32.mrb[110].mxu0 }
 0x6c3   : > { %v6466_v61 = vpop.f32.mrb[111].mxu0 }
 0x6c6   : > { %6226 = vmatmul.mubr.msk.bf16.gmra.mrb[120].mxu1 %vm1648_vm13, %v9076_v31 }
 0x6c7   : > { %3429 = vmatprep.mubr.bf16.mxu1 %v10979_v24 }
 0x6ca   : > { %v3205_v14 = vpop.f32.mrb[112].mxu0 }
 0x6cb   : > { %v6469_v0 = vpop.f32.mrb[113].mxu0 }
 0x6cc   : > { %v3208_v16 = vpop.f32.mrb[114].mxu0 }
 0x6cd   : > { %v6470_v54 = vpop.f32.mrb[115].mxu0 }
 0x6ce   : > { %6227 = vmatmul.mubr.msk.bf16.gmra.mrb[124].mxu1 %vm1648_vm13, %v9078_v59 }
 0x6cf   : > { %3439 = vmatprep.mubr.bf16.mxu1 %v10979_v24 }
 0x6d2   : > { %v3213_v13 = vpop.f32.mrb[116].mxu0 }
 0x6d3   : > { %v6473_v30 = vpop.f32.mrb[117].mxu0 }
 0x6d4   : > { %v3216_v27 = vpop.f32.mrb[118].mxu0 }
 0x6d5   : > { %v6474_v55 = vpop.f32.mrb[119].mxu0 }
 0x6d6   : > { %6228 = vmatmul.mubr.msk.bf16.gmra.mrb[128].mxu1 %vm1648_vm13, %v9080_v9 }
 0x6d7   : > { %3449 = vmatprep.mubr.bf16.mxu1 %v10979_v24 }
 0x6da   : > { %v3221_v31 = vpop.f32.mrb[120].mxu0 }
 0x6db   : > { %v6477_v7 = vpop.f32.mrb[121].mxu0 }
 0x6dc   : > { %v3224_v20 = vpop.f32.mrb[122].mxu0 }
 0x6dd   : > { %v6478_v18 = vpop.f32.mrb[123].mxu0 }
 0x6de   : > { %6229 = vmatmul.mubr.msk.bf16.gmra.mrb[132].mxu1 %vm1648_vm13, %v9082_v44 }
 0x6df   : > { %3459 = vmatprep.mubr.bf16.mxu1 %v10979_v24 }
 0x6e2   : > { %v3229_v59 = vpop.f32.mrb[124].mxu0 }
 0x6e3   : > { %v6481_v11 = vpop.f32.mrb[125].mxu0 }
 0x6e4   : > { %v3232_v56 = vpop.f32.mrb[126].mxu0 }
 0x6e5   : > { %v6482_v62 = vpop.f32.mrb[127].mxu0 }
 0x6e6   : > { %6230 = vmatmul.mubr.msk.bf16.gmra.mrb[136].mxu1 %vm1648_vm13, %v9084_v12 }
 0x6e7   : > { %3469 = vmatprep.mubr.bf16.mxu1 %v10979_v24 }
 0x6ea   : > { %v3237_v9 = vpop.f32.mrb[128].mxu0 }
 0x6eb   : > { %v6485_v33 = vpop.f32.mrb[129].mxu0 }
 0x6ec   : > { %v3240_v40 = vpop.f32.mrb[130].mxu0 }
 0x6ed   : > { %v6486_v63 = vpop.f32.mrb[131].mxu0 }
 0x6ee   : > { %6231 = vmatmul.mubr.msk.bf16.gmra.mrb[140].mxu1 %vm1648_vm13, %v9086_v58 }
 0x6ef   : > { %6501 = vmatprep.mubr.msk.bf16.mxu1 %vm7329_vm1, %v11008_v41 }
 0x70a   : > { %v3245_v44 = vpop.f32.mrb[132].mxu0 }
 0x70b   : > { %v6489_v35 = vpop.f32.mrb[133].mxu0 }
 0x70c   : > { %v3248_v38 = vpop.f32.mrb[134].mxu0 }
 0x70d   : > { %v6490_v32 = vpop.f32.mrb[135].mxu0 }
 0x724   : > { %v3253_v23 = vpop.f32.mrb[136].mxu0 }
 0x725   : > { %v6493_v6 = vpop.f32.mrb[137].mxu0 }
 0x726   : > { %v3256_v52 = vpop.f32.mrb[138].mxu0 }
 0x727   : > { %v6494_v12 = vpop.f32.mrb[139].mxu0 }
 0x72c   : > { %v3261_v36 = vpop.f32.mrb[140].mxu0 }
 0x72d   : > { %v6497_v39 = vpop.f32.mrb[141].mxu0 }
 0x72e   : > { %v3264_v3 = vpop.f32.mrb[142].mxu0 }
 0x72f   : > { %v6498_v46 = vpop.f32.mrb[143].mxu0 }
 0x734   : > { %v3063_v42 = vpop.f32.mrb[72].mxu1 }
 0x735   : > { %v9204_v5 = vadd.f32 %v3197_v57, %v3063_v42  ;;  %v6427_v43 = vpop.f32.mrb[73].mxu1 }
 0x736   : > { %v3066_v58 = vpop.f32.mrb[74].mxu1 }
 0x737   : > { %11018 = vst [vmem:[#allocation24_spill] sm:$0xff] %v9204_v5  ;;  %v9206_v22 = vadd.f32 %v3200_v49, %v3066_v58  ;;  %v6428_v4 = vpop.f32.mrb[75].mxu1 }
 0x739   : > { %11019 = vst [vmem:[#allocation61_spill] sm:$0xff] %v9206_v22 }
 0x73c   : > { %v3071_v47 = vpop.f32.mrb[76].mxu1 }
 0x73d   : > { %v9208_v28 = vadd.f32 %v3205_v14, %v3071_v47  ;;  %v6431_v53 = vpop.f32.mrb[77].mxu1 }
 0x73e   : > { %v3074_v61 = vpop.f32.mrb[78].mxu1 }
 0x73f   : > { %11020 = vst [vmem:[#allocation26_spill] sm:$0xff] %v9208_v28  ;;  %v9210_v0 = vadd.f32 %v3208_v16, %v3074_v61  ;;  %v6432_v54 = vpop.f32.mrb[79].mxu1 }
 0x741   : > { %11021 = vst [vmem:[#allocation62_spill] sm:$0xff] %v9210_v0 }
 0x744   : > { %v3079_v30 = vpop.f32.mrb[80].mxu1 }
 0x745   : > { %v9212_v55 = vadd.f32 %v3213_v13, %v3079_v30  ;;  %v6435_v7 = vpop.f32.mrb[81].mxu1 }
 0x746   : > { %v3082_v18 = vpop.f32.mrb[82].mxu1 }
 0x747   : > { %11022 = vst [vmem:[#allocation63_spill] sm:$0xff] %v9212_v55  ;;  %v9214_v57 = vadd.f32 %v3216_v27, %v3082_v18  ;;  %v6436_v11 = vpop.f32.mrb[83].mxu1 }
 0x749   : > { %11023 = vst [vmem:[#allocation64_spill] sm:$0xff] %v9214_v57 }
 0x74e   : > { %v3087_v62 = vpop.f32.mrb[84].mxu1 }
 0x74f   : > { %v9216_v49 = vadd.f32 %v3221_v31, %v3087_v62  ;;  %v6439_v33 = vpop.f32.mrb[85].mxu1 }
 0x750   : > { %v3090_v63 = vpop.f32.mrb[86].mxu1 }
 0x751   : > { %11024 = vst [vmem:[#allocation66_spill] sm:$0xff] %v9216_v49  ;;  %v9218_v14 = vadd.f32 %v3224_v20, %v3090_v63  ;;  %v6440_v35 = vpop.f32.mrb[87].mxu1  ;;  %v11044_v49 = vld [vmem:[#allocation41_spill] sm:$0xff] }
 0x753   : > { %11025 = vst [vmem:[#allocation67_spill] sm:$0xff] %v9218_v14 }
 0x756   : > { %v3095_v32 = vpop.f32.mrb[88].mxu1 }
 0x757   : > { %v9220_v16 = vadd.f32 %v3229_v59, %v3095_v32  ;;  %v6443_v6 = vpop.f32.mrb[89].mxu1  ;;  %v11035_v32 = vld [vmem:[#allocation28_spill] sm:$0xff] }
 0x758   : > { %v3098_v12 = vpop.f32.mrb[90].mxu1 }
 0x759   : > { %11026 = vst [vmem:[#allocation65_spill] sm:$0xff] %v9220_v16  ;;  %v9222_v13 = vadd.f32 %v3232_v56, %v3098_v12  ;;  %v6444_v39 = vpop.f32.mrb[91].mxu1 }
 0x75b   : > { %11027 = vst [vmem:[#allocation68_spill] sm:$0xff] %v9222_v13 }
 0x75e   : > { %v3103_v3 = vpop.f32.mrb[92].mxu1 }
 0x75f   : > { %v9224_v27 = vadd.f32 %v3237_v9, %v3103_v3  ;;  %v6447_v46 = vpop.f32.mrb[93].mxu1 }
 0x760   : > { %v3106_v42 = vpop.f32.mrb[94].mxu1 }
 0x761   : > { %11028 = vst [vmem:[#allocation70_spill] sm:$0xff] %v9224_v27  ;;  %v9226_v31 = vadd.f32 %v3240_v40, %v3106_v42  ;;  %v6448_v43 = vpop.f32.mrb[95].mxu1 }
 0x763   : > { %11029 = vst [vmem:[#allocation69_spill] sm:$0xff] %v9226_v31 }
 0x769   : > { %v3111_v58 = vpop.f32.mrb[96].mxu1 }
 0x76a   : > { %v9228_v20 = vadd.f32 %v3245_v44, %v3111_v58  ;;  %v6451_v4 = vpop.f32.mrb[97].mxu1 }
 0x76b   : > { %v3114_v47 = vpop.f32.mrb[98].mxu1 }
 0x76c   : > { %11030 = vst [vmem:[#allocation12_spill] sm:$0xff] %v9228_v20  ;;  %v9230_v59 = vadd.f32 %v3248_v38, %v3114_v47  ;;  %v6452_v53 = vpop.f32.mrb[99].mxu1  ;;  %v11036_v47 = vld [vmem:[#allocation29_spill] sm:$0xff]  ;;  %v11042_v20 = vld [vmem:[#allocation38_spill] sm:$0xff] }
 0x76e   : > { %11031 = vst [vmem:[#allocation71_spill] sm:$0xff] %v9230_v59 }
 0x771   : > { %v3119_v61 = vpop.f32.mrb[100].mxu1 }
 0x772   : > { %v9232_v56 = vadd.f32 %v3253_v23, %v3119_v61  ;;  %v6455_v54 = vpop.f32.mrb[101].mxu1 }
 0x773   : > { %v3122_v30 = vpop.f32.mrb[102].mxu1 }
 0x774   : > { %11032 = vst [vmem:[#allocation22_spill] sm:$0xff] %v9232_v56  ;;  %v9234_v9 = vadd.f32 %v3256_v52, %v3122_v30  ;;  %v6456_v7 = vpop.f32.mrb[103].mxu1 }
 0x776   : > { %11033 = vst [vmem:[#allocation72_spill] sm:$0xff] %v9234_v9  ;;  %v11041_v9 = vld [vmem:[#allocation37_spill] sm:$0xff] }
 0x779   : > { %v3127_v18 = vpop.f32.mrb[104].mxu1 }
 0x77a   : > { %v9236_v40 = vadd.f32 %v3261_v36, %v3127_v18  ;;  %v6459_v11 = vpop.f32.mrb[105].mxu1 }
 0x77b   : > { %v3130_v62 = vpop.f32.mrb[106].mxu1  ;;  %v11037_v11 = vld [vmem:[#allocation31_spill] sm:$0xff] }
 0x77c   : > { %11034 = vst [vmem:[#allocation52_spill] sm:$0xff] %v9236_v40  ;;  %v6460_v44 = vpop.f32.mrb[107].mxu1 }
 0x781   : > { %v3391_v33 = vpop.f32.mrb[108].mxu1 }
 0x782   : > { %v3393_v63 = vpop.f32.mrb[109].mxu1  ;;  %v9241_v6 = vadd.f32 %v3391_v33, %v11035_v32  ;;  %v11038_v33 = vld [vmem:[#allocation32_spill] sm:$0xff] }
 0x783   : > { %v9238_v35 = vadd.f32 -1e+30, %v3393_v63  ;;  %v3395_v38 = vpop.f32.mrb[110].mxu1 }
 0x784   : > { %v3397_v23 = vpop.f32.mrb[111].mxu1  ;;  %v9249_v39 = vadd.f32 %v3395_v38, %v11035_v32 }
 0x785   : > { %v3478_v52 = vsel %vm1648_vm13, %v9238_v35, -inf  ;;  %v9245_v12 = vadd.f32 -1e+30, %v3397_v23 }
 0x786   : > { %v3479_v36 = vmax.f32 %v9241_v6, %v3478_v52 }
 0x787   : > { %v3482_v3 = vsel %vm1648_vm13, %v9245_v12, -inf }
 0x788   : > { %v3483_v46 = vmax.f32 %v9249_v39, %v3482_v3  ;;  %3480 = vmax.xlane.f32.xlu1 %v3479_v36 }
 0x789   : > { %v3401_v42 = vpop.f32.mrb[112].mxu1 }
 0x78a   : > { %v3403_v43 = vpop.f32.mrb[113].mxu1  ;;  %3484 = vmax.xlane.f32.xlu0 %v3483_v46  ;;  %v9257_v53 = vadd.f32 %v3401_v42, %v11036_v47  ;;  %v11039_v46 = vld [vmem:[#allocation34_spill] sm:$0xff] }
 0x78b   : > { %v9254_v58 = vadd.f32 -1e+30, %v3403_v43  ;;  %v3405_v4 = vpop.f32.mrb[114].mxu1 }
 0x78c   : > { %v3407_v61 = vpop.f32.mrb[115].mxu1 }
 0x78d   : > { %v3486_v54 = vsel %vm1648_vm13, %v9254_v58, -inf  ;;  %v9303_v5 = vadd.f32 -1e+30, %v3407_v61 }
 0x78e   : > { %v3487_v30 = vmax.f32 %v9257_v53, %v3486_v54  ;;  %v11040_v54 = vld [vmem:[#allocation35_spill] sm:$0xff] }
 0x790   : > { %3488 = vmax.xlane.f32.xlu0 %v3487_v30 }
 0x791   : > { %v3411_v7 = vpop.f32.mrb[116].mxu1 }
 0x792   : > { %v3413_v18 = vpop.f32.mrb[117].mxu1  ;;  %v9266_v63 = vadd.f32 %v3411_v7, %v11038_v33 }
 0x793   : > { %v9263_v62 = vadd.f32 %v3413_v18, %v11037_v11  ;;  %v3415_v44 = vpop.f32.mrb[118].mxu1  ;;  %v11049_v11 = vld [vmem:[#allocation50_spill] sm:$0xff] }
 0x794   : > { %v3417_v38 = vpop.f32.mrb[119].mxu1 }
 0x795   : > { %v3494_v23 = vsel %vm1648_vm13, %v9263_v62, -inf }
 0x796   : > { %v3495_v52 = vmax.f32 %v9266_v63, %v3494_v23 }
 0x798   : > { %3496 = vmax.xlane.f32.xlu0 %v3495_v52 }
 0x799   : > { %4126 = vrot.lane.b32.xlu1 %v10983_v10, %s7339_s20  ;;  %v3421_v36 = vpop.f32.mrb[120].mxu1 }
 0x79a   : > { %v3423_v3 = vpop.f32.mrb[121].mxu1  ;;  %v9277_v30 = vadd.f32 %v3421_v36, %v11040_v54 }
 0x79b   : > { %v9274_v42 = vadd.f32 %v3423_v3, %v11039_v46  ;;  %v3425_v43 = vpop.f32.mrb[122].mxu1 }
 0x79c   : > { %v3427_v7 = vpop.f32.mrb[123].mxu1 }
 0x79d   : > { %v3502_v18 = vsel %vm1648_vm13, %v9274_v42, -inf  ;;  %v9324_v33 = vadd.f32 -1e+30, %v3427_v7 }
 0x79e   : > { %v3503_v40 = vmax.f32 %v9277_v30, %v3502_v18  ;;  %v11043_v18 = vld [vmem:[#allocation40_spill] sm:$0xff] }
 0x79f   : > { %v3506_v7 = vsel %vm1648_vm13, %v9324_v33, -inf }
 0x7a0   : > { %3504 = vmax.xlane.f32.xlu0 %v3503_v40 }
 0x7a1   : > { %v3431_v23 = vpop.f32.mrb[124].mxu1 }
 0x7a2   : > { %v3433_v52 = vpop.f32.mrb[125].mxu1  ;;  %v9286_v3 = vadd.f32 %v3431_v23, %v11042_v20 }
 0x7a3   : > { %v9283_v56 = vadd.f32 %v3433_v52, %v11041_v9  ;;  %v3435_v59 = vpop.f32.mrb[126].mxu1 }
 0x7a4   : > { %v3437_v31 = vpop.f32.mrb[127].mxu1 }
 0x7a5   : > { %v3510_v36 = vsel %vm1648_vm13, %v9283_v56, -inf  ;;  %v9340_v47 = vadd.f32 -1e+30, %v3437_v31  ;;  %v9353_v31 = vadd.f32 %v3435_v59, %v11052_v15 }
 0x7a6   : > { %v3511_v27 = vmax.f32 %v9286_v3, %v3510_v36  ;;  %v11045_v36 = vld [vmem:[#allocation43_spill] sm:$0xff] }
 0x7a8   : > { %3512 = vmax.xlane.f32.xlu0 %v3511_v27 }
 0x7a9   : > { %v3441_v13 = vpop.f32.mrb[128].mxu1 }
 0x7aa   : > { %v3443_v16 = vpop.f32.mrb[129].mxu1  ;;  %v9295_v52 = vadd.f32 %v3441_v13, %v11044_v49 }
 0x7ab   : > { %v9292_v40 = vadd.f32 %v3443_v16, %v11043_v18  ;;  %v3445_v14 = vpop.f32.mrb[130].mxu1  ;;  %v11046_v16 = vld [vmem:[#allocation44_spill] sm:$0xff] }
 0x7ac   : > { %v3447_v57 = vpop.f32.mrb[131].mxu1 }
 0x7ad   : > { %v3518_v23 = vsel %vm1648_vm13, %v9292_v40, -inf }
 0x7ae   : > { %v3519_v55 = vmax.f32 %v9295_v52, %v3518_v23  ;;  %v9313_v23 = vadd.f32 -1e+30, %v3417_v38 }
 0x7b0   : > { %3520 = vmax.xlane.f32.xlu0 %v3519_v55  ;;  %v3490_v55 = vsel %vm1648_vm13, %v9303_v5, -inf }
 0x7b1   : > { %v3451_v0 = vpop.f32.mrb[132].mxu1 }
 0x7b2   : > { %v3453_v28 = vpop.f32.mrb[133].mxu1  ;;  %v9306_v18 = vadd.f32 %v3451_v0, %v11046_v16  ;;  %v11048_v16 = vld [vmem:[#allocation49_spill] sm:$0xff] }
 0x7b3   : > { %v9301_v27 = vadd.f32 %v3453_v28, %v11045_v36  ;;  %v3455_v22 = vpop.f32.mrb[134].mxu1  ;;  %v11047_v28 = vld [vmem:[#allocation30_spill] sm:$0xff] }
 0x7b4   : > { %v3457_v13 = vpop.f32.mrb[135].mxu1  ;;  %v9316_v36 = vadd.f32 %v3405_v4, %v11047_v28  ;;  %v11050_v4 = vld [vmem:[#allocation33_spill] sm:$0xff] }
 0x7b5   : > { %v3526_v49 = vsel %vm1648_vm13, %v9301_v27, -inf  ;;  %v9332_v28 = vadd.f32 %v3415_v44, %v11050_v4 }
 0x7b6   : > { %v3527_v20 = vmax.f32 %v9306_v18, %v3526_v49  ;;  %v3491_v0 = vmax.f32 %v9316_v36, %v3490_v55  ;;  %v3498_v49 = vsel %vm1648_vm13, %v9313_v23, -inf }
 0x7b8   : > { %3528 = vmax.xlane.f32.xlu0 %v3527_v20 }
 0x7b9   : > { %v3461_v61 = vpop.f32.mrb[136].mxu1 }
 0x7ba   : > { %v3463_v9 = vpop.f32.mrb[137].mxu1  ;;  %v9327_v38 = vadd.f32 %v3461_v61, %v11049_v11  ;;  %v11051_v61 = vld [vmem:[#allocation36_spill] sm:$0xff] }
 0x7bb   : > { %v9320_v54 = vadd.f32 %v3463_v9, %v11048_v16  ;;  %v3465_v46 = vpop.f32.mrb[138].mxu1  ;;  %v3499_v16 = vmax.f32 %v9332_v28, %v3498_v49  ;;  %v9343_v11 = vadd.f32 %v3425_v43, %v11051_v61  ;;  %v9350_v49 = vadd.f32 -1e+30, %v3447_v57  ;;  %v11053_v61 = vld [vmem:[#allocation42_spill] sm:$0xff] }
 0x7bc   : > { %v9329_v20 = vpop.f32.mrb[139].mxu1  ;;  %v11054_v57 = vld [vmem:[#allocation46_spill] sm:$0xff] }
 0x7bd   : > { %v3534_v55 = vsel %vm1648_vm13, %v9320_v54, -inf  ;;  %3492 = vmax.xlane.f32.xlu1 %v3491_v0  ;;  %v3507_v32 = vmax.f32 %v9343_v11, %v3506_v7  ;;  %v9361_v7 = vadd.f32 %v3445_v14, %v11053_v61  ;;  %v9367_v59 = vadd.f32 %v3455_v22, %v11054_v57 }
 0x7be   : > { %v3535_v9 = vmax.f32 %v9327_v38, %v3534_v55  ;;  %v3514_v55 = vsel %vm1648_vm13, %v9340_v47, -inf }
 0x7bf   : > { %v3515_v43 = vmax.f32 %v9353_v31, %v3514_v55  ;;  %v11055_v55 = vld [vmem:[#allocation53_spill] sm:$0xff] }
 0x7c0   : > { %3536 = vmax.xlane.f32.xlu0 %v3535_v9  ;;  %v9358_v9 = vadd.f32 -1e+30, %v3457_v13  ;;  %v9371_v15 = vadd.f32 %v3465_v46, %v11055_v55  ;;  %v3538_v13 = vsel %vm1648_vm13, %v9329_v20, -inf }
 0x7c1   : > { %3500 = vmax.xlane.f32.xlu1 %v3499_v16  ;;  %v3471_v44 = vpop.f32.mrb[140].mxu1  ;;  %v3522_v16 = vsel %vm1648_vm13, %v9350_v49, -inf }
 0x7c2   : > { %v9345_v4 = vpop.f32.mrb[141].mxu1  ;;  %v3539_v14 = vmax.f32 %v9371_v15, %v3538_v13  ;;  %v9381_v22 = vadd.f32 %v3471_v44, %v11055_v55 }
 0x7c3   : > { %v3475_v0 = vpop.f32.mrb[142].mxu1  ;;  %v3542_v46 = vsel %vm1648_vm13, %v9345_v4, -inf }
 0x7c4   : > { %v3476_v41 = vpop.f32.mrb[143].mxu1  ;;  %v3523_v0 = vmax.f32 %v9361_v7, %v3522_v16  ;;  %v9386_v16 = vpop.permute.xlu0 %4124 }
 0x7c5   : > { %3508 = vmax.xlane.f32.xlu1 %v3507_v32  ;;  %v3530_v41 = vsel %vm1648_vm13, %v9358_v9, -inf }
 0x7c6   : > { %v3531_v32 = vmax.f32 %v9367_v59, %v3530_v41 }
 0x7c9   : > { %3516 = vmax.xlane.f32.xlu1 %v3515_v43  ;;  %v3543_v43 = vmax.f32 %v9381_v22, %v3542_v46 }
 0x7cd   : > { %3524 = vmax.xlane.f32.xlu1 %v3523_v0 }
 0x7d1   : > { %3532 = vmax.xlane.f32.xlu1 %v3531_v32 }
 0x7d5   : > { %3540 = vmax.xlane.f32.xlu1 %v3539_v14 }
 0x7d6   : > { %4128 = vrot.lane.b32.xlu0 %v10992_v29, %s7339_s20 }
 0x7e6   : > { %4130 = vrot.lane.b32.xlu1 %v10994_v48, %s7339_s20 }
 0x7f5   : > { %3544 = vmax.xlane.f32.xlu0 %v3543_v43 }
 0x815   : > { %v3481_v0 = vpop.xlane.xlu1 %3480 }
 0x816   : > { %v3546_v41 = vsub.f32 %v9241_v6, %v3481_v0  ;;  %v3547_v32 = vsub.f32 %v9238_v35, %v3481_v0 }
 0x817   : > { %v3485_v13 = vpop.xlane.xlu0 %3484 }
 0x818   : > { %v3580_v14 = vmul.f32 1.442695, %v3546_v41  ;;  %v3582_v57 = vmul.f32 1.442695, %v3547_v32  ;;  %v3548_v61 = vsub.f32 %v9249_v39, %v3485_v13  ;;  %v3549_v44 = vsub.f32 %v9245_v12, %v3485_v13 }
 0x81a   : > { %6962 = vpow2.f32 %v3580_v14  ;;  %v3584_v55 = vmul.f32 1.442695, %v3548_v61  ;;  %v3586_v29 = vmul.f32 1.442695, %v3549_v44 }
 0x81b   : > { %6964 = vpow2.f32 %v3582_v57 }
 0x81c   : > { %6966 = vpow2.f32 %v3584_v55 }
 0x81d   : > { %6968 = vpow2.f32 %v3586_v29  ;;  %v3489_v46 = vpop.xlane.xlu0 %3488 }
 0x81e   : > { %v3550_v43 = vsub.f32 %v9257_v53, %v3489_v46  ;;  %v3551_v6 = vsub.f32 %v9254_v58, %v3489_v46 }
 0x820   : > { %v3588_v26 = vmul.f32 1.442695, %v3550_v43  ;;  %v3590_v35 = vmul.f32 1.442695, %v3551_v6 }
 0x822   : > { %6970 = vpow2.f32 %v3588_v26 }
 0x823   : > { %6972 = vpow2.f32 %v3590_v35 }
 0x824   : > { %v9394_v0 = vpop.eup %6962 }
 0x825   : > { %v9396_v39 = vpop.eup %6964  ;;  %v3497_v12 = vpop.xlane.xlu0 %3496 }
 0x826   : > { %v9398_v41 = vpop.eup %6966  ;;  %v3554_v61 = vsub.f32 %v9266_v63, %v3497_v12  ;;  %v3555_v29 = vsub.f32 %v9263_v62, %v3497_v12  ;;  %v3648_v53 = vsel %vm1648_vm13, %v9396_v39, 0.0 }
 0x827   : > { %v9404_v57 = vpop.eup %6968  ;;  %v3649_v58 = vadd.f32 %v9394_v0, %v3648_v53 }
 0x828   : > { %v3596_v26 = vmul.f32 1.442695, %v3554_v61  ;;  %v3598_v55 = vmul.f32 1.442695, %v3555_v29  ;;  %v3652_v32 = vsel %vm1648_vm13, %v9404_v57, 0.0 }
 0x829   : > { %3650 = vadd.xlane.f32.xlu1 %v3649_v58  ;;  %v3653_v13 = vadd.f32 %v9398_v41, %v3652_v32 }
 0x82a   : > { %6974 = vpow2.f32 %v3596_v26 }
 0x82b   : > { %6976 = vpow2.f32 %v3598_v55  ;;  %3654 = vadd.xlane.f32.xlu0 %v3653_v13 }
 0x82c   : > { %v9410_v63 = vpop.eup %6970 }
 0x82d   : > { %v9412_v62 = vpop.eup %6972  ;;  %v3505_v14 = vpop.xlane.xlu0 %3504 }
 0x82e   : > { %v3558_v44 = vsub.f32 %v9277_v30, %v3505_v14  ;;  %v3559_v46 = vsub.f32 %v9274_v42, %v3505_v14  ;;  %v3656_v43 = vsel %vm1648_vm13, %v9412_v62, 0.0 }
 0x82f   : > { %v3657_v6 = vadd.f32 %v9410_v63, %v3656_v43  ;;  %v9439_v43 = vpop.permute.xlu1 %4126 }
 0x830   : > { %v3604_v35 = vmul.f32 1.442695, %v3558_v44  ;;  %v3606_v12 = vmul.f32 1.442695, %v3559_v46 }
 0x831   : > { %3658 = vadd.xlane.f32.xlu1 %v3657_v6 }
 0x832   : > { %6978 = vpow2.f32 %v3604_v35 }
 0x833   : > { %6980 = vpow2.f32 %v3606_v12 }
 0x834   : > { %v9419_v61 = vpop.eup %6974 }
 0x835   : > { %v9421_v29 = vpop.eup %6976  ;;  %v3513_v53 = vpop.xlane.xlu0 %3512 }
 0x836   : > { %v3562_v58 = vsub.f32 %v9286_v3, %v3513_v53  ;;  %v3563_v30 = vsub.f32 %v9283_v56, %v3513_v53  ;;  %v3664_v42 = vsel %vm1648_vm13, %v9421_v29, 0.0 }
 0x837   : > { %v3665_v26 = vadd.f32 %v9419_v61, %v3664_v42 }
 0x838   : > { %v3612_v55 = vmul.f32 1.442695, %v3562_v58  ;;  %v3614_v32 = vmul.f32 1.442695, %v3563_v30 }
 0x839   : > { %3666 = vadd.xlane.f32.xlu1 %v3665_v26 }
 0x83a   : > { %6982 = vpow2.f32 %v3612_v55 }
 0x83b   : > { %6984 = vpow2.f32 %v3614_v32 }
 0x83c   : > { %v9428_v13 = vpop.eup %6978 }
 0x83d   : > { %v9430_v14 = vpop.eup %6980  ;;  %v3521_v26 = vpop.xlane.xlu0 %3520 }
 0x83e   : > { %v3672_v44 = vsel %vm1648_vm13, %v9430_v14, 0.0 }
 0x83f   : > { %v3673_v3 = vadd.f32 %v9428_v13, %v3672_v44 }
 0x841   : > { %3674 = vadd.xlane.f32.xlu1 %v3673_v3  ;;  %v3567_v3 = vsub.f32 %v9292_v40, %v3521_v26 }
 0x844   : > { %v9435_v56 = vpop.eup %6982 }
 0x845   : > { %11056 = vst [vmem:[#allocation48_spill] sm:$0xff] %v9435_v56  ;;  %v9437_v46 = vpop.eup %6984 }
 0x846   : > { %11057 = vst [vmem:[#allocation51_spill] sm:$0xff] %v9437_v46  ;;  %v3680_v6 = vsel %vm1648_vm13, %v9437_v46, 0.0 }
 0x847   : > { %v3681_v35 = vadd.f32 %v9435_v56, %v3680_v6 }
 0x849   : > { %3682 = vadd.xlane.f32.xlu1 %v3681_v35  ;;  %v3566_v35 = vsub.f32 %v9295_v52, %v3521_v26 }
 0x84a   : > { %v3493_v12 = vpop.xlane.xlu1 %3492 }
 0x84b   : > { %v3552_v53 = vsub.f32 %v9316_v36, %v3493_v12  ;;  %v3553_v58 = vsub.f32 %v9303_v5, %v3493_v12  ;;  %v3529_v36 = vpop.xlane.xlu0 %3528 }
 0x84d   : > { %v3592_v30 = vmul.f32 1.442695, %v3552_v53  ;;  %v3594_v42 = vmul.f32 1.442695, %v3553_v58  ;;  %v3622_v53 = vmul.f32 1.442695, %v3567_v3 }
 0x84e   : > { %v3501_v55 = vpop.xlane.xlu1 %3500 }
 0x84f   : > { %6986 = vpow2.f32 %v3592_v30  ;;  %v3556_v32 = vsub.f32 %v9332_v28, %v3501_v55  ;;  %v3557_v44 = vsub.f32 %v9313_v23, %v3501_v55  ;;  %v3620_v30 = vmul.f32 1.442695, %v3566_v35 }
 0x850   : > { %6988 = vpow2.f32 %v3594_v42  ;;  %v3571_v23 = vsub.f32 %v9301_v27, %v3529_v36 }
 0x851   : > { %v3600_v46 = vmul.f32 1.442695, %v3556_v32  ;;  %v3602_v6 = vmul.f32 1.442695, %v3557_v44 }
 0x852   : > { %v3509_v56 = vpop.xlane.xlu1 %3508  ;;  %v3630_v55 = vmul.f32 1.442695, %v3571_v23 }
 0x853   : > { %v3560_v5 = vsub.f32 %v9343_v11, %v3509_v56  ;;  %v3561_v12 = vsub.f32 %v9324_v33, %v3509_v56  ;;  %6990 = vpow2.f32 %v3600_v46  ;;  %v3570_v46 = vsub.f32 %v9306_v18, %v3529_v36 }
 0x854   : > { %6992 = vpow2.f32 %v3602_v6 }
 0x855   : > { %v3608_v58 = vmul.f32 1.442695, %v3560_v5  ;;  %v3610_v28 = vmul.f32 1.442695, %v3561_v12  ;;  %v3628_v5 = vmul.f32 1.442695, %v3570_v46 }
 0x856   : > { %v3517_v42 = vpop.xlane.xlu1 %3516 }
 0x857   : > { %6994 = vpow2.f32 %v3608_v58  ;;  %v3564_v40 = vsub.f32 %v9353_v31, %v3517_v42  ;;  %v3565_v52 = vsub.f32 %v9340_v47, %v3517_v42 }
 0x858   : > { %6996 = vpow2.f32 %v3610_v28 }
 0x859   : > { %v9455_v26 = vpop.eup %6986  ;;  %6998 = vpow2.f32 %v3622_v53  ;;  %v3616_v11 = vmul.f32 1.442695, %v3564_v40  ;;  %v3618_v33 = vmul.f32 1.442695, %v3565_v52 }
 0x85a   : > { %v9457_v56 = vpop.eup %6988  ;;  %7000 = vpow2.f32 %v3620_v30  ;;  %v3525_v32 = vpop.xlane.xlu1 %3524 }
 0x85b   : > { %7002 = vpow2.f32 %v3616_v11  ;;  %v3568_v27 = vsub.f32 %v9361_v7, %v3525_v32  ;;  %v3569_v31 = vsub.f32 %v9350_v49, %v3525_v32  ;;  %v3660_v47 = vsel %vm1648_vm13, %v9457_v56, 0.0 }
 0x85c   : > { %7004 = vpow2.f32 %v3618_v33  ;;  %v3661_v44 = vadd.f32 %v9455_v26, %v3660_v47 }
 0x85d   : > { %v3624_v3 = vmul.f32 1.442695, %v3568_v27  ;;  %v3626_v6 = vmul.f32 1.442695, %v3569_v31  ;;  %v9465_v35 = vpop.eup %6990  ;;  %7006 = vpow2.f32 %v3630_v55 }
 0x85e   : > { %3662 = vadd.xlane.f32.xlu0 %v3661_v44  ;;  %v3533_v18 = vpop.xlane.xlu1 %3532  ;;  %v9467_v36 = vpop.eup %6992 }
 0x85f   : > { %7008 = vpow2.f32 %v3624_v3  ;;  %v3572_v7 = vsub.f32 %v9367_v59, %v3533_v18  ;;  %v3573_v49 = vsub.f32 %v9358_v9, %v3533_v18  ;;  %v3668_v12 = vsel %vm1648_vm13, %v9467_v36, 0.0 }
 0x860   : > { %7010 = vpow2.f32 %v3626_v6  ;;  %v3669_v28 = vadd.f32 %v9465_v35, %v3668_v12 }
 0x861   : > { %v9473_v53 = vpop.eup %6994  ;;  %v3634_v58 = vmul.f32 1.442695, %v3573_v49  ;;  %7012 = vpow2.f32 %v3628_v5  ;;  %v3632_v40 = vmul.f32 1.442695, %v3572_v7 }
 0x862   : > { %v9476_v30 = vpop.eup %6996  ;;  %v3541_v23 = vpop.xlane.xlu1 %3540  ;;  %3670 = vadd.xlane.f32.xlu0 %v3669_v28 }
 0x863   : > { %v9478_v42 = vpop.eup %6998  ;;  %v3576_v59 = vsub.f32 %v9371_v15, %v3541_v23  ;;  %v3577_v9 = vsub.f32 %v9329_v20, %v3541_v23  ;;  %v3676_v52 = vsel %vm1648_vm13, %v9476_v30, 0.0  ;;  %7014 = vpow2.f32 %v3634_v58 }
 0x864   : > { %v9484_v11 = vpop.eup %7000  ;;  %v3677_v33 = vadd.f32 %v9473_v53, %v3676_v52  ;;  %v3688_v27 = vsel %vm1648_vm13, %v9478_v42, 0.0  ;;  %7016 = vpow2.f32 %v3632_v40 }
 0x865   : > { %v9487_v46 = vpop.eup %7002  ;;  %v3642_v55 = vmul.f32 1.442695, %v3577_v9  ;;  %v3640_v15 = vmul.f32 1.442695, %v3576_v59  ;;  %v3689_v3 = vadd.f32 %v9484_v11, %v3688_v27 }
 0x866   : > { %v9489_v32 = vpop.eup %7004  ;;  %3678 = vadd.xlane.f32.xlu0 %v3677_v33  ;;  %v3537_v33 = vpop.xlane.xlu0 %3536 }
 0x867   : > { %v3684_v20 = vsel %vm1648_vm13, %v9489_v32, 0.0  ;;  %v9495_v31 = vpop.eup %7006  ;;  %7018 = vpow2.f32 %v3642_v55 }
 0x868   : > { %v3685_v47 = vadd.f32 %v9487_v46, %v3684_v20  ;;  %7020 = vpow2.f32 %v3640_v15  ;;  %v3696_v49 = vsel %vm1648_vm13, %v9495_v31, 0.0 }
 0x869   : > { %v9498_v44 = vpop.eup %7008 }
 0x86a   : > { %v9501_v6 = vpop.eup %7010  ;;  %3686 = vadd.xlane.f32.xlu1 %v3685_v47  ;;  %3690 = vadd.xlane.f32.xlu0 %v3689_v3  ;;  %v9525_v27 = vpop.permute.xlu0 %4128 }
 0x86b   : > { %v3692_v5 = vsel %vm1648_vm13, %v9501_v6, 0.0  ;;  %v9505_v18 = vpop.eup %7012 }
 0x86c   : > { %v3693_v7 = vadd.f32 %v9498_v44, %v3692_v5  ;;  %v3697_v58 = vadd.f32 %v9505_v18, %v3696_v49  ;;  %v3574_v49 = vsub.f32 %v9327_v38, %v3537_v33 }
 0x86d   : > { %v9510_v12 = vpop.eup %7014 }
 0x86e   : > { %3694 = vadd.xlane.f32.xlu1 %v3693_v7  ;;  %v9513_v28 = vpop.eup %7016  ;;  %v3700_v23 = vsel %vm1648_vm13, %v9510_v12, 0.0  ;;  %v3575_v7 = vsub.f32 %v9320_v54, %v3537_v33 }
 0x86f   : > { %v3701_v59 = vadd.f32 %v9513_v28, %v3700_v23  ;;  %v3636_v23 = vmul.f32 1.442695, %v3574_v49 }
 0x871   : > { %v9517_v40 = vpop.eup %7018 }
 0x872   : > { %3698 = vadd.xlane.f32.xlu1 %v3697_v58  ;;  %v9520_v9 = vpop.eup %7020  ;;  %v3708_v52 = vsel %vm1648_vm13, %v9517_v40, 0.0  ;;  %v3638_v58 = vmul.f32 1.442695, %v3575_v7 }
 0x873   : > { %v3709_v55 = vadd.f32 %v9520_v9, %v3708_v52 }
 0x876   : > { %3702 = vadd.xlane.f32.xlu1 %v3701_v59 }
 0x87a   : > { %3710 = vadd.xlane.f32.xlu1 %v3709_v55 }
 0x880   : > { %4132 = vrot.lane.b32.xlu0 %v10996_v50, %s7339_s20 }
 0x882   : > { %v3545_v15 = vpop.xlane.xlu0 %3544 }
 0x883   : > { %v3578_v20 = vsub.f32 %v9381_v22, %v3545_v15  ;;  %v3579_v47 = vsub.f32 %v9345_v4, %v3545_v15  ;;  %v4131_v15 = vpop.permute.xlu1 %4130 }
 0x885   : > { %v3644_v3 = vmul.f32 1.442695, %v3578_v20  ;;  %v3646_v5 = vmul.f32 1.442695, %v3579_v47 }
 0x887   : > { %7022 = vpow2.f32 %v3644_v3 }
 0x888   : > { %7024 = vpow2.f32 %v3646_v5 }
 0x889   : > { %7026 = vpow2.f32 %v3638_v58 }
 0x88a   : > { %7028 = vpow2.f32 %v3636_v23 }
 0x891   : > { %v9533_v59 = vpop.eup %7022 }
 0x892   : > { %v9535_v52 = vpop.eup %7024 }
 0x893   : > { %v3712_v22 = vsel %vm1648_vm13, %v9535_v52, 0.0  ;;  %v9540_v55 = vpop.eup %7026 }
 0x894   : > { %v3713_v4 = vadd.f32 %v9533_v59, %v3712_v22  ;;  %v9542_v54 = vpop.eup %7028  ;;  %v3704_v38 = vsel %vm1648_vm13, %v9540_v55, 0.0 }
 0x895   : > { %v3705_v33 = vadd.f32 %v9542_v54, %v3704_v38 }
 0x896   : > { %3714 = vadd.xlane.f32.xlu1 %v3713_v4 }
 0x89f   : > { %3706 = vadd.xlane.f32.xlu0 %v3705_v33 }
 0x8a7   : > { %4134 = vrot.lane.b32.xlu1 %v10998_v17, %s7339_s20 }
 0x8ab   : > { %4110 = vrot.lane.b32.xlu1 %v11000_v25, %s7340_s26 }
 0x8af   : > { %4114 = vrot.lane.b32.xlu1 %v11003_v19, %s7340_s26 }
 0x8b3   : > { %4118 = vrot.lane.b32.xlu1 %v11004_v1, %s7340_s26 }
 0x8b5   : > { %4136 = vrot.lane.b32.xlu0 %v10985_v51, %s7339_s20 }
 0x8b6   : > { %v3651_v20 = vpop.xlane.xlu1 %3650 }
 0x8b7   : > { %7030 = vrcp.f32 %v3651_v20  ;;  %4122 = vrot.lane.b32.xlu1 %v11005_v60, %s7340_s26 }
 0x8b8   : > { %v3655_v47 = vpop.xlane.xlu0 %3654 }
 0x8b9   : > { %7032 = vrcp.f32 %v3655_v47  ;;  %4138 = vrot.lane.b32.xlu0 %v10970_v2, %s7339_s20 }
 0x8bb   : > { %4626 = vrot.lane.b32.xlu1 %v10983_v10, %s7341_s29 }
 0x8bd   : > { %4140 = vrot.lane.b32.xlu0 %v10972_v8, %s7339_s20 }
 0x8bf   : > { %4630 = vrot.lane.b32.xlu1 %v10994_v48, %s7341_s29  ;;  %v4170_v48 = vsel %vm1648_vm13, %v9386_v16, 0  ;;  %v11059_v16 = vld [vmem:[#allocation10_spill] sm:$0xff] }
 0x8c1   : > { %v7031_v25 = vpop.eup %7030  ;;  %4106 = vrot.lane.b32.xlu0 %v10999_v45, %s7340_s26  ;;  %v11058_v45 = vld [vmem:[#allocation25_spill] sm:$0xff] }
 0x8c2   : > { %v3733_v1 = vmul.f32 %v7031_v25, %v9394_v0  ;;  %v3734_v3 = vmul.f32 %v7031_v25, %v9396_v39  ;;  %v11060_v0 = vld [vmem:[#allocation14_spill] sm:$0xff]  ;;  %v3659_v39 = vpop.xlane.xlu1 %3658 }
 0x8c3   : > { %v7033_v19 = vpop.eup %7032  ;;  %7034 = vrcp.f32 %v3659_v39 }
 0x8c4   : > { %v3735_v60 = vmul.f32 %v7033_v19, %v9398_v41  ;;  %v3736_v5 = vmul.f32 %v7033_v19, %v9404_v57 }
 0x8c5   : > { %4108 = vrot.lane.b32.xlu0 %v10991_v34, %s7340_s26  ;;  %v4173_v34 = vsel %vm1648_vm13, %v9439_v43, 0 }
 0x8c6   : > { %v3768_v10 = vpack.c.bf16 %v3736_v5, %v3734_v3  ;;  %v3767_v7 = vpack.c.bf16 %v3735_v60, %v3733_v1  ;;  %v3667_v41 = vpop.xlane.xlu1 %3666 }
 0x8c8   : > { %6232 = vmatprep.mubr.msk.bf16.mxu0 %vm1648_vm13, %v3768_v10 }
 0x8c9   : > { %3874 = vmatmul.mubr.bf16.vlgmr.msra.gmra.mrb[144].mxu0 %v3767_v7  ;;  %4112 = vrot.lane.b32.xlu0 %v10993_v37, %s7340_s26  ;;  %v4176_v37 = vsel %vm1648_vm13, %v9525_v27, 0 }
 0x8ca   : > { %4197 = vmatpush1.bf16.xpose.msra.mxu0 %v4170_v48 }
 0x8cb   : > { %4198 = vmatprep.subr.bf16.mxu0 %v10979_v24 }
 0x8cd   : > { %4116 = vrot.lane.b32.xlu0 %v10995_v21, %s7340_s26  ;;  %v4179_v21 = vsel %vm1648_vm13, %v4131_v15, 0  ;;  %v7035_v58 = vpop.eup %7034 }
 0x8ce   : > { %v3675_v43 = vpop.xlane.xlu1 %3674  ;;  %v3738_v4 = vmul.f32 %v7035_v58, %v9412_v62  ;;  %v3737_v33 = vmul.f32 %v7035_v58, %v9410_v63  ;;  %v11062_v58 = vld [vmem:[#allocation48_spill] sm:$0xff] }
 0x8d1   : > { %4120 = vrot.lane.b32.xlu0 %v11058_v45, %s7340_s26 }
 0x8d2   : > { %4199 = vmatpush1.bf16.xpose.msra.mxu0 %v4173_v34 }
 0x8d3   : > { %4200 = vmatprep.subr.bf16.mxu0 %v10979_v24 }
 0x8d5   : > { %4624 = vrot.lane.b32.xlu0 %v11059_v16, %s7341_s29 }
 0x8d6   : > { %v3683_v49 = vpop.xlane.xlu1 %3682 }
 0x8d9   : > { %4628 = vrot.lane.b32.xlu0 %v11060_v0, %s7341_s29 }
 0x8da   : > { %4201 = vmatpush1.bf16.xpose.msra.mxu0 %v4176_v37 }
 0x8db   : > { %4202 = vmatprep.subr.bf16.mxu0 %v10979_v24 }
 0x8dd   : > { %4632 = vrot.lane.b32.xlu0 %v10996_v50, %s7341_s29 }
 0x8e2   : > { %4203 = vmatpush1.bf16.xpose.msra.mxu0 %v4179_v21 }
 0x8e3   : > { %4204 = vmatprep.subr.bf16.mxu0 %v10979_v24 }
 0x8eb   : > { %v3663_v57 = vpop.xlane.xlu0 %3662 }
 0x8ec   : > { %7036 = vrcp.f32 %v3663_v57 }
 0x8ed   : > { %7038 = vrcp.f32 %v3667_v41 }
 0x8ef   : > { %v3671_v27 = vpop.xlane.xlu0 %3670 }
 0x8f0   : > { %7040 = vrcp.f32 %v3671_v27 }
 0x8f1   : > { %7042 = vrcp.f32 %v3675_v43 }
 0x8f3   : > { %v3679_v23 = vpop.xlane.xlu0 %3678 }
 0x8f4   : > { %7044 = vrcp.f32 %v3679_v23 }
 0x8f6   : > { %v7037_v50 = vpop.eup %7036 }
 0x8f7   : > { %v3687_v22 = vpop.xlane.xlu1 %3686  ;;  %v3740_v38 = vmul.f32 %v7037_v50, %v9457_v56  ;;  %v3739_v15 = vmul.f32 %v7037_v50, %v9455_v26  ;;  %v3691_v20 = vpop.xlane.xlu0 %3690 }
 0x8f8   : > { %v7039_v47 = vpop.eup %7038  ;;  %7046 = vrcp.f32 %v3687_v22 }
 0x8f9   : > { %v3770_v25 = vpack.c.bf16 %v3740_v38, %v3738_v4  ;;  %v3769_v19 = vpack.c.bf16 %v3739_v15, %v3737_v33  ;;  %7048 = vrcp.f32 %v3683_v49  ;;  %v3742_v62 = vmul.f32 %v7039_v47, %v9421_v29 }
 0x8fa   : > { %v7041_v1 = vpop.eup %7040  ;;  %v3741_v48 = vmul.f32 %v7039_v47, %v9419_v61 }
 0x8fb   : > { %v3695_v60 = vpop.xlane.xlu1 %3694  ;;  %6233 = vmatprep.mubr.msk.bf16.mxu0 %vm1648_vm13, %v3770_v25  ;;  %v4133_v3 = vpop.permute.xlu0 %4132  ;;  %v3744_v56 = vmul.f32 %v7041_v1, %v9467_v36  ;;  %v3743_v10 = vmul.f32 %v7041_v1, %v9465_v35 }
 0x8fc   : > { %3882 = vmatmul.mubr.bf16.gmra.mrb[148].mxu0 %v3769_v19  ;;  %v4182_v63 = vsel %vm1648_vm13, %v4133_v3, 0  ;;  %v7043_v5 = vpop.eup %7042  ;;  %7050 = vrcp.f32 %v3695_v60 }
 0x8fd   : > { %4205 = vmatpush1.bf16.xpose.msra.mxu0 %v4182_v63  ;;  %v3772_v26 = vpack.c.bf16 %v3744_v56, %v3742_v62  ;;  %v3746_v29 = vmul.f32 %v7043_v5, %v9430_v14  ;;  %v3771_v36 = vpack.c.bf16 %v3743_v10, %v3741_v48  ;;  %7052 = vrcp.f32 %v3691_v20 }
 0x8fe   : > { %v7045_v7 = vpop.eup %7044  ;;  %4206 = vmatprep.subr.bf16.mxu0 %v10979_v24  ;;  %v3745_v61 = vmul.f32 %v7043_v5, %v9428_v13 }
 0x8ff   : > { %6234 = vmatprep.mubr.msk.bf16.mxu0 %vm1648_vm13, %v3772_v26  ;;  %v3748_v34 = vmul.f32 %v7045_v7, %v9476_v30  ;;  %v3699_v45 = vpop.xlane.xlu1 %3698  ;;  %v3747_v0 = vmul.f32 %v7045_v7, %v9473_v53  ;;  %v11061_v30 = vld [vmem:[#allocation51_spill] sm:$0xff] }
 0x901   : > { %v3774_v16 = vpack.c.bf16 %v3748_v34, %v3746_v29  ;;  %v3773_v14 = vpack.c.bf16 %v3747_v0, %v3745_v61 }
 0x902   : > { %v7047_v37 = vpop.eup %7046 }
 0x903   : > { %v7049_v35 = vpop.eup %7048  ;;  %v3703_v21 = vpop.xlane.xlu1 %3702  ;;  %v3752_v39 = vmul.f32 %v7047_v37, %v9489_v32  ;;  %v3751_v49 = vmul.f32 %v7047_v37, %v9487_v46 }
 0x904   : > { %3890 = vmatmul.mubr.bf16.gmra.mrb[152].mxu0 %v3771_v36  ;;  %v3750_v41 = vmul.f32 %v7049_v35, %v11061_v30  ;;  %7054 = vrcp.f32 %v3703_v21  ;;  %v3749_v23 = vmul.f32 %v7049_v35, %v11062_v58 }
 0x905   : > { %6235 = vmatprep.mubr.msk.bf16.mxu0 %vm1648_vm13, %v3774_v16  ;;  %7056 = vrcp.f32 %v3699_v45 }
 0x906   : > { %v3776_v57 = vpack.c.bf16 %v3752_v39, %v3750_v41  ;;  %v7051_v43 = vpop.eup %7050  ;;  %v3775_v13 = vpack.c.bf16 %v3751_v49, %v3749_v23 }
 0x907   : > { %v7053_v27 = vpop.eup %7052  ;;  %v3756_v53 = vmul.f32 %v7051_v43, %v9501_v6  ;;  %v3755_v38 = vmul.f32 %v7051_v43, %v9498_v44  ;;  %v3711_v44 = vpop.xlane.xlu1 %3710 }
 0x908   : > { %v3754_v32 = vmul.f32 %v7053_v27, %v9478_v42  ;;  %v3753_v15 = vmul.f32 %v7053_v27, %v9484_v11  ;;  %v3954_v42 = vld [vmem:[%s10725_s5 + $0x8] sm:$0xf]  ;;  %7058 = vrcp.f32 %v3711_v44 }
 0x909   : > { %v3983_v25 = vsel %vm2184_vm14, %v3954_v42, 0 }
 0x90a   : > { %v3778_v50 = vpack.c.bf16 %v3756_v53, %v3754_v32  ;;  %v3777_v6 = vpack.c.bf16 %v3755_v38, %v3753_v15  ;;  %6500 = vmatpush3.bf16.msra.mxu1 %v3983_v25 }
 0x90b   : > { %4680 = vmatprep.subr.bf16.mxu1 %v10979_v24 }
 0x90c   : > { %3898 = vmatmul.mubr.bf16.gmra.mrb[156].mxu0 %v3773_v14 }
 0x90d   : > { %6236 = vmatprep.mubr.msk.bf16.mxu0 %vm1648_vm13, %v3776_v57 }
 0x90e   : > { %v7055_v22 = vpop.eup %7054 }
 0x90f   : > { %v7057_v4 = vpop.eup %7056  ;;  %v3760_v33 = vmul.f32 %v7055_v22, %v9510_v12  ;;  %v3759_v47 = vmul.f32 %v7055_v22, %v9513_v28 }
 0x910   : > { %v3758_v46 = vmul.f32 %v7057_v4, %v9495_v31  ;;  %v3757_v12 = vmul.f32 %v7057_v4, %v9505_v18 }
 0x912   : > { %v3780_v20 = vpack.c.bf16 %v3760_v33, %v3758_v46  ;;  %v3779_v11 = vpack.c.bf16 %v3759_v47, %v3757_v12  ;;  %v7059_v18 = vpop.eup %7058 }
 0x913   : > { %v3764_v5 = vmul.f32 %v7059_v18, %v9517_v40  ;;  %v3763_v7 = vmul.f32 %v7059_v18, %v9520_v9 }
 0x914   : > { %3906 = vmatmul.mubr.bf16.gmra.mrb[160].mxu0 %v3775_v13 }
 0x915   : > { %6237 = vmatprep.mubr.msk.bf16.mxu0 %vm1648_vm13, %v3778_v50 }
 0x91c   : > { %3914 = vmatmul.mubr.bf16.gmra.mrb[164].mxu0 %v3777_v6 }
 0x91d   : > { %6238 = vmatprep.mubr.msk.bf16.mxu0 %vm1648_vm13, %v3780_v20 }
 0x923   : > { %v3715_v31 = vpop.xlane.xlu1 %3714 }
 0x924   : > { %3922 = vmatmul.mubr.bf16.gmra.mrb[168].mxu0 %v3779_v11  ;;  %7060 = vrcp.f32 %v3715_v31 }
 0x927   : > { %v4135_v19 = vpop.permute.xlu1 %4134 }
 0x928   : > { %v4185_v1 = vsel %vm1648_vm13, %v4135_v19, 0 }
 0x929   : > { %4207 = vmatpush1.bf16.xpose.msra.mxu0 %v4185_v1 }
 0x92a   : > { %4208 = vmatprep.subr.bf16.mxu0 %v10979_v24 }
 0x92c   : > { %v3707_v28 = vpop.xlane.xlu0 %3706 }
 0x92d   : > { %7062 = vrcp.f32 %v3707_v28 }
 0x92e   : > { %v7061_v62 = vpop.eup %7060 }
 0x92f   : > { %v3766_v48 = vmul.f32 %v7061_v62, %v9535_v52 }
 0x930   : > { %v4137_v60 = vpop.permute.xlu0 %4136 }
 0x931   : > { %v4188_v3 = vsel %vm1648_vm13, %v4137_v60, 0  ;;  %v3784_v36 = vpack.c.bf16 %v3766_v48, %v3766_v48 }
 0x932   : > { %4209 = vmatpush1.bf16.xpose.msra.mxu0 %v4188_v3 }
 0x933   : > { %4210 = vmatprep.subr.bf16.mxu0 %v10979_v24 }
 0x934   : > { %v4139_v56 = vpop.permute.xlu0 %4138 }
 0x935   : > { %v4191_v34 = vsel %vm1648_vm13, %v4139_v56, 0 }
 0x937   : > { %v7063_v63 = vpop.eup %7062 }
 0x938   : > { %v3762_v26 = vmul.f32 %v7063_v63, %v9540_v55  ;;  %v3761_v10 = vmul.f32 %v7063_v63, %v9542_v54  ;;  %v4141_v40 = vpop.permute.xlu0 %4140  ;;  %v3765_v55 = vmul.f32 %v7061_v62, %v9533_v59  ;;  %v11063_v54 = vmov 0.0   ;;  %v4111_v59 = vpop.permute.xlu1 %4110 }
 0x939   : > { %v4194_v9 = vsel %vm1648_vm13, %v4141_v40, 0 }
 0x93a   : > { %4211 = vmatpush1.bf16.xpose.msra.mxu0 %v4191_v34  ;;  %v3782_v45 = vpack.c.bf16 %v3764_v5, %v3762_v26  ;;  %v3781_v29 = vpack.c.bf16 %v3763_v7, %v3761_v10  ;;  %v3783_v52 = vpack.c.bf16 %v3765_v55, %v3765_v55 }
 0x93b   : > { %4212 = vmatprep.subr.bf16.mxu0 %v10979_v24 }
 0x93c   : > { %6239 = vmatprep.mubr.msk.bf16.mxu0 %vm1648_vm13, %v3782_v45  ;;  %v4107_v16 = vpop.permute.xlu0 %4106  ;;  %v4115_v0 = vpop.permute.xlu1 %4114 }
 0x93d   : > { %3930 = vmatmul.mubr.bf16.gmra.mrb[172].mxu0 %v3781_v29 }
 0x93e   : > { %6240 = vmatprep.mubr.msk.bf16.mxu0 %vm1648_vm13, %v3784_v36 }
 0x940   : > { %v4109_v37 = vpop.permute.xlu0 %4108  ;;  %v4119_v39 = vpop.permute.xlu1 %4118 }
 0x942   : > { %4213 = vmatpush1.bf16.xpose.msra.mxu0 %v4194_v9 }
 0x943   : > { %6537 = vmatprep.subr.bf16.mxu0 %v11063_v54 }
 0x944   : > { %v4113_v35 = vpop.permute.xlu0 %4112  ;;  %v4123_v30 = vpop.permute.xlu1 %4122 }
 0x945   : > { %3938 = vmatmul.mubr.bf16.gmra.mrb[176].mxu0 %v3783_v52 }
 0x946   : > { %4228 = vmatprep.mubr.bf16.mxu0 %v10979_v24 }
 0x948   : > { %v4117_v21 = vpop.permute.xlu0 %4116  ;;  %v4627_v53 = vpop.permute.xlu1 %4626 }
 0x94c   : > { %v4121_v61 = vpop.permute.xlu0 %4120  ;;  %v4631_v23 = vpop.permute.xlu1 %4630 }
 0x94d   : > { %6250 = vmatmul.mubr.msk.bf16.vlgmr.msra.gmra.mrb[180].mxu0 %vm1648_vm13, %v4107_v16 }
 0x94e   : > { %4238 = vmatprep.mubr.bf16.mxu0 %v10979_v24 }
 0x950   : > { %v4625_v49 = vpop.permute.xlu0 %4624 }
 0x954   : > { %v4629_v58 = vpop.permute.xlu0 %4628 }
 0x955   : > { %6251 = vmatmul.mubr.msk.bf16.gmra.mrb[184].mxu0 %vm1648_vm13, %v4109_v37 }
 0x956   : > { %4248 = vmatprep.mubr.bf16.mxu0 %v10979_v24 }
 0x958   : > { %v4633_v32 = vpop.permute.xlu0 %4632 }
 0x95d   : > { %6252 = vmatmul.mubr.msk.bf16.gmra.mrb[188].mxu0 %vm1648_vm13, %v4111_v59 }
 0x95e   : > { %4258 = vmatprep.mubr.bf16.mxu0 %v10979_v24 }
 0x965   : > { %6253 = vmatmul.mubr.msk.bf16.gmra.mrb[192].mxu0 %vm1648_vm13, %v4113_v35 }
 0x966   : > { %4268 = vmatprep.mubr.bf16.mxu0 %v10979_v24 }
 0x96d   : > { %6254 = vmatmul.mubr.msk.bf16.gmra.mrb[196].mxu0 %vm1648_vm13, %v4115_v0 }
 0x96e   : > { %4278 = vmatprep.mubr.bf16.mxu0 %v10979_v24 }
 0x975   : > { %6255 = vmatmul.mubr.msk.bf16.gmra.mrb[200].mxu0 %vm1648_vm13, %v4117_v21  ;;  %v11064_v21 = vld [vmem:[#allocation28_spill] sm:$0xff] }
 0x976   : > { %4288 = vmatprep.mubr.bf16.mxu0 %v10979_v24 }
 0x97d   : > { %6256 = vmatmul.mubr.msk.bf16.gmra.mrb[204].mxu0 %vm1648_vm13, %v4119_v39 }
 0x97e   : > { %4298 = vmatprep.mubr.bf16.mxu0 %v10979_v24 }
 0x985   : > { %6257 = vmatmul.mubr.msk.bf16.gmra.mrb[208].mxu0 %vm1648_vm13, %v4121_v61 }
 0x986   : > { %4308 = vmatprep.mubr.bf16.mxu0 %v10979_v24 }
 0x98d   : > { %6258 = vmatmul.mubr.msk.bf16.gmra.mrb[212].mxu0 %vm1648_vm13, %v4123_v30 }
 0x98e   : > { %6539 = vmatprep.mubr.msk.bf16.mxu0 %vm7329_vm1, %v11063_v54 }
 0x99c   : > { %v3875_v41 = vpop.f32.mrb[144].mxu0 }
 0x99d   : > { %v3877_v14 = vpop.f32.mrb[145].mxu0 }
 0x99e   : > { %v3878_v57 = vpop.f32.mrb[146].mxu0 }
 0x99f   : > { %v3945_v43 = vpack.c.bf16 %v3878_v57, %v3875_v41  ;;  %v3880_v27 = vpop.f32.mrb[147].mxu0 }
 0x9a1   : > { %6502 = vmatmul.mubr.msk.bf16.vlgmr.msra.gmra.mrb[144].mxu1 %vm1648_vm13, %v3945_v43 }
 0x9a2   : > { %4681 = vmatpush1.bf16.msra.mxu1 %v4625_v49  ;;  %6505 = vmatprep.mubr.msk.bf16.mxu1 %vm7329_vm1, %v11063_v54 }
 0x9a3   : > { %4682 = vmatprep.subr.bf16.mxu1 %v10979_v24 }
 0x9a6   : > { %4683 = vmatpush1.bf16.msra.mxu1 %v4627_v53 }
 0x9a7   : > { %4684 = vmatprep.subr.bf16.mxu1 %v10979_v24 }
 0x9aa   : > { %4685 = vmatpush1.bf16.msra.mxu1 %v4629_v58 }
 0x9ab   : > { %4686 = vmatprep.subr.bf16.mxu1 %v10979_v24 }
 0x9ae   : > { %4687 = vmatpush1.bf16.msra.mxu1 %v4631_v23 }
 0x9af   : > { %4688 = vmatprep.subr.bf16.mxu1 %v10979_v24 }
 0x9b2   : > { %4689 = vmatpush1.bf16.msra.mxu1 %v4633_v32  ;;  %v11065_v32 = vld [vmem:[#allocation29_spill] sm:$0xff] }
 0x9b3   : > { %4690 = vmatprep.subr.bf16.mxu1 %v10979_v24 }
 0x9cf   : > { %v3883_v13 = vpop.f32.mrb[148].mxu0 }
 0x9d0   : > { %v3885_v50 = vpop.f32.mrb[149].mxu0 }
 0x9d1   : > { %v3886_v22 = vpop.f32.mrb[150].mxu0 }
 0x9d2   : > { %v3946_v4 = vpack.c.bf16 %v3886_v22, %v3883_v13  ;;  %v3888_v38 = vpop.f32.mrb[151].mxu0 }
 0x9d4   : > { %6506 = vmatmul.mubr.msk.bf16.gmra.mrb[148].mxu1 %vm1648_vm13, %v3946_v4 }
 0x9d5   : > { %6509 = vmatprep.mubr.msk.bf16.mxu1 %vm7329_vm1, %v11063_v54 }
 0x9d7   : > { %v3891_v33 = vpop.f32.mrb[152].mxu0 }
 0x9d8   : > { %v3893_v15 = vpop.f32.mrb[153].mxu0 }
 0x9d9   : > { %v3894_v46 = vpop.f32.mrb[154].mxu0  ;;  %v11066_v15 = vld [vmem:[#allocation30_spill] sm:$0xff] }
 0x9da   : > { %v3947_v6 = vpack.c.bf16 %v3894_v46, %v3891_v33  ;;  %v3896_v20 = vpop.f32.mrb[155].mxu0 }
 0x9dc   : > { %6510 = vmatmul.mubr.msk.bf16.gmra.mrb[152].mxu1 %vm1648_vm13, %v3947_v6 }
 0x9dd   : > { %6513 = vmatprep.mubr.msk.bf16.mxu1 %vm7329_vm1, %v11063_v54 }
 0x9df   : > { %v3899_v42 = vpop.f32.mrb[156].mxu0 }
 0x9e0   : > { %v3901_v47 = vpop.f32.mrb[157].mxu0 }
 0x9e1   : > { %v3902_v25 = vpop.f32.mrb[158].mxu0  ;;  %v11067_v47 = vld [vmem:[#allocation31_spill] sm:$0xff] }
 0x9e2   : > { %v3948_v44 = vpack.c.bf16 %v3902_v25, %v3899_v42  ;;  %v3904_v12 = vpop.f32.mrb[159].mxu0 }
 0x9e3   : > { %v11068_v12 = vld [vmem:[#allocation32_spill] sm:$0xff] }
 0x9e4   : > { %6514 = vmatmul.mubr.msk.bf16.gmra.mrb[156].mxu1 %vm1648_vm13, %v3948_v44 }
 0x9e5   : > { %6517 = vmatprep.mubr.msk.bf16.mxu1 %vm7329_vm1, %v11063_v54 }
 0x9e7   : > { %v3907_v11 = vpop.f32.mrb[160].mxu0 }
 0x9e8   : > { %v3909_v31 = vpop.f32.mrb[161].mxu0 }
 0x9e9   : > { %v3910_v19 = vpop.f32.mrb[162].mxu0 }
 0x9ea   : > { %v3949_v1 = vpack.c.bf16 %v3910_v19, %v3907_v11  ;;  %v3912_v28 = vpop.f32.mrb[163].mxu0 }
 0x9ec   : > { %6518 = vmatmul.mubr.msk.bf16.gmra.mrb[160].mxu1 %vm1648_vm13, %v3949_v1 }
 0x9ed   : > { %6521 = vmatprep.mubr.msk.bf16.mxu1 %vm7329_vm1, %v11063_v54 }
 0x9ef   : > { %v3915_v60 = vpop.f32.mrb[164].mxu0 }
 0x9f0   : > { %v3917_v3 = vpop.f32.mrb[165].mxu0 }
 0x9f1   : > { %v3918_v18 = vpop.f32.mrb[166].mxu0 }
 0x9f2   : > { %v3950_v62 = vpack.c.bf16 %v3918_v18, %v3915_v60  ;;  %v3920_v56 = vpop.f32.mrb[167].mxu0  ;;  %v11069_v60 = vld [vmem:[#allocation33_spill] sm:$0xff] }
 0x9f4   : > { %6522 = vmatmul.mubr.msk.bf16.gmra.mrb[164].mxu1 %vm1648_vm13, %v3950_v62 }
 0x9f5   : > { %6525 = vmatprep.mubr.msk.bf16.mxu1 %vm7329_vm1, %v11063_v54 }
 0x9f7   : > { %v3923_v63 = vpop.f32.mrb[168].mxu0 }
 0x9f8   : > { %v3925_v5 = vpop.f32.mrb[169].mxu0 }
 0x9f9   : > { %v3926_v26 = vpop.f32.mrb[170].mxu0  ;;  %v11070_v5 = vld [vmem:[#allocation34_spill] sm:$0xff] }
 0x9fa   : > { %v3951_v10 = vpack.c.bf16 %v3926_v26, %v3923_v63  ;;  %v3928_v7 = vpop.f32.mrb[171].mxu0 }
 0x9fb   : > { %v11071_v7 = vld [vmem:[#allocation35_spill] sm:$0xff] }
 0x9fc   : > { %6526 = vmatmul.mubr.msk.bf16.gmra.mrb[168].mxu1 %vm1648_vm13, %v3951_v10 }
 0x9fd   : > { %6529 = vmatprep.mubr.msk.bf16.mxu1 %vm7329_vm1, %v11063_v54 }
 0xa10   : > { %v3931_v48 = vpop.f32.mrb[172].mxu0 }
 0xa11   : > { %v3933_v34 = vpop.f32.mrb[173].mxu0 }
 0xa12   : > { %v3934_v45 = vpop.f32.mrb[174].mxu0 }
 0xa13   : > { %v3952_v29 = vpack.c.bf16 %v3934_v45, %v3931_v48  ;;  %v3936_v36 = vpop.f32.mrb[175].mxu0 }
 0xa15   : > { %6530 = vmatmul.mubr.msk.bf16.gmra.mrb[172].mxu1 %vm1648_vm13, %v3952_v29 }
 0xa16   : > { %6533 = vmatprep.mubr.msk.bf16.mxu1 %vm7329_vm1, %v11063_v54 }
 0xa18   : > { %v3939_v40 = vpop.f32.mrb[176].mxu0 }
 0xa19   : > { %v3941_v55 = vpop.f32.mrb[177].mxu0  ;;  %v3953_v52 = vpack.c.bf16 %v3939_v40, %v3939_v40  ;;  %v11072_v40 = vld [vmem:[#allocation36_spill] sm:$0xff] }
 0xa1a   : > { %v3942_v9 = vpop.f32.mrb[178].mxu0 }
 0xa1b   : > { %v3943_v16 = vpop.f32.mrb[179].mxu0 }
 0xa1d   : > { %6534 = vmatmul.mubr.msk.bf16.gmra.mrb[176].mxu1 %vm1648_vm13, %v3953_v52 }
 0xa20   : > { %v4230_v37 = vpop.f32.mrb[180].mxu0 }
 0xa21   : > { %v4232_v59 = vpop.f32.mrb[181].mxu0  ;;  %v9705_v39 = vadd.f32 %v4230_v37, %v11064_v21 }
 0xa22   : > { %v9702_v35 = vadd.f32 -1e+30, %v4232_v59  ;;  %v4234_v0 = vpop.f32.mrb[182].mxu0  ;;  %v11073_v59 = vld [vmem:[#allocation37_spill] sm:$0xff] }
 0xa23   : > { %v4236_v61 = vpop.f32.mrb[183].mxu0  ;;  %v9713_v57 = vadd.f32 %v4234_v0, %v11064_v21 }
 0xa24   : > { %v4317_v30 = vsel %vm1648_vm13, %v9702_v35, -inf  ;;  %v9709_v41 = vadd.f32 -1e+30, %v4236_v61  ;;  %v11074_v61 = vld [vmem:[#allocation38_spill] sm:$0xff] }
 0xa25   : > { %v4318_v14 = vmax.f32 %v9705_v39, %v4317_v30 }
 0xa26   : > { %v4321_v43 = vsel %vm1648_vm13, %v9709_v41, -inf }
 0xa27   : > { %v4322_v27 = vmax.f32 %v9713_v57, %v4321_v43  ;;  %4319 = vmax.xlane.f32.xlu0 %v4318_v14 }
 0xa28   : > { %v4240_v49 = vpop.f32.mrb[184].mxu0 }
 0xa29   : > { %4323 = vmax.xlane.f32.xlu1 %v4322_v27  ;;  %v4242_v53 = vpop.f32.mrb[185].mxu0  ;;  %v9721_v13 = vadd.f32 %v4240_v49, %v11065_v32 }
 0xa2a   : > { %v9718_v58 = vadd.f32 -1e+30, %v4242_v53  ;;  %v4244_v23 = vpop.f32.mrb[186].mxu0  ;;  %v11075_v53 = vld [vmem:[#allocation39_spill] sm:$0xff] }
 0xa2b   : > { %v4246_v50 = vpop.f32.mrb[187].mxu0  ;;  %v9731_v46 = vadd.f32 %v4244_v23, %v11066_v15 }
 0xa2c   : > { %v4325_v22 = vsel %vm1648_vm13, %v9718_v58, -inf  ;;  %v9725_v4 = vadd.f32 -1e+30, %v4246_v50 }
 0xa2d   : > { %v4326_v38 = vmax.f32 %v9721_v13, %v4325_v22 }
 0xa2e   : > { %v4329_v33 = vsel %vm1648_vm13, %v9725_v4, -inf }
 0xa2f   : > { %4327 = vmax.xlane.f32.xlu0 %v4326_v38  ;;  %v4330_v20 = vmax.f32 %v9731_v46, %v4329_v33 }
 0xa30   : > { %v4250_v6 = vpop.f32.mrb[188].mxu0 }
 0xa31   : > { %v4252_v42 = vpop.f32.mrb[189].mxu0  ;;  %v9738_v11 = vadd.f32 %v4250_v6, %v11068_v12 }
 0xa32   : > { %v9735_v25 = vadd.f32 %v4252_v42, %v11067_v47  ;;  %v4254_v44 = vpop.f32.mrb[190].mxu0 }
 0xa33   : > { %v4256_v31 = vpop.f32.mrb[191].mxu0  ;;  %4331 = vmax.xlane.f32.xlu0 %v4330_v20  ;;  %v9746_v3 = vadd.f32 %v4254_v44, %v11069_v60  ;;  %v11076_v20 = vld [vmem:[#allocation42_spill] sm:$0xff] }
 0xa34   : > { %v4333_v19 = vsel %vm1648_vm13, %v9735_v25, -inf  ;;  %v9742_v1 = vadd.f32 -1e+30, %v4256_v31 }
 0xa35   : > { %v4334_v28 = vmax.f32 %v9738_v11, %v4333_v19 }
 0xa36   : > { %v4337_v18 = vsel %vm1648_vm13, %v9742_v1, -inf }
 0xa37   : > { %v4338_v62 = vmax.f32 %v9746_v3, %v4337_v18  ;;  %4335 = vmax.xlane.f32.xlu1 %v4334_v28  ;;  %v11077_v18 = vld [vmem:[#allocation46_spill] sm:$0xff] }
 0xa38   : > { %v4260_v56 = vpop.f32.mrb[192].mxu0 }
 0xa39   : > { %4339 = vmax.xlane.f32.xlu0 %v4338_v62  ;;  %v4262_v63 = vpop.f32.mrb[193].mxu0  ;;  %v9755_v48 = vadd.f32 %v4260_v56, %v11071_v7 }
 0xa3a   : > { %v9752_v26 = vadd.f32 %v4262_v63, %v11070_v5  ;;  %v4264_v10 = vpop.f32.mrb[194].mxu0 }
 0xa3b   : > { %v4266_v34 = vpop.f32.mrb[195].mxu0  ;;  %v9763_v55 = vadd.f32 %v4264_v10, %v11072_v40 }
 0xa3c   : > { %v4341_v45 = vsel %vm1648_vm13, %v9752_v26, -inf  ;;  %v9759_v29 = vadd.f32 -1e+30, %v4266_v34  ;;  %v11078_v34 = vld [vmem:[#allocation53_spill] sm:$0xff] }
 0xa3d   : > { %v4342_v36 = vmax.f32 %v9755_v48, %v4341_v45 }
 0xa3e   : > { %v4345_v9 = vsel %vm1648_vm13, %v9759_v29, -inf }
 0xa3f   : > { %v4346_v52 = vmax.f32 %v9763_v55, %v4345_v9  ;;  %4343 = vmax.xlane.f32.xlu1 %v4342_v36 }
 0xa40   : > { %v4270_v16 = vpop.f32.mrb[196].mxu0 }
 0xa41   : > { %v4272_v37 = vpop.f32.mrb[197].mxu0  ;;  %4347 = vmax.xlane.f32.xlu0 %v4346_v52  ;;  %v9772_v30 = vadd.f32 %v4270_v16, %v11074_v61 }
 0xa42   : > { %v9769_v0 = vadd.f32 %v4272_v37, %v11073_v59  ;;  %v4274_v21 = vpop.f32.mrb[198].mxu0  ;;  %v11079_v59 = vld [vmem:[#allocation40_spill] sm:$0xff] }
 0xa43   : > { %v4276_v14 = vpop.f32.mrb[199].mxu0  ;;  %v9780_v23 = vadd.f32 %v4274_v21, %v11075_v53 }
 0xa44   : > { %v4349_v43 = vsel %vm1648_vm13, %v9769_v0, -inf  ;;  %v9776_v27 = vadd.f32 -1e+30, %v4276_v14  ;;  %v11080_v14 = vld [vmem:[#allocation24_spill] sm:$0xff] }
 0xa45   : > { %v4350_v49 = vmax.f32 %v9772_v30, %v4349_v43 }
 0xa46   : > { %v4353_v32 = vsel %vm1648_vm13, %v9776_v27, -inf }
 0xa47   : > { %v4354_v50 = vmax.f32 %v9780_v23, %v4353_v32  ;;  %4351 = vmax.xlane.f32.xlu1 %v4350_v49  ;;  %v11081_v32 = vld [vmem:[#allocation61_spill] sm:$0xff] }
 0xa48   : > { %v4280_v22 = vpop.f32.mrb[200].mxu0 }
 0xa49   : > { %4355 = vmax.xlane.f32.xlu0 %v4354_v50  ;;  %v4282_v38 = vpop.f32.mrb[201].mxu0 }
 0xa4a   : > { %v4284_v33 = vpop.f32.mrb[202].mxu0  ;;  %v9814_v21 = vadd.f32 %v4282_v38, %v11079_v59  ;;  %v11083_v38 = vld [vmem:[#allocation41_spill] sm:$0xff]  ;;  %v11087_v59 = vld [vmem:[#allocation26_spill] sm:$0xff] }
 0xa4b   : > { %v4286_v15 = vpop.f32.mrb[203].mxu0  ;;  %v9788_v42 = vadd.f32 %v4284_v33, %v11076_v20  ;;  %v11082_v20 = vld [vmem:[#allocation43_spill] sm:$0xff] }
 0xa4c   : > { %v9785_v6 = vadd.f32 -1e+30, %v4286_v15  ;;  %v4357_v15 = vsel %vm1648_vm13, %v9814_v21, -inf }
 0xa4e   : > { %v4361_v47 = vsel %vm1648_vm13, %v9785_v6, -inf }
 0xa4f   : > { %v4362_v44 = vmax.f32 %v9788_v42, %v4361_v47 }
 0xa50   : > { %v4290_v12 = vpop.f32.mrb[204].mxu0 }
 0xa51   : > { %v4292_v31 = vpop.f32.mrb[205].mxu0  ;;  %4363 = vmax.xlane.f32.xlu0 %v4362_v44  ;;  %v9830_v44 = vadd.f32 %v4280_v22, %v11083_v38  ;;  %v11090_v38 = vld [vmem:[#allocation64_spill] sm:$0xff] }
 0xa52   : > { %v4294_v19 = vpop.f32.mrb[206].mxu0  ;;  %v9827_v47 = vadd.f32 %v4292_v31, %v11082_v20 }
 0xa53   : > { %v4296_v28 = vpop.f32.mrb[207].mxu0  ;;  %v9796_v62 = vadd.f32 %v4294_v19, %v11077_v18  ;;  %v4358_v19 = vmax.f32 %v9830_v44, %v4357_v15 }
 0xa54   : > { %v9793_v60 = vadd.f32 -1e+30, %v4296_v28  ;;  %v4365_v28 = vsel %vm1648_vm13, %v9827_v47, -inf }
 0xa56   : > { %v4369_v56 = vsel %vm1648_vm13, %v9793_v60, -inf }
 0xa57   : > { %v4370_v63 = vmax.f32 %v9796_v62, %v4369_v56  ;;  %v11085_v56 = vld [vmem:[#allocation44_spill] sm:$0xff] }
 0xa58   : > { %4634 = vrot.lane.b32.xlu1 %v10998_v17, %s7341_s29  ;;  %v4300_v5 = vpop.f32.mrb[208].mxu0 }
 0xa59   : > { %4371 = vmax.xlane.f32.xlu0 %v4370_v63  ;;  %v4302_v10 = vpop.f32.mrb[209].mxu0  ;;  %v9839_v63 = vadd.f32 %v4290_v12, %v11085_v56 }
 0xa5a   : > { %v4304_v7 = vpop.f32.mrb[210].mxu0 }
 0xa5b   : > { %v9804_v45 = vadd.f32 %v4304_v7, %v11078_v34  ;;  %v9806_v36 = vpop.f32.mrb[211].mxu0  ;;  %v4366_v7 = vmax.f32 %v9839_v63, %v4365_v28 }
 0xa5c   : > { %v4377_v40 = vsel %vm1648_vm13, %v9806_v36, -inf }
 0xa5d   : > { %v4378_v9 = vmax.f32 %v9804_v45, %v4377_v40  ;;  %v11086_v40 = vld [vmem:[#allocation50_spill] sm:$0xff] }
 0xa5e   : > { %v9845_v22 = vadd.f32 %v4300_v5, %v11086_v40 }
 0xa5f   : > { %4379 = vmax.xlane.f32.xlu0 %v4378_v9 }
 0xa60   : > { %v4310_v52 = vpop.f32.mrb[212].mxu0 }
 0xa61   : > { %v9811_v16 = vpop.f32.mrb[213].mxu0 }
 0xa62   : > { %v4314_v37 = vpop.f32.mrb[214].mxu0 }
 0xa63   : > { %v4315_v17 = vpop.f32.mrb[215].mxu0  ;;  %v9849_v37 = vadd.f32 %v4310_v52, %v11078_v34  ;;  %v11089_v34 = vld [vmem:[#allocation63_spill] sm:$0xff] }
 0xa74   : > { %v4019_v61 = vpop.f32.mrb[144].mxu1 }
 0xa75   : > { %v9817_v43 = vadd.f32 %v4019_v61, %v11080_v14  ;;  %v6503_v49 = vpop.f32.mrb[145].mxu1  ;;  %4636 = vrot.lane.b32.xlu0 %v10985_v51, %s7341_s29  ;;  %v11084_v51 = vld [vmem:[#allocation49_spill] sm:$0xff] }
 0xa76   : > { %v4022_v53 = vpop.f32.mrb[146].mxu1  ;;  %v9836_v18 = vadd.f32 %v4302_v10, %v11084_v51  ;;  %v4381_v10 = vsel %vm1648_vm13, %v9811_v16, -inf  ;;  %v11088_v49 = vld [vmem:[#allocation62_spill] sm:$0xff] }
 0xa77   : > { %v9822_v50 = vadd.f32 %v4022_v53, %v11081_v32  ;;  %v6504_v33 = vpop.f32.mrb[147].mxu1  ;;  %v4382_v12 = vmax.f32 %v9849_v37, %v4381_v10 }
 0xa78   : > { %v4373_v31 = vsel %vm1648_vm13, %v9836_v18, -inf }
 0xa79   : > { %v4374_v9 = vmax.f32 %v9845_v22, %v4373_v31 }
 0xa7c   : > { %4359 = vmax.xlane.f32.xlu1 %v4358_v19 }
 0xa80   : > { %4367 = vmax.xlane.f32.xlu1 %v4366_v7 }
 0xa84   : > { %4375 = vmax.xlane.f32.xlu1 %v4374_v9 }
 0xa88   : > { %4383 = vmax.xlane.f32.xlu1 %v4382_v12 }
 0xaa7   : > { %v4027_v17 = vpop.f32.mrb[148].mxu1 }
 0xaa8   : > { %v9855_v61 = vadd.f32 %v4027_v17, %v11087_v59  ;;  %v6507_v14 = vpop.f32.mrb[149].mxu1 }
 0xaa9   : > { %v4030_v5 = vpop.f32.mrb[150].mxu1  ;;  %v11091_v14 = vld [vmem:[#allocation66_spill] sm:$0xff] }
 0xaaa   : > { %v9858_v53 = vadd.f32 %v4030_v5, %v11088_v49  ;;  %v6508_v32 = vpop.f32.mrb[151].mxu1 }
 0xaaf   : > { %v4035_v33 = vpop.f32.mrb[152].mxu1 }
 0xab0   : > { %v9861_v52 = vadd.f32 %v4035_v33, %v11089_v34  ;;  %v6511_v15 = vpop.f32.mrb[153].mxu1  ;;  %v11092_v34 = vld [vmem:[#allocation67_spill] sm:$0xff] }
 0xab1   : > { %v4038_v20 = vpop.f32.mrb[154].mxu1 }
 0xab2   : > { %v9864_v19 = vadd.f32 %v4038_v20, %v11090_v38  ;;  %v6512_v28 = vpop.f32.mrb[155].mxu1 }
 0xab4   : > { %v4320_v51 = vpop.xlane.xlu0 %4319 }
 0xab5   : > { %v4385_v56 = vsub.f32 %v9705_v39, %v4320_v51  ;;  %v4386_v7 = vsub.f32 %v9702_v35, %v4320_v51  ;;  %v11094_v51 = vld [vmem:[#allocation65_spill] sm:$0xff] }
 0xab6   : > { %v4324_v31 = vpop.xlane.xlu1 %4323 }
 0xab7   : > { %v4043_v40 = vpop.f32.mrb[156].mxu1  ;;  %v4419_v9 = vmul.f32 1.442695, %v4385_v56  ;;  %v4421_v10 = vmul.f32 1.442695, %v4386_v7  ;;  %v4387_v12 = vsub.f32 %v9713_v57, %v4324_v31  ;;  %v4388_v17 = vsub.f32 %v9709_v41, %v4324_v31 }
 0xab8   : > { %v6515_v59 = vpop.f32.mrb[157].mxu1  ;;  %v9871_v5 = vadd.f32 %v4043_v40, %v11091_v14 }
 0xab9   : > { %v4046_v49 = vpop.f32.mrb[158].mxu1  ;;  %7064 = vpow2.f32 %v4419_v9  ;;  %v4423_v32 = vmul.f32 1.442695, %v4387_v12  ;;  %v4425_v33 = vmul.f32 1.442695, %v4388_v17  ;;  %v11096_v12 = vld [vmem:[#allocation68_spill] sm:$0xff] }
 0xaba   : > { %v9874_v39 = vadd.f32 %v4046_v49, %v11092_v34  ;;  %v6516_v35 = vpop.f32.mrb[159].mxu1  ;;  %7066 = vpow2.f32 %v4421_v10 }
 0xabb   : > { %7068 = vpow2.f32 %v4425_v33 }
 0xabc   : > { %11093 = vst [vmem:[#allocation13_spill] sm:$0xff] %v9874_v39  ;;  %v4328_v15 = vpop.xlane.xlu0 %4327  ;;  %7070 = vpow2.f32 %v4423_v32 }
 0xabd   : > { %v4389_v57 = vsub.f32 %v9721_v13, %v4328_v15  ;;  %v4390_v41 = vsub.f32 %v9718_v58, %v4328_v15 }
 0xabf   : > { %v4051_v20 = vpop.f32.mrb[160].mxu1  ;;  %v4427_v38 = vmul.f32 1.442695, %v4389_v57  ;;  %v4429_v28 = vmul.f32 1.442695, %v4390_v41 }
 0xac0   : > { %v9879_v56 = vadd.f32 %v4051_v20, %v11094_v51  ;;  %v6519_v7 = vpop.f32.mrb[161].mxu1  ;;  %v4332_v31 = vpop.xlane.xlu0 %4331 }
 0xac1   : > { %v4054_v40 = vpop.f32.mrb[162].mxu1  ;;  %7072 = vpow2.f32 %v4427_v38  ;;  %v4391_v9 = vsub.f32 %v9731_v46, %v4332_v31  ;;  %v4392_v10 = vsub.f32 %v9725_v4, %v4332_v31 }
 0xac2   : > { %11095 = vst [vmem:[#allocation17_spill] sm:$0xff] %v9879_v56  ;;  %v9884_v17 = vadd.f32 %v4054_v40, %v11096_v12  ;;  %v6520_v13 = vpop.f32.mrb[163].mxu1  ;;  %7074 = vpow2.f32 %v4429_v28  ;;  %v11100_v12 = vld [vmem:[#allocation69_spill] sm:$0xff] }
 0xac3   : > { %v9886_v58 = vpop.eup %7064  ;;  %v4431_v59 = vmul.f32 1.442695, %v4391_v9  ;;  %v4433_v14 = vmul.f32 1.442695, %v4392_v10 }
 0xac4   : > { %11097 = vst [vmem:[#allocation16_spill] sm:$0xff] %v9884_v17  ;;  %v9888_v49 = vpop.eup %7066  ;;  %v4336_v32 = vpop.xlane.xlu1 %4335  ;;  %v11108_v17 = vld [vmem:[#allocation52_spill] sm:$0xff] }
 0xac5   : > { %7076 = vpow2.f32 %v4431_v59  ;;  %v4393_v33 = vsub.f32 %v9738_v11, %v4336_v32  ;;  %v4394_v34 = vsub.f32 %v9735_v25, %v4336_v32  ;;  %v4487_v4 = vsel %vm1648_vm13, %v9888_v49, 0.0  ;;  %v9894_v46 = vpop.eup %7068  ;;  %v11098_v25 = vld [vmem:[#allocation70_spill] sm:$0xff] }
 0xac6   : > { %7078 = vpow2.f32 %v4433_v14  ;;  %v4340_v35 = vpop.xlane.xlu0 %4339  ;;  %v4488_v57 = vadd.f32 %v9886_v58, %v4487_v4  ;;  %v9897_v41 = vpop.eup %7070  ;;  %v4491_v40 = vsel %vm1648_vm13, %v9894_v46, 0.0 }
 0xac7   : > { %v4059_v15 = vpop.f32.mrb[164].mxu1  ;;  %v4435_v20 = vmul.f32 1.442695, %v4393_v33  ;;  %v4437_v38 = vmul.f32 1.442695, %v4394_v34  ;;  %v4395_v28 = vsub.f32 %v9746_v3, %v4340_v35  ;;  %v4396_v11 = vsub.f32 %v9742_v1, %v4340_v35 }
 0xac8   : > { %v6523_v51 = vpop.f32.mrb[165].mxu1  ;;  %v9902_v7 = vadd.f32 %v4059_v15, %v11098_v25  ;;  %4489 = vadd.xlane.f32.xlu1 %v4488_v57  ;;  %v4492_v3 = vadd.f32 %v9897_v41, %v4491_v40 }
 0xac9   : > { %v4062_v31 = vpop.f32.mrb[166].mxu1  ;;  %7080 = vpow2.f32 %v4435_v20  ;;  %v4439_v9 = vmul.f32 1.442695, %v4395_v28  ;;  %v4441_v10 = vmul.f32 1.442695, %v4396_v11  ;;  %v11102_v11 = vld [vmem:[#allocation12_spill] sm:$0xff] }
 0xaca   : > { %11099 = vst [vmem:[#allocation21_spill] sm:$0xff] %v9902_v7  ;;  %v9907_v13 = vadd.f32 %v4062_v31, %v11100_v12  ;;  %v6524_v59 = vpop.f32.mrb[167].mxu1  ;;  %7082 = vpow2.f32 %v4437_v38  ;;  %4493 = vadd.xlane.f32.xlu0 %v4492_v3 }
 0xacb   : > { %v9910_v1 = vpop.eup %7072  ;;  %7084 = vpow2.f32 %v4439_v9  ;;  %v11104_v9 = vld [vmem:[#allocation71_spill] sm:$0xff] }
 0xacc   : > { %11101 = vst [vmem:[#allocation18_spill] sm:$0xff] %v9907_v13  ;;  %v9912_v14 = vpop.eup %7074  ;;  %7086 = vpow2.f32 %v4441_v10  ;;  %v4344_v28 = vpop.xlane.xlu1 %4343 }
 0xacd   : > { %v4495_v32 = vsel %vm1648_vm13, %v9912_v14, 0.0 }
 0xace   : > { %v4348_v33 = vpop.xlane.xlu0 %4347  ;;  %v4496_v4 = vadd.f32 %v9910_v1, %v4495_v32 }
 0xacf   : > { %v4067_v34 = vpop.f32.mrb[168].mxu1  ;;  %v9917_v35 = vpop.eup %7076  ;;  %v4399_v15 = vsub.f32 %v9763_v55, %v4348_v33  ;;  %v4400_v57 = vsub.f32 %v9759_v29, %v4348_v33 }
 0xad0   : > { %v6527_v20 = vpop.f32.mrb[169].mxu1  ;;  %v9921_v38 = vpop.eup %7078  ;;  %v9924_v51 = vadd.f32 %v4067_v34, %v11102_v11  ;;  %4497 = vadd.xlane.f32.xlu1 %v4496_v4 }
 0xad1   : > { %v4070_v25 = vpop.f32.mrb[170].mxu1  ;;  %v4447_v31 = vmul.f32 1.442695, %v4399_v15  ;;  %v4449_v40 = vmul.f32 1.442695, %v4400_v57  ;;  %v4499_v55 = vsel %vm1648_vm13, %v9921_v38, 0.0 }
 0xad2   : > { %11103 = vst [vmem:[#allocation20_spill] sm:$0xff] %v9924_v51  ;;  %v9927_v10 = vadd.f32 %v4070_v25, %v11104_v9  ;;  %v6528_v12 = vpop.f32.mrb[171].mxu1  ;;  %v4500_v29 = vadd.f32 %v9917_v35, %v4499_v55 }
 0xad3   : > { %v9931_v59 = vpop.eup %7080  ;;  %7088 = vpow2.f32 %v4447_v31 }
 0xad4   : > { %11105 = vst [vmem:[#allocation11_spill] sm:$0xff] %v9927_v10  ;;  %v9934_v3 = vpop.eup %7082  ;;  %7090 = vpow2.f32 %v4449_v40  ;;  %v4352_v32 = vpop.xlane.xlu1 %4351  ;;  %4501 = vadd.xlane.f32.xlu0 %v4500_v29  ;;  %v11107_v10 = vld [vmem:[#allocation72_spill] sm:$0xff] }
 0xad5   : > { %v9936_v33 = vpop.eup %7084  ;;  %v4503_v34 = vsel %vm1648_vm13, %v9934_v3, 0.0 }
 0xad6   : > { %v9940_v4 = vpop.eup %7086  ;;  %v4504_v15 = vadd.f32 %v9931_v59, %v4503_v34  ;;  %v4356_v9 = vpop.xlane.xlu0 %4355 }
 0xad7   : > { %v4507_v20 = vsel %vm1648_vm13, %v9940_v4, 0.0 }
 0xad8   : > { %4505 = vadd.xlane.f32.xlu1 %v4504_v15  ;;  %v4635_v57 = vpop.permute.xlu1 %4634  ;;  %v4508_v11 = vadd.f32 %v9936_v33, %v4507_v20  ;;  %v11106_v15 = vld [vmem:[#allocation22_spill] sm:$0xff] }
 0xad9   : > { %4691 = vmatpush1.bf16.msra.mxu1 %v4635_v57 }
 0xada   : > { %4692 = vmatprep.subr.bf16.mxu1 %v10979_v24  ;;  %4509 = vadd.xlane.f32.xlu0 %v4508_v11 }
 0xadd   : > { %v9947_v25 = vpop.eup %7088 }
 0xade   : > { %v9949_v31 = vpop.eup %7090  ;;  %v4364_v55 = vpop.xlane.xlu0 %4363 }
 0xadf   : > { %v4515_v40 = vsel %vm1648_vm13, %v9949_v31, 0.0 }
 0xae0   : > { %v4516_v12 = vadd.f32 %v9947_v25, %v4515_v40 }
 0xae2   : > { %4517 = vadd.xlane.f32.xlu0 %v4516_v12 }
 0xae6   : > { %v9954_v29 = vpop.xlane.xlu0 %4371 }
 0xae8   : > { %v4075_v34 = vpop.f32.mrb[172].mxu1 }
 0xae9   : > { %v9957_v57 = vadd.f32 %v4075_v34, %v11106_v15  ;;  %4638 = vrot.lane.b32.xlu1 %v10970_v2, %s7341_s29  ;;  %v6531_v20 = vpop.f32.mrb[173].mxu1  ;;  %v4398_v2 = vsub.f32 %v9752_v26, %v4344_v28  ;;  %v4403_v26 = vsub.f32 %v9780_v23, %v4356_v9  ;;  %v4407_v23 = vsub.f32 %v9788_v42, %v4364_v55 }
 0xaea   : > { %v4078_v11 = vpop.f32.mrb[174].mxu1  ;;  %v4397_v20 = vsub.f32 %v9755_v48, %v4344_v28 }
 0xaeb   : > { %v9962_v51 = vadd.f32 %v4078_v11, %v11107_v10  ;;  %v6532_v13 = vpop.f32.mrb[175].mxu1  ;;  %v4445_v10 = vmul.f32 1.442695, %v4398_v2  ;;  %v4455_v48 = vmul.f32 1.442695, %v4403_v26 }
 0xaec   : > { %v9964_v7 = vpop.xlane.xlu0 %4379  ;;  %v4402_v13 = vsub.f32 %v9769_v0, %v4352_v32  ;;  %v4443_v11 = vmul.f32 1.442695, %v4397_v20 }
 0xaed   : > { %7092 = vpow2.f32 %v4445_v10 }
 0xaee   : > { %7094 = vpow2.f32 %v4443_v11 }
 0xaf0   : > { %v4083_v40 = vpop.f32.mrb[176].mxu1  ;;  %v4637_v12 = vpop.permute.xlu0 %4636 }
 0xaf1   : > { %v9967_v56 = vadd.f32 %v4083_v40, %v11108_v17  ;;  %v6535_v39 = vpop.f32.mrb[177].mxu1  ;;  %4693 = vmatpush1.bf16.msra.mxu1 %v4637_v12  ;;  %v4401_v17 = vsub.f32 %v9772_v30, %v4352_v32  ;;  %v4404_v40 = vsub.f32 %v9776_v27, %v4356_v9 }
 0xaf2   : > { %v4086_v34 = vpop.f32.mrb[178].mxu1  ;;  %4694 = vmatprep.subr.bf16.mxu1 %v10979_v24  ;;  %v4453_v39 = vmul.f32 1.442695, %v4402_v13 }
 0xaf3   : > { %v6536_v15 = vpop.f32.mrb[179].mxu1  ;;  %v4451_v12 = vmul.f32 1.442695, %v4401_v17  ;;  %v4457_v34 = vmul.f32 1.442695, %v4404_v40 }
 0xaf4   : > { %7096 = vpow2.f32 %v4453_v39 }
 0xaf5   : > { %7098 = vpow2.f32 %v4451_v12 }
 0xaf6   : > { %7100 = vpow2.f32 %v4457_v34 }
 0xaf7   : > { %v9978_v0 = vpop.eup %7092  ;;  %7102 = vpow2.f32 %v4455_v48 }
 0xaf8   : > { %4640 = vrot.lane.b32.xlu0 %v10972_v8, %s7341_s29  ;;  %v4408_v8 = vsub.f32 %v9785_v6, %v4364_v55  ;;  %v9981_v28 = vpop.eup %7094  ;;  %v4511_v30 = vsel %vm1648_vm13, %v9978_v0, 0.0  ;;  %v4412_v6 = vsub.f32 %v9793_v60, %v9954_v29 }
 0xaf9   : > { %v4512_v20 = vadd.f32 %v9981_v28, %v4511_v30  ;;  %v4411_v30 = vsub.f32 %v9796_v62, %v9954_v29  ;;  %v4415_v62 = vsub.f32 %v9804_v45, %v9964_v7 }
 0xafa   : > { %v4465_v32 = vmul.f32 1.442695, %v4408_v8  ;;  %v4473_v12 = vmul.f32 1.442695, %v4412_v6 }
 0xafc   : > { %7104 = vpow2.f32 %v4465_v32  ;;  %v4416_v32 = vsub.f32 %v9806_v36, %v9964_v7 }
 0xafe   : > { %v9985_v27 = vpop.eup %7096 }
 0xaff   : > { %v9991_v10 = vpop.eup %7098  ;;  %v4519_v17 = vsel %vm1648_vm13, %v9985_v27, 0.0 }
 0xb00   : > { %v9997_v39 = vpop.eup %7100  ;;  %v4520_v40 = vadd.f32 %v9991_v10, %v4519_v17 }
 0xb01   : > { %v10002_v60 = vpop.eup %7102  ;;  %v4523_v34 = vsel %vm1648_vm13, %v9997_v39, 0.0 }
 0xb09   : > { %v4360_v2 = vpop.xlane.xlu1 %4359 }
 0xb0a   : > { %v4405_v9 = vsub.f32 %v9830_v44, %v4360_v2  ;;  %v4406_v15 = vsub.f32 %v9814_v21, %v4360_v2  ;;  %v4463_v44 = vmul.f32 1.442695, %v4407_v23  ;;  %v4524_v2 = vadd.f32 %v10002_v60, %v4523_v34 }
 0xb0c   : > { %v4459_v13 = vmul.f32 1.442695, %v4405_v9  ;;  %v4461_v11 = vmul.f32 1.442695, %v4406_v15 }
 0xb0d   : > { %4513 = vadd.xlane.f32.xlu1 %v4512_v20  ;;  %v4368_v42 = vpop.xlane.xlu1 %4367  ;;  %v4471_v20 = vmul.f32 1.442695, %v4411_v30 }
 0xb0e   : > { %7106 = vpow2.f32 %v4459_v13  ;;  %v4409_v21 = vsub.f32 %v9839_v63, %v4368_v42  ;;  %v4410_v55 = vsub.f32 %v9827_v47, %v4368_v42  ;;  %v4479_v13 = vmul.f32 1.442695, %v4415_v62 }
 0xb0f   : > { %7108 = vpow2.f32 %v4461_v11 }
 0xb10   : > { %v4469_v26 = vmul.f32 1.442695, %v4410_v55  ;;  %v4467_v48 = vmul.f32 1.442695, %v4409_v21  ;;  %7110 = vpow2.f32 %v4463_v44 }
 0xb11   : > { %4521 = vadd.xlane.f32.xlu1 %v4520_v40  ;;  %v4376_v8 = vpop.xlane.xlu1 %4375 }
 0xb12   : > { %v4413_v63 = vsub.f32 %v9845_v22, %v4376_v8  ;;  %v4414_v47 = vsub.f32 %v9836_v18, %v4376_v8  ;;  %7112 = vpow2.f32 %v4469_v26  ;;  %v10015_v22 = vpop.eup %7104  ;;  %v4481_v18 = vmul.f32 1.442695, %v4416_v32 }
 0xb13   : > { %7114 = vpow2.f32 %v4473_v12 }
 0xb14   : > { %v4475_v23 = vmul.f32 1.442695, %v4413_v63  ;;  %v4477_v9 = vmul.f32 1.442695, %v4414_v47  ;;  %7116 = vpow2.f32 %v4467_v48 }
 0xb15   : > { %4525 = vadd.xlane.f32.xlu1 %v4524_v2  ;;  %v4384_v15 = vpop.xlane.xlu1 %4383 }
 0xb16   : > { %7118 = vpow2.f32 %v4475_v23  ;;  %v4418_v36 = vsub.f32 %v9811_v16, %v4384_v15  ;;  %v4417_v11 = vsub.f32 %v9849_v37, %v4384_v15  ;;  %v4531_v16 = vsel %vm1648_vm13, %v10015_v22, 0.0 }
 0xb17   : > { %7120 = vpow2.f32 %v4477_v9 }
 0xb18   : > { %v10018_v29 = vpop.eup %7106  ;;  %7122 = vpow2.f32 %v4471_v20  ;;  %v4485_v45 = vmul.f32 1.442695, %v4418_v36  ;;  %v4483_v55 = vmul.f32 1.442695, %v4417_v11  ;;  %v4793_v11 = vld [vmem:[%s10725_s5 + $0xc] sm:$0xf] }
 0xb19   : > { %v10020_v6 = vpop.eup %7108  ;;  %7124 = vpow2.f32 %v4481_v18 }
 0xb1a   : > { %v4527_v17 = vsel %vm1648_vm13, %v10020_v6, 0.0  ;;  %v10026_v42 = vpop.eup %7110  ;;  %7126 = vpow2.f32 %v4479_v13 }
 0xb1b   : > { %v4528_v7 = vadd.f32 %v10018_v29, %v4527_v17  ;;  %7128 = vpow2.f32 %v4485_v45  ;;  %v4532_v40 = vadd.f32 %v10026_v42, %v4531_v16  ;;  %v4822_v17 = vsel %vm2184_vm14, %v4793_v11, 0 }
 0xb1c   : > { %v10030_v44 = vpop.eup %7112  ;;  %7130 = vpow2.f32 %v4483_v55  ;;  %6538 = vmatpush3.bf16.msra.mxu0 %v4822_v17 }
 0xb1d   : > { %4529 = vadd.xlane.f32.xlu1 %v4528_v7  ;;  %v10032_v21 = vpop.eup %7114  ;;  %v4535_v26 = vsel %vm1648_vm13, %v10030_v44, 0.0  ;;  %6615 = vmatprep.subr.bf16.mxu0 %v11063_v54 }
 0xb1e   : > { %v10034_v37 = vpop.eup %7116  ;;  %v4539_v47 = vsel %vm1648_vm13, %v10032_v21, 0.0 }
 0xb1f   : > { %v4536_v30 = vadd.f32 %v10034_v37, %v4535_v26 }
 0xb20   : > { %v10037_v12 = vpop.eup %7118 }
 0xb21   : > { %v10041_v34 = vpop.eup %7120  ;;  %4533 = vadd.xlane.f32.xlu1 %v4532_v40 }
 0xb22   : > { %v4543_v48 = vsel %vm1648_vm13, %v10041_v34, 0.0  ;;  %v10047_v63 = vpop.eup %7122 }
 0xb23   : > { %v4544_v8 = vadd.f32 %v10037_v12, %v4543_v48  ;;  %v10051_v32 = vpop.eup %7124  ;;  %v4540_v2 = vadd.f32 %v10047_v63, %v4539_v47 }
 0xb24   : > { %v10054_v23 = vpop.eup %7126  ;;  %v4547_v9 = vsel %vm1648_vm13, %v10051_v32, 0.0 }
 0xb25   : > { %4545 = vadd.xlane.f32.xlu0 %v4544_v8  ;;  %4537 = vadd.xlane.f32.xlu1 %v4536_v30  ;;  %v10058_v15 = vpop.eup %7128  ;;  %v4548_v20 = vadd.f32 %v10054_v23, %v4547_v9 }
 0xb26   : > { %v10061_v62 = vpop.eup %7130  ;;  %v4551_v18 = vsel %vm1648_vm13, %v10058_v15, 0.0 }
 0xb27   : > { %v4552_v36 = vadd.f32 %v10061_v62, %v4551_v18 }
 0xb29   : > { %4541 = vadd.xlane.f32.xlu1 %v4540_v2 }
 0xb2d   : > { %4549 = vadd.xlane.f32.xlu1 %v4548_v20 }
 0xb31   : > { %4553 = vadd.xlane.f32.xlu1 %v4552_v36 }
 0xb55   : > { %v4490_v13 = vpop.xlane.xlu1 %4489 }
 0xb56   : > { %7132 = vrcp.f32 %v4490_v13 }
 0xb57   : > { %v4494_v45 = vpop.xlane.xlu0 %4493 }
 0xb58   : > { %7134 = vrcp.f32 %v4494_v45 }
 0xb5d   : > { %v4498_v7 = vpop.xlane.xlu1 %4497 }
 0xb60   : > { %v7133_v16 = vpop.eup %7132 }
 0xb61   : > { %v4502_v55 = vpop.xlane.xlu0 %4501  ;;  %v4573_v48 = vmul.f32 %v7133_v16, %v9888_v49  ;;  %v4572_v13 = vmul.f32 %v7133_v16, %v9886_v58 }
 0xb62   : > { %v7135_v40 = vpop.eup %7134  ;;  %7136 = vrcp.f32 %v4502_v55 }
 0xb63   : > { %v4575_v8 = vmul.f32 %v7135_v40, %v9894_v46  ;;  %7138 = vrcp.f32 %v4498_v7  ;;  %v4574_v36 = vmul.f32 %v7135_v40, %v9897_v41 }
 0xb65   : > { %v4506_v26 = vpop.xlane.xlu1 %4505  ;;  %v4607_v30 = vpack.c.bf16 %v4575_v8, %v4573_v48  ;;  %v4606_v45 = vpack.c.bf16 %v4574_v36, %v4572_v13 }
 0xb67   : > { %6259 = vmatprep.mubr.msk.bf16.mxu1 %vm1648_vm13, %v4607_v30  ;;  %v4510_v2 = vpop.xlane.xlu0 %4509 }
 0xb68   : > { %7140 = vrcp.f32 %v4510_v2 }
 0xb69   : > { %v4639_v47 = vpop.permute.xlu1 %4638  ;;  %7142 = vrcp.f32 %v4506_v26 }
 0xb6a   : > { %4695 = vmatpush1.bf16.msra.mxu1 %v4639_v47 }
 0xb6b   : > { %4696 = vmatprep.subr.bf16.mxu1 %v10979_v24 }
 0xb6c   : > { %v7137_v20 = vpop.eup %7136 }
 0xb6d   : > { %v7139_v18 = vpop.eup %7138  ;;  %v4579_v46 = vmul.f32 %v7137_v20, %v9921_v38  ;;  %v4578_v41 = vmul.f32 %v7137_v20, %v9917_v35 }
 0xb6e   : > { %v4577_v17 = vmul.f32 %v7139_v18, %v9912_v14  ;;  %v4576_v58 = vmul.f32 %v7139_v18, %v9910_v1 }
 0xb6f   : > { %v4518_v9 = vpop.xlane.xlu0 %4517 }
 0xb70   : > { %v4609_v24 = vpack.c.bf16 %v4579_v46, %v4577_v17  ;;  %v4608_v40 = vpack.c.bf16 %v4578_v41, %v4576_v58  ;;  %7144 = vrcp.f32 %v4518_v9 }
 0xb72   : > { %v7141_v7 = vpop.eup %7140 }
 0xb73   : > { %v4641_v49 = vpop.permute.xlu0 %4640  ;;  %v7143_v55 = vpop.eup %7142  ;;  %v4583_v38 = vmul.f32 %v7141_v7, %v9940_v4  ;;  %v4582_v14 = vmul.f32 %v7141_v7, %v9936_v33 }
 0xb74   : > { %v4678_v11 = vsel %vm2184_vm14, %v4641_v49, 0  ;;  %v4581_v16 = vmul.f32 %v7143_v55, %v9934_v3  ;;  %v4580_v48 = vmul.f32 %v7143_v55, %v9931_v59 }
 0xb75   : > { %4697 = vmatpush1.bf16.msra.mxu1 %v4678_v11 }
 0xb76   : > { %6575 = vmatprep.subr.bf16.mxu1 %v11063_v54  ;;  %v4611_v26 = vpack.c.bf16 %v4583_v38, %v4581_v16  ;;  %v4610_v8 = vpack.c.bf16 %v4582_v14, %v4580_v48 }
 0xb78   : > { %4713 = vmatmul.mubr.bf16.vlgmr.msra.gmra.mrb[180].mxu1 %v4606_v45 }
 0xb79   : > { %6260 = vmatprep.mubr.msk.bf16.mxu1 %vm1648_vm13, %v4609_v24 }
 0xb7a   : > { %v7145_v1 = vpop.eup %7144 }
 0xb7b   : > { %v4587_v2 = vmul.f32 %v7145_v1, %v9949_v31  ;;  %v4586_v33 = vmul.f32 %v7145_v1, %v9947_v25 }
 0xb80   : > { %4721 = vmatmul.mubr.bf16.gmra.mrb[184].mxu1 %v4608_v40 }
 0xb81   : > { %6261 = vmatprep.mubr.msk.bf16.mxu1 %vm1648_vm13, %v4611_v26 }
 0xb88   : > { %4729 = vmatmul.mubr.bf16.gmra.mrb[188].mxu1 %v4610_v8 }
 0xb9a   : > { %v4514_v30 = vpop.xlane.xlu1 %4513 }
 0xb9b   : > { %7146 = vrcp.f32 %v4514_v30 }
 0xb9e   : > { %v4522_v35 = vpop.xlane.xlu1 %4521 }
 0xb9f   : > { %7148 = vrcp.f32 %v4522_v35 }
 0xba2   : > { %v4526_v4 = vpop.xlane.xlu1 %4525 }
 0xba3   : > { %7150 = vrcp.f32 %v4526_v4 }
 0xba5   : > { %v7147_v3 = vpop.eup %7146 }
 0xba6   : > { %v4585_v47 = vmul.f32 %v7147_v3, %v9978_v0  ;;  %v4584_v20 = vmul.f32 %v7147_v3, %v9981_v28 }
 0xba8   : > { %v4613_v59 = vpack.c.bf16 %v4587_v2, %v4585_v47  ;;  %v4612_v18 = vpack.c.bf16 %v4586_v33, %v4584_v20 }
 0xba9   : > { %v7149_v9 = vpop.eup %7148 }
 0xbaa   : > { %v4530_v36 = vpop.xlane.xlu1 %4529  ;;  %6262 = vmatprep.mubr.msk.bf16.mxu1 %vm1648_vm13, %v4613_v59  ;;  %v4589_v13 = vmul.f32 %v7149_v9, %v9985_v27  ;;  %v4588_v31 = vmul.f32 %v7149_v9, %v9991_v10 }
 0xbab   : > { %4737 = vmatmul.mubr.bf16.gmra.mrb[192].mxu1 %v4612_v18  ;;  %7152 = vrcp.f32 %v4530_v36 }
 0xbad   : > { %v7151_v49 = vpop.eup %7150 }
 0xbae   : > { %v4534_v46 = vpop.xlane.xlu1 %4533  ;;  %v4591_v0 = vmul.f32 %v7151_v49, %v9997_v39  ;;  %v4590_v28 = vmul.f32 %v7151_v49, %v10002_v60 }
 0xbaf   : > { %7154 = vrcp.f32 %v4534_v46 }
 0xbb0   : > { %v4615_v25 = vpack.c.bf16 %v4591_v0, %v4589_v13  ;;  %v4614_v11 = vpack.c.bf16 %v4590_v28, %v4588_v31 }
 0xbb2   : > { %v4538_v17 = vpop.xlane.xlu1 %4537  ;;  %6263 = vmatprep.mubr.msk.bf16.mxu1 %vm1648_vm13, %v4615_v25  ;;  %v4546_v45 = vpop.xlane.xlu0 %4545 }
 0xbb3   : > { %4745 = vmatmul.mubr.bf16.gmra.mrb[196].mxu1 %v4614_v11  ;;  %7156 = vrcp.f32 %v4538_v17 }
 0xbb5   : > { %v7153_v7 = vpop.eup %7152 }
 0xbb6   : > { %v4542_v24 = vpop.xlane.xlu1 %4541  ;;  %v4593_v39 = vmul.f32 %v7153_v7, %v10020_v6  ;;  %v4592_v60 = vmul.f32 %v7153_v7, %v10018_v29 }
 0xbb7   : > { %7158 = vrcp.f32 %v4542_v24 }
 0xbb8   : > { %7160 = vrcp.f32 %v4546_v45 }
 0xbb9   : > { %v7155_v55 = vpop.eup %7154 }
 0xbba   : > { %v4550_v27 = vpop.xlane.xlu1 %4549  ;;  %v4595_v10 = vmul.f32 %v7155_v55, %v10015_v22  ;;  %v4594_v41 = vmul.f32 %v7155_v55, %v10026_v42 }
 0xbbb   : > { %7162 = vrcp.f32 %v4550_v27 }
 0xbbc   : > { %v4617_v38 = vpack.c.bf16 %v4595_v10, %v4593_v39  ;;  %v4616_v58 = vpack.c.bf16 %v4594_v41, %v4592_v60 }
 0xbbd   : > { %v7157_v40 = vpop.eup %7156 }
 0xbbe   : > { %v4554_v16 = vpop.xlane.xlu1 %4553  ;;  %6264 = vmatprep.mubr.msk.bf16.mxu1 %vm1648_vm13, %v4617_v38  ;;  %v4597_v14 = vmul.f32 %v7157_v40, %v10030_v44  ;;  %v4596_v22 = vmul.f32 %v7157_v40, %v10034_v37 }
 0xbbf   : > { %7164 = vrcp.f32 %v4554_v16  ;;  %4753 = vmatmul.mubr.bf16.gmra.mrb[200].mxu1 %v4616_v58 }
 0xbc1   : > { %v7159_v26 = vpop.eup %7158 }
 0xbc2   : > { %v4599_v6 = vmul.f32 %v7159_v26, %v10032_v21  ;;  %v4598_v29 = vmul.f32 %v7159_v26, %v10047_v63  ;;  %v7161_v48 = vpop.eup %7160 }
 0xbc3   : > { %v4601_v35 = vmul.f32 %v7161_v48, %v10041_v34  ;;  %v4600_v37 = vmul.f32 %v7161_v48, %v10037_v12 }
 0xbc4   : > { %v4619_v42 = vpack.c.bf16 %v4599_v6, %v4597_v14  ;;  %v4618_v8 = vpack.c.bf16 %v4598_v29, %v4596_v22 }
 0xbc5   : > { %v7163_v30 = vpop.eup %7162 }
 0xbc6   : > { %6265 = vmatprep.mubr.msk.bf16.mxu1 %vm1648_vm13, %v4619_v42  ;;  %v4603_v4 = vmul.f32 %v7163_v30, %v10051_v32  ;;  %v4602_v44 = vmul.f32 %v7163_v30, %v10054_v23 }
 0xbc7   : > { %4761 = vmatmul.mubr.bf16.gmra.mrb[204].mxu1 %v4618_v8 }
 0xbc8   : > { %v4621_v1 = vpack.c.bf16 %v4603_v4, %v4601_v35  ;;  %v4620_v63 = vpack.c.bf16 %v4602_v44, %v4600_v37  ;;  %v10150_v37 = vld [vmem:[%s10726_s6] ss:$0 sm:$0xff] }
 0xbc9   : > { %v7165_v3 = vpop.eup %7164 }
 0xbca   : > { %6266 = vmatprep.mubr.msk.bf16.mxu1 %vm1648_vm13, %v4621_v1  ;;  %v4605_v21 = vmul.f32 %v7165_v3, %v10058_v15  ;;  %v4604_v34 = vmul.f32 %v7165_v3, %v10061_v62 }
 0xbcc   : > { %v4623_v47 = vpack.c.bf16 %v4605_v21, %v4605_v21  ;;  %v4622_v2 = vpack.c.bf16 %v4604_v34, %v4604_v34 }
 0xbcf   : > { %4769 = vmatmul.mubr.bf16.gmra.mrb[208].mxu1 %v4620_v63 }
 0xbd0   : > { %6267 = vmatprep.mubr.msk.bf16.mxu1 %vm1648_vm13, %v4623_v47  ;;  %v7302_v47 = vld [vmem:[%s7428_s14] sm:$0xff] }
 0xbd7   : > { %4777 = vmatmul.mubr.bf16.gmra.mrb[212].mxu1 %v4622_v2 }
 0xbd8   : > { %6579 = vmatprep.mubr.msk.bf16.mxu1 %vm7329_vm1, %v11063_v54 }
 0xc4b   : > { %v4714_v32 = vpop.f32.mrb[180].mxu1 }
 0xc4c   : > { %v4716_v23 = vpop.f32.mrb[181].mxu1 }
 0xc4d   : > { %v4717_v20 = vpop.f32.mrb[182].mxu1 }
 0xc4e   : > { %v4784_v33 = vpack.c.bf16 %v4717_v20, %v4714_v32  ;;  %v4719_v59 = vpop.f32.mrb[183].mxu1  ;;  %v7303_v20 = vld [vmem:[%s7428_s14 + $0x8] sm:$0xff] }
 0xc50   : > { %6540 = vmatmul.mubr.msk.bf16.vlgmr.msra.gmra.mrb[216].mxu0 %vm1648_vm13, %v4784_v33 }
 0xc51   : > { %6543 = vmatprep.mubr.msk.bf16.mxu0 %vm7329_vm1, %v11063_v54 }
 0xc53   : > { %v4722_v12 = vpop.f32.mrb[184].mxu1 }
 0xc54   : > { %v4724_v15 = vpop.f32.mrb[185].mxu1 }
 0xc55   : > { %v4725_v18 = vpop.f32.mrb[186].mxu1 }
 0xc56   : > { %v4785_v36 = vpack.c.bf16 %v4725_v18, %v4722_v12  ;;  %v4727_v62 = vpop.f32.mrb[187].mxu1 }
 0xc58   : > { %6544 = vmatmul.mubr.msk.bf16.gmra.mrb[220].mxu0 %vm1648_vm13, %v4785_v36 }
 0xc59   : > { %6547 = vmatprep.mubr.msk.bf16.mxu0 %vm7329_vm1, %v11063_v54 }
 0xc5b   : > { %v4730_v9 = vpop.f32.mrb[188].mxu1 }
 0xc5c   : > { %v4732_v49 = vpop.f32.mrb[189].mxu1 }
 0xc5d   : > { %v4733_v46 = vpop.f32.mrb[190].mxu1 }
 0xc5e   : > { %v4786_v13 = vpack.c.bf16 %v4733_v46, %v4730_v9  ;;  %v4735_v0 = vpop.f32.mrb[191].mxu1 }
 0xc5f   : > { %v7305_v0 = vld [vmem:[%s7428_s14 + $0x18] sm:$0xff] }
 0xc60   : > { %6548 = vmatmul.mubr.msk.bf16.gmra.mrb[224].mxu0 %vm1648_vm13, %v4786_v13 }
 0xc61   : > { %6551 = vmatprep.mubr.msk.bf16.mxu0 %vm7329_vm1, %v11063_v54 }
 0xc7e   : > { %v4738_v31 = vpop.f32.mrb[192].mxu1 }
 0xc7f   : > { %v4740_v28 = vpop.f32.mrb[193].mxu1 }
 0xc80   : > { %v4741_v25 = vpop.f32.mrb[194].mxu1 }
 0xc81   : > { %v4787_v11 = vpack.c.bf16 %v4741_v25, %v4738_v31  ;;  %v4743_v17 = vpop.f32.mrb[195].mxu1 }
 0xc83   : > { %6552 = vmatmul.mubr.msk.bf16.gmra.mrb[228].mxu0 %vm1648_vm13, %v4787_v11 }
 0xc84   : > { %6555 = vmatprep.mubr.msk.bf16.mxu0 %vm7329_vm1, %v11063_v54 }
 0xc86   : > { %v4746_v45 = vpop.f32.mrb[196].mxu1 }
 0xc87   : > { %v4748_v24 = vpop.f32.mrb[197].mxu1 }
 0xc88   : > { %v4749_v7 = vpop.f32.mrb[198].mxu1 }
 0xc89   : > { %v4788_v55 = vpack.c.bf16 %v4749_v7, %v4746_v45  ;;  %v4751_v27 = vpop.f32.mrb[199].mxu1  ;;  %v7306_v45 = vld [vmem:[%s7428_s14 + $0x20] sm:$0xff] }
 0xc8b   : > { %6556 = vmatmul.mubr.msk.bf16.gmra.mrb[232].mxu0 %vm1648_vm13, %v4788_v55 }
 0xc8c   : > { %6559 = vmatprep.mubr.msk.bf16.mxu0 %vm7329_vm1, %v11063_v54 }
 0xc92   : > { %v4754_v39 = vpop.f32.mrb[200].mxu1 }
 0xc93   : > { %v4756_v10 = vpop.f32.mrb[201].mxu1 }
 0xc94   : > { %v4757_v60 = vpop.f32.mrb[202].mxu1  ;;  %v7307_v10 = vld [vmem:[%s7428_s14 + $0x28] sm:$0xff] }
 0xc95   : > { %v4789_v41 = vpack.c.bf16 %v4757_v60, %v4754_v39  ;;  %v4759_v38 = vpop.f32.mrb[203].mxu1 }
 0xc97   : > { %6560 = vmatmul.mubr.msk.bf16.gmra.mrb[236].mxu0 %vm1648_vm13, %v4789_v41 }
 0xc98   : > { %6563 = vmatprep.mubr.msk.bf16.mxu0 %vm7329_vm1, %v11063_v54 }
 0xc9a   : > { %v4762_v58 = vpop.f32.mrb[204].mxu1 }
 0xc9b   : > { %v4764_v16 = vpop.f32.mrb[205].mxu1 }
 0xc9c   : > { %v4765_v40 = vpop.f32.mrb[206].mxu1 }
 0xc9d   : > { %v4790_v26 = vpack.c.bf16 %v4765_v40, %v4762_v58  ;;  %v4767_v14 = vpop.f32.mrb[207].mxu1 }
 0xc9f   : > { %6564 = vmatmul.mubr.msk.bf16.gmra.mrb[240].mxu0 %vm1648_vm13, %v4790_v26  ;;  %v7308_v26 = vld [vmem:[%s7428_s14 + $0x30] sm:$0xff] }
 0xca0   : > { %6567 = vmatprep.mubr.msk.bf16.mxu0 %vm7329_vm1, %v11063_v54 }
 0xca2   : > { %v4770_v6 = vpop.f32.mrb[208].mxu1 }
 0xca3   : > { %v4772_v22 = vpop.f32.mrb[209].mxu1 }
 0xca4   : > { %v4773_v29 = vpop.f32.mrb[210].mxu1 }
 0xca5   : > { %v4791_v48 = vpack.c.bf16 %v4773_v29, %v4770_v6  ;;  %v4775_v42 = vpop.f32.mrb[211].mxu1  ;;  %v11109_v6 = vld [vmem:[#allocation13_spill] sm:$0xff] }
 0xca6   : > { %v7309_v42 = vld [vmem:[%s7428_s14 + $0x38] sm:$0xff] }
 0xca7   : > { %6568 = vmatmul.mubr.msk.bf16.gmra.mrb[244].mxu0 %vm1648_vm13, %v4791_v48 }
 0xca8   : > { %6571 = vmatprep.mubr.msk.bf16.mxu0 %vm7329_vm1, %v11063_v54 }
 0xcaa   : > { %v4778_v8 = vpop.f32.mrb[212].mxu1 }
 0xcab   : > { %v4780_v30 = vpop.f32.mrb[213].mxu1  ;;  %v4792_v4 = vpack.c.bf16 %v4778_v8, %v4778_v8 }
 0xcac   : > { %v4781_v35 = vpop.f32.mrb[214].mxu1 }
 0xcad   : > { %v4782_v1 = vpop.f32.mrb[215].mxu1 }
 0xcaf   : > { %6572 = vmatmul.mubr.msk.bf16.gmra.mrb[248].mxu0 %vm1648_vm13, %v4792_v4  ;;  %v11110_v4 = vld [vmem:[#allocation17_spill] sm:$0xff] }
 0xcb0   : > { %6623 = vmatprep.mubr.msk.bf16.mxu0 %vm7329_vm1, %v11063_v54 }
 0xd23   : > { %v4858_v3 = vpop.f32.mrb[216].mxu0 }
 0xd24   : > { %v4928_v44 = vadd.f32 %v4858_v3, %v9817_v43  ;;  %v6541_v21 = vpop.f32.mrb[217].mxu0 }
 0xd25   : > { %v4861_v63 = vpop.f32.mrb[218].mxu0 }
 0xd26   : > { %v4945_v34 = vadd.f32 %v7302_v47, %v4928_v44  ;;  %v4929_v2 = vadd.f32 %v4861_v63, %v9822_v50  ;;  %v6542_v32 = vpop.f32.mrb[219].mxu0  ;;  %v7304_v50 = vld [vmem:[%s7428_s14 + $0x10] sm:$0xff]  ;;  %v7310_v63 = vld [vmem:[%s7428_s14 + $0x40] sm:$0xff] }
 0xd28   : > { %v10155_v23 = vadd.f32 %v10150_v37, %v4945_v34  ;;  %v4946_v33 = vadd.f32 %v7303_v20, %v4929_v2  ;;  %v11111_v34 = vld [vmem:[#allocation16_spill] sm:$0xff] }
 0xd2a   : > { %v10159_v43 = vadd.f32 %v10150_v37, %v4946_v33  ;;  %v4988_v59 = vsel %vm984_vm0, %v10155_v23, 0.0  ;;  %v7311_v33 = vld [vmem:[%s7428_s14 + $0x48] sm:$0xff] }
 0xd2b   : > { %4989 = vadd.xlane.f32.xlu1 %v4988_v59  ;;  %v4866_v12 = vpop.f32.mrb[220].mxu0 }
 0xd2c   : > { %v4930_v15 = vadd.f32 %v4866_v12, %v9855_v61  ;;  %v6545_v18 = vpop.f32.mrb[221].mxu0  ;;  %v4991_v46 = vsel %vm984_vm0, %v10159_v43, 0.0 }
 0xd2d   : > { %v4869_v36 = vpop.f32.mrb[222].mxu0 }
 0xd2e   : > { %v4947_v62 = vadd.f32 %v7304_v50, %v4930_v15  ;;  %v4931_v9 = vadd.f32 %v4869_v36, %v9858_v53  ;;  %v6546_v49 = vpop.f32.mrb[223].mxu0  ;;  %v11112_v50 = vld [vmem:[#allocation21_spill] sm:$0xff] }
 0xd2f   : > { %4992 = vadd.xlane.f32.xlu1 %v4991_v46  ;;  %v7312_v46 = vld [vmem:[%s7428_s14 + $0x50] sm:$0xff] }
 0xd30   : > { %v10169_v13 = vadd.f32 %v10150_v37, %v4947_v62  ;;  %v4948_v31 = vadd.f32 %v7305_v0, %v4931_v9 }
 0xd32   : > { %v10173_v61 = vadd.f32 %v10150_v37, %v4948_v31  ;;  %v4994_v28 = vsel %vm984_vm0, %v10169_v13, 0.0  ;;  %v11113_v31 = vld [vmem:[#allocation18_spill] sm:$0xff] }
 0xd33   : > { %4995 = vadd.xlane.f32.xlu1 %v4994_v28  ;;  %v4874_v25 = vpop.f32.mrb[224].mxu0 }
 0xd34   : > { %v4932_v53 = vadd.f32 %v4874_v25, %v9861_v52  ;;  %v6549_v11 = vpop.f32.mrb[225].mxu0  ;;  %v4997_v27 = vsel %vm984_vm0, %v10173_v61, 0.0 }
 0xd35   : > { %v4877_v17 = vpop.f32.mrb[226].mxu0  ;;  %v7313_v11 = vld [vmem:[%s7428_s14 + $0x58] sm:$0xff] }
 0xd36   : > { %v4949_v24 = vadd.f32 %v7306_v45, %v4932_v53  ;;  %v4933_v7 = vadd.f32 %v4877_v17, %v9864_v19  ;;  %v6550_v55 = vpop.f32.mrb[227].mxu0 }
 0xd37   : > { %4998 = vadd.xlane.f32.xlu1 %v4997_v27  ;;  %v11114_v55 = vld [vmem:[#allocation20_spill] sm:$0xff] }
 0xd38   : > { %v10183_v39 = vadd.f32 %v10150_v37, %v4949_v24  ;;  %v4950_v60 = vadd.f32 %v7307_v10, %v4933_v7 }
 0xd3a   : > { %v10187_v52 = vadd.f32 %v10150_v37, %v4950_v60  ;;  %v5000_v41 = vsel %vm984_vm0, %v10183_v39, 0.0 }
 0xd3b   : > { %5001 = vadd.xlane.f32.xlu1 %v5000_v41 }
 0xd3c   : > { %v5003_v19 = vsel %vm984_vm0, %v10187_v52, 0.0 }
 0xd3d   : > { %5004 = vadd.xlane.f32.xlu0 %v5003_v19  ;;  %v7314_v19 = vld [vmem:[%s7428_s14 + $0x60] sm:$0xff] }
 0xd56   : > { %v4882_v38 = vpop.f32.mrb[228].mxu0 }
 0xd57   : > { %v4934_v58 = vadd.f32 %v4882_v38, %v9871_v5  ;;  %v6553_v16 = vpop.f32.mrb[229].mxu0 }
 0xd58   : > { %v4885_v40 = vpop.f32.mrb[230].mxu0 }
 0xd59   : > { %v4951_v14 = vadd.f32 %v7308_v26, %v4934_v58  ;;  %v4935_v22 = vadd.f32 %v4885_v40, %v11109_v6  ;;  %v6554_v29 = vpop.f32.mrb[231].mxu0  ;;  %v11115_v58 = vld [vmem:[#allocation11_spill] sm:$0xff] }
 0xd5b   : > { %v10197_v48 = vadd.f32 %v10150_v37, %v4951_v14  ;;  %v4952_v8 = vadd.f32 %v7309_v42, %v4935_v22  ;;  %v7315_v14 = vld [vmem:[%s7428_s14 + $0x68] sm:$0xff] }
 0xd5d   : > { %v10201_v30 = vadd.f32 %v10150_v37, %v4952_v8  ;;  %v5006_v5 = vsel %vm984_vm0, %v10197_v48, 0.0 }
 0xd5e   : > { %5007 = vadd.xlane.f32.xlu1 %v5006_v5  ;;  %v4890_v35 = vpop.f32.mrb[232].mxu0 }
 0xd5f   : > { %v4936_v1 = vadd.f32 %v4890_v35, %v11110_v4  ;;  %v6557_v3 = vpop.f32.mrb[233].mxu0  ;;  %v5009_v44 = vsel %vm984_vm0, %v10201_v30, 0.0 }
 0xd60   : > { %5010 = vadd.xlane.f32.xlu0 %v5009_v44  ;;  %v4893_v21 = vpop.f32.mrb[234].mxu0 }
 0xd61   : > { %v4953_v47 = vadd.f32 %v7310_v63, %v4936_v1  ;;  %v4937_v2 = vadd.f32 %v4893_v21, %v11111_v34  ;;  %v6558_v32 = vpop.f32.mrb[235].mxu0  ;;  %v7316_v1 = vld [vmem:[%s7428_s14 + $0x70] sm:$0xff] }
 0xd63   : > { %v10211_v20 = vadd.f32 %v10150_v37, %v4953_v47  ;;  %v4954_v59 = vadd.f32 %v7311_v33, %v4937_v2  ;;  %v7317_v47 = vld [vmem:[%s7428_s14 + $0x78] sm:$0xff] }
 0xd65   : > { %v10215_v12 = vadd.f32 %v10150_v37, %v4954_v59  ;;  %v5012_v15 = vsel %vm984_vm0, %v10211_v20, 0.0 }
 0xd66   : > { %5013 = vadd.xlane.f32.xlu1 %v5012_v15 }
 0xd67   : > { %v5015_v18 = vsel %vm984_vm0, %v10215_v12, 0.0 }
 0xd68   : > { %5016 = vadd.xlane.f32.xlu0 %v5015_v18  ;;  %v7318_v18 = vld [vmem:[%s7428_s14 + $0x80] sm:$0xff] }
 0xd6a   : > { %v4898_v36 = vpop.f32.mrb[236].mxu0 }
 0xd6b   : > { %v4938_v62 = vadd.f32 %v4898_v36, %v11112_v50  ;;  %v6561_v9 = vpop.f32.mrb[237].mxu0 }
 0xd6c   : > { %v4901_v49 = vpop.f32.mrb[238].mxu0 }
 0xd6d   : > { %v4955_v0 = vadd.f32 %v7312_v46, %v4938_v62  ;;  %v4939_v28 = vadd.f32 %v4901_v49, %v11113_v31  ;;  %v6562_v25 = vpop.f32.mrb[239].mxu0 }
 0xd6f   : > { %v10225_v53 = vadd.f32 %v10150_v37, %v4955_v0  ;;  %v4956_v17 = vadd.f32 %v7313_v11, %v4939_v28 }
 0xd71   : > { %v10229_v45 = vadd.f32 %v10150_v37, %v4956_v17  ;;  %v5018_v24 = vsel %vm984_vm0, %v10225_v53, 0.0 }
 0xd72   : > { %5019 = vadd.xlane.f32.xlu1 %v5018_v24  ;;  %v4906_v7 = vpop.f32.mrb[240].mxu0 }
 0xd73   : > { %v4940_v27 = vadd.f32 %v4906_v7, %v11114_v55  ;;  %v6565_v10 = vpop.f32.mrb[241].mxu0  ;;  %v5021_v60 = vsel %vm984_vm0, %v10229_v45, 0.0 }
 0xd74   : > { %5022 = vadd.xlane.f32.xlu0 %v5021_v60  ;;  %v4909_v41 = vpop.f32.mrb[242].mxu0 }
 0xd75   : > { %v4957_v38 = vadd.f32 %v7314_v19, %v4940_v27  ;;  %v4941_v16 = vadd.f32 %v4909_v41, %v11115_v58  ;;  %v6566_v40 = vpop.f32.mrb[243].mxu0 }
 0xd77   : > { %v10239_v26 = vadd.f32 %v10150_v37, %v4957_v38  ;;  %v4958_v6 = vadd.f32 %v7315_v14, %v4941_v16 }
 0xd79   : > { %v10243_v22 = vadd.f32 %v10150_v37, %v4958_v6  ;;  %v5024_v29 = vsel %vm984_vm0, %v10239_v26, 0.0 }
 0xd7a   : > { %5025 = vadd.xlane.f32.xlu1 %v5024_v29  ;;  %v4914_v42 = vpop.f32.mrb[244].mxu0 }
 0xd7b   : > { %v4942_v8 = vadd.f32 %v4914_v42, %v9957_v57  ;;  %v6569_v5 = vpop.f32.mrb[245].mxu0  ;;  %v5027_v35 = vsel %vm984_vm0, %v10243_v22, 0.0 }
 0xd7c   : > { %5028 = vadd.xlane.f32.xlu0 %v5027_v35  ;;  %v4917_v4 = vpop.f32.mrb[246].mxu0 }
 0xd7d   : > { %v4959_v3 = vadd.f32 %v7316_v1, %v4942_v8  ;;  %v4943_v44 = vadd.f32 %v4917_v4, %v9962_v51  ;;  %v6570_v21 = vpop.f32.mrb[247].mxu0 }
 0xd7f   : > { %v10253_v63 = vadd.f32 %v10150_v37, %v4959_v3  ;;  %v4960_v34 = vadd.f32 %v7317_v47, %v4943_v44 }
 0xd81   : > { %v10257_v2 = vadd.f32 %v10150_v37, %v4960_v34  ;;  %v5030_v57 = vsel %vm984_vm0, %v10253_v63, 0.0 }
 0xd82   : > { %5031 = vadd.xlane.f32.xlu1 %v5030_v57  ;;  %v4922_v32 = vpop.f32.mrb[248].mxu0 }
 0xd83   : > { %v4944_v33 = vadd.f32 %v4922_v32, %v9967_v56  ;;  %v6573_v59 = vpop.f32.mrb[249].mxu0  ;;  %v5033_v51 = vsel %vm984_vm0, %v10257_v2, 0.0  ;;  %v6684_v56 = vld [vmem:[%s10729_s9] sm:$0xff]  }
 0xd84   : > { %5034 = vadd.xlane.f32.xlu0 %v5033_v51  ;;  %v4925_v15 = vpop.f32.mrb[250].mxu0  ;;  %6576 = vmatpush3.bf16.msra.mxu1 %v6684_v56 }
 0xd85   : > { %v4961_v36 = vadd.f32 %v7318_v18, %v4944_v33  ;;  %v6574_v50 = vpop.f32.mrb[251].mxu0  ;;  %6577 = vmatprep.subr.bf16.mxu1 %v11063_v54 }
 0xd87   : > { %v10266_v62 = vadd.f32 %v10150_v37, %v4961_v36  ;;  %v6685_v36 = vld [vmem:[%s10729_s9 + $0x8] sm:$0xff]  }
 0xd88   : > { %6578 = vmatpush3.bf16.msra.mxu1 %v6685_v36 }
 0xd89   : > { %v5036_v9 = vsel %vm984_vm0, %v10266_v62, 0.0 }
 0xd8a   : > { %5037 = vadd.xlane.f32.xlu1 %v5036_v9 }
 0xdb8   : > { %v4990_v49 = vpop.xlane.xlu1 %4989 }
 0xdb9   : > { %v5039_v46 = vmul.f32 0.03125, %v4990_v49 }
 0xdbb   : > { %v10275_v0 = vsub.f32 %v10155_v23, %v5039_v46 }
 0xdbc   : > { %v4993_v31 = vpop.xlane.xlu1 %4992 }
 0xdbd   : > { %v5040_v28 = vmul.f32 0.03125, %v4993_v31  ;;  %v5073_v37 = vmul.f32 %v10275_v0, %v10275_v0 }
 0xdbf   : > { %v10280_v25 = vsub.f32 %v10159_v43, %v5040_v28  ;;  %v5090_v11 = vsel %vm984_vm0, %v5073_v37, 0.0 }
 0xdc0   : > { %v4996_v17 = vpop.xlane.xlu1 %4995  ;;  %5091 = vadd.xlane.f32.xlu0 %v5090_v11 }
 0xdc1   : > { %v5041_v24 = vmul.f32 0.03125, %v4996_v17  ;;  %v5074_v7 = vmul.f32 %v10280_v25, %v10280_v25 }
 0xdc3   : > { %v10286_v55 = vsub.f32 %v10169_v13, %v5041_v24  ;;  %v5093_v27 = vsel %vm984_vm0, %v5074_v7, 0.0 }
 0xdc4   : > { %v4999_v10 = vpop.xlane.xlu1 %4998  ;;  %5094 = vadd.xlane.f32.xlu1 %v5093_v27 }
 0xdc5   : > { %v5042_v60 = vmul.f32 0.03125, %v4999_v10  ;;  %v5075_v41 = vmul.f32 %v10286_v55, %v10286_v55 }
 0xdc7   : > { %v10292_v19 = vsub.f32 %v10173_v61, %v5042_v60  ;;  %v5096_v38 = vsel %vm984_vm0, %v5075_v41, 0.0 }
 0xdc8   : > { %v5002_v58 = vpop.xlane.xlu1 %5001  ;;  %5097 = vadd.xlane.f32.xlu0 %v5096_v38 }
 0xdc9   : > { %v5043_v16 = vmul.f32 0.03125, %v5002_v58  ;;  %v5076_v40 = vmul.f32 %v10292_v19, %v10292_v19 }
 0xdca   : > { %v5005_v14 = vpop.xlane.xlu0 %5004 }
 0xdcb   : > { %v10298_v6 = vsub.f32 %v10183_v39, %v5043_v16  ;;  %v5044_v29 = vmul.f32 0.03125, %v5005_v14  ;;  %v5099_v42 = vsel %vm984_vm0, %v5076_v40, 0.0 }
 0xdcc   : > { %5100 = vadd.xlane.f32.xlu1 %v5099_v42 }
 0xdcd   : > { %v10302_v8 = vsub.f32 %v10187_v52, %v5044_v29  ;;  %v5077_v5 = vmul.f32 %v10298_v6, %v10298_v6 }
 0xdcf   : > { %v5102_v35 = vsel %vm984_vm0, %v5077_v5, 0.0  ;;  %v5078_v4 = vmul.f32 %v10302_v8, %v10302_v8 }
 0xdd0   : > { %5103 = vadd.xlane.f32.xlu0 %v5102_v35 }
 0xdd1   : > { %v5105_v1 = vsel %vm984_vm0, %v5078_v4, 0.0 }
 0xdd2   : > { %5106 = vadd.xlane.f32.xlu1 %v5105_v1 }
 0xdeb   : > { %v5008_v3 = vpop.xlane.xlu1 %5007 }
 0xdec   : > { %v5045_v44 = vmul.f32 0.03125, %v5008_v3 }
 0xded   : > { %v5011_v21 = vpop.xlane.xlu0 %5010 }
 0xdee   : > { %v10311_v47 = vsub.f32 %v10197_v48, %v5045_v44  ;;  %v5046_v34 = vmul.f32 0.03125, %v5011_v21 }
 0xdf0   : > { %v10314_v57 = vsub.f32 %v10201_v30, %v5046_v34  ;;  %v5079_v32 = vmul.f32 %v10311_v47, %v10311_v47 }
 0xdf2   : > { %v5108_v33 = vsel %vm984_vm0, %v5079_v32, 0.0  ;;  %v5080_v59 = vmul.f32 %v10314_v57, %v10314_v57 }
 0xdf3   : > { %v5014_v51 = vpop.xlane.xlu1 %5013  ;;  %5109 = vadd.xlane.f32.xlu0 %v5108_v33 }
 0xdf4   : > { %v5047_v15 = vmul.f32 0.03125, %v5014_v51  ;;  %v5111_v18 = vsel %vm984_vm0, %v5080_v59, 0.0 }
 0xdf5   : > { %5112 = vadd.xlane.f32.xlu1 %v5111_v18  ;;  %v5017_v50 = vpop.xlane.xlu0 %5016 }
 0xdf6   : > { %v10326_v9 = vsub.f32 %v10211_v20, %v5047_v15  ;;  %v5048_v56 = vmul.f32 0.03125, %v5017_v50 }
 0xdf8   : > { %v10329_v49 = vsub.f32 %v10215_v12, %v5048_v56  ;;  %v5081_v46 = vmul.f32 %v10326_v9, %v10326_v9 }
 0xdfa   : > { %v5114_v31 = vsel %vm984_vm0, %v5081_v46, 0.0  ;;  %v5082_v28 = vmul.f32 %v10329_v49, %v10329_v49 }
 0xdfb   : > { %5115 = vadd.xlane.f32.xlu0 %v5114_v31 }
 0xdfc   : > { %v5117_v37 = vsel %vm984_vm0, %v5082_v28, 0.0 }
 0xdfd   : > { %5118 = vadd.xlane.f32.xlu1 %v5117_v37 }
 0xdff   : > { %v5020_v11 = vpop.xlane.xlu1 %5019 }
 0xe00   : > { %v5049_v17 = vmul.f32 0.03125, %v5020_v11 }
 0xe01   : > { %v5023_v24 = vpop.xlane.xlu0 %5022 }
 0xe02   : > { %v10338_v7 = vsub.f32 %v10225_v53, %v5049_v17  ;;  %v5050_v27 = vmul.f32 0.03125, %v5023_v24 }
 0xe04   : > { %v10341_v10 = vsub.f32 %v10229_v45, %v5050_v27  ;;  %v5083_v60 = vmul.f32 %v10338_v7, %v10338_v7 }
 0xe06   : > { %v5120_v41 = vsel %vm984_vm0, %v5083_v60, 0.0  ;;  %v5084_v38 = vmul.f32 %v10341_v10, %v10341_v10 }
 0xe07   : > { %v5026_v58 = vpop.xlane.xlu1 %5025  ;;  %5121 = vadd.xlane.f32.xlu0 %v5120_v41  ;;  %v6686_v41 = vld [vmem:[%s10731_s11] sm:$0xff]  }
 0xe08   : > { %v5051_v16 = vmul.f32 0.03125, %v5026_v58  ;;  %v5123_v40 = vsel %vm984_vm0, %v5084_v38, 0.0  ;;  %6616 = vmatpush3.bf16.msra.mxu0 %v6686_v41 }
 0xe09   : > { %5124 = vadd.xlane.f32.xlu1 %v5123_v40  ;;  %v5029_v14 = vpop.xlane.xlu0 %5028  ;;  %6617 = vmatprep.subr.bf16.mxu0 %v11063_v54 }
 0xe0a   : > { %v10350_v29 = vsub.f32 %v10239_v26, %v5051_v16  ;;  %v5052_v42 = vmul.f32 0.03125, %v5029_v14 }
 0xe0c   : > { %v10353_v5 = vsub.f32 %v10243_v22, %v5052_v42  ;;  %v5085_v35 = vmul.f32 %v10350_v29, %v10350_v29 }
 0xe0e   : > { %v5126_v4 = vsel %vm984_vm0, %v5085_v35, 0.0  ;;  %v5086_v1 = vmul.f32 %v10353_v5, %v10353_v5 }
 0xe0f   : > { %v5032_v3 = vpop.xlane.xlu1 %5031  ;;  %5127 = vadd.xlane.f32.xlu0 %v5126_v4 }
 0xe10   : > { %v5053_v44 = vmul.f32 0.03125, %v5032_v3  ;;  %v5129_v21 = vsel %vm984_vm0, %v5086_v1, 0.0 }
 0xe11   : > { %5130 = vadd.xlane.f32.xlu1 %v5129_v21  ;;  %v5035_v34 = vpop.xlane.xlu0 %5034 }
 0xe12   : > { %v10362_v32 = vsub.f32 %v10253_v63, %v5053_v44  ;;  %v5054_v33 = vmul.f32 0.03125, %v5035_v34 }
 0xe14   : > { %v10365_v59 = vsub.f32 %v10257_v2, %v5054_v33  ;;  %v5087_v51 = vmul.f32 %v10362_v32, %v10362_v32 }
 0xe16   : > { %v5132_v15 = vsel %vm984_vm0, %v5087_v51, 0.0  ;;  %v5088_v18 = vmul.f32 %v10365_v59, %v10365_v59 }
 0xe17   : > { %5133 = vadd.xlane.f32.xlu0 %v5132_v15  ;;  %v5038_v36 = vpop.xlane.xlu1 %5037 }
 0xe18   : > { %v5055_v50 = vmul.f32 0.03125, %v5038_v36  ;;  %v5135_v56 = vsel %vm984_vm0, %v5088_v18, 0.0 }
 0xe19   : > { %5136 = vadd.xlane.f32.xlu1 %v5135_v56 }
 0xe1a   : > { %v10374_v46 = vsub.f32 %v10266_v62, %v5055_v50 }
 0xe1c   : > { %v5089_v31 = vmul.f32 %v10374_v46, %v10374_v46 }
 0xe1e   : > { %v5138_v28 = vsel %vm984_vm0, %v5089_v31, 0.0 }
 0xe1f   : > { %5139 = vadd.xlane.f32.xlu0 %v5138_v28 }
 0xe4d   : > { %v5092_v37 = vpop.xlane.xlu0 %5091 }
 0xe4e   : > { %v5141_v11 = vmul.f32 0.032258064, %v5092_v37 }
 0xe50   : > { %7166 = vrsqrt.f32 %v5141_v11  ;;  %vm5160_vm13 = vcmp.eq.f32.partialorder %v5141_v11, inf  ;;  %v5163_v14 = vand.u32 2147483648, %v5141_v11  ;;  %vm5162_vm14 = vcmp.eq.f32.partialorder %v5141_v11, 0.0 }
 0xe51   : > { %v5095_v17 = vpop.xlane.xlu1 %5094 }
 0xe52   : > { %v5142_v24 = vmul.f32 0.032258064, %v5095_v17 }
 0xe54   : > { %7168 = vrsqrt.f32 %v5142_v24  ;;  %vm5167_vm15 = vcmp.eq.f32.partialorder %v5142_v24, inf  ;;  %v5170_v33 = vand.u32 2147483648, %v5142_v24  ;;  %vm5169_vm8 = vcmp.eq.f32.partialorder %v5142_v24, 0.0 }
 0xe55   : > { %v5098_v27 = vpop.xlane.xlu0 %5097 }
 0xe56   : > { %v5143_v60 = vmul.f32 0.032258064, %v5098_v27 }
 0xe58   : > { %7170 = vrsqrt.f32 %v5143_v60  ;;  %vm5174_vm9 = vcmp.eq.f32.partialorder %v5143_v60, inf  ;;  %v5177_v31 = vand.u32 2147483648, %v5143_v60  ;;  %vm5176_vm12 = vcmp.eq.f32.partialorder %v5143_v60, 0.0 }
 0xe59   : > { %v5101_v38 = vpop.xlane.xlu1 %5100 }
 0xe5a   : > { %v7167_v58 = vpop.eup %7166  ;;  %v5144_v16 = vmul.f32 0.032258064, %v5101_v38 }
 0xe5b   : > { %v5159_v40 = vmul.f32 %v7167_v58, %v5141_v11 }
 0xe5c   : > { %7172 = vrsqrt.f32 %v5144_v16  ;;  %vm5181_vm3 = vcmp.eq.f32.partialorder %v5144_v16, inf  ;;  %v5184_v41 = vand.u32 2147483648, %v5144_v16  ;;  %vm5183_vm4 = vcmp.eq.f32.partialorder %v5144_v16, 0.0 }
 0xe5d   : > { %v5161_v42 = vsel %vm5160_vm13, %v5141_v11, %v5159_v40  ;;  %v5104_v35 = vpop.xlane.xlu0 %5103 }
 0xe5e   : > { %v7169_v4 = vpop.eup %7168  ;;  %v5164_v1 = vsel %vm5162_vm14, %v5163_v14, %v5161_v42  ;;  %v5145_v3 = vmul.f32 0.032258064, %v5104_v35 }
 0xe5f   : > { %v5277_v44 = vadd.f32 1e-05, %v5164_v1  ;;  %v5166_v21 = vmul.f32 %v7169_v4, %v5142_v24  ;;  %v5107_v34 = vpop.xlane.xlu1 %5106 }
 0xe60   : > { %7174 = vrsqrt.f32 %v5145_v3  ;;  %v5146_v15 = vmul.f32 0.032258064, %v5107_v34  ;;  %vm5188_vm6 = vcmp.eq.f32.partialorder %v5145_v3, inf  ;;  %v5191_v35 = vand.u32 2147483648, %v5145_v3 }
 0xe61   : > { %7176 = vrcp.f32 %v5277_v44  ;;  %v5168_v51 = vsel %vm5167_vm15, %v5142_v24, %v5166_v21  ;;  %vm5190_vm13 = vcmp.eq.f32.partialorder %v5145_v3, 0.0  ;;  %v10387_v44 = vld [vmem:[%s10727_s7] ss:$0 sm:$0xff] }
 0xe62   : > { %v7171_v18 = vpop.eup %7170  ;;  %v5171_v36 = vsel %vm5169_vm8, %v5170_v33, %v5168_v51  ;;  %7178 = vrsqrt.f32 %v5146_v15  ;;  %vm5195_vm14 = vcmp.eq.f32.partialorder %v5146_v15, inf  ;;  %v5198_v51 = vand.u32 2147483648, %v5146_v15 }
 0xe63   : > { %v5278_v50 = vadd.f32 1e-05, %v5171_v36  ;;  %v5173_v56 = vmul.f32 %v7171_v18, %v5143_v60  ;;  %vm5197_vm15 = vcmp.eq.f32.partialorder %v5146_v15, 0.0 }
 0xe65   : > { %7180 = vrcp.f32 %v5278_v50  ;;  %v5175_v28 = vsel %vm5174_vm9, %v5143_v60, %v5173_v56 }
 0xe66   : > { %v7173_v37 = vpop.eup %7172  ;;  %v5178_v11 = vsel %vm5176_vm12, %v5177_v31, %v5175_v28 }
 0xe67   : > { %v5279_v17 = vadd.f32 1e-05, %v5178_v11  ;;  %v5180_v27 = vmul.f32 %v7173_v37, %v5144_v16 }
 0xe69   : > { %7182 = vrcp.f32 %v5279_v17  ;;  %v5182_v38 = vsel %vm5181_vm3, %v5144_v16, %v5180_v27 }
 0xe6a   : > { %v7175_v24 = vpop.eup %7174  ;;  %v5185_v58 = vsel %vm5183_vm4, %v5184_v41, %v5182_v38 }
 0xe6b   : > { %v7177_v40 = vpop.eup %7176  ;;  %v5280_v14 = vadd.f32 1e-05, %v5185_v58  ;;  %v5187_v42 = vmul.f32 %v7175_v24, %v5145_v3 }
 0xe6c   : > { %v5311_v4 = vmul.f32 %v7177_v40, %v10275_v0  ;;  %v7179_v1 = vpop.eup %7178 }
 0xe6d   : > { %7184 = vrcp.f32 %v5280_v14  ;;  %v5189_v60 = vsel %vm5188_vm6, %v5145_v3, %v5187_v42  ;;  %v5194_v16 = vmul.f32 %v7179_v1, %v5146_v15  ;;  %v10394_v3 = vld [vmem:[%s10728_s8] ss:$0 sm:$0xff] }
 0xe6e   : > { %v5192_v21 = vsel %vm5190_vm13, %v5191_v35, %v5189_v60  ;;  %v5334_v0 = vmul.f32 %v10387_v44, %v5311_v4 }
 0xe6f   : > { %v7181_v34 = vpop.eup %7180  ;;  %v5281_v33 = vadd.f32 1e-05, %v5192_v21  ;;  %v5196_v18 = vsel %vm5195_vm14, %v5146_v15, %v5194_v16 }
 0xe70   : > { %v5312_v36 = vmul.f32 %v7181_v34, %v10280_v25  ;;  %v5199_v50 = vsel %vm5197_vm15, %v5198_v51, %v5196_v18  ;;  %v5357_v37 = vadd.f32 %v10394_v3, %v5334_v0 }
 0xe71   : > { %7186 = vrcp.f32 %v5281_v33  ;;  %v5282_v56 = vadd.f32 1e-05, %v5199_v50 }
 0xe72   : > { %v5335_v31 = vmul.f32 %v10387_v44, %v5312_v36 }
 0xe73   : > { %v7183_v28 = vpop.eup %7182  ;;  %7188 = vrcp.f32 %v5282_v56 }
 0xe74   : > { %v5358_v15 = vadd.f32 %v10394_v3, %v5335_v31  ;;  %v5313_v25 = vmul.f32 %v7183_v28, %v10286_v55 }
 0xe76   : > { %v5391_v11 = vpack.c.bf16 %v5358_v15, %v5357_v37  ;;  %v5336_v17 = vmul.f32 %v10387_v44, %v5313_v25 }
 0xe77   : > { %v7185_v27 = vpop.eup %7184 }
 0xe78   : > { %6580 = vmatmul.mubr.msk.bf16.vlgmr.msra.gmra.mrb[216].mxu1 %vm984_vm0, %v5391_v11  ;;  %v5314_v41 = vmul.f32 %v7185_v27, %v10292_v19  ;;  %v5359_v38 = vadd.f32 %v10394_v3, %v5336_v17 }
 0xe79   : > { %6583 = vmatprep.mubr.msk.bf16.mxu1 %vm7329_vm1, %v11063_v54 }
 0xe7a   : > { %v5337_v24 = vmul.f32 %v10387_v44, %v5314_v41  ;;  %v5376_v42 = vsel %vm899_vm10, %v10169_v13, %v5359_v38 }
 0xe7b   : > { %v7187_v58 = vpop.eup %7186 }
 0xe7c   : > { %v5360_v40 = vadd.f32 %v10394_v3, %v5337_v24  ;;  %v5315_v55 = vmul.f32 %v7187_v58, %v10298_v6 }
 0xe7d   : > { %v7189_v35 = vpop.eup %7188 }
 0xe7e   : > { %v5392_v4 = vpack.c.bf16 %v5360_v40, %v5376_v42  ;;  %v5338_v19 = vmul.f32 %v10387_v44, %v5315_v55  ;;  %v5316_v1 = vmul.f32 %v7189_v35, %v10302_v8 }
 0xe80   : > { %6584 = vmatmul.mubr.msk.bf16.gmra.mrb[220].mxu1 %vm984_vm0, %v5392_v4  ;;  %v5110_v60 = vpop.xlane.xlu0 %5109  ;;  %v5361_v21 = vadd.f32 %v10394_v3, %v5338_v19  ;;  %v5339_v6 = vmul.f32 %v10387_v44, %v5316_v1 }
 0xe81   : > { %v5147_v16 = vmul.f32 0.032258064, %v5110_v60  ;;  %6587 = vmatprep.mubr.msk.bf16.mxu1 %vm7329_vm1, %v11063_v54 }
 0xe82   : > { %v5113_v34 = vpop.xlane.xlu1 %5112  ;;  %v5362_v51 = vadd.f32 %v10394_v3, %v5339_v6  ;;  %v5378_v8 = vsel %vm901_vm2, %v10183_v39, %v5361_v21 }
 0xe83   : > { %7190 = vrsqrt.f32 %v5147_v16  ;;  %v5148_v33 = vmul.f32 0.032258064, %v5113_v34  ;;  %vm5202_vm10 = vcmp.eq.f32.partialorder %v5147_v16, inf  ;;  %v5205_v15 = vand.u32 2147483648, %v5147_v16 }
 0xe84   : > { %v5393_v36 = vpack.c.bf16 %v5362_v51, %v5378_v8  ;;  %vm5204_vm2 = vcmp.eq.f32.partialorder %v5147_v16, 0.0 }
 0xe85   : > { %7192 = vrsqrt.f32 %v5148_v33  ;;  %vm5209_vm8 = vcmp.eq.f32.partialorder %v5148_v33, inf  ;;  %v5212_v38 = vand.u32 2147483648, %v5148_v33  ;;  %vm5211_vm9 = vcmp.eq.f32.partialorder %v5148_v33, 0.0 }
 0xe88   : > { %v5116_v0 = vpop.xlane.xlu0 %5115  ;;  %6588 = vmatmul.mubr.msk.bf16.gmra.mrb[224].mxu1 %vm984_vm0, %v5393_v36 }
 0xe89   : > { %v5149_v50 = vmul.f32 0.032258064, %v5116_v0  ;;  %6591 = vmatprep.mubr.msk.bf16.mxu1 %vm7329_vm1, %v11063_v54 }
 0xe8a   : > { %v5119_v56 = vpop.xlane.xlu1 %5118 }
 0xe8b   : > { %7194 = vrsqrt.f32 %v5149_v50  ;;  %v5150_v31 = vmul.f32 0.032258064, %v5119_v56  ;;  %vm5216_vm12 = vcmp.eq.f32.partialorder %v5149_v50, inf  ;;  %v5219_v19 = vand.u32 2147483648, %v5149_v50 }
 0xe8c   : > { %vm5218_vm3 = vcmp.eq.f32.partialorder %v5149_v50, 0.0 }
 0xe8d   : > { %v7191_v28 = vpop.eup %7190  ;;  %7196 = vrsqrt.f32 %v5150_v31  ;;  %vm5223_vm4 = vcmp.eq.f32.partialorder %v5150_v31, inf  ;;  %vm5225_vm6 = vcmp.eq.f32.partialorder %v5150_v31, 0.0 }
 0xe8e   : > { %v5201_v37 = vmul.f32 %v7191_v28, %v5147_v16 }
 0xe8f   : > { %v7193_v25 = vpop.eup %7192 }
 0xe90   : > { %v5203_v11 = vsel %vm5202_vm10, %v5147_v16, %v5201_v37  ;;  %v5208_v27 = vmul.f32 %v7193_v25, %v5148_v33 }
 0xe91   : > { %v5206_v17 = vsel %vm5204_vm2, %v5205_v15, %v5203_v11 }
 0xe92   : > { %v5283_v41 = vadd.f32 1e-05, %v5206_v17  ;;  %v5210_v24 = vsel %vm5209_vm8, %v5148_v33, %v5208_v27  ;;  %v5226_v33 = vand.u32 2147483648, %v5150_v31 }
 0xe93   : > { %v5213_v58 = vsel %vm5211_vm9, %v5212_v38, %v5210_v24 }
 0xe94   : > { %7198 = vrcp.f32 %v5283_v41  ;;  %v5122_v40 = vpop.xlane.xlu0 %5121  ;;  %v5284_v14 = vadd.f32 1e-05, %v5213_v58 }
 0xe95   : > { %v7195_v55 = vpop.eup %7194  ;;  %v5151_v42 = vmul.f32 0.032258064, %v5122_v40 }
 0xe96   : > { %v5215_v35 = vmul.f32 %v7195_v55, %v5149_v50  ;;  %v5125_v4 = vpop.xlane.xlu1 %5124  ;;  %7200 = vrcp.f32 %v5284_v14 }
 0xe97   : > { %v7197_v1 = vpop.eup %7196  ;;  %7202 = vrsqrt.f32 %v5151_v42  ;;  %v5152_v21 = vmul.f32 0.032258064, %v5125_v4  ;;  %vm5230_vm13 = vcmp.eq.f32.partialorder %v5151_v42, inf  ;;  %vm5232_vm14 = vcmp.eq.f32.partialorder %v5151_v42, 0.0 }
 0xe98   : > { %v5217_v60 = vsel %vm5216_vm12, %v5149_v50, %v5215_v35  ;;  %v5222_v6 = vmul.f32 %v7197_v1, %v5150_v31  ;;  %v5233_v41 = vand.u32 2147483648, %v5151_v42 }
 0xe99   : > { %v5220_v16 = vsel %vm5218_vm3, %v5219_v19, %v5217_v60  ;;  %7204 = vrsqrt.f32 %v5152_v21  ;;  %vm5237_vm15 = vcmp.eq.f32.partialorder %v5152_v21, inf  ;;  %v5240_v14 = vand.u32 2147483648, %v5152_v21 }
 0xe9a   : > { %v5285_v34 = vadd.f32 1e-05, %v5220_v16  ;;  %v5224_v51 = vsel %vm5223_vm4, %v5150_v31, %v5222_v6  ;;  %vm5239_vm10 = vcmp.eq.f32.partialorder %v5152_v21, 0.0 }
 0xe9b   : > { %v5227_v18 = vsel %vm5225_vm6, %v5226_v33, %v5224_v51 }
 0xe9c   : > { %v5128_v8 = vpop.xlane.xlu0 %5127  ;;  %v5286_v36 = vadd.f32 1e-05, %v5227_v18  ;;  %7206 = vrcp.f32 %v5285_v34 }
 0xe9d   : > { %v5153_v0 = vmul.f32 0.032258064, %v5128_v8 }
 0xe9e   : > { %v7199_v56 = vpop.eup %7198  ;;  %v5131_v28 = vpop.xlane.xlu1 %5130  ;;  %7208 = vrcp.f32 %v5286_v36 }
 0xe9f   : > { %7210 = vrsqrt.f32 %v5153_v0  ;;  %v5154_v50 = vmul.f32 0.032258064, %v5131_v28  ;;  %v5317_v37 = vmul.f32 %v7199_v56, %v10311_v47  ;;  %vm5244_vm2 = vcmp.eq.f32.partialorder %v5153_v0, inf }
 0xea0   : > { %v7201_v15 = vpop.eup %7200  ;;  %vm5246_vm8 = vcmp.eq.f32.partialorder %v5153_v0, 0.0  ;;  %v5247_v28 = vand.u32 2147483648, %v5153_v0 }
 0xea1   : > { %v7203_v25 = vpop.eup %7202  ;;  %7212 = vrsqrt.f32 %v5154_v50  ;;  %v5318_v17 = vmul.f32 %v7201_v15, %v10314_v57  ;;  %v5340_v31 = vmul.f32 %v10387_v44, %v5317_v37  ;;  %vm5253_vm9 = vcmp.eq.f32.partialorder %v5154_v50, 0.0 }
 0xea2   : > { %v5229_v11 = vmul.f32 %v7203_v25, %v5151_v42 }
 0xea3   : > { %v7205_v27 = vpop.eup %7204  ;;  %v5341_v55 = vmul.f32 %v10387_v44, %v5318_v17  ;;  %v5363_v4 = vadd.f32 %v10394_v3, %v5340_v31 }
 0xea4   : > { %v5134_v38 = vpop.xlane.xlu0 %5133  ;;  %v5231_v24 = vsel %vm5230_vm13, %v5151_v42, %v5229_v11  ;;  %v5236_v58 = vmul.f32 %v7205_v27, %v5152_v21 }
 0xea5   : > { %v10429_v40 = vmul.f32 0.032258064, %v5134_v38  ;;  %v5234_v47 = vsel %vm5232_vm14, %v5233_v41, %v5231_v24  ;;  %v5364_v34 = vadd.f32 %v10394_v3, %v5341_v55  ;;  %v5380_v51 = vsel %vm903_vm11, %v10197_v48, %v5363_v4 }
 0xea6   : > { %v5137_v35 = vpop.xlane.xlu1 %5136  ;;  %v5287_v57 = vadd.f32 1e-05, %v5234_v47  ;;  %v5238_v19 = vsel %vm5237_vm15, %v5152_v21, %v5236_v58  ;;  %v7207_v1 = vpop.eup %7206  ;;  %vm5251_vm11 = vcmp.eq.f32.partialorder %v5154_v50, inf  ;;  %v5254_v41 = vand.u32 2147483648, %v5154_v50 }
 0xea7   : > { %7214 = vrsqrt.f32 %v10429_v40  ;;  %v5241_v60 = vsel %vm5239_vm10, %v5240_v14, %v5238_v19  ;;  %v10434_v16 = vmul.f32 0.032258064, %v5137_v35  ;;  %v5394_v8 = vpack.c.bf16 %v5364_v34, %v5380_v51 }
 0xea8   : > { %v7209_v42 = vpop.eup %7208  ;;  %7216 = vrcp.f32 %v5287_v57  ;;  %v5288_v6 = vadd.f32 1e-05, %v5241_v60  ;;  %v5319_v36 = vmul.f32 %v7207_v1, %v10326_v9  ;;  %vm5258_vm12 = vcmp.eq.f32.partialorder %v10429_v40, inf }
 0xea9   : > { %v7211_v18 = vpop.eup %7210  ;;  %7218 = vrsqrt.f32 %v10434_v16  ;;  %v5320_v15 = vmul.f32 %v7209_v42, %v10329_v49  ;;  %6592 = vmatmul.mubr.msk.bf16.gmra.mrb[228].mxu1 %vm984_vm0, %v5394_v8  ;;  %vm5260_vm3 = vcmp.eq.f32.partialorder %v10429_v40, 0.0  ;;  %vm5267_vm4 = vcmp.eq.f32.partialorder %v10434_v16, 0.0 }
 0xeaa   : > { %7220 = vrcp.f32 %v5288_v6  ;;  %v5243_v21 = vmul.f32 %v7211_v18, %v5153_v0  ;;  %v5342_v31 = vmul.f32 %v10387_v44, %v5319_v36  ;;  %6595 = vmatprep.mubr.msk.bf16.mxu1 %vm7329_vm1, %v11063_v54  ;;  %v5268_v18 = vand.u32 2147483648, %v10434_v16 }
 0xeab   : > { %v7213_v56 = vpop.eup %7212  ;;  %v5343_v9 = vmul.f32 %v10387_v44, %v5320_v15  ;;  %vm5755_vm10 = vcmask 523264  }
 0xeac   : > { %v5140_v37 = vpop.xlane.xlu0 %5139  ;;  %v5245_v25 = vsel %vm5244_vm2, %v5153_v0, %v5243_v21  ;;  %v5250_v11 = vmul.f32 %v7213_v56, %v5154_v50  ;;  %v5365_v0 = vadd.f32 %v10394_v3, %v5342_v31 }
 0xead   : > { %v5157_v17 = vmul.f32 0.032258064, %v5140_v37  ;;  %v5248_v27 = vsel %vm5246_vm8, %v5247_v28, %v5245_v25  ;;  %v5366_v47 = vadd.f32 %v10394_v3, %v5343_v9 }
 0xeae   : > { %v5289_v38 = vadd.f32 1e-05, %v5248_v27  ;;  %v5252_v24 = vsel %vm5251_vm11, %v5154_v50, %v5250_v11  ;;  %v5382_v4 = vsel %vm905_vm5, %v10211_v20, %v5365_v0  ;;  %v5261_v50 = vand.u32 2147483648, %v10429_v40 }
 0xeaf   : > { %7222 = vrsqrt.f32 %v5157_v17  ;;  %v5255_v49 = vsel %vm5253_vm9, %v5254_v41, %v5252_v24  ;;  %v5395_v19 = vpack.c.bf16 %v5366_v47, %v5382_v4  ;;  %vm5265_vm5 = vcmp.eq.f32.partialorder %v10434_v16, inf }
 0xeb0   : > { %7224 = vrcp.f32 %v5289_v38  ;;  %v5290_v55 = vadd.f32 1e-05, %v5255_v49  ;;  %vm5272_vm6 = vcmp.eq.f32.partialorder %v5157_v17, inf  ;;  %v5275_v27 = vand.u32 2147483648, %v5157_v17 }
 0xeb1   : > { %v7215_v58 = vpop.eup %7214  ;;  %6596 = vmatmul.mubr.msk.bf16.gmra.mrb[232].mxu1 %vm984_vm0, %v5395_v19  ;;  %vm5274_vm13 = vcmp.eq.f32.partialorder %v5157_v17, 0.0 }
 0xeb2   : > { %v5257_v14 = vmul.f32 %v7215_v58, %v10429_v40  ;;  %v7217_v57 = vpop.eup %7216  ;;  %7226 = vrcp.f32 %v5290_v55  ;;  %6599 = vmatprep.mubr.msk.bf16.mxu1 %vm7329_vm1, %v11063_v54 }
 0xeb3   : > { %v7219_v1 = vpop.eup %7218  ;;  %v5321_v42 = vmul.f32 %v7217_v57, %v10338_v7 }
 0xeb4   : > { %v5259_v60 = vsel %vm5258_vm12, %v10429_v40, %v5257_v14  ;;  %v7221_v6 = vpop.eup %7220  ;;  %v5264_v33 = vmul.f32 %v7219_v1, %v10434_v16  ;;  %v11121_v14 = vld [vmem:[#allocation7_spill] sm:$0xff] }
 0xeb5   : > { %v5262_v34 = vsel %vm5260_vm3, %v5261_v50, %v5259_v60  ;;  %v5322_v21 = vmul.f32 %v7221_v6, %v10341_v10  ;;  %v5344_v40 = vmul.f32 %v10387_v44, %v5321_v42  ;;  %v11123_v42 = vld [vmem:[#allocation8_spill] sm:$0xff] }
 0xeb6   : > { %v5291_v51 = vadd.f32 1e-05, %v5262_v34  ;;  %v5266_v7 = vsel %vm5265_vm5, %v10434_v16, %v5264_v33  ;;  %vm11124_vm14 = vcmp.eq.s32.totalorder %v11123_v42, 16 }
 0xeb7   : > { %v5269_v8 = vsel %vm5267_vm4, %v5268_v18, %v5266_v7  ;;  %v5345_v36 = vmul.f32 %v10387_v44, %v5322_v21  ;;  %v5367_v56 = vadd.f32 %v10394_v3, %v5344_v40  ;;  %v11125_v21 = vld [vmem:[#allocation9_spill] sm:$0xff] }
 0xeb8   : > { %7228 = vrcp.f32 %v5291_v51  ;;  %v5292_v37 = vadd.f32 1e-05, %v5269_v8  ;;  %vm11126_vm15 = vcmp.eq.s32.totalorder %v11125_v21, 16  ;;  %v10523_v8 = vld [vmem:[%s10730_s10] ss:$0 sm:$0xff] }
 0xeb9   : > { %v7223_v28 = vpop.eup %7222  ;;  %v5368_v25 = vadd.f32 %v10394_v3, %v5345_v36  ;;  %v5384_v10 = vsel %vm907_vm7, %v10225_v53, %v5367_v56  ;;  %vm11122_vm7 = vcmp.eq.s32.totalorder %v11121_v14, 16 }
 0xeba   : > { %v5271_v15 = vmul.f32 %v7223_v28, %v5157_v17  ;;  %v7225_v31 = vpop.eup %7224  ;;  %7230 = vrcp.f32 %v5292_v37 }
 0xebb   : > { %v5396_v41 = vpack.c.bf16 %v5368_v25, %v5384_v10  ;;  %v5323_v9 = vmul.f32 %v7225_v31, %v10350_v29 }
 0xebc   : > { %v5273_v16 = vsel %vm5272_vm6, %v5157_v17, %v5271_v15  ;;  %v7227_v38 = vpop.eup %7226 }
 0xebd   : > { %v5276_v24 = vsel %vm5274_vm13, %v5275_v27, %v5273_v16  ;;  %6600 = vmatmul.mubr.msk.bf16.gmra.mrb[236].mxu1 %vm984_vm0, %v5396_v41  ;;  %v5324_v0 = vmul.f32 %v7227_v38, %v10353_v5  ;;  %v5346_v58 = vmul.f32 %v10387_v44, %v5323_v9 }
 0xebe   : > { %v5293_v49 = vadd.f32 1e-05, %v5276_v24  ;;  %6603 = vmatprep.mubr.msk.bf16.mxu1 %vm7329_vm1, %v11063_v54 }
 0xebf   : > { %v5347_v55 = vmul.f32 %v10387_v44, %v5324_v0  ;;  %v5369_v17 = vadd.f32 %v10394_v3, %v5346_v58 }
 0xec0   : > { %7232 = vrcp.f32 %v5293_v49 }
 0xec1   : > { %v5370_v29 = vadd.f32 %v10394_v3, %v5347_v55  ;;  %v5386_v35 = vsel %vm11122_vm7, %v10239_v26, %v5369_v17 }
 0xec2   : > { %v7229_v47 = vpop.eup %7228 }
 0xec3   : > { %v5325_v4 = vmul.f32 %v7229_v47, %v10362_v32  ;;  %v5397_v5 = vpack.c.bf16 %v5370_v29, %v5386_v35 }
 0xec4   : > { %v7231_v57 = vpop.eup %7230 }
 0xec5   : > { %v5348_v50 = vmul.f32 %v10387_v44, %v5325_v4  ;;  %6604 = vmatmul.mubr.msk.bf16.gmra.mrb[240].mxu1 %vm984_vm0, %v5397_v5  ;;  %v5326_v19 = vmul.f32 %v7231_v57, %v10365_v59 }
 0xec6   : > { %6607 = vmatprep.mubr.msk.bf16.mxu1 %vm7329_vm1, %v11063_v54 }
 0xec7   : > { %v5371_v1 = vadd.f32 %v10394_v3, %v5348_v50  ;;  %v5349_v60 = vmul.f32 %v10387_v44, %v5326_v19 }
 0xec9   : > { %v5388_v6 = vsel %vm11124_vm14, %v10253_v63, %v5371_v1  ;;  %v5372_v34 = vadd.f32 %v10394_v3, %v5349_v60 }
 0xeca   : > { %v7233_v32 = vpop.eup %7232 }
 0xecb   : > { %v5327_v33 = vmul.f32 %v7233_v32, %v10374_v46  ;;  %v5398_v51 = vpack.c.bf16 %v5372_v34, %v5388_v6  ;;  %v6687_v46 = vld [vmem:[%s10731_s11 + $0x8] sm:$0xff]  }
 0xecc   : > { %6618 = vmatpush3.bf16.msra.mxu0 %v6687_v46 }
 0xecd   : > { %v5350_v18 = vmul.f32 %v10387_v44, %v5327_v33  ;;  %6608 = vmatmul.mubr.msk.bf16.gmra.mrb[244].mxu1 %vm984_vm0, %v5398_v51  ;;  %6619 = vmatprep.subr.bf16.mxu0 %v11063_v54  ;;  %v6688_v44 = vld [vmem:[%s10731_s11 + $0x10] sm:$0xff]  }
 0xece   : > { %6611 = vmatprep.mubr.msk.bf16.mxu1 %vm7329_vm1, %v11063_v54 }
 0xecf   : > { %v5373_v59 = vadd.f32 %v10394_v3, %v5350_v18  ;;  %v6689_v3 = vld [vmem:[%s10731_s11 + $0x18] sm:$0xff]  }
 0xed0   : > { %6620 = vmatpush3.bf16.msra.mxu0 %v6688_v44 }
 0xed1   : > { %v5390_v40 = vsel %vm11126_vm15, %v10266_v62, %v5373_v59  ;;  %6621 = vmatprep.subr.bf16.mxu0 %v11063_v54 }
 0xed2   : > { %v5399_v7 = vpack.c.bf16 %v5390_v40, %v5390_v40 }
 0xed4   : > { %6622 = vmatpush3.bf16.msra.mxu0 %v6689_v3 }
 0xed5   : > { %6612 = vmatmul.mubr.msk.bf16.gmra.mrb[248].mxu1 %vm984_vm0, %v5399_v7 }
 0xf4b   : > { %v5484_v36 = vpop.f32.mrb[216].mxu1 }
 0xf4c   : > { %v5485_v56 = vadd.f32 %v10523_v8, %v5484_v36  ;;  %v6581_v28 = vpop.f32.mrb[217].mxu1 }
 0xf4d   : > { %v5487_v37 = vpop.f32.mrb[218].mxu1 }
 0xf4e   : > { %v5571_v15 = vmul.f32 %v5485_v56, %v5485_v56  ;;  %v5488_v25 = vadd.f32 %v10523_v8, %v5487_v37  ;;  %v6582_v11 = vpop.f32.mrb[219].mxu1  ;;  %v5554_v28 = vmul.f32 0.5, %v5485_v56 }
 0xf50   : > { %v5588_v10 = vmul.f32 %v5571_v15, %v5485_v56  ;;  %v5572_v31 = vmul.f32 %v5488_v25, %v5488_v25  ;;  %v5555_v37 = vmul.f32 0.5, %v5488_v25 }
 0xf52   : > { %v5605_v27 = vmul.f32 0.044715, %v5588_v10  ;;  %v5589_v16 = vmul.f32 %v5572_v31, %v5488_v25 }
 0xf53   : > { %v5492_v41 = vpop.f32.mrb[220].mxu1 }
 0xf54   : > { %v5622_v9 = vadd.f32 %v5605_v27, %v5485_v56  ;;  %v5606_v38 = vmul.f32 0.044715, %v5589_v16  ;;  %v5493_v24 = vadd.f32 %v10523_v8, %v5492_v41  ;;  %v6585_v49 = vpop.f32.mrb[221].mxu1 }
 0xf55   : > { %v5495_v0 = vpop.f32.mrb[222].mxu1 }
 0xf56   : > { %v5639_v58 = vmul.f32 0.7978846, %v5622_v9  ;;  %v5623_v55 = vadd.f32 %v5606_v38, %v5488_v25  ;;  %v5573_v17 = vmul.f32 %v5493_v24, %v5493_v24  ;;  %v6586_v47 = vpop.f32.mrb[223].mxu1  ;;  %v5496_v29 = vadd.f32 %v10523_v8, %v5495_v0 }
 0xf57   : > { %v5556_v25 = vmul.f32 0.5, %v5493_v24 }
 0xf58   : > { %7234 = vtanh.f32 %v5639_v58  ;;  %v5640_v14 = vmul.f32 0.7978846, %v5623_v55  ;;  %v5590_v35 = vmul.f32 %v5573_v17, %v5493_v24  ;;  %v5574_v4 = vmul.f32 %v5496_v29, %v5496_v29 }
 0xf59   : > { %v5557_v58 = vmul.f32 0.5, %v5496_v29 }
 0xf5a   : > { %7236 = vtanh.f32 %v5640_v14  ;;  %v5607_v5 = vmul.f32 0.044715, %v5590_v35  ;;  %v5591_v57 = vmul.f32 %v5574_v4, %v5496_v29 }
 0xf5b   : > { %v5500_v19 = vpop.f32.mrb[224].mxu1 }
 0xf5c   : > { %v5624_v50 = vadd.f32 %v5607_v5, %v5493_v24  ;;  %v5608_v1 = vmul.f32 0.044715, %v5591_v57  ;;  %v5501_v60 = vadd.f32 %v10523_v8, %v5500_v19  ;;  %v6589_v42 = vpop.f32.mrb[225].mxu1 }
 0xf5d   : > { %v5503_v32 = vpop.f32.mrb[226].mxu1 }
 0xf5e   : > { %v5641_v6 = vmul.f32 0.7978846, %v5624_v50  ;;  %v5625_v34 = vadd.f32 %v5608_v1, %v5496_v29  ;;  %v5575_v33 = vmul.f32 %v5501_v60, %v5501_v60  ;;  %v5504_v51 = vadd.f32 %v10523_v8, %v5503_v32  ;;  %v6590_v18 = vpop.f32.mrb[227].mxu1 }
 0xf5f   : > { %v5558_v57 = vmul.f32 0.5, %v5501_v60 }
 0xf60   : > { %7238 = vtanh.f32 %v5641_v6  ;;  %v5642_v59 = vmul.f32 0.7978846, %v5625_v34  ;;  %v5592_v21 = vmul.f32 %v5575_v33, %v5501_v60  ;;  %v5576_v40 = vmul.f32 %v5504_v51, %v5504_v51 }
 0xf61   : > { %v5559_v50 = vmul.f32 0.5, %v5504_v51 }
 0xf62   : > { %v7235_v7 = vpop.eup %7234  ;;  %7240 = vtanh.f32 %v5642_v59  ;;  %v5609_v44 = vmul.f32 0.044715, %v5592_v21  ;;  %v5593_v3 = vmul.f32 %v5576_v40, %v5504_v51 }
 0xf63   : > { %v5673_v46 = vadd.f32 1.0, %v7235_v7 }
 0xf64   : > { %v7237_v36 = vpop.eup %7236  ;;  %v5626_v11 = vadd.f32 %v5609_v44, %v5501_v60  ;;  %v5610_v10 = vmul.f32 0.044715, %v5593_v3 }
 0xf65   : > { %v5674_v15 = vadd.f32 1.0, %v7237_v36  ;;  %v5690_v31 = vmul.f32 %v5673_v46, %v5554_v28 }
 0xf66   : > { %v5643_v16 = vmul.f32 0.7978846, %v5626_v11  ;;  %v5627_v41 = vadd.f32 %v5610_v10, %v5504_v51 }
 0xf67   : > { %v5691_v27 = vmul.f32 %v5674_v15, %v5555_v37 }
 0xf68   : > { %7242 = vtanh.f32 %v5643_v16  ;;  %v5644_v38 = vmul.f32 0.7978846, %v5627_v41 }
 0xf69   : > { %v5707_v9 = vpack.c.bf16 %v5691_v27, %v5690_v31 }
 0xf6a   : > { %v7239_v49 = vpop.eup %7238  ;;  %7244 = vtanh.f32 %v5644_v38 }
 0xf6b   : > { %6624 = vmatmul.mubr.msk.bf16.vlgmr.msra.gmra.mrb[252].mxu0 %vm5755_vm10, %v5707_v9  ;;  %v5675_v0 = vadd.f32 1.0, %v7239_v49 }
 0xf6c   : > { %6627 = vmatprep.mubr.msk.bf16.mxu0 %vm7329_vm1, %v11063_v54  ;;  %v7241_v56 = vpop.eup %7240 }
 0xf6d   : > { %v5676_v55 = vadd.f32 1.0, %v7241_v56  ;;  %v5692_v17 = vmul.f32 %v5675_v0, %v5556_v25 }
 0xf6f   : > { %v5693_v47 = vmul.f32 %v5676_v55, %v5557_v58 }
 0xf71   : > { %v5708_v14 = vpack.c.bf16 %v5693_v47, %v5692_v17 }
 0xf72   : > { %v7243_v35 = vpop.eup %7242 }
 0xf73   : > { %v5677_v4 = vadd.f32 1.0, %v7243_v35  ;;  %6628 = vmatmul.mubr.msk.bf16.gmra.mrb[0].mxu0 %vm5755_vm10, %v5708_v14 }
 0xf74   : > { %v7245_v5 = vpop.eup %7244  ;;  %6631 = vmatprep.mubr.msk.bf16.mxu0 %vm7329_vm1, %v11063_v54 }
 0xf75   : > { %v5678_v19 = vadd.f32 1.0, %v7245_v5  ;;  %v5694_v1 = vmul.f32 %v5677_v4, %v5558_v57 }
 0xf77   : > { %v5695_v42 = vmul.f32 %v5678_v19, %v5559_v50 }
 0xf79   : > { %v5709_v6 = vpack.c.bf16 %v5695_v42, %v5694_v1 }
 0xf7b   : > { %6632 = vmatmul.mubr.msk.bf16.gmra.mrb[4].mxu0 %vm5755_vm10, %v5709_v6 }
 0xf7c   : > { %6635 = vmatprep.mubr.msk.bf16.mxu0 %vm7329_vm1, %v11063_v54  ;;  %v5508_v24 = vpop.f32.mrb[228].mxu1 }
 0xf7d   : > { %v5509_v29 = vadd.f32 %v10523_v8, %v5508_v24  ;;  %v6593_v32 = vpop.f32.mrb[229].mxu1 }
 0xf7e   : > { %v5511_v34 = vpop.f32.mrb[230].mxu1 }
 0xf7f   : > { %v5577_v33 = vmul.f32 %v5509_v29, %v5509_v29  ;;  %v5512_v18 = vadd.f32 %v10523_v8, %v5511_v34  ;;  %v6594_v59 = vpop.f32.mrb[231].mxu1  ;;  %v5560_v32 = vmul.f32 0.5, %v5509_v29 }
 0xf81   : > { %v5594_v60 = vmul.f32 %v5577_v33, %v5509_v29  ;;  %v5578_v51 = vmul.f32 %v5512_v18, %v5512_v18  ;;  %v5561_v33 = vmul.f32 0.5, %v5512_v18 }
 0xf83   : > { %v5611_v21 = vmul.f32 0.044715, %v5594_v60  ;;  %v5595_v40 = vmul.f32 %v5578_v51, %v5512_v18 }
 0xf84   : > { %v5516_v7 = vpop.f32.mrb[232].mxu1 }
 0xf85   : > { %v5628_v46 = vadd.f32 %v5611_v21, %v5509_v29  ;;  %v5612_v44 = vmul.f32 0.044715, %v5595_v40  ;;  %v10543_v3 = vadd.f32 %v10523_v8, %v5516_v7  ;;  %v6597_v36 = vpop.f32.mrb[233].mxu1 }
 0xf86   : > { %v5519_v28 = vpop.f32.mrb[234].mxu1 }
 0xf87   : > { %v5645_v37 = vmul.f32 0.7978846, %v5628_v46  ;;  %v5629_v15 = vadd.f32 %v5612_v44, %v5512_v18  ;;  %v5579_v11 = vmul.f32 %v10543_v3, %v10543_v3  ;;  %v6598_v10 = vpop.f32.mrb[235].mxu1  ;;  %v5520_v31 = vadd.f32 %v10523_v8, %v5519_v28 }
 0xf89   : > { %7246 = vtanh.f32 %v5645_v37  ;;  %v5646_v27 = vmul.f32 0.7978846, %v5629_v15  ;;  %v5596_v16 = vmul.f32 %v5579_v11, %v10543_v3  ;;  %v5580_v41 = vmul.f32 %v5520_v31, %v5520_v31 }
 0xf8b   : > { %7248 = vtanh.f32 %v5646_v27  ;;  %v5613_v9 = vmul.f32 0.044715, %v5596_v16  ;;  %v5597_v38 = vmul.f32 %v5580_v41, %v5520_v31 }
 0xf8d   : > { %v5630_v49 = vadd.f32 %v5613_v9, %v10543_v3  ;;  %v5614_v56 = vmul.f32 0.044715, %v5597_v38 }
 0xf8f   : > { %v5647_v55 = vmul.f32 0.7978846, %v5630_v49  ;;  %v5631_v47 = vadd.f32 %v5614_v56, %v5520_v31  ;;  %v5562_v56 = vmul.f32 0.5, %v10543_v3 }
 0xf90   : > { %v5524_v0 = vpop.f32.mrb[236].mxu1 }
 0xf91   : > { %v10551_v25 = vadd.f32 %v10523_v8, %v5524_v0  ;;  %v6601_v58 = vpop.f32.mrb[237].mxu1  ;;  %7250 = vtanh.f32 %v5647_v55  ;;  %v5648_v5 = vmul.f32 0.7978846, %v5631_v47 }
 0xf92   : > { %v5527_v17 = vpop.f32.mrb[238].mxu1 }
 0xf93   : > { %v5581_v14 = vmul.f32 %v10551_v25, %v10551_v25  ;;  %v10556_v35 = vadd.f32 %v10523_v8, %v5527_v17  ;;  %v6602_v4 = vpop.f32.mrb[239].mxu1  ;;  %v7247_v19 = vpop.eup %7246  ;;  %7252 = vtanh.f32 %v5648_v5  ;;  %v5563_v17 = vmul.f32 0.5, %v5520_v31 }
 0xf94   : > { %v5679_v1 = vadd.f32 1.0, %v7247_v19 }
 0xf95   : > { %v5598_v57 = vmul.f32 %v5581_v14, %v10551_v25  ;;  %v5582_v50 = vmul.f32 %v10556_v35, %v10556_v35  ;;  %v7249_v24 = vpop.eup %7248 }
 0xf96   : > { %v5680_v59 = vadd.f32 1.0, %v7249_v24  ;;  %v5696_v40 = vmul.f32 %v5679_v1, %v5560_v32 }
 0xf97   : > { %v5615_v42 = vmul.f32 0.044715, %v5598_v57  ;;  %v5599_v6 = vmul.f32 %v5582_v50, %v10556_v35 }
 0xf98   : > { %v5532_v34 = vpop.f32.mrb[240].mxu1  ;;  %v5697_v44 = vmul.f32 %v5680_v59, %v5561_v33 }
 0xf99   : > { %v5632_v60 = vadd.f32 %v5615_v42, %v10551_v25  ;;  %v5616_v51 = vmul.f32 0.044715, %v5599_v6  ;;  %v6605_v21 = vpop.f32.mrb[241].mxu1  ;;  %v10564_v7 = vadd.f32 %v10523_v8, %v5532_v34 }
 0xf9a   : > { %v5535_v46 = vpop.f32.mrb[242].mxu1  ;;  %v5710_v15 = vpack.c.bf16 %v5697_v44, %v5696_v40 }
 0xf9b   : > { %v5649_v36 = vmul.f32 0.7978846, %v5632_v60  ;;  %v5633_v28 = vadd.f32 %v5616_v51, %v10556_v35  ;;  %v10568_v37 = vadd.f32 %v10523_v8, %v5535_v46  ;;  %v6606_v29 = vpop.f32.mrb[243].mxu1  ;;  %v5583_v18 = vmul.f32 %v10564_v7, %v10564_v7  ;;  %v7251_v10 = vpop.eup %7250 }
 0xf9c   : > { %6636 = vmatmul.mubr.msk.bf16.gmra.mrb[8].mxu0 %vm5755_vm10, %v5710_v15  ;;  %v5681_v41 = vadd.f32 1.0, %v7251_v10  ;;  %v5564_v29 = vmul.f32 0.5, %v10551_v25 }
 0xf9d   : > { %7254 = vtanh.f32 %v5649_v36  ;;  %v5650_v11 = vmul.f32 0.7978846, %v5633_v28  ;;  %v5600_v27 = vmul.f32 %v5583_v18, %v10564_v7  ;;  %v5584_v16 = vmul.f32 %v10568_v37, %v10568_v37  ;;  %6639 = vmatprep.mubr.msk.bf16.mxu0 %vm7329_vm1, %v11063_v54  ;;  %v7253_v0 = vpop.eup %7252 }
 0xf9e   : > { %v5682_v47 = vadd.f32 1.0, %v7253_v0  ;;  %v5698_v1 = vmul.f32 %v5681_v41, %v5562_v56  ;;  %v5565_v18 = vmul.f32 0.5, %v10556_v35 }
 0xf9f   : > { %7256 = vtanh.f32 %v5650_v11  ;;  %v5617_v9 = vmul.f32 0.044715, %v5600_v27  ;;  %v5601_v38 = vmul.f32 %v5584_v16, %v10568_v37 }
 0xfa0   : > { %v5540_v49 = vpop.f32.mrb[244].mxu1  ;;  %v5699_v42 = vmul.f32 %v5682_v47, %v5563_v17  ;;  %v5566_v47 = vmul.f32 0.5, %v10564_v7 }
 0xfa1   : > { %v10581_v58 = vadd.f32 %v10523_v8, %v5540_v49  ;;  %v6609_v55 = vpop.f32.mrb[245].mxu1  ;;  %v5634_v14 = vadd.f32 %v5617_v9, %v10564_v7  ;;  %v5618_v4 = vmul.f32 0.044715, %v5601_v38 }
 0xfa2   : > { %v5543_v5 = vpop.f32.mrb[246].mxu1  ;;  %v5711_v31 = vpack.c.bf16 %v5699_v42, %v5698_v1 }
 0xfa3   : > { %v5585_v57 = vmul.f32 %v10581_v58, %v10581_v58  ;;  %v5544_v50 = vadd.f32 %v10523_v8, %v5543_v5  ;;  %v6610_v19 = vpop.f32.mrb[247].mxu1  ;;  %v5651_v6 = vmul.f32 0.7978846, %v5634_v14  ;;  %v5635_v3 = vadd.f32 %v5618_v4, %v10568_v37 }
 0xfa4   : > { %6640 = vmatmul.mubr.msk.bf16.gmra.mrb[12].mxu0 %vm5755_vm10, %v5711_v31  ;;  %v5567_v14 = vmul.f32 0.5, %v10568_v37 }
 0xfa5   : > { %v5602_v24 = vmul.f32 %v5585_v57, %v10581_v58  ;;  %v5586_v32 = vmul.f32 %v5544_v50, %v5544_v50  ;;  %7258 = vtanh.f32 %v5651_v6  ;;  %v5652_v34 = vmul.f32 0.7978846, %v5635_v3  ;;  %6643 = vmatprep.mubr.msk.bf16.mxu0 %vm7329_vm1, %v11063_v54 }
 0xfa7   : > { %v7255_v33 = vpop.eup %7254  ;;  %v5619_v59 = vmul.f32 0.044715, %v5602_v24  ;;  %v5603_v60 = vmul.f32 %v5586_v32, %v5544_v50  ;;  %7260 = vtanh.f32 %v5652_v34  ;;  %v5568_v24 = vmul.f32 0.5, %v10581_v58 }
 0xfa8   : > { %v5683_v51 = vadd.f32 1.0, %v7255_v33  ;;  %v5548_v21 = vpop.f32.mrb[248].mxu1  ;;  %v5569_v32 = vmul.f32 0.5, %v5544_v50 }
 0xfa9   : > { %v7257_v40 = vpop.eup %7256  ;;  %v5636_v46 = vadd.f32 %v5619_v59, %v10581_v58  ;;  %v5620_v44 = vmul.f32 0.044715, %v5603_v60  ;;  %v5549_v36 = vadd.f32 %v10523_v8, %v5548_v21  ;;  %v6613_v28 = vpop.f32.mrb[249].mxu1  ;;  %v10612_v58 = vld [vmem:[%s10732_s12] ss:$0 sm:$0xff] }
 0xfaa   : > { %v5684_v15 = vadd.f32 1.0, %v7257_v40  ;;  %v5551_v11 = vpop.f32.mrb[250].mxu1  ;;  %v5700_v9 = vmul.f32 %v5683_v51, %v5564_v29 }
 0xfab   : > { %v5653_v10 = vmul.f32 0.7978846, %v5636_v46  ;;  %v5637_v27 = vadd.f32 %v5620_v44, %v5544_v50  ;;  %v5587_v16 = vmul.f32 %v5549_v36, %v5549_v36  ;;  %v6614_v41 = vpop.f32.mrb[251].mxu1  ;;  %v5570_v60 = vmul.f32 0.5, %v5549_v36 }
 0xfac   : > { %v5701_v38 = vmul.f32 %v5684_v15, %v5565_v18 }
 0xfad   : > { %7262 = vtanh.f32 %v5653_v10  ;;  %v5654_v49 = vmul.f32 0.7978846, %v5637_v27  ;;  %v5604_v0 = vmul.f32 %v5587_v16, %v5549_v36 }
 0xfae   : > { %v5712_v8 = vpack.c.bf16 %v5701_v38, %v5700_v9 }
 0xfaf   : > { %7264 = vtanh.f32 %v5654_v49  ;;  %v5621_v56 = vmul.f32 0.044715, %v5604_v0  ;;  %v7259_v55 = vpop.eup %7258 }
 0xfb0   : > { %6644 = vmatmul.mubr.msk.bf16.gmra.mrb[16].mxu0 %vm5755_vm10, %v5712_v8  ;;  %v5685_v25 = vadd.f32 1.0, %v7259_v55 }
 0xfb1   : > { %v5638_v17 = vadd.f32 %v5621_v56, %v5549_v36  ;;  %6647 = vmatprep.mubr.msk.bf16.mxu0 %vm7329_vm1, %v11063_v54  ;;  %v7261_v35 = vpop.eup %7260 }
 0xfb2   : > { %v5686_v4 = vadd.f32 1.0, %v7261_v35  ;;  %v5702_v57 = vmul.f32 %v5685_v25, %v5566_v47 }
 0xfb3   : > { %v5655_v5 = vmul.f32 0.7978846, %v5638_v17 }
 0xfb4   : > { %v5703_v19 = vmul.f32 %v5686_v4, %v5567_v14 }
 0xfb5   : > { %7266 = vtanh.f32 %v5655_v5 }
 0xfb6   : > { %v5713_v42 = vpack.c.bf16 %v5703_v19, %v5702_v57 }
 0xfb7   : > { %v7263_v1 = vpop.eup %7262 }
 0xfb8   : > { %v5687_v6 = vadd.f32 1.0, %v7263_v1  ;;  %6648 = vmatmul.mubr.msk.bf16.gmra.mrb[20].mxu0 %vm5755_vm10, %v5713_v42 }
 0xfb9   : > { %v7265_v3 = vpop.eup %7264  ;;  %6651 = vmatprep.mubr.msk.bf16.mxu0 %vm7329_vm1, %v11063_v54 }
 0xfba   : > { %v5688_v31 = vadd.f32 1.0, %v7265_v3  ;;  %v5704_v7 = vmul.f32 %v5687_v6, %v5568_v24 }
 0xfbc   : > { %v5705_v37 = vmul.f32 %v5688_v31, %v5569_v32 }
 0xfbe   : > { %v5714_v34 = vpack.c.bf16 %v5705_v37, %v5704_v7 }
 0xfbf   : > { %v7267_v33 = vpop.eup %7266 }
 0xfc0   : > { %v5689_v59 = vadd.f32 1.0, %v7267_v33  ;;  %6652 = vmatmul.mubr.msk.bf16.gmra.mrb[24].mxu0 %vm5755_vm10, %v5714_v34 }
 0xfc1   : > { %6655 = vmatprep.mubr.msk.bf16.mxu0 %vm7329_vm1, %v11063_v54 }
 0xfc2   : > { %v5706_v51 = vmul.f32 %v5689_v59, %v5570_v60 }
 0xfc4   : > { %v5715_v21 = vpack.c.bf16 %v5706_v51, %v5706_v51 }
 0xfc8   : > { %6656 = vmatmul.mubr.msk.bf16.gmra.mrb[28].mxu0 %vm5755_vm10, %v5715_v21 }
0x103e   : > { %v5817_v50 = vpop.f32.mrb[252].mxu0 }
0x103f   : > { %v5818_v40 = vadd.f32 %v10612_v58, %v5817_v50  ;;  %v6625_v46 = vpop.f32.mrb[253].mxu0 }
0x1040   : > { %v5820_v44 = vpop.f32.mrb[254].mxu0 }
0x1041   : > { %v5904_v36 = vmul.f32 %v5818_v40, %v5818_v40  ;;  %v5821_v28 = vadd.f32 %v10612_v58, %v5820_v44  ;;  %v6626_v29 = vpop.f32.mrb[255].mxu0  ;;  %v5887_v59 = vmul.f32 0.5, %v5818_v40 }
0x1043   : > { %v5921_v18 = vmul.f32 %v5904_v36, %v5818_v40  ;;  %v5905_v54 = vmul.f32 %v5821_v28, %v5821_v28  ;;  %v5888_v44 = vmul.f32 0.5, %v5821_v28 }
0x1045   : > { %v5938_v15 = vmul.f32 0.044715, %v5921_v18  ;;  %v5922_v11 = vmul.f32 %v5905_v54, %v5821_v28 }
0x1046   : > { %v5825_v16 = vpop.f32.mrb[0].mxu0 }
0x1047   : > { %v5955_v10 = vadd.f32 %v5938_v15, %v5818_v40  ;;  %v5939_v27 = vmul.f32 0.044715, %v5922_v11  ;;  %v5826_v41 = vadd.f32 %v10612_v58, %v5825_v16  ;;  %v6629_v9 = vpop.f32.mrb[1].mxu0 }
0x1048   : > { %v5828_v0 = vpop.f32.mrb[2].mxu0 }
0x1049   : > { %v5972_v38 = vmul.f32 0.7978846, %v5955_v10  ;;  %v5956_v49 = vadd.f32 %v5939_v27, %v5821_v28  ;;  %v5906_v8 = vmul.f32 %v5826_v41, %v5826_v41  ;;  %v5829_v56 = vadd.f32 %v10612_v58, %v5828_v0  ;;  %v6630_v55 = vpop.f32.mrb[3].mxu0 }
0x104a   : > { %v5889_v16 = vmul.f32 0.5, %v5826_v41 }
0x104b   : > { %7268 = vtanh.f32 %v5972_v38  ;;  %v5973_v25 = vmul.f32 0.7978846, %v5956_v49  ;;  %v5923_v17 = vmul.f32 %v5906_v8, %v5826_v41  ;;  %v5907_v35 = vmul.f32 %v5829_v56, %v5829_v56 }
0x104d   : > { %7270 = vtanh.f32 %v5973_v25  ;;  %v5940_v47 = vmul.f32 0.044715, %v5923_v17  ;;  %v5924_v14 = vmul.f32 %v5907_v35, %v5829_v56 }
0x104e   : > { %v5833_v4 = vpop.f32.mrb[4].mxu0 }
0x104f   : > { %v5957_v5 = vadd.f32 %v5940_v47, %v5826_v41  ;;  %v5941_v57 = vmul.f32 0.044715, %v5924_v14  ;;  %v5834_v19 = vadd.f32 %v10612_v58, %v5833_v4  ;;  %v6633_v1 = vpop.f32.mrb[5].mxu0 }
0x1050   : > { %v5836_v42 = vpop.f32.mrb[6].mxu0 }
0x1051   : > { %v5974_v6 = vmul.f32 0.7978846, %v5957_v5  ;;  %v5958_v3 = vadd.f32 %v5941_v57, %v5829_v56  ;;  %v5908_v24 = vmul.f32 %v5834_v19, %v5834_v19  ;;  %v6634_v32 = vpop.f32.mrb[7].mxu0  ;;  %v5837_v31 = vadd.f32 %v10612_v58, %v5836_v42 }
0x1052   : > { %v5891_v17 = vmul.f32 0.5, %v5834_v19 }
0x1053   : > { %7272 = vtanh.f32 %v5974_v6  ;;  %v5975_v7 = vmul.f32 0.7978846, %v5958_v3  ;;  %v5925_v37 = vmul.f32 %v5908_v24, %v5834_v19  ;;  %v5909_v33 = vmul.f32 %v5837_v31, %v5837_v31 }
0x1054   : > { %v5892_v14 = vmul.f32 0.5, %v5837_v31 }
0x1055   : > { %v7269_v34 = vpop.eup %7268  ;;  %7274 = vtanh.f32 %v5975_v7  ;;  %v5942_v51 = vmul.f32 0.044715, %v5925_v37  ;;  %v5926_v50 = vmul.f32 %v5909_v33, %v5837_v31 }
0x1056   : > { %v6006_v60 = vadd.f32 1.0, %v7269_v34 }
0x1057   : > { %v7271_v21 = vpop.eup %7270  ;;  %v5959_v29 = vadd.f32 %v5942_v51, %v5834_v19  ;;  %v5943_v18 = vmul.f32 0.044715, %v5926_v50 }
0x1058   : > { %v6023_v46 = vmul.f32 %v6006_v60, %v5887_v59  ;;  %v6007_v36 = vadd.f32 1.0, %v7271_v21 }
0x1059   : > { %v5976_v15 = vmul.f32 0.7978846, %v5959_v29  ;;  %v5960_v11 = vadd.f32 %v5943_v18, %v5837_v31 }
0x105a   : > { %v6040_v40 = vadd.f32 %v6023_v46, %v10155_v23  ;;  %v6024_v54 = vmul.f32 %v6007_v36, %v5888_v44  ;;  %v5890_v23 = vmul.f32 0.5, %v5829_v56 }
0x105b   : > { %7276 = vtanh.f32 %v5976_v15  ;;  %v5977_v10 = vmul.f32 0.7978846, %v5960_v11 }
0x105c   : > { %6057 = vst.msk [vmem:[%s10625_s30] sm:$0xff] %vm984_vm0, %v6040_v40  ;;  %v6041_v28 = vadd.f32 %v6024_v54, %v10159_v43 }
0x105d   : > { %v7273_v27 = vpop.eup %7272  ;;  %7278 = vtanh.f32 %v5977_v10 }
0x105e   : > { %6058 = vst.msk [vmem:[%s10625_s30 + $0x8] sm:$0xff] %vm984_vm0, %v6041_v28  ;;  %v6008_v9 = vadd.f32 1.0, %v7273_v27 }
0x105f   : > { %v7275_v38 = vpop.eup %7274 }
0x1060   : > { %v6025_v49 = vmul.f32 %v6008_v9, %v5889_v16  ;;  %v6009_v0 = vadd.f32 1.0, %v7275_v38 }
0x1062   : > { %v6042_v8 = vadd.f32 %v6025_v49, %v10169_v13  ;;  %v6026_v55 = vmul.f32 %v6009_v0, %v5890_v23 }
0x1064   : > { %6059 = vst.msk [vmem:[%s10625_s30 + $0x10] sm:$0xff] %vm984_vm0, %v6042_v8  ;;  %v6043_v43 = vadd.f32 %v6026_v55, %v10173_v61 }
0x1065   : > { %v7277_v25 = vpop.eup %7276 }
0x1066   : > { %6060 = vst.msk [vmem:[%s10625_s30 + $0x18] sm:$0xff] %vm984_vm0, %v6043_v43  ;;  %v6010_v41 = vadd.f32 1.0, %v7277_v25 }
0x1067   : > { %v7279_v35 = vpop.eup %7278 }
0x1068   : > { %v6027_v47 = vmul.f32 %v6010_v41, %v5891_v17  ;;  %v6011_v4 = vadd.f32 1.0, %v7279_v35 }
0x106a   : > { %v6044_v56 = vadd.f32 %v6027_v47, %v10183_v39  ;;  %v6028_v5 = vmul.f32 %v6011_v4, %v5892_v14 }
0x106c   : > { %6061 = vst.msk [vmem:[%s10625_s30 + $0x20] sm:$0xff] %vm984_vm0, %v6044_v56  ;;  %v6045_v13 = vadd.f32 %v6028_v5, %v10187_v52 }
0x106e   : > { %6062 = vst.msk [vmem:[%s10625_s30 + $0x28] sm:$0xff] %vm984_vm0, %v6045_v13 }
0x106f   : > { %v5841_v57 = vpop.f32.mrb[8].mxu0 }
0x1070   : > { %v5842_v61 = vadd.f32 %v10612_v58, %v5841_v57  ;;  %v6637_v1 = vpop.f32.mrb[9].mxu0 }
0x1071   : > { %v5844_v42 = vpop.f32.mrb[10].mxu0 }
0x1072   : > { %v5910_v19 = vmul.f32 %v5842_v61, %v5842_v61  ;;  %v5845_v6 = vadd.f32 %v10612_v58, %v5844_v42  ;;  %v6638_v3 = vpop.f32.mrb[11].mxu0  ;;  %v5893_v25 = vmul.f32 0.5, %v5842_v61 }
0x1074   : > { %v5927_v24 = vmul.f32 %v5910_v19, %v5842_v61  ;;  %v5911_v32 = vmul.f32 %v5845_v6, %v5845_v6  ;;  %v5894_v4 = vmul.f32 0.5, %v5845_v6 }
0x1076   : > { %v5944_v31 = vmul.f32 0.044715, %v5927_v24  ;;  %v5928_v39 = vmul.f32 %v5911_v32, %v5845_v6 }
0x1077   : > { %v5849_v34 = vpop.f32.mrb[12].mxu0 }
0x1078   : > { %v5961_v7 = vadd.f32 %v5944_v31, %v5842_v61  ;;  %v5945_v37 = vmul.f32 0.044715, %v5928_v39  ;;  %v5850_v52 = vadd.f32 %v10612_v58, %v5849_v34  ;;  %v6641_v33 = vpop.f32.mrb[13].mxu0 }
0x1079   : > { %v5852_v51 = vpop.f32.mrb[14].mxu0 }
0x107a   : > { %v5978_v59 = vmul.f32 0.7978846, %v5961_v7  ;;  %v5962_v60 = vadd.f32 %v5945_v37, %v5845_v6  ;;  %v5912_v21 = vmul.f32 %v5850_v52, %v5850_v52  ;;  %v5853_v50 = vadd.f32 %v10612_v58, %v5852_v51  ;;  %v6642_v46 = vpop.f32.mrb[15].mxu0 }
0x107c   : > { %7280 = vtanh.f32 %v5978_v59  ;;  %v5979_v44 = vmul.f32 0.7978846, %v5962_v60  ;;  %v5929_v36 = vmul.f32 %v5912_v21, %v5850_v52  ;;  %v5913_v29 = vmul.f32 %v5853_v50, %v5853_v50 }
0x107d   : > { %v5895_v59 = vmul.f32 0.5, %v5850_v52 }
0x107e   : > { %7282 = vtanh.f32 %v5979_v44  ;;  %v5946_v18 = vmul.f32 0.044715, %v5929_v36  ;;  %v5930_v40 = vmul.f32 %v5913_v29, %v5853_v50  ;;  %v5896_v44 = vmul.f32 0.5, %v5853_v50 }
0x1080   : > { %v5963_v15 = vadd.f32 %v5946_v18, %v5850_v52  ;;  %v5947_v11 = vmul.f32 0.044715, %v5930_v40 }
0x1082   : > { %v5980_v16 = vmul.f32 0.7978846, %v5963_v15  ;;  %v5964_v9 = vadd.f32 %v5947_v11, %v5853_v50 }
0x1083   : > { %v5857_v54 = vpop.f32.mrb[16].mxu0 }
0x1084   : > { %v10650_v28 = vadd.f32 %v10612_v58, %v5857_v54  ;;  %v6645_v10 = vpop.f32.mrb[17].mxu0  ;;  %7284 = vtanh.f32 %v5980_v16  ;;  %v5981_v0 = vmul.f32 0.7978846, %v5964_v9 }
0x1085   : > { %v5860_v27 = vpop.f32.mrb[18].mxu0 }
0x1086   : > { %v5914_v38 = vmul.f32 %v10650_v28, %v10650_v28  ;;  %v6646_v49 = vpop.f32.mrb[19].mxu0  ;;  %v10655_v23 = vadd.f32 %v10612_v58, %v5860_v27  ;;  %v7281_v55 = vpop.eup %7280  ;;  %7286 = vtanh.f32 %v5981_v0 }
0x1087   : > { %v6012_v17 = vadd.f32 1.0, %v7281_v55 }
0x1088   : > { %v5931_v8 = vmul.f32 %v5914_v38, %v10650_v28  ;;  %v5915_v43 = vmul.f32 %v10655_v23, %v10655_v23  ;;  %v7283_v35 = vpop.eup %7282 }
0x1089   : > { %v6029_v14 = vmul.f32 %v6012_v17, %v5893_v25  ;;  %v6013_v56 = vadd.f32 1.0, %v7283_v35 }
0x108a   : > { %v5948_v41 = vmul.f32 0.044715, %v5931_v8  ;;  %v5932_v47 = vmul.f32 %v5915_v43, %v10655_v23 }
0x108b   : > { %v5865_v13 = vpop.f32.mrb[20].mxu0  ;;  %v6046_v61 = vadd.f32 %v6029_v14, %v10197_v48  ;;  %v6030_v19 = vmul.f32 %v6013_v56, %v5894_v4  ;;  %v5898_v56 = vmul.f32 0.5, %v10655_v23 }
0x108c   : > { %v5965_v5 = vadd.f32 %v5948_v41, %v10650_v28  ;;  %v5949_v57 = vmul.f32 0.044715, %v5932_v47  ;;  %v10663_v1 = vadd.f32 %v10612_v58, %v5865_v13  ;;  %v6649_v42 = vpop.f32.mrb[21].mxu0 }
0x108d   : > { %v5868_v24 = vpop.f32.mrb[22].mxu0  ;;  %6063 = vst.msk [vmem:[%s10625_s30 + $0x30] sm:$0xff] %vm984_vm0, %v6046_v61  ;;  %v6047_v7 = vadd.f32 %v6030_v19, %v10201_v30 }
0x108e   : > { %v5982_v3 = vmul.f32 0.7978846, %v5965_v5  ;;  %v5966_v32 = vadd.f32 %v5949_v57, %v10655_v23  ;;  %v5916_v6 = vmul.f32 %v10663_v1, %v10663_v1  ;;  %v10670_v31 = vadd.f32 %v10612_v58, %v5868_v24  ;;  %v6650_v39 = vpop.f32.mrb[23].mxu0  ;;  %v7285_v33 = vpop.eup %7284 }
0x108f   : > { %6064 = vst.msk [vmem:[%s10625_s30 + $0x38] sm:$0xff] %vm984_vm0, %v6047_v7  ;;  %v6014_v60 = vadd.f32 1.0, %v7285_v33 }
0x1090   : > { %7288 = vtanh.f32 %v5982_v3  ;;  %v5983_v37 = vmul.f32 0.7978846, %v5966_v32  ;;  %v5933_v48 = vmul.f32 %v5916_v6, %v10663_v1  ;;  %v5917_v34 = vmul.f32 %v10670_v31, %v10670_v31  ;;  %v7287_v46 = vpop.eup %7286 }
0x1091   : > { %v6031_v36 = vmul.f32 %v6014_v60, %v5895_v59  ;;  %v6015_v29 = vadd.f32 1.0, %v7287_v46  ;;  %v5900_v59 = vmul.f32 0.5, %v10670_v31 }
0x1092   : > { %7290 = vtanh.f32 %v5983_v37  ;;  %v5950_v51 = vmul.f32 0.044715, %v5933_v48  ;;  %v5934_v21 = vmul.f32 %v5917_v34, %v10670_v31 }
0x1093   : > { %v5873_v30 = vpop.f32.mrb[24].mxu0  ;;  %v6048_v52 = vadd.f32 %v6031_v36, %v10211_v20  ;;  %v6032_v10 = vmul.f32 %v6015_v29, %v5896_v44  ;;  %v5897_v20 = vmul.f32 0.5, %v10650_v28 }
0x1094   : > { %v5967_v18 = vadd.f32 %v5950_v51, %v10663_v1  ;;  %v5951_v40 = vmul.f32 0.044715, %v5934_v21  ;;  %v6653_v54 = vpop.f32.mrb[25].mxu0  ;;  %v5874_v15 = vadd.f32 %v10612_v58, %v5873_v30 }
0x1095   : > { %v5876_v11 = vpop.f32.mrb[26].mxu0  ;;  %6065 = vst.msk [vmem:[%s10625_s30 + $0x40] sm:$0xff] %vm984_vm0, %v6048_v52  ;;  %v6049_v49 = vadd.f32 %v6032_v10, %v10215_v12 }
0x1096   : > { %v5984_v27 = vmul.f32 0.7978846, %v5967_v18  ;;  %v5968_v16 = vadd.f32 %v5951_v40, %v10670_v31  ;;  %v6654_v9 = vpop.f32.mrb[27].mxu0  ;;  %v5918_v50 = vmul.f32 %v5874_v15, %v5874_v15  ;;  %v5877_v38 = vadd.f32 %v10612_v58, %v5876_v11 }
0x1097   : > { %6066 = vst.msk [vmem:[%s10625_s30 + $0x48] sm:$0xff] %vm984_vm0, %v6049_v49  ;;  %v5901_v44 = vmul.f32 0.5, %v5874_v15 }
0x1098   : > { %7292 = vtanh.f32 %v5984_v27  ;;  %v5985_v0 = vmul.f32 0.7978846, %v5968_v16  ;;  %v5935_v55 = vmul.f32 %v5918_v50, %v5874_v15  ;;  %v5919_v43 = vmul.f32 %v5877_v38, %v5877_v38 }
0x1099   : > { %v5902_v29 = vmul.f32 0.5, %v5877_v38 }
0x109a   : > { %v7289_v8 = vpop.eup %7288  ;;  %7294 = vtanh.f32 %v5985_v0  ;;  %v5952_v17 = vmul.f32 0.044715, %v5935_v55  ;;  %v5936_v41 = vmul.f32 %v5919_v43, %v5877_v38 }
0x109b   : > { %v6016_v25 = vadd.f32 1.0, %v7289_v8  ;;  %v5881_v35 = vpop.f32.mrb[28].mxu0 }
0x109c   : > { %v7291_v47 = vpop.eup %7290  ;;  %v5882_v4 = vadd.f32 %v10612_v58, %v5881_v35  ;;  %v6657_v12 = vpop.f32.mrb[29].mxu0  ;;  %v5969_v13 = vadd.f32 %v5952_v17, %v5874_v15  ;;  %v5953_v57 = vmul.f32 0.044715, %v5936_v41 }
0x109d   : > { %v6033_v14 = vmul.f32 %v6016_v25, %v5897_v20  ;;  %v6017_v5 = vadd.f32 1.0, %v7291_v47  ;;  %v5884_v42 = vpop.f32.mrb[30].mxu0 }
0x109e   : > { %v5920_v61 = vmul.f32 %v5882_v4, %v5882_v4  ;;  %v6658_v19 = vpop.f32.mrb[31].mxu0  ;;  %v5986_v24 = vmul.f32 0.7978846, %v5969_v13  ;;  %v5970_v32 = vadd.f32 %v5953_v57, %v5877_v38 }
0x109f   : > { %v6050_v28 = vadd.f32 %v6033_v14, %v10225_v53  ;;  %v6034_v3 = vmul.f32 %v6017_v5, %v5898_v56  ;;  %v5899_v53 = vmul.f32 0.5, %v10663_v1 }
0x10a0   : > { %v5937_v6 = vmul.f32 %v5920_v61, %v5882_v4  ;;  %7296 = vtanh.f32 %v5986_v24  ;;  %v5987_v39 = vmul.f32 0.7978846, %v5970_v32 }
0x10a1   : > { %6067 = vst.msk [vmem:[%s10625_s30 + $0x50] sm:$0xff] %vm984_vm0, %v6050_v28  ;;  %v6051_v58 = vadd.f32 %v6034_v3, %v10229_v45 }
0x10a2   : > { %v7293_v23 = vpop.eup %7292  ;;  %v5954_v7 = vmul.f32 0.044715, %v5937_v6  ;;  %7298 = vtanh.f32 %v5987_v39 }
0x10a3   : > { %6068 = vst.msk [vmem:[%s10625_s30 + $0x58] sm:$0xff] %vm984_vm0, %v6051_v58  ;;  %v6018_v37 = vadd.f32 1.0, %v7293_v23 }
0x10a4   : > { %v7295_v48 = vpop.eup %7294  ;;  %v5971_v34 = vadd.f32 %v5954_v7, %v5882_v4 }
0x10a5   : > { %v6035_v33 = vmul.f32 %v6018_v37, %v5899_v53  ;;  %v6019_v60 = vadd.f32 1.0, %v7295_v48 }
0x10a6   : > { %v5988_v51 = vmul.f32 0.7978846, %v5971_v34 }
0x10a7   : > { %v6052_v45 = vadd.f32 %v6035_v33, %v10239_v26  ;;  %v6036_v21 = vmul.f32 %v6019_v60, %v5900_v59 }
0x10a8   : > { %7300 = vtanh.f32 %v5988_v51 }
0x10a9   : > { %6069 = vst.msk [vmem:[%s10625_s30 + $0x60] sm:$0xff] %vm984_vm0, %v6052_v45  ;;  %v6053_v46 = vadd.f32 %v6036_v21, %v10243_v22  ;;  %v5903_v22 = vmul.f32 0.5, %v5882_v4 }
0x10aa   : > { %v7297_v1 = vpop.eup %7296 }
0x10ab   : > { %6070 = vst.msk [vmem:[%s10625_s30 + $0x68] sm:$0xff] %vm984_vm0, %v6053_v46  ;;  %v6020_v30 = vadd.f32 1.0, %v7297_v1 }
0x10ac   : > { %v7299_v36 = vpop.eup %7298 }
0x10ad   : > { %v6037_v31 = vmul.f32 %v6020_v30, %v5901_v44  ;;  %v6021_v18 = vadd.f32 1.0, %v7299_v36 }
0x10af   : > { %v6054_v26 = vadd.f32 %v6037_v31, %v10253_v63  ;;  %v6038_v40 = vmul.f32 %v6021_v18, %v5902_v29 }
0x10b1   : > { %6071 = vst.msk [vmem:[%s10625_s30 + $0x70] sm:$0xff] %vm984_vm0, %v6054_v26  ;;  %v6055_v11 = vadd.f32 %v6038_v40, %v10257_v2 }
0x10b2   : > { %v7301_v54 = vpop.eup %7300 }
0x10b3   : > { %v6022_v52 = vadd.f32 1.0, %v7301_v54  ;;  %6072 = vst.msk [vmem:[%s10625_s30 + $0x78] sm:$0xff] %vm984_vm0, %v6055_v11 }
0x10b5   : > { %v6039_v10 = vmul.f32 %v6022_v52, %v5903_v22 }
0x10b7   : > { %v6056_v15 = vadd.f32 %v6039_v10, %v10266_v62 }
0x10b9   : > { %6073 = vst.msk [vmem:[%s10625_s30 + $0x80] sm:$0xff] %vm984_vm0, %v6056_v15 }
0x10ba PF: > { %s23_s25 = sadd.s32 1, %s7325_s25  }
0x10bb   : > { %p20_p4 = scmp.ge.s32.totalorder %s23_s25, 4  }
0x10bd   :  { %22 = sbr.rel (!%p20_p4) target bundleno = 1 (0x1), region = 102 }

</bundles_post_ra>
